<compile_context>
chip_gen: v6e
topology: v6e:2x2x1
jax: 0.10.0
libtpu: 0.0.40
codegen_flags: <defaults>
</compile_context>

<pallas_src>
import numpy as np
import jax
import jax.numpy as jnp
from jax import lax
from jax.experimental import pallas as pl
from jax.experimental.pallas import tpu as pltpu

BN_EPS = 1e-5
NUM_CLASSES = 10
# (H, W, Cin, Cout) of each conv block; Linear(in_features=64) implies a 1x32x32 input.
LAYERS = ((32, 32, 1, 16), (16, 16, 16, 16), (8, 8, 16, 16), (4, 4, 16, 16))
_NL = len(LAYERS)
_CMAX = 16
_GUARD = 40  # >= (W+2)+1 of the widest layer (35): zero guard for every shifted 3x3 tap read


# ------------------------------ fused Pallas kernel ------------------------------

def _make_kernel(B):
    Lp = [(H + 2) * (W + 2) for (H, W, _, _) in LAYERS]
    N = [B * l for l in Lp]
    G = _GUARD

    def kernel(x_ref, w0, w1, w2, w3, g0, g1, g2, g3, be0, be1, be2, be3,
               m0, m1, m2, m3, sc0, sc1, sc2, e_ref, wl_ref, bl_ref,
               o_ref, xst, im2, zy, feat):
        w_refs = (w0, w1, w2, w3)
        g_refs = (g0, g1, g2, g3)
        b_refs = (be0, be1, be2, be3)
        m_refs = (m0, m1, m2, m3)
        s_refs = (sc0, sc1, sc2)

        # Left guard columns of the activation staging scratch are read by negative tap
        # shifts and never written by the pool scatter: zero them exactly once.
        xst[:, 0:G] = jnp.zeros((xst.shape[0], G), xst.dtype)

        v_last = None
        for l, (H, W, Cin, Cout) in enumerate(LAYERS):
            Wp = W + 2
            n = N[l]
            lp = Lp[l]

            # ---- Conv2d(3x3, pad=1); bias dropped (cancels under batch-stat BN) ----
            if Cin == 1:
                # Layer 1: K would only be 9 -> cheaper as 9 shifted broadcast-MACs on the
                # VPU in f32, read directly from the guard-padded input row.
                z = None
                for ky in range(3):
                    for kx in range(3):
                        d = (ky - 1) * Wp + (kx - 1)
                        zt = w_refs[l][ky * 3 + kx] * x_ref[0:1, G + d:G + d + n]
                        z = zt if z is None else z + zt
            else:
                # Re-zero the right guard band so shifted tap reads never see stale data.
                xst[0:Cin, G + n:G + n + G] = jnp.zeros((Cin, G), xst.dtype)
                # im2col: 9 shifted bf16 windows stacked on the contraction axis, then ONE
                # (Cout, 9*Cin) x (9*Cin, B*Lp) bf16 MXU matmul with f32 accumulation.
                for ky in range(3):
                    for kx in range(3):
                        t = ky * 3 + kx
                        d = (ky - 1) * Wp + (kx - 1)
                        im2[t * Cin:(t + 1) * Cin, 0:n] = xst[0:Cin, G + d:G + d + n]
                z = jnp.dot(w_refs[l][...], im2[0:9 * Cin, 0:n],
                            preferred_element_type=jnp.float32)        # (Cout, B*Lp) f32

            # Park the conv output in VMEM scratch (frees vregs across the BN reduction).
            zy[0:Cout, 0:n] = z
            zy[0:Cout, n:n + G] = jnp.zeros((Cout, G), jnp.float32)

            # ---- BatchNorm2d (training): masked, biased batch stats over valid pixels ----
            zv = zy[0:Cout, 0:n]
            valid = m_refs[l][...] > 0.5                                # (1, B*Lp)
            zm = jnp.where(valid, zv, 0.0)
            cnt = float(B * H * W)
            mean = jnp.sum(zm, axis=1, keepdims=True) / cnt             # (Cout, 1)
            var = jnp.sum(zm * zv, axis=1, keepdims=True) / cnt - mean * mean
            scale = g_refs[l][...] * lax.rsqrt(var + BN_EPS)
            shift = b_refs[l][...] - mean * scale

            # ---- ReLU, then MaxPool2d(2) via three shifted reads of the resident tile ----
            y = jnp.maximum(zv * scale + shift, 0.0)
            zy[0:Cout, 0:n] = y
            v = jnp.maximum(jnp.maximum(y, zy[0:Cout, 1:1 + n]),
                            jnp.maximum(zy[0:Cout, Wp:Wp + n],
                                        zy[0:Cout, Wp + 1:Wp + 1 + n]))
            zy[0:Cout, 0:n] = v                                         # pooled values resident

            if l + 1 < _NL:
                # bf16 0/1 scatter matmul: gathers each image's pooled pixels and drops them
                # into the next layer's zero-padded flat layout (pad lanes stay exactly 0).
                # TODO(synk): for large B, batch this repack instead of a per-image loop.
                lpn = Lp[l + 1]
                for b in range(B):
                    vb = zy[0:Cout, b * lp:(b + 1) * lp].astype(jnp.bfloat16)
                    nb = jnp.dot(vb, s_refs[l][...], preferred_element_type=jnp.float32)
                    xst[0:Cout, G + b * lpn:G + (b + 1) * lpn] = nb.astype(jnp.bfloat16)
            else:
                v_last = zy[0:Cout, 0:n]                                # (16, B*36) f32

        # ---- Flatten (NCHW order) + Linear(64 -> 10) epilogue ----
        # Four tiny gather matmuls assemble the (64, B) feature matrix, then ONE
        # (10, 64) x (64, B) GEMM + bias.
        C4 = LAYERS[-1][3]
        for k in range(4):
            feat[k * C4:(k + 1) * C4, :] = jnp.dot(v_last, e_ref[k],
                                                   preferred_element_type=jnp.float32)
        o_ref[...] = jnp.dot(wl_ref[...], feat[...],
                             preferred_element_type=jnp.float32) + bl_ref[...]

    return kernel


# ------------------------------ host-side constants ------------------------------

def _host_constants(B):
    """Valid-pixel masks, bf16 pool->next-layer scatter matrices, and the epilogue gather."""
    masks, sels = [], []
    for li, (H, W, _, _) in enumerate(LAYERS):
        Hp, Wp = H + 2, W + 2
        m = np.zeros((1, Hp * Wp), np.float32)
        for y in range(1, H + 1):
            m[0, y * Wp + 1:y * Wp + 1 + W] = 1.0
        masks.append(jnp.asarray(np.tile(m, (1, B))))
        if li + 1 < _NL:
            Hn, Wn = LAYERS[li + 1][0], LAYERS[li + 1][1]
            Wpn = Wn + 2
            S = np.zeros((Hp * Wp, (Hn + 2) * Wpn), np.float32)
            for yo in range(Hn):
                for xo in range(Wn):
                    S[(2 * yo + 1) * Wp + (2 * xo + 1), (yo + 1) * Wpn + (xo + 1)] = 1.0
            sels.append(jnp.asarray(S, dtype=jnp.bfloat16))
    # Epilogue gather: E[k, b*Lp4 + lane(k), b] = 1 selects pooled pixel k of image b.
    H4, W4, _, _ = LAYERS[-1]
    Wp4 = W4 + 2
    Lp4 = (H4 + 2) * Wp4
    E = np.zeros((4, B * Lp4, B), np.float32)
    for b in range(B):
        for yo in range(H4 // 2):
            for xo in range(W4 // 2):
                k = yo * (W4 // 2) + xo
                E[k, b * Lp4 + (2 * yo + 1) * Wp4 + (2 * xo + 1), b] = 1.0
    return masks, sels, jnp.asarray(E)


def classifier_forward(x_nchw, conv_params, wl, bl):
    """Forward pass of `Classifier` (training-mode BatchNorm) as ONE fused Pallas kernel."""
    B = int(x_nchw.shape[0])
    H0, W0, Cin0, _ = LAYERS[0]
    masks, sels, E = _host_constants(B)

    # Zero-pad each plane, flatten batch-major onto the lane axis and add lane guards:
    # (Cin0, GUARD + B*(H+2)*(W+2) + GUARD), so every shifted tap read is in-bounds and zero.
    xp = jnp.pad(x_nchw.astype(jnp.float32), ((0, 0), (0, 0), (1, 1), (1, 1)))
    x_flat = jnp.transpose(xp, (1, 0, 2, 3)).reshape(Cin0, B * (H0 + 2) * (W0 + 2))
    x_flat = jnp.pad(x_flat, ((0, 0), (_GUARD, _GUARD)))

    w_list, gammas, betas = [], [], []
    for (w, _b, g, be), (_, _, Cin, Cout) in zip(conv_params, LAYERS):
        # The conv bias `_b` is dropped on purpose: a per-channel constant added before
        # batch-statistic BatchNorm cancels exactly.
        if Cin == 1:
            wf = jnp.transpose(w, (2, 3, 0, 1)).reshape(9, Cout, 1).astype(jnp.float32)
        else:
            # Rows of the im2col matrix are ordered (tap, ci) -> weight columns t*Cin + ci.
            wf = jnp.transpose(w, (0, 2, 3, 1)).reshape(Cout, 9 * Cin).astype(jnp.bfloat16)
        w_list.append(wf)
        gammas.append(g.reshape(Cout, 1).astype(jnp.float32))
        betas.append(be.reshape(Cout, 1).astype(jnp.float32))

    C4 = LAYERS[-1][3]
    # Linear(64, 10): reorder columns from NCHW index c*4+k to k*16+c so the kernel can
    # assemble the (64, B) feature matrix directly from four (16, B) gathers.
    wl_re = jnp.transpose(wl.reshape(NUM_CLASSES, C4, 4), (0, 2, 1))
    wl_re = wl_re.reshape(NUM_CLASSES, 4 * C4).astype(jnp.float32)
    bl_col = bl.reshape(NUM_CLASSES, 1).astype(jnp.float32)

    N1 = B * (H0 + 2) * (W0 + 2)
    N2 = B * (LAYERS[1][0] + 2) * (LAYERS[1][1] + 2)

    out_t = pl.pallas_call(
        _make_kernel(B),
        out_shape=jax.ShapeDtypeStruct((NUM_CLASSES, B), jnp.float32),
        scratch_shapes=[
            pltpu.VMEM((_CMAX, _GUARD + N2 + _GUARD), jnp.bfloat16),   # bf16 activation staging
            pltpu.VMEM((9 * _CMAX, N2), jnp.bfloat16),                 # im2col (layers 2-4)
            pltpu.VMEM((_CMAX, N1 + _GUARD), jnp.float32),             # conv/relu/pool tile
            pltpu.VMEM((4 * C4, B), jnp.float32),                      # (64, B) features
        ],
    )(x_flat, *w_list, *gammas, *betas, *masks, *sels, E, wl_re, bl_col)
    return out_t.T


# --------------------------- reference (plain JAX / XLA) ---------------------------

def reference_forward(x_nchw, conv_params, wl, bl):
    x = x_nchw
    for (w, b, g, beta) in conv_params:
        x = lax.conv_general_dilated(x, w, (1, 1), ((1, 1), (1, 1)),
                                     dimension_numbers=('NCHW', 'OIHW', 'NCHW'))
        x = x + b.reshape(1, -1, 1, 1)
        mean = jnp.mean(x, axis=(0, 2, 3), keepdims=True)
        var = jnp.mean((x - mean) ** 2, axis=(0, 2, 3), keepdims=True)
        x = (x - mean) * lax.rsqrt(var + BN_EPS)
        x = x * g.reshape(1, -1, 1, 1) + beta.reshape(1, -1, 1, 1)
        x = jnp.maximum(x, 0.0)
        x = lax.reduce_window(x, -jnp.inf, lax.max, (1, 1, 2, 2), (1, 1, 2, 2), 'VALID')
    feat = x.reshape(x.shape[0], -1)
    return feat @ wl.T + bl


# ----------------------------------- parameters ------------------------------------

def init_params(key):
    conv_params = []
    keys = jax.random.split(key, len(LAYERS) + 1)
    for i, (_, _, cin, cout) in enumerate(LAYERS):
        wk, bk, gk, bek = jax.random.split(keys[i], 4)
        bound = 1.0 / np.sqrt(cin * 9)
        w = jax.random.uniform(wk, (cout, cin, 3, 3), jnp.float32, -bound, bound)
        b = jax.random.uniform(bk, (cout,), jnp.float32, -bound, bound)
        gamma = 1.0 + 0.1 * jax.random.normal(gk, (cout,), jnp.float32)
        beta = 0.1 * jax.random.normal(bek, (cout,), jnp.float32)
        conv_params.append((w, b, gamma, beta))
    lk1, lk2 = jax.random.split(keys[-1])
    bound = 1.0 / np.sqrt(64)
    wl = jax.random.uniform(lk1, (NUM_CLASSES, 64), jnp.float32, -bound, bound)
    bl = jax.random.uniform(lk2, (NUM_CLASSES,), jnp.float32, -bound, bound)
    return conv_params, wl, bl


# -------------------------------------- main ----------------------------------------

if __name__ == "__main__":
    key = jax.random.PRNGKey(0)
    pkey, xkey = jax.random.split(key)
    conv_params, wl, bl = init_params(pkey)

    # Linear(in_features=64) with four stride-2 pools and 16 channels implies 1x32x32 input.
    x = jax.random.normal(xkey, (2, 1, 32, 32), jnp.float32)

    fwd = jax.jit(classifier_forward)
    out = jax.block_until_ready(fwd(x, conv_params, wl, bl))
    ref = jax.block_until_ready(reference_forward(x, conv_params, wl, bl))

    assert out.shape == (2, NUM_CLASSES)
    assert np.all(np.isfinite(np.asarray(out)))
    assert np.allclose(np.asarray(out), np.asarray(ref), rtol=5e-2, atol=5e-2)

    print("KERNEL_OK")
</pallas_src>

<mosaic_0001>
module attributes {stable_mosaic.version = 11 : i64} {
  func.func @kernel(%arg0: memref<1x2392xf32, #tpu.memory_space<vmem>>, %arg1: memref<9x16x1xf32, #tpu.memory_space<vmem>>, %arg2: memref<16x144xbf16, #tpu.memory_space<vmem>>, %arg3: memref<16x144xbf16, #tpu.memory_space<vmem>>, %arg4: memref<16x144xbf16, #tpu.memory_space<vmem>>, %arg5: memref<16x1xf32, #tpu.memory_space<vmem>>, %arg6: memref<16x1xf32, #tpu.memory_space<vmem>>, %arg7: memref<16x1xf32, #tpu.memory_space<vmem>>, %arg8: memref<16x1xf32, #tpu.memory_space<vmem>>, %arg9: memref<16x1xf32, #tpu.memory_space<vmem>>, %arg10: memref<16x1xf32, #tpu.memory_space<vmem>>, %arg11: memref<16x1xf32, #tpu.memory_space<vmem>>, %arg12: memref<16x1xf32, #tpu.memory_space<vmem>>, %arg13: memref<1x2312xf32, #tpu.memory_space<vmem>>, %arg14: memref<1x648xf32, #tpu.memory_space<vmem>>, %arg15: memref<1x200xf32, #tpu.memory_space<vmem>>, %arg16: memref<1x72xf32, #tpu.memory_space<vmem>>, %arg17: memref<1156x324xbf16, #tpu.memory_space<vmem>>, %arg18: memref<324x100xbf16, #tpu.memory_space<vmem>>, %arg19: memref<100x36xbf16, #tpu.memory_space<vmem>>, %arg20: memref<4x72x2xf32, #tpu.memory_space<vmem>>, %arg21: memref<10x64xf32, #tpu.memory_space<vmem>>, %arg22: memref<10x1xf32, #tpu.memory_space<vmem>>, %arg23: memref<10x2xf32, #tpu.memory_space<vmem>>, %arg24: memref<16x728xbf16, #tpu.memory_space<vmem>>, %arg25: memref<144x648xbf16, #tpu.memory_space<vmem>>, %arg26: memref<16x2352xf32, #tpu.memory_space<vmem>>, %arg27: memref<64x2xf32, #tpu.memory_space<vmem>>) attributes {dimension_semantics = [], scalar_prefetch = 0 : i64, scratch_operands = 4 : i64, tpu.core_type = #tpu.core_type<tc>} {
    %cst = arith.constant 0.000000e+00 : bf16
    %0 = vector.broadcast %cst : bf16 to vector<16x40xbf16>
    %c0 = arith.constant 0 : index
    %c0_0 = arith.constant 0 : index
    %1 = vector.load %arg24[%c0, %c0_0] : memref<16x728xbf16, #tpu.memory_space<vmem>>, vector<16x40xbf16>
    tpu.vector_store %arg24[%c0, %c0_0], %0 {strides = array<i32>} : memref<16x728xbf16, #tpu.memory_space<vmem>>, vector<16x40xbf16>,
    %c0_1 = arith.constant 0 : index
    %c0_2 = arith.constant 0 : index
    %c0_3 = arith.constant 0 : index
    %2 = vector.load %arg1[%c0_1, %c0_2, %c0_3] : memref<9x16x1xf32, #tpu.memory_space<vmem>>, vector<1x16x1xf32>
    %3 = vector.shape_cast %2 : vector<1x16x1xf32> to vector<16x1xf32>
    %c0_4 = arith.constant 0 : index
    %c5 = arith.constant 5 : index
    %4 = vector.load %arg0[%c0_4, %c5] : memref<1x2392xf32, #tpu.memory_space<vmem>>, vector<1x2312xf32>
    %5 = vector.broadcast %3 : vector<16x1xf32> to vector<16x2312xf32>
    %6 = vector.broadcast %4 : vector<1x2312xf32> to vector<16x2312xf32>
    %7 = arith.mulf %5, %6 : vector<16x2312xf32>
    %c1 = arith.constant 1 : index
    %c0_5 = arith.constant 0 : index
    %c0_6 = arith.constant 0 : index
    %8 = vector.load %arg1[%c1, %c0_5, %c0_6] : memref<9x16x1xf32, #tpu.memory_space<vmem>>, vector<1x16x1xf32>
    %9 = vector.shape_cast %8 : vector<1x16x1xf32> to vector<16x1xf32>
    %c0_7 = arith.constant 0 : index
    %c6 = arith.constant 6 : index
    %10 = vector.load %arg0[%c0_7, %c6] : memref<1x2392xf32, #tpu.memory_space<vmem>>, vector<1x2312xf32>
    %11 = vector.broadcast %9 : vector<16x1xf32> to vector<16x2312xf32>
    %12 = vector.broadcast %10 : vector<1x2312xf32> to vector<16x2312xf32>
    %13 = arith.mulf %11, %12 : vector<16x2312xf32>
    %14 = arith.addf %7, %13 : vector<16x2312xf32>
    %c2 = arith.constant 2 : index
    %c0_8 = arith.constant 0 : index
    %c0_9 = arith.constant 0 : index
    %15 = vector.load %arg1[%c2, %c0_8, %c0_9] : memref<9x16x1xf32, #tpu.memory_space<vmem>>, vector<1x16x1xf32>
    %16 = vector.shape_cast %15 : vector<1x16x1xf32> to vector<16x1xf32>
    %c0_10 = arith.constant 0 : index
    %c7 = arith.constant 7 : index
    %17 = vector.load %arg0[%c0_10, %c7] : memref<1x2392xf32, #tpu.memory_space<vmem>>, vector<1x2312xf32>
    %18 = vector.broadcast %16 : vector<16x1xf32> to vector<16x2312xf32>
    %19 = vector.broadcast %17 : vector<1x2312xf32> to vector<16x2312xf32>
    %20 = arith.mulf %18, %19 : vector<16x2312xf32>
    %21 = arith.addf %14, %20 : vector<16x2312xf32>
    %c3 = arith.constant 3 : index
    %c0_11 = arith.constant 0 : index
    %c0_12 = arith.constant 0 : index
    %22 = vector.load %arg1[%c3, %c0_11, %c0_12] : memref<9x16x1xf32, #tpu.memory_space<vmem>>, vector<1x16x1xf32>
    %23 = vector.shape_cast %22 : vector<1x16x1xf32> to vector<16x1xf32>
    %c0_13 = arith.constant 0 : index
    %c39 = arith.constant 39 : index
    %24 = vector.load %arg0[%c0_13, %c39] : memref<1x2392xf32, #tpu.memory_space<vmem>>, vector<1x2312xf32>
    %25 = vector.broadcast %23 : vector<16x1xf32> to vector<16x2312xf32>
    %26 = vector.broadcast %24 : vector<1x2312xf32> to vector<16x2312xf32>
    %27 = arith.mulf %25, %26 : vector<16x2312xf32>
    %28 = arith.addf %21, %27 : vector<16x2312xf32>
    %c4 = arith.constant 4 : index
    %c0_14 = arith.constant 0 : index
    %c0_15 = arith.constant 0 : index
    %29 = vector.load %arg1[%c4, %c0_14, %c0_15] : memref<9x16x1xf32, #tpu.memory_space<vmem>>, vector<1x16x1xf32>
    %30 = vector.shape_cast %29 : vector<1x16x1xf32> to vector<16x1xf32>
    %c0_16 = arith.constant 0 : index
    %c40 = arith.constant 40 : index
    %31 = vector.load %arg0[%c0_16, %c40] : memref<1x2392xf32, #tpu.memory_space<vmem>>, vector<1x2312xf32>
    %32 = vector.broadcast %30 : vector<16x1xf32> to vector<16x2312xf32>
    %33 = vector.broadcast %31 : vector<1x2312xf32> to vector<16x2312xf32>
    %34 = arith.mulf %32, %33 : vector<16x2312xf32>
    %35 = arith.addf %28, %34 : vector<16x2312xf32>
    %c5_17 = arith.constant 5 : index
    %c0_18 = arith.constant 0 : index
    %c0_19 = arith.constant 0 : index
    %36 = vector.load %arg1[%c5_17, %c0_18, %c0_19] : memref<9x16x1xf32, #tpu.memory_space<vmem>>, vector<1x16x1xf32>
    %37 = vector.shape_cast %36 : vector<1x16x1xf32> to vector<16x1xf32>
    %c0_20 = arith.constant 0 : index
    %c41 = arith.constant 41 : index
    %38 = vector.load %arg0[%c0_20, %c41] : memref<1x2392xf32, #tpu.memory_space<vmem>>, vector<1x2312xf32>
    %39 = vector.broadcast %37 : vector<16x1xf32> to vector<16x2312xf32>
    %40 = vector.broadcast %38 : vector<1x2312xf32> to vector<16x2312xf32>
    %41 = arith.mulf %39, %40 : vector<16x2312xf32>
    %42 = arith.addf %35, %41 : vector<16x2312xf32>
    %c6_21 = arith.constant 6 : index
    %c0_22 = arith.constant 0 : index
    %c0_23 = arith.constant 0 : index
    %43 = vector.load %arg1[%c6_21, %c0_22, %c0_23] : memref<9x16x1xf32, #tpu.memory_space<vmem>>, vector<1x16x1xf32>
    %44 = vector.shape_cast %43 : vector<1x16x1xf32> to vector<16x1xf32>
    %c0_24 = arith.constant 0 : index
    %c73 = arith.constant 73 : index
    %45 = vector.load %arg0[%c0_24, %c73] : memref<1x2392xf32, #tpu.memory_space<vmem>>, vector<1x2312xf32>
    %46 = vector.broadcast %44 : vector<16x1xf32> to vector<16x2312xf32>
    %47 = vector.broadcast %45 : vector<1x2312xf32> to vector<16x2312xf32>
    %48 = arith.mulf %46, %47 : vector<16x2312xf32>
    %49 = arith.addf %42, %48 : vector<16x2312xf32>
    %c7_25 = arith.constant 7 : index
    %c0_26 = arith.constant 0 : index
    %c0_27 = arith.constant 0 : index
    %50 = vector.load %arg1[%c7_25, %c0_26, %c0_27] : memref<9x16x1xf32, #tpu.memory_space<vmem>>, vector<1x16x1xf32>
    %51 = vector.shape_cast %50 : vector<1x16x1xf32> to vector<16x1xf32>
    %c0_28 = arith.constant 0 : index
    %c74 = arith.constant 74 : index
    %52 = vector.load %arg0[%c0_28, %c74] : memref<1x2392xf32, #tpu.memory_space<vmem>>, vector<1x2312xf32>
    %53 = vector.broadcast %51 : vector<16x1xf32> to vector<16x2312xf32>
    %54 = vector.broadcast %52 : vector<1x2312xf32> to vector<16x2312xf32>
    %55 = arith.mulf %53, %54 : vector<16x2312xf32>
    %56 = arith.addf %49, %55 : vector<16x2312xf32>
    %c8 = arith.constant 8 : index
    %c0_29 = arith.constant 0 : index
    %c0_30 = arith.constant 0 : index
    %57 = vector.load %arg1[%c8, %c0_29, %c0_30] : memref<9x16x1xf32, #tpu.memory_space<vmem>>, vector<1x16x1xf32>
    %58 = vector.shape_cast %57 : vector<1x16x1xf32> to vector<16x1xf32>
    %c0_31 = arith.constant 0 : index
    %c75 = arith.constant 75 : index
    %59 = vector.load %arg0[%c0_31, %c75] : memref<1x2392xf32, #tpu.memory_space<vmem>>, vector<1x2312xf32>
    %60 = vector.broadcast %58 : vector<16x1xf32> to vector<16x2312xf32>
    %61 = vector.broadcast %59 : vector<1x2312xf32> to vector<16x2312xf32>
    %62 = arith.mulf %60, %61 : vector<16x2312xf32>
    %63 = arith.addf %56, %62 : vector<16x2312xf32>
    %c0_32 = arith.constant 0 : index
    %c0_33 = arith.constant 0 : index
    %64 = vector.load %arg26[%c0_32, %c0_33] : memref<16x2352xf32, #tpu.memory_space<vmem>>, vector<16x2312xf32>
    tpu.vector_store %arg26[%c0_32, %c0_33], %63 {strides = array<i32>} : memref<16x2352xf32, #tpu.memory_space<vmem>>, vector<16x2312xf32>,
    %cst_34 = arith.constant 0.000000e+00 : f32
    %65 = vector.broadcast %cst_34 : f32 to vector<16x40xf32>
    %c0_35 = arith.constant 0 : index
    %c2312 = arith.constant 2312 : index
    %66 = vector.load %arg26[%c0_35, %c2312] : memref<16x2352xf32, #tpu.memory_space<vmem>>, vector<16x40xf32>
    tpu.vector_store %arg26[%c0_35, %c2312], %65 {strides = array<i32>} : memref<16x2352xf32, #tpu.memory_space<vmem>>, vector<16x40xf32>,
    %c0_36 = arith.constant 0 : index
    %c0_37 = arith.constant 0 : index
    %67 = vector.load %arg26[%c0_36, %c0_37] : memref<16x2352xf32, #tpu.memory_space<vmem>>, vector<16x2312xf32>
    %c0_38 = arith.constant 0 : index
    %c0_39 = arith.constant 0 : index
    %68 = vector.load %arg13[%c0_38, %c0_39] : memref<1x2312xf32, #tpu.memory_space<vmem>>, vector<1x2312xf32>
    %cst_40 = arith.constant 5.000000e-01 : f32
    %69 = vector.broadcast %cst_40 : f32 to vector<1x2312xf32>
    %70 = arith.cmpf ogt, %68, %69 : vector<1x2312xf32>
    %cst_41 = arith.constant 0.000000e+00 : f32
    %71 = vector.shape_cast %70 : vector<1x2312xi1> to vector<1x2312xi1>
    %72 = vector.broadcast %71 : vector<1x2312xi1> to vector<16x2312xi1>
    %73 = vector.broadcast %cst_41 : f32 to vector<16x2312xf32>
    %74 = arith.select %72, %67, %73 : vector<16x2312xi1>, vector<16x2312xf32>
    %cst_42 = arith.constant dense<0.000000e+00> : vector<16xf32>
    %75 = vector.multi_reduction <add>, %74, %cst_42 [1] : vector<16x2312xf32> to vector<16xf32>
    %76 = vector.shape_cast %75 : vector<16xf32> to vector<16x1xf32>
    %cst_43 = arith.constant 2.048000e+03 : f32
    %77 = vector.broadcast %cst_43 : f32 to vector<16x1xf32>
    %78 = arith.divf %76, %77 : vector<16x1xf32>
    %79 = arith.mulf %74, %67 : vector<16x2312xf32>
    %cst_44 = arith.constant dense<0.000000e+00> : vector<16xf32>
    %80 = vector.multi_reduction <add>, %79, %cst_44 [1] : vector<16x2312xf32> to vector<16xf32>
    %81 = vector.shape_cast %80 : vector<16xf32> to vector<16x1xf32>
    %cst_45 = arith.constant 2.048000e+03 : f32
    %82 = vector.broadcast %cst_45 : f32 to vector<16x1xf32>
    %83 = arith.divf %81, %82 : vector<16x1xf32>
    %84 = arith.mulf %78, %78 : vector<16x1xf32>
    %85 = arith.subf %83, %84 : vector<16x1xf32>
    %c0_46 = arith.constant 0 : index
    %c0_47 = arith.constant 0 : index
    %86 = vector.load %arg5[%c0_46, %c0_47] : memref<16x1xf32, #tpu.memory_space<vmem>>, vector<16x1xf32>
    %cst_48 = arith.constant 9.99999974E-6 : f32
    %87 = vector.broadcast %cst_48 : f32 to vector<16x1xf32>
    %88 = arith.addf %85, %87 : vector<16x1xf32>
    %89 = math.rsqrt %88 : vector<16x1xf32>
    %90 = arith.mulf %86, %89 : vector<16x1xf32>
    %c0_49 = arith.constant 0 : index
    %c0_50 = arith.constant 0 : index
    %91 = vector.load %arg9[%c0_49, %c0_50] : memref<16x1xf32, #tpu.memory_space<vmem>>, vector<16x1xf32>
    %92 = arith.mulf %78, %90 : vector<16x1xf32>
    %93 = arith.subf %91, %92 : vector<16x1xf32>
    %94 = vector.broadcast %90 : vector<16x1xf32> to vector<16x2312xf32>
    %95 = arith.mulf %67, %94 : vector<16x2312xf32>
    %96 = vector.broadcast %93 : vector<16x1xf32> to vector<16x2312xf32>
    %97 = arith.addf %95, %96 : vector<16x2312xf32>
    %cst_51 = arith.constant 0.000000e+00 : f32
    %98 = vector.broadcast %cst_51 : f32 to vector<16x2312xf32>
    %99 = arith.maximumf %97, %98 : vector<16x2312xf32>
    %c0_52 = arith.constant 0 : index
    %c0_53 = arith.constant 0 : index
    %100 = vector.load %arg26[%c0_52, %c0_53] : memref<16x2352xf32, #tpu.memory_space<vmem>>, vector<16x2312xf32>
    tpu.vector_store %arg26[%c0_52, %c0_53], %99 {strides = array<i32>} : memref<16x2352xf32, #tpu.memory_space<vmem>>, vector<16x2312xf32>,
    %c0_54 = arith.constant 0 : index
    %c1_55 = arith.constant 1 : index
    %101 = vector.load %arg26[%c0_54, %c1_55] : memref<16x2352xf32, #tpu.memory_space<vmem>>, vector<16x2312xf32>
    %102 = arith.maximumf %99, %101 : vector<16x2312xf32>
    %c0_56 = arith.constant 0 : index
    %c34 = arith.constant 34 : index
    %103 = vector.load %arg26[%c0_56, %c34] : memref<16x2352xf32, #tpu.memory_space<vmem>>, vector<16x2312xf32>
    %c0_57 = arith.constant 0 : index
    %c35 = arith.constant 35 : index
    %104 = vector.load %arg26[%c0_57, %c35] : memref<16x2352xf32, #tpu.memory_space<vmem>>, vector<16x2312xf32>
    %105 = arith.maximumf %103, %104 : vector<16x2312xf32>
    %106 = arith.maximumf %102, %105 : vector<16x2312xf32>
    %c0_58 = arith.constant 0 : index
    %c0_59 = arith.constant 0 : index
    %107 = vector.load %arg26[%c0_58, %c0_59] : memref<16x2352xf32, #tpu.memory_space<vmem>>, vector<16x2312xf32>
    tpu.vector_store %arg26[%c0_58, %c0_59], %106 {strides = array<i32>} : memref<16x2352xf32, #tpu.memory_space<vmem>>, vector<16x2312xf32>,
    %c0_60 = arith.constant 0 : index
    %c0_61 = arith.constant 0 : index
    %108 = vector.load %arg26[%c0_60, %c0_61] : memref<16x2352xf32, #tpu.memory_space<vmem>>, vector<16x1156xf32>
    %109 = arith.truncf %108 : vector<16x1156xf32> to vector<16x1156xbf16>
    %c0_62 = arith.constant 0 : index
    %c0_63 = arith.constant 0 : index
    %110 = vector.load %arg17[%c0_62, %c0_63] : memref<1156x324xbf16, #tpu.memory_space<vmem>>, vector<1156x324xbf16>
    %cst_64 = arith.constant dense<0.000000e+00> : vector<16x324xf32>
    %111 = tpu.matmul %109, %110, %cst_64 {dimension_numbers = #tpu.dot_dimension_numbers<[1], [0], [0], [1], [0, 0, 1, 1], [], []>} : vector<16x1156xbf16>, vector<1156x324xbf16>, vector<16x324xf32> -> vector<16x324xf32>
    %112 = arith.truncf %111 : vector<16x324xf32> to vector<16x324xbf16>
    %c0_65 = arith.constant 0 : index
    %c40_66 = arith.constant 40 : index
    %113 = vector.load %arg24[%c0_65, %c40_66] : memref<16x728xbf16, #tpu.memory_space<vmem>>, vector<16x324xbf16>
    tpu.vector_store %arg24[%c0_65, %c40_66], %112 {strides = array<i32>} : memref<16x728xbf16, #tpu.memory_space<vmem>>, vector<16x324xbf16>,
    %c0_67 = arith.constant 0 : index
    %c1156 = arith.constant 1156 : index
    %114 = vector.load %arg26[%c0_67, %c1156] : memref<16x2352xf32, #tpu.memory_space<vmem>>, vector<16x1156xf32>
    %115 = arith.truncf %114 : vector<16x1156xf32> to vector<16x1156xbf16>
    %c0_68 = arith.constant 0 : index
    %c0_69 = arith.constant 0 : index
    %116 = vector.load %arg17[%c0_68, %c0_69] : memref<1156x324xbf16, #tpu.memory_space<vmem>>, vector<1156x324xbf16>
    %cst_70 = arith.constant dense<0.000000e+00> : vector<16x324xf32>
    %117 = tpu.matmul %115, %116, %cst_70 {dimension_numbers = #tpu.dot_dimension_numbers<[1], [0], [0], [1], [0, 0, 1, 1], [], []>} : vector<16x1156xbf16>, vector<1156x324xbf16>, vector<16x324xf32> -> vector<16x324xf32>
    %118 = arith.truncf %117 : vector<16x324xf32> to vector<16x324xbf16>
    %c0_71 = arith.constant 0 : index
    %c364 = arith.constant 364 : index
    %119 = vector.load %arg24[%c0_71, %c364] : memref<16x728xbf16, #tpu.memory_space<vmem>>, vector<16x324xbf16>
    tpu.vector_store %arg24[%c0_71, %c364], %118 {strides = array<i32>} : memref<16x728xbf16, #tpu.memory_space<vmem>>, vector<16x324xbf16>,
    %cst_72 = arith.constant 0.000000e+00 : bf16
    %120 = vector.broadcast %cst_72 : bf16 to vector<16x40xbf16>
    %c0_73 = arith.constant 0 : index
    %c688 = arith.constant 688 : index
    %121 = vector.load %arg24[%c0_73, %c688] : memref<16x728xbf16, #tpu.memory_space<vmem>>, vector<16x40xbf16>
    tpu.vector_store %arg24[%c0_73, %c688], %120 {strides = array<i32>} : memref<16x728xbf16, #tpu.memory_space<vmem>>, vector<16x40xbf16>,
    %c0_74 = arith.constant 0 : index
    %c21 = arith.constant 21 : index
    %122 = vector.load %arg24[%c0_74, %c21] : memref<16x728xbf16, #tpu.memory_space<vmem>>, vector<16x648xbf16>
    %c0_75 = arith.constant 0 : index
    %c0_76 = arith.constant 0 : index
    %123 = vector.load %arg25[%c0_75, %c0_76] : memref<144x648xbf16, #tpu.memory_space<vmem>>, vector<16x648xbf16>
    tpu.vector_store %arg25[%c0_75, %c0_76], %122 {strides = array<i32>} : memref<144x648xbf16, #tpu.memory_space<vmem>>, vector<16x648xbf16>,
    %c0_77 = arith.constant 0 : index
    %c22 = arith.constant 22 : index
    %124 = vector.load %arg24[%c0_77, %c22] : memref<16x728xbf16, #tpu.memory_space<vmem>>, vector<16x648xbf16>
    %c16 = arith.constant 16 : index
    %c0_78 = arith.constant 0 : index
    %125 = vector.load %arg25[%c16, %c0_78] : memref<144x648xbf16, #tpu.memory_space<vmem>>, vector<16x648xbf16>
    tpu.vector_store %arg25[%c16, %c0_78], %124 {strides = array<i32>} : memref<144x648xbf16, #tpu.memory_space<vmem>>, vector<16x648xbf16>,
    %c0_79 = arith.constant 0 : index
    %c23 = arith.constant 23 : index
    %126 = vector.load %arg24[%c0_79, %c23] : memref<16x728xbf16, #tpu.memory_space<vmem>>, vector<16x648xbf16>
    %c32 = arith.constant 32 : index
    %c0_80 = arith.constant 0 : index
    %127 = vector.load %arg25[%c32, %c0_80] : memref<144x648xbf16, #tpu.memory_space<vmem>>, vector<16x648xbf16>
    tpu.vector_store %arg25[%c32, %c0_80], %126 {strides = array<i32>} : memref<144x648xbf16, #tpu.memory_space<vmem>>, vector<16x648xbf16>,
    %c0_81 = arith.constant 0 : index
    %c39_82 = arith.constant 39 : index
    %128 = vector.load %arg24[%c0_81, %c39_82] : memref<16x728xbf16, #tpu.memory_space<vmem>>, vector<16x648xbf16>
    %c48 = arith.constant 48 : index
    %c0_83 = arith.constant 0 : index
    %129 = vector.load %arg25[%c48, %c0_83] : memref<144x648xbf16, #tpu.memory_space<vmem>>, vector<16x648xbf16>
    tpu.vector_store %arg25[%c48, %c0_83], %128 {strides = array<i32>} : memref<144x648xbf16, #tpu.memory_space<vmem>>, vector<16x648xbf16>,
    %c0_84 = arith.constant 0 : index
    %c40_85 = arith.constant 40 : index
    %130 = vector.load %arg24[%c0_84, %c40_85] : memref<16x728xbf16, #tpu.memory_space<vmem>>, vector<16x648xbf16>
    %c64 = arith.constant 64 : index
    %c0_86 = arith.constant 0 : index
    %131 = vector.load %arg25[%c64, %c0_86] : memref<144x648xbf16, #tpu.memory_space<vmem>>, vector<16x648xbf16>
    tpu.vector_store %arg25[%c64, %c0_86], %130 {strides = array<i32>} : memref<144x648xbf16, #tpu.memory_space<vmem>>, vector<16x648xbf16>,
    %c0_87 = arith.constant 0 : index
    %c41_88 = arith.constant 41 : index
    %132 = vector.load %arg24[%c0_87, %c41_88] : memref<16x728xbf16, #tpu.memory_space<vmem>>, vector<16x648xbf16>
    %c80 = arith.constant 80 : index
    %c0_89 = arith.constant 0 : index
    %133 = vector.load %arg25[%c80, %c0_89] : memref<144x648xbf16, #tpu.memory_space<vmem>>, vector<16x648xbf16>
    tpu.vector_store %arg25[%c80, %c0_89], %132 {strides = array<i32>} : memref<144x648xbf16, #tpu.memory_space<vmem>>, vector<16x648xbf16>,
    %c0_90 = arith.constant 0 : index
    %c57 = arith.constant 57 : index
    %134 = vector.load %arg24[%c0_90, %c57] : memref<16x728xbf16, #tpu.memory_space<vmem>>, vector<16x648xbf16>
    %c96 = arith.constant 96 : index
    %c0_91 = arith.constant 0 : index
    %135 = vector.load %arg25[%c96, %c0_91] : memref<144x648xbf16, #tpu.memory_space<vmem>>, vector<16x648xbf16>
    tpu.vector_store %arg25[%c96, %c0_91], %134 {strides = array<i32>} : memref<144x648xbf16, #tpu.memory_space<vmem>>, vector<16x648xbf16>,
    %c0_92 = arith.constant 0 : index
    %c58 = arith.constant 58 : index
    %136 = vector.load %arg24[%c0_92, %c58] : memref<16x728xbf16, #tpu.memory_space<vmem>>, vector<16x648xbf16>
    %c112 = arith.constant 112 : index
    %c0_93 = arith.constant 0 : index
    %137 = vector.load %arg25[%c112, %c0_93] : memref<144x648xbf16, #tpu.memory_space<vmem>>, vector<16x648xbf16>
    tpu.vector_store %arg25[%c112, %c0_93], %136 {strides = array<i32>} : memref<144x648xbf16, #tpu.memory_space<vmem>>, vector<16x648xbf16>,
    %c0_94 = arith.constant 0 : index
    %c59 = arith.constant 59 : index
    %138 = vector.load %arg24[%c0_94, %c59] : memref<16x728xbf16, #tpu.memory_space<vmem>>, vector<16x648xbf16>
    %c128 = arith.constant 128 : index
    %c0_95 = arith.constant 0 : index
    %139 = vector.load %arg25[%c128, %c0_95] : memref<144x648xbf16, #tpu.memory_space<vmem>>, vector<16x648xbf16>
    tpu.vector_store %arg25[%c128, %c0_95], %138 {strides = array<i32>} : memref<144x648xbf16, #tpu.memory_space<vmem>>, vector<16x648xbf16>,
    %c0_96 = arith.constant 0 : index
    %c0_97 = arith.constant 0 : index
    %140 = vector.load %arg2[%c0_96, %c0_97] : memref<16x144xbf16, #tpu.memory_space<vmem>>, vector<16x144xbf16>
    %c0_98 = arith.constant 0 : index
    %c0_99 = arith.constant 0 : index
    %141 = vector.load %arg25[%c0_98, %c0_99] : memref<144x648xbf16, #tpu.memory_space<vmem>>, vector<144x648xbf16>
    %cst_100 = arith.constant dense<0.000000e+00> : vector<16x648xf32>
    %142 = tpu.matmul %140, %141, %cst_100 {dimension_numbers = #tpu.dot_dimension_numbers<[1], [0], [0], [1], [0, 0, 1, 1], [], []>} : vector<16x144xbf16>, vector<144x648xbf16>, vector<16x648xf32> -> vector<16x648xf32>
    %c0_101 = arith.constant 0 : index
    %c0_102 = arith.constant 0 : index
    %143 = vector.load %arg26[%c0_101, %c0_102] : memref<16x2352xf32, #tpu.memory_space<vmem>>, vector<16x648xf32>
    tpu.vector_store %arg26[%c0_101, %c0_102], %142 {strides = array<i32>} : memref<16x2352xf32, #tpu.memory_space<vmem>>, vector<16x648xf32>,
    %cst_103 = arith.constant 0.000000e+00 : f32
    %144 = vector.broadcast %cst_103 : f32 to vector<16x40xf32>
    %c0_104 = arith.constant 0 : index
    %c648 = arith.constant 648 : index
    %145 = vector.load %arg26[%c0_104, %c648] : memref<16x2352xf32, #tpu.memory_space<vmem>>, vector<16x40xf32>
    tpu.vector_store %arg26[%c0_104, %c648], %144 {strides = array<i32>} : memref<16x2352xf32, #tpu.memory_space<vmem>>, vector<16x40xf32>,
    %c0_105 = arith.constant 0 : index
    %c0_106 = arith.constant 0 : index
    %146 = vector.load %arg26[%c0_105, %c0_106] : memref<16x2352xf32, #tpu.memory_space<vmem>>, vector<16x648xf32>
    %c0_107 = arith.constant 0 : index
    %c0_108 = arith.constant 0 : index
    %147 = vector.load %arg14[%c0_107, %c0_108] : memref<1x648xf32, #tpu.memory_space<vmem>>, vector<1x648xf32>
    %cst_109 = arith.constant 5.000000e-01 : f32
    %148 = vector.broadcast %cst_109 : f32 to vector<1x648xf32>
    %149 = arith.cmpf ogt, %147, %148 : vector<1x648xf32>
    %cst_110 = arith.constant 0.000000e+00 : f32
    %150 = vector.shape_cast %149 : vector<1x648xi1> to vector<1x648xi1>
    %151 = vector.broadcast %150 : vector<1x648xi1> to vector<16x648xi1>
    %152 = vector.broadcast %cst_110 : f32 to vector<16x648xf32>
    %153 = arith.select %151, %146, %152 : vector<16x648xi1>, vector<16x648xf32>
    %cst_111 = arith.constant dense<0.000000e+00> : vector<16xf32>
    %154 = vector.multi_reduction <add>, %153, %cst_111 [1] : vector<16x648xf32> to vector<16xf32>
    %155 = vector.shape_cast %154 : vector<16xf32> to vector<16x1xf32>
    %cst_112 = arith.constant 5.120000e+02 : f32
    %156 = vector.broadcast %cst_112 : f32 to vector<16x1xf32>
    %157 = arith.divf %155, %156 : vector<16x1xf32>
    %158 = arith.mulf %153, %146 : vector<16x648xf32>
    %cst_113 = arith.constant dense<0.000000e+00> : vector<16xf32>
    %159 = vector.multi_reduction <add>, %158, %cst_113 [1] : vector<16x648xf32> to vector<16xf32>
    %160 = vector.shape_cast %159 : vector<16xf32> to vector<16x1xf32>
    %cst_114 = arith.constant 5.120000e+02 : f32
    %161 = vector.broadcast %cst_114 : f32 to vector<16x1xf32>
    %162 = arith.divf %160, %161 : vector<16x1xf32>
    %163 = arith.mulf %157, %157 : vector<16x1xf32>
    %164 = arith.subf %162, %163 : vector<16x1xf32>
    %c0_115 = arith.constant 0 : index
    %c0_116 = arith.constant 0 : index
    %165 = vector.load %arg6[%c0_115, %c0_116] : memref<16x1xf32, #tpu.memory_space<vmem>>, vector<16x1xf32>
    %cst_117 = arith.constant 9.99999974E-6 : f32
    %166 = vector.broadcast %cst_117 : f32 to vector<16x1xf32>
    %167 = arith.addf %164, %166 : vector<16x1xf32>
    %168 = math.rsqrt %167 : vector<16x1xf32>
    %169 = arith.mulf %165, %168 : vector<16x1xf32>
    %c0_118 = arith.constant 0 : index
    %c0_119 = arith.constant 0 : index
    %170 = vector.load %arg10[%c0_118, %c0_119] : memref<16x1xf32, #tpu.memory_space<vmem>>, vector<16x1xf32>
    %171 = arith.mulf %157, %169 : vector<16x1xf32>
    %172 = arith.subf %170, %171 : vector<16x1xf32>
    %173 = vector.broadcast %169 : vector<16x1xf32> to vector<16x648xf32>
    %174 = arith.mulf %146, %173 : vector<16x648xf32>
    %175 = vector.broadcast %172 : vector<16x1xf32> to vector<16x648xf32>
    %176 = arith.addf %174, %175 : vector<16x648xf32>
    %cst_120 = arith.constant 0.000000e+00 : f32
    %177 = vector.broadcast %cst_120 : f32 to vector<16x648xf32>
    %178 = arith.maximumf %176, %177 : vector<16x648xf32>
    %c0_121 = arith.constant 0 : index
    %c0_122 = arith.constant 0 : index
    %179 = vector.load %arg26[%c0_121, %c0_122] : memref<16x2352xf32, #tpu.memory_space<vmem>>, vector<16x648xf32>
    tpu.vector_store %arg26[%c0_121, %c0_122], %178 {strides = array<i32>} : memref<16x2352xf32, #tpu.memory_space<vmem>>, vector<16x648xf32>,
    %c0_123 = arith.constant 0 : index
    %c1_124 = arith.constant 1 : index
    %180 = vector.load %arg26[%c0_123, %c1_124] : memref<16x2352xf32, #tpu.memory_space<vmem>>, vector<16x648xf32>
    %181 = arith.maximumf %178, %180 : vector<16x648xf32>
    %c0_125 = arith.constant 0 : index
    %c18 = arith.constant 18 : index
    %182 = vector.load %arg26[%c0_125, %c18] : memref<16x2352xf32, #tpu.memory_space<vmem>>, vector<16x648xf32>
    %c0_126 = arith.constant 0 : index
    %c19 = arith.constant 19 : index
    %183 = vector.load %arg26[%c0_126, %c19] : memref<16x2352xf32, #tpu.memory_space<vmem>>, vector<16x648xf32>
    %184 = arith.maximumf %182, %183 : vector<16x648xf32>
    %185 = arith.maximumf %181, %184 : vector<16x648xf32>
    %c0_127 = arith.constant 0 : index
    %c0_128 = arith.constant 0 : index
    %186 = vector.load %arg26[%c0_127, %c0_128] : memref<16x2352xf32, #tpu.memory_space<vmem>>, vector<16x648xf32>
    tpu.vector_store %arg26[%c0_127, %c0_128], %185 {strides = array<i32>} : memref<16x2352xf32, #tpu.memory_space<vmem>>, vector<16x648xf32>,
    %c0_129 = arith.constant 0 : index
    %c0_130 = arith.constant 0 : index
    %187 = vector.load %arg26[%c0_129, %c0_130] : memref<16x2352xf32, #tpu.memory_space<vmem>>, vector<16x324xf32>
    %188 = arith.truncf %187 : vector<16x324xf32> to vector<16x324xbf16>
    %c0_131 = arith.constant 0 : index
    %c0_132 = arith.constant 0 : index
    %189 = vector.load %arg18[%c0_131, %c0_132] : memref<324x100xbf16, #tpu.memory_space<vmem>>, vector<324x100xbf16>
    %cst_133 = arith.constant dense<0.000000e+00> : vector<16x100xf32>
    %190 = tpu.matmul %188, %189, %cst_133 {dimension_numbers = #tpu.dot_dimension_numbers<[1], [0], [0], [1], [0, 0, 1, 1], [], []>} : vector<16x324xbf16>, vector<324x100xbf16>, vector<16x100xf32> -> vector<16x100xf32>
    %191 = arith.truncf %190 : vector<16x100xf32> to vector<16x100xbf16>
    %c0_134 = arith.constant 0 : index
    %c40_135 = arith.constant 40 : index
    %192 = vector.load %arg24[%c0_134, %c40_135] : memref<16x728xbf16, #tpu.memory_space<vmem>>, vector<16x100xbf16>
    tpu.vector_store %arg24[%c0_134, %c40_135], %191 {strides = array<i32>} : memref<16x728xbf16, #tpu.memory_space<vmem>>, vector<16x100xbf16>,
    %c0_136 = arith.constant 0 : index
    %c324 = arith.constant 324 : index
    %193 = vector.load %arg26[%c0_136, %c324] : memref<16x2352xf32, #tpu.memory_space<vmem>>, vector<16x324xf32>
    %194 = arith.truncf %193 : vector<16x324xf32> to vector<16x324xbf16>
    %c0_137 = arith.constant 0 : index
    %c0_138 = arith.constant 0 : index
    %195 = vector.load %arg18[%c0_137, %c0_138] : memref<324x100xbf16, #tpu.memory_space<vmem>>, vector<324x100xbf16>
    %cst_139 = arith.constant dense<0.000000e+00> : vector<16x100xf32>
    %196 = tpu.matmul %194, %195, %cst_139 {dimension_numbers = #tpu.dot_dimension_numbers<[1], [0], [0], [1], [0, 0, 1, 1], [], []>} : vector<16x324xbf16>, vector<324x100xbf16>, vector<16x100xf32> -> vector<16x100xf32>
    %197 = arith.truncf %196 : vector<16x100xf32> to vector<16x100xbf16>
    %c0_140 = arith.constant 0 : index
    %c140 = arith.constant 140 : index
    %198 = vector.load %arg24[%c0_140, %c140] : memref<16x728xbf16, #tpu.memory_space<vmem>>, vector<16x100xbf16>
    tpu.vector_store %arg24[%c0_140, %c140], %197 {strides = array<i32>} : memref<16x728xbf16, #tpu.memory_space<vmem>>, vector<16x100xbf16>,
    %cst_141 = arith.constant 0.000000e+00 : bf16
    %199 = vector.broadcast %cst_141 : bf16 to vector<16x40xbf16>
    %c0_142 = arith.constant 0 : index
    %c240 = arith.constant 240 : index
    %200 = vector.load %arg24[%c0_142, %c240] : memref<16x728xbf16, #tpu.memory_space<vmem>>, vector<16x40xbf16>
    tpu.vector_store %arg24[%c0_142, %c240], %199 {strides = array<i32>} : memref<16x728xbf16, #tpu.memory_space<vmem>>, vector<16x40xbf16>,
    %c0_143 = arith.constant 0 : index
    %c29 = arith.constant 29 : index
    %201 = vector.load %arg24[%c0_143, %c29] : memref<16x728xbf16, #tpu.memory_space<vmem>>, vector<16x200xbf16>
    %c0_144 = arith.constant 0 : index
    %c0_145 = arith.constant 0 : index
    %202 = vector.load %arg25[%c0_144, %c0_145] : memref<144x648xbf16, #tpu.memory_space<vmem>>, vector<16x200xbf16>
    tpu.vector_store %arg25[%c0_144, %c0_145], %201 {strides = array<i32>} : memref<144x648xbf16, #tpu.memory_space<vmem>>, vector<16x200xbf16>,
    %c0_146 = arith.constant 0 : index
    %c30 = arith.constant 30 : index
    %203 = vector.load %arg24[%c0_146, %c30] : memref<16x728xbf16, #tpu.memory_space<vmem>>, vector<16x200xbf16>
    %c16_147 = arith.constant 16 : index
    %c0_148 = arith.constant 0 : index
    %204 = vector.load %arg25[%c16_147, %c0_148] : memref<144x648xbf16, #tpu.memory_space<vmem>>, vector<16x200xbf16>
    tpu.vector_store %arg25[%c16_147, %c0_148], %203 {strides = array<i32>} : memref<144x648xbf16, #tpu.memory_space<vmem>>, vector<16x200xbf16>,
    %c0_149 = arith.constant 0 : index
    %c31 = arith.constant 31 : index
    %205 = vector.load %arg24[%c0_149, %c31] : memref<16x728xbf16, #tpu.memory_space<vmem>>, vector<16x200xbf16>
    %c32_150 = arith.constant 32 : index
    %c0_151 = arith.constant 0 : index
    %206 = vector.load %arg25[%c32_150, %c0_151] : memref<144x648xbf16, #tpu.memory_space<vmem>>, vector<16x200xbf16>
    tpu.vector_store %arg25[%c32_150, %c0_151], %205 {strides = array<i32>} : memref<144x648xbf16, #tpu.memory_space<vmem>>, vector<16x200xbf16>,
    %c0_152 = arith.constant 0 : index
    %c39_153 = arith.constant 39 : index
    %207 = vector.load %arg24[%c0_152, %c39_153] : memref<16x728xbf16, #tpu.memory_space<vmem>>, vector<16x200xbf16>
    %c48_154 = arith.constant 48 : index
    %c0_155 = arith.constant 0 : index
    %208 = vector.load %arg25[%c48_154, %c0_155] : memref<144x648xbf16, #tpu.memory_space<vmem>>, vector<16x200xbf16>
    tpu.vector_store %arg25[%c48_154, %c0_155], %207 {strides = array<i32>} : memref<144x648xbf16, #tpu.memory_space<vmem>>, vector<16x200xbf16>,
    %c0_156 = arith.constant 0 : index
    %c40_157 = arith.constant 40 : index
    %209 = vector.load %arg24[%c0_156, %c40_157] : memref<16x728xbf16, #tpu.memory_space<vmem>>, vector<16x200xbf16>
    %c64_158 = arith.constant 64 : index
    %c0_159 = arith.constant 0 : index
    %210 = vector.load %arg25[%c64_158, %c0_159] : memref<144x648xbf16, #tpu.memory_space<vmem>>, vector<16x200xbf16>
    tpu.vector_store %arg25[%c64_158, %c0_159], %209 {strides = array<i32>} : memref<144x648xbf16, #tpu.memory_space<vmem>>, vector<16x200xbf16>,
    %c0_160 = arith.constant 0 : index
    %c41_161 = arith.constant 41 : index
    %211 = vector.load %arg24[%c0_160, %c41_161] : memref<16x728xbf16, #tpu.memory_space<vmem>>, vector<16x200xbf16>
    %c80_162 = arith.constant 80 : index
    %c0_163 = arith.constant 0 : index
    %212 = vector.load %arg25[%c80_162, %c0_163] : memref<144x648xbf16, #tpu.memory_space<vmem>>, vector<16x200xbf16>
    tpu.vector_store %arg25[%c80_162, %c0_163], %211 {strides = array<i32>} : memref<144x648xbf16, #tpu.memory_space<vmem>>, vector<16x200xbf16>,
    %c0_164 = arith.constant 0 : index
    %c49 = arith.constant 49 : index
    %213 = vector.load %arg24[%c0_164, %c49] : memref<16x728xbf16, #tpu.memory_space<vmem>>, vector<16x200xbf16>
    %c96_165 = arith.constant 96 : index
    %c0_166 = arith.constant 0 : index
    %214 = vector.load %arg25[%c96_165, %c0_166] : memref<144x648xbf16, #tpu.memory_space<vmem>>, vector<16x200xbf16>
    tpu.vector_store %arg25[%c96_165, %c0_166], %213 {strides = array<i32>} : memref<144x648xbf16, #tpu.memory_space<vmem>>, vector<16x200xbf16>,
    %c0_167 = arith.constant 0 : index
    %c50 = arith.constant 50 : index
    %215 = vector.load %arg24[%c0_167, %c50] : memref<16x728xbf16, #tpu.memory_space<vmem>>, vector<16x200xbf16>
    %c112_168 = arith.constant 112 : index
    %c0_169 = arith.constant 0 : index
    %216 = vector.load %arg25[%c112_168, %c0_169] : memref<144x648xbf16, #tpu.memory_space<vmem>>, vector<16x200xbf16>
    tpu.vector_store %arg25[%c112_168, %c0_169], %215 {strides = array<i32>} : memref<144x648xbf16, #tpu.memory_space<vmem>>, vector<16x200xbf16>,
    %c0_170 = arith.constant 0 : index
    %c51 = arith.constant 51 : index
    %217 = vector.load %arg24[%c0_170, %c51] : memref<16x728xbf16, #tpu.memory_space<vmem>>, vector<16x200xbf16>
    %c128_171 = arith.constant 128 : index
    %c0_172 = arith.constant 0 : index
    %218 = vector.load %arg25[%c128_171, %c0_172] : memref<144x648xbf16, #tpu.memory_space<vmem>>, vector<16x200xbf16>
    tpu.vector_store %arg25[%c128_171, %c0_172], %217 {strides = array<i32>} : memref<144x648xbf16, #tpu.memory_space<vmem>>, vector<16x200xbf16>,
    %c0_173 = arith.constant 0 : index
    %c0_174 = arith.constant 0 : index
    %219 = vector.load %arg3[%c0_173, %c0_174] : memref<16x144xbf16, #tpu.memory_space<vmem>>, vector<16x144xbf16>
    %c0_175 = arith.constant 0 : index
    %c0_176 = arith.constant 0 : index
    %220 = vector.load %arg25[%c0_175, %c0_176] : memref<144x648xbf16, #tpu.memory_space<vmem>>, vector<144x200xbf16>
    %cst_177 = arith.constant dense<0.000000e+00> : vector<16x200xf32>
    %221 = tpu.matmul %219, %220, %cst_177 {dimension_numbers = #tpu.dot_dimension_numbers<[1], [0], [0], [1], [0, 0, 1, 1], [], []>} : vector<16x144xbf16>, vector<144x200xbf16>, vector<16x200xf32> -> vector<16x200xf32>
    %c0_178 = arith.constant 0 : index
    %c0_179 = arith.constant 0 : index
    %222 = vector.load %arg26[%c0_178, %c0_179] : memref<16x2352xf32, #tpu.memory_space<vmem>>, vector<16x200xf32>
    tpu.vector_store %arg26[%c0_178, %c0_179], %221 {strides = array<i32>} : memref<16x2352xf32, #tpu.memory_space<vmem>>, vector<16x200xf32>,
    %cst_180 = arith.constant 0.000000e+00 : f32
    %223 = vector.broadcast %cst_180 : f32 to vector<16x40xf32>
    %c0_181 = arith.constant 0 : index
    %c200 = arith.constant 200 : index
    %224 = vector.load %arg26[%c0_181, %c200] : memref<16x2352xf32, #tpu.memory_space<vmem>>, vector<16x40xf32>
    tpu.vector_store %arg26[%c0_181, %c200], %223 {strides = array<i32>} : memref<16x2352xf32, #tpu.memory_space<vmem>>, vector<16x40xf32>,
    %c0_182 = arith.constant 0 : index
    %c0_183 = arith.constant 0 : index
    %225 = vector.load %arg26[%c0_182, %c0_183] : memref<16x2352xf32, #tpu.memory_space<vmem>>, vector<16x200xf32>
    %c0_184 = arith.constant 0 : index
    %c0_185 = arith.constant 0 : index
    %226 = vector.load %arg15[%c0_184, %c0_185] : memref<1x200xf32, #tpu.memory_space<vmem>>, vector<1x200xf32>
    %cst_186 = arith.constant 5.000000e-01 : f32
    %227 = vector.broadcast %cst_186 : f32 to vector<1x200xf32>
    %228 = arith.cmpf ogt, %226, %227 : vector<1x200xf32>
    %cst_187 = arith.constant 0.000000e+00 : f32
    %229 = vector.shape_cast %228 : vector<1x200xi1> to vector<1x200xi1>
    %230 = vector.broadcast %229 : vector<1x200xi1> to vector<16x200xi1>
    %231 = vector.broadcast %cst_187 : f32 to vector<16x200xf32>
    %232 = arith.select %230, %225, %231 : vector<16x200xi1>, vector<16x200xf32>
    %cst_188 = arith.constant dense<0.000000e+00> : vector<16xf32>
    %233 = vector.multi_reduction <add>, %232, %cst_188 [1] : vector<16x200xf32> to vector<16xf32>
    %234 = vector.shape_cast %233 : vector<16xf32> to vector<16x1xf32>
    %cst_189 = arith.constant 1.280000e+02 : f32
    %235 = vector.broadcast %cst_189 : f32 to vector<16x1xf32>
    %236 = arith.divf %234, %235 : vector<16x1xf32>
    %237 = arith.mulf %232, %225 : vector<16x200xf32>
    %cst_190 = arith.constant dense<0.000000e+00> : vector<16xf32>
    %238 = vector.multi_reduction <add>, %237, %cst_190 [1] : vector<16x200xf32> to vector<16xf32>
    %239 = vector.shape_cast %238 : vector<16xf32> to vector<16x1xf32>
    %cst_191 = arith.constant 1.280000e+02 : f32
    %240 = vector.broadcast %cst_191 : f32 to vector<16x1xf32>
    %241 = arith.divf %239, %240 : vector<16x1xf32>
    %242 = arith.mulf %236, %236 : vector<16x1xf32>
    %243 = arith.subf %241, %242 : vector<16x1xf32>
    %c0_192 = arith.constant 0 : index
    %c0_193 = arith.constant 0 : index
    %244 = vector.load %arg7[%c0_192, %c0_193] : memref<16x1xf32, #tpu.memory_space<vmem>>, vector<16x1xf32>
    %cst_194 = arith.constant 9.99999974E-6 : f32
    %245 = vector.broadcast %cst_194 : f32 to vector<16x1xf32>
    %246 = arith.addf %243, %245 : vector<16x1xf32>
    %247 = math.rsqrt %246 : vector<16x1xf32>
    %248 = arith.mulf %244, %247 : vector<16x1xf32>
    %c0_195 = arith.constant 0 : index
    %c0_196 = arith.constant 0 : index
    %249 = vector.load %arg11[%c0_195, %c0_196] : memref<16x1xf32, #tpu.memory_space<vmem>>, vector<16x1xf32>
    %250 = arith.mulf %236, %248 : vector<16x1xf32>
    %251 = arith.subf %249, %250 : vector<16x1xf32>
    %252 = vector.broadcast %248 : vector<16x1xf32> to vector<16x200xf32>
    %253 = arith.mulf %225, %252 : vector<16x200xf32>
    %254 = vector.broadcast %251 : vector<16x1xf32> to vector<16x200xf32>
    %255 = arith.addf %253, %254 : vector<16x200xf32>
    %cst_197 = arith.constant 0.000000e+00 : f32
    %256 = vector.broadcast %cst_197 : f32 to vector<16x200xf32>
    %257 = arith.maximumf %255, %256 : vector<16x200xf32>
    %c0_198 = arith.constant 0 : index
    %c0_199 = arith.constant 0 : index
    %258 = vector.load %arg26[%c0_198, %c0_199] : memref<16x2352xf32, #tpu.memory_space<vmem>>, vector<16x200xf32>
    tpu.vector_store %arg26[%c0_198, %c0_199], %257 {strides = array<i32>} : memref<16x2352xf32, #tpu.memory_space<vmem>>, vector<16x200xf32>,
    %c0_200 = arith.constant 0 : index
    %c1_201 = arith.constant 1 : index
    %259 = vector.load %arg26[%c0_200, %c1_201] : memref<16x2352xf32, #tpu.memory_space<vmem>>, vector<16x200xf32>
    %260 = arith.maximumf %257, %259 : vector<16x200xf32>
    %c0_202 = arith.constant 0 : index
    %c10 = arith.constant 10 : index
    %261 = vector.load %arg26[%c0_202, %c10] : memref<16x2352xf32, #tpu.memory_space<vmem>>, vector<16x200xf32>
    %c0_203 = arith.constant 0 : index
    %c11 = arith.constant 11 : index
    %262 = vector.load %arg26[%c0_203, %c11] : memref<16x2352xf32, #tpu.memory_space<vmem>>, vector<16x200xf32>
    %263 = arith.maximumf %261, %262 : vector<16x200xf32>
    %264 = arith.maximumf %260, %263 : vector<16x200xf32>
    %c0_204 = arith.constant 0 : index
    %c0_205 = arith.constant 0 : index
    %265 = vector.load %arg26[%c0_204, %c0_205] : memref<16x2352xf32, #tpu.memory_space<vmem>>, vector<16x200xf32>
    tpu.vector_store %arg26[%c0_204, %c0_205], %264 {strides = array<i32>} : memref<16x2352xf32, #tpu.memory_space<vmem>>, vector<16x200xf32>,
    %c0_206 = arith.constant 0 : index
    %c0_207 = arith.constant 0 : index
    %266 = vector.load %arg26[%c0_206, %c0_207] : memref<16x2352xf32, #tpu.memory_space<vmem>>, vector<16x100xf32>
    %267 = arith.truncf %266 : vector<16x100xf32> to vector<16x100xbf16>
    %c0_208 = arith.constant 0 : index
    %c0_209 = arith.constant 0 : index
    %268 = vector.load %arg19[%c0_208, %c0_209] : memref<100x36xbf16, #tpu.memory_space<vmem>>, vector<100x36xbf16>
    %cst_210 = arith.constant dense<0.000000e+00> : vector<16x36xf32>
    %269 = tpu.matmul %267, %268, %cst_210 {dimension_numbers = #tpu.dot_dimension_numbers<[1], [0], [0], [1], [0, 0, 1, 1], [], []>} : vector<16x100xbf16>, vector<100x36xbf16>, vector<16x36xf32> -> vector<16x36xf32>
    %270 = arith.truncf %269 : vector<16x36xf32> to vector<16x36xbf16>
    %c0_211 = arith.constant 0 : index
    %c40_212 = arith.constant 40 : index
    %271 = vector.load %arg24[%c0_211, %c40_212] : memref<16x728xbf16, #tpu.memory_space<vmem>>, vector<16x36xbf16>
    tpu.vector_store %arg24[%c0_211, %c40_212], %270 {strides = array<i32>} : memref<16x728xbf16, #tpu.memory_space<vmem>>, vector<16x36xbf16>,
    %c0_213 = arith.constant 0 : index
    %c100 = arith.constant 100 : index
    %272 = vector.load %arg26[%c0_213, %c100] : memref<16x2352xf32, #tpu.memory_space<vmem>>, vector<16x100xf32>
    %273 = arith.truncf %272 : vector<16x100xf32> to vector<16x100xbf16>
    %c0_214 = arith.constant 0 : index
    %c0_215 = arith.constant 0 : index
    %274 = vector.load %arg19[%c0_214, %c0_215] : memref<100x36xbf16, #tpu.memory_space<vmem>>, vector<100x36xbf16>
    %cst_216 = arith.constant dense<0.000000e+00> : vector<16x36xf32>
    %275 = tpu.matmul %273, %274, %cst_216 {dimension_numbers = #tpu.dot_dimension_numbers<[1], [0], [0], [1], [0, 0, 1, 1], [], []>} : vector<16x100xbf16>, vector<100x36xbf16>, vector<16x36xf32> -> vector<16x36xf32>
    %276 = arith.truncf %275 : vector<16x36xf32> to vector<16x36xbf16>
    %c0_217 = arith.constant 0 : index
    %c76 = arith.constant 76 : index
    %277 = vector.load %arg24[%c0_217, %c76] : memref<16x728xbf16, #tpu.memory_space<vmem>>, vector<16x36xbf16>
    tpu.vector_store %arg24[%c0_217, %c76], %276 {strides = array<i32>} : memref<16x728xbf16, #tpu.memory_space<vmem>>, vector<16x36xbf16>,
    %cst_218 = arith.constant 0.000000e+00 : bf16
    %278 = vector.broadcast %cst_218 : bf16 to vector<16x40xbf16>
    %c0_219 = arith.constant 0 : index
    %c112_220 = arith.constant 112 : index
    %279 = vector.load %arg24[%c0_219, %c112_220] : memref<16x728xbf16, #tpu.memory_space<vmem>>, vector<16x40xbf16>
    tpu.vector_store %arg24[%c0_219, %c112_220], %278 {strides = array<i32>} : memref<16x728xbf16, #tpu.memory_space<vmem>>, vector<16x40xbf16>,
    %c0_221 = arith.constant 0 : index
    %c33 = arith.constant 33 : index
    %280 = vector.load %arg24[%c0_221, %c33] : memref<16x728xbf16, #tpu.memory_space<vmem>>, vector<16x72xbf16>
    %c0_222 = arith.constant 0 : index
    %c0_223 = arith.constant 0 : index
    %281 = vector.load %arg25[%c0_222, %c0_223] : memref<144x648xbf16, #tpu.memory_space<vmem>>, vector<16x72xbf16>
    tpu.vector_store %arg25[%c0_222, %c0_223], %280 {strides = array<i32>} : memref<144x648xbf16, #tpu.memory_space<vmem>>, vector<16x72xbf16>,
    %c0_224 = arith.constant 0 : index
    %c34_225 = arith.constant 34 : index
    %282 = vector.load %arg24[%c0_224, %c34_225] : memref<16x728xbf16, #tpu.memory_space<vmem>>, vector<16x72xbf16>
    %c16_226 = arith.constant 16 : index
    %c0_227 = arith.constant 0 : index
    %283 = vector.load %arg25[%c16_226, %c0_227] : memref<144x648xbf16, #tpu.memory_space<vmem>>, vector<16x72xbf16>
    tpu.vector_store %arg25[%c16_226, %c0_227], %282 {strides = array<i32>} : memref<144x648xbf16, #tpu.memory_space<vmem>>, vector<16x72xbf16>,
    %c0_228 = arith.constant 0 : index
    %c35_229 = arith.constant 35 : index
    %284 = vector.load %arg24[%c0_228, %c35_229] : memref<16x728xbf16, #tpu.memory_space<vmem>>, vector<16x72xbf16>
    %c32_230 = arith.constant 32 : index
    %c0_231 = arith.constant 0 : index
    %285 = vector.load %arg25[%c32_230, %c0_231] : memref<144x648xbf16, #tpu.memory_space<vmem>>, vector<16x72xbf16>
    tpu.vector_store %arg25[%c32_230, %c0_231], %284 {strides = array<i32>} : memref<144x648xbf16, #tpu.memory_space<vmem>>, vector<16x72xbf16>,
    %c0_232 = arith.constant 0 : index
    %c39_233 = arith.constant 39 : index
    %286 = vector.load %arg24[%c0_232, %c39_233] : memref<16x728xbf16, #tpu.memory_space<vmem>>, vector<16x72xbf16>
    %c48_234 = arith.constant 48 : index
    %c0_235 = arith.constant 0 : index
    %287 = vector.load %arg25[%c48_234, %c0_235] : memref<144x648xbf16, #tpu.memory_space<vmem>>, vector<16x72xbf16>
    tpu.vector_store %arg25[%c48_234, %c0_235], %286 {strides = array<i32>} : memref<144x648xbf16, #tpu.memory_space<vmem>>, vector<16x72xbf16>,
    %c0_236 = arith.constant 0 : index
    %c40_237 = arith.constant 40 : index
    %288 = vector.load %arg24[%c0_236, %c40_237] : memref<16x728xbf16, #tpu.memory_space<vmem>>, vector<16x72xbf16>
    %c64_238 = arith.constant 64 : index
    %c0_239 = arith.constant 0 : index
    %289 = vector.load %arg25[%c64_238, %c0_239] : memref<144x648xbf16, #tpu.memory_space<vmem>>, vector<16x72xbf16>
    tpu.vector_store %arg25[%c64_238, %c0_239], %288 {strides = array<i32>} : memref<144x648xbf16, #tpu.memory_space<vmem>>, vector<16x72xbf16>,
    %c0_240 = arith.constant 0 : index
    %c41_241 = arith.constant 41 : index
    %290 = vector.load %arg24[%c0_240, %c41_241] : memref<16x728xbf16, #tpu.memory_space<vmem>>, vector<16x72xbf16>
    %c80_242 = arith.constant 80 : index
    %c0_243 = arith.constant 0 : index
    %291 = vector.load %arg25[%c80_242, %c0_243] : memref<144x648xbf16, #tpu.memory_space<vmem>>, vector<16x72xbf16>
    tpu.vector_store %arg25[%c80_242, %c0_243], %290 {strides = array<i32>} : memref<144x648xbf16, #tpu.memory_space<vmem>>, vector<16x72xbf16>,
    %c0_244 = arith.constant 0 : index
    %c45 = arith.constant 45 : index
    %292 = vector.load %arg24[%c0_244, %c45] : memref<16x728xbf16, #tpu.memory_space<vmem>>, vector<16x72xbf16>
    %c96_245 = arith.constant 96 : index
    %c0_246 = arith.constant 0 : index
    %293 = vector.load %arg25[%c96_245, %c0_246] : memref<144x648xbf16, #tpu.memory_space<vmem>>, vector<16x72xbf16>
    tpu.vector_store %arg25[%c96_245, %c0_246], %292 {strides = array<i32>} : memref<144x648xbf16, #tpu.memory_space<vmem>>, vector<16x72xbf16>,
    %c0_247 = arith.constant 0 : index
    %c46 = arith.constant 46 : index
    %294 = vector.load %arg24[%c0_247, %c46] : memref<16x728xbf16, #tpu.memory_space<vmem>>, vector<16x72xbf16>
    %c112_248 = arith.constant 112 : index
    %c0_249 = arith.constant 0 : index
    %295 = vector.load %arg25[%c112_248, %c0_249] : memref<144x648xbf16, #tpu.memory_space<vmem>>, vector<16x72xbf16>
    tpu.vector_store %arg25[%c112_248, %c0_249], %294 {strides = array<i32>} : memref<144x648xbf16, #tpu.memory_space<vmem>>, vector<16x72xbf16>,
    %c0_250 = arith.constant 0 : index
    %c47 = arith.constant 47 : index
    %296 = vector.load %arg24[%c0_250, %c47] : memref<16x728xbf16, #tpu.memory_space<vmem>>, vector<16x72xbf16>
    %c128_251 = arith.constant 128 : index
    %c0_252 = arith.constant 0 : index
    %297 = vector.load %arg25[%c128_251, %c0_252] : memref<144x648xbf16, #tpu.memory_space<vmem>>, vector<16x72xbf16>
    tpu.vector_store %arg25[%c128_251, %c0_252], %296 {strides = array<i32>} : memref<144x648xbf16, #tpu.memory_space<vmem>>, vector<16x72xbf16>,
    %c0_253 = arith.constant 0 : index
    %c0_254 = arith.constant 0 : index
    %298 = vector.load %arg4[%c0_253, %c0_254] : memref<16x144xbf16, #tpu.memory_space<vmem>>, vector<16x144xbf16>
    %c0_255 = arith.constant 0 : index
    %c0_256 = arith.constant 0 : index
    %299 = vector.load %arg25[%c0_255, %c0_256] : memref<144x648xbf16, #tpu.memory_space<vmem>>, vector<144x72xbf16>
    %cst_257 = arith.constant dense<0.000000e+00> : vector<16x72xf32>
    %300 = tpu.matmul %298, %299, %cst_257 {dimension_numbers = #tpu.dot_dimension_numbers<[1], [0], [0], [1], [0, 0, 1, 1], [], []>} : vector<16x144xbf16>, vector<144x72xbf16>, vector<16x72xf32> -> vector<16x72xf32>
    %c0_258 = arith.constant 0 : index
    %c0_259 = arith.constant 0 : index
    %301 = vector.load %arg26[%c0_258, %c0_259] : memref<16x2352xf32, #tpu.memory_space<vmem>>, vector<16x72xf32>
    tpu.vector_store %arg26[%c0_258, %c0_259], %300 {strides = array<i32>} : memref<16x2352xf32, #tpu.memory_space<vmem>>, vector<16x72xf32>,
    %cst_260 = arith.constant 0.000000e+00 : f32
    %302 = vector.broadcast %cst_260 : f32 to vector<16x40xf32>
    %c0_261 = arith.constant 0 : index
    %c72 = arith.constant 72 : index
    %303 = vector.load %arg26[%c0_261, %c72] : memref<16x2352xf32, #tpu.memory_space<vmem>>, vector<16x40xf32>
    tpu.vector_store %arg26[%c0_261, %c72], %302 {strides = array<i32>} : memref<16x2352xf32, #tpu.memory_space<vmem>>, vector<16x40xf32>,
    %c0_262 = arith.constant 0 : index
    %c0_263 = arith.constant 0 : index
    %304 = vector.load %arg26[%c0_262, %c0_263] : memref<16x2352xf32, #tpu.memory_space<vmem>>, vector<16x72xf32>
    %c0_264 = arith.constant 0 : index
    %c0_265 = arith.constant 0 : index
    %305 = vector.load %arg16[%c0_264, %c0_265] : memref<1x72xf32, #tpu.memory_space<vmem>>, vector<1x72xf32>
    %cst_266 = arith.constant 5.000000e-01 : f32
    %306 = vector.broadcast %cst_266 : f32 to vector<1x72xf32>
    %307 = arith.cmpf ogt, %305, %306 : vector<1x72xf32>
    %cst_267 = arith.constant 0.000000e+00 : f32
    %308 = vector.shape_cast %307 : vector<1x72xi1> to vector<1x72xi1>
    %309 = vector.broadcast %308 : vector<1x72xi1> to vector<16x72xi1>
    %310 = vector.broadcast %cst_267 : f32 to vector<16x72xf32>
    %311 = arith.select %309, %304, %310 : vector<16x72xi1>, vector<16x72xf32>
    %cst_268 = arith.constant dense<0.000000e+00> : vector<16xf32>
    %312 = vector.multi_reduction <add>, %311, %cst_268 [1] : vector<16x72xf32> to vector<16xf32>
    %313 = vector.shape_cast %312 : vector<16xf32> to vector<16x1xf32>
    %cst_269 = arith.constant 3.200000e+01 : f32
    %314 = vector.broadcast %cst_269 : f32 to vector<16x1xf32>
    %315 = arith.divf %313, %314 : vector<16x1xf32>
    %316 = arith.mulf %311, %304 : vector<16x72xf32>
    %cst_270 = arith.constant dense<0.000000e+00> : vector<16xf32>
    %317 = vector.multi_reduction <add>, %316, %cst_270 [1] : vector<16x72xf32> to vector<16xf32>
    %318 = vector.shape_cast %317 : vector<16xf32> to vector<16x1xf32>
    %cst_271 = arith.constant 3.200000e+01 : f32
    %319 = vector.broadcast %cst_271 : f32 to vector<16x1xf32>
    %320 = arith.divf %318, %319 : vector<16x1xf32>
    %321 = arith.mulf %315, %315 : vector<16x1xf32>
    %322 = arith.subf %320, %321 : vector<16x1xf32>
    %c0_272 = arith.constant 0 : index
    %c0_273 = arith.constant 0 : index
    %323 = vector.load %arg8[%c0_272, %c0_273] : memref<16x1xf32, #tpu.memory_space<vmem>>, vector<16x1xf32>
    %cst_274 = arith.constant 9.99999974E-6 : f32
    %324 = vector.broadcast %cst_274 : f32 to vector<16x1xf32>
    %325 = arith.addf %322, %324 : vector<16x1xf32>
    %326 = math.rsqrt %325 : vector<16x1xf32>
    %327 = arith.mulf %323, %326 : vector<16x1xf32>
    %c0_275 = arith.constant 0 : index
    %c0_276 = arith.constant 0 : index
    %328 = vector.load %arg12[%c0_275, %c0_276] : memref<16x1xf32, #tpu.memory_space<vmem>>, vector<16x1xf32>
    %329 = arith.mulf %315, %327 : vector<16x1xf32>
    %330 = arith.subf %328, %329 : vector<16x1xf32>
    %331 = vector.broadcast %327 : vector<16x1xf32> to vector<16x72xf32>
    %332 = arith.mulf %304, %331 : vector<16x72xf32>
    %333 = vector.broadcast %330 : vector<16x1xf32> to vector<16x72xf32>
    %334 = arith.addf %332, %333 : vector<16x72xf32>
    %cst_277 = arith.constant 0.000000e+00 : f32
    %335 = vector.broadcast %cst_277 : f32 to vector<16x72xf32>
    %336 = arith.maximumf %334, %335 : vector<16x72xf32>
    %c0_278 = arith.constant 0 : index
    %c0_279 = arith.constant 0 : index
    %337 = vector.load %arg26[%c0_278, %c0_279] : memref<16x2352xf32, #tpu.memory_space<vmem>>, vector<16x72xf32>
    tpu.vector_store %arg26[%c0_278, %c0_279], %336 {strides = array<i32>} : memref<16x2352xf32, #tpu.memory_space<vmem>>, vector<16x72xf32>,
    %c0_280 = arith.constant 0 : index
    %c1_281 = arith.constant 1 : index
    %338 = vector.load %arg26[%c0_280, %c1_281] : memref<16x2352xf32, #tpu.memory_space<vmem>>, vector<16x72xf32>
    %339 = arith.maximumf %336, %338 : vector<16x72xf32>
    %c0_282 = arith.constant 0 : index
    %c6_283 = arith.constant 6 : index
    %340 = vector.load %arg26[%c0_282, %c6_283] : memref<16x2352xf32, #tpu.memory_space<vmem>>, vector<16x72xf32>
    %c0_284 = arith.constant 0 : index
    %c7_285 = arith.constant 7 : index
    %341 = vector.load %arg26[%c0_284, %c7_285] : memref<16x2352xf32, #tpu.memory_space<vmem>>, vector<16x72xf32>
    %342 = arith.maximumf %340, %341 : vector<16x72xf32>
    %343 = arith.maximumf %339, %342 : vector<16x72xf32>
    %c0_286 = arith.constant 0 : index
    %c0_287 = arith.constant 0 : index
    %344 = vector.load %arg26[%c0_286, %c0_287] : memref<16x2352xf32, #tpu.memory_space<vmem>>, vector<16x72xf32>
    tpu.vector_store %arg26[%c0_286, %c0_287], %343 {strides = array<i32>} : memref<16x2352xf32, #tpu.memory_space<vmem>>, vector<16x72xf32>,
    %c0_288 = arith.constant 0 : index
    %c0_289 = arith.constant 0 : index
    %345 = vector.load %arg26[%c0_288, %c0_289] : memref<16x2352xf32, #tpu.memory_space<vmem>>, vector<16x72xf32>
    %c0_290 = arith.constant 0 : index
    %c0_291 = arith.constant 0 : index
    %c0_292 = arith.constant 0 : index
    %346 = vector.load %arg20[%c0_290, %c0_291, %c0_292] : memref<4x72x2xf32, #tpu.memory_space<vmem>>, vector<1x72x2xf32>
    %347 = vector.shape_cast %346 : vector<1x72x2xf32> to vector<72x2xf32>
    %cst_293 = arith.constant dense<0.000000e+00> : vector<16x2xf32>
    %348 = tpu.matmul %345, %347, %cst_293 {dimension_numbers = #tpu.dot_dimension_numbers<[1], [0], [0], [1], [0, 0, 1, 1], [], []>} : vector<16x72xf32>, vector<72x2xf32>, vector<16x2xf32> -> vector<16x2xf32>
    %c0_294 = arith.constant 0 : index
    %c0_295 = arith.constant 0 : index
    %349 = vector.load %arg27[%c0_294, %c0_295] : memref<64x2xf32, #tpu.memory_space<vmem>>, vector<16x2xf32>
    tpu.vector_store %arg27[%c0_294, %c0_295], %348 {strides = array<i32>} : memref<64x2xf32, #tpu.memory_space<vmem>>, vector<16x2xf32>,
    %c1_296 = arith.constant 1 : index
    %c0_297 = arith.constant 0 : index
    %c0_298 = arith.constant 0 : index
    %350 = vector.load %arg20[%c1_296, %c0_297, %c0_298] : memref<4x72x2xf32, #tpu.memory_space<vmem>>, vector<1x72x2xf32>
    %351 = vector.shape_cast %350 : vector<1x72x2xf32> to vector<72x2xf32>
    %cst_299 = arith.constant dense<0.000000e+00> : vector<16x2xf32>
    %352 = tpu.matmul %345, %351, %cst_299 {dimension_numbers = #tpu.dot_dimension_numbers<[1], [0], [0], [1], [0, 0, 1, 1], [], []>} : vector<16x72xf32>, vector<72x2xf32>, vector<16x2xf32> -> vector<16x2xf32>
    %c16_300 = arith.constant 16 : index
    %c0_301 = arith.constant 0 : index
    %353 = vector.load %arg27[%c16_300, %c0_301] : memref<64x2xf32, #tpu.memory_space<vmem>>, vector<16x2xf32>
    tpu.vector_store %arg27[%c16_300, %c0_301], %352 {strides = array<i32>} : memref<64x2xf32, #tpu.memory_space<vmem>>, vector<16x2xf32>,
    %c2_302 = arith.constant 2 : index
    %c0_303 = arith.constant 0 : index
    %c0_304 = arith.constant 0 : index
    %354 = vector.load %arg20[%c2_302, %c0_303, %c0_304] : memref<4x72x2xf32, #tpu.memory_space<vmem>>, vector<1x72x2xf32>
    %355 = vector.shape_cast %354 : vector<1x72x2xf32> to vector<72x2xf32>
    %cst_305 = arith.constant dense<0.000000e+00> : vector<16x2xf32>
    %356 = tpu.matmul %345, %355, %cst_305 {dimension_numbers = #tpu.dot_dimension_numbers<[1], [0], [0], [1], [0, 0, 1, 1], [], []>} : vector<16x72xf32>, vector<72x2xf32>, vector<16x2xf32> -> vector<16x2xf32>
    %c32_306 = arith.constant 32 : index
    %c0_307 = arith.constant 0 : index
    %357 = vector.load %arg27[%c32_306, %c0_307] : memref<64x2xf32, #tpu.memory_space<vmem>>, vector<16x2xf32>
    tpu.vector_store %arg27[%c32_306, %c0_307], %356 {strides = array<i32>} : memref<64x2xf32, #tpu.memory_space<vmem>>, vector<16x2xf32>,
    %c3_308 = arith.constant 3 : index
    %c0_309 = arith.constant 0 : index
    %c0_310 = arith.constant 0 : index
    %358 = vector.load %arg20[%c3_308, %c0_309, %c0_310] : memref<4x72x2xf32, #tpu.memory_space<vmem>>, vector<1x72x2xf32>
    %359 = vector.shape_cast %358 : vector<1x72x2xf32> to vector<72x2xf32>
    %cst_311 = arith.constant dense<0.000000e+00> : vector<16x2xf32>
    %360 = tpu.matmul %345, %359, %cst_311 {dimension_numbers = #tpu.dot_dimension_numbers<[1], [0], [0], [1], [0, 0, 1, 1], [], []>} : vector<16x72xf32>, vector<72x2xf32>, vector<16x2xf32> -> vector<16x2xf32>
    %c48_312 = arith.constant 48 : index
    %c0_313 = arith.constant 0 : index
    %361 = vector.load %arg27[%c48_312, %c0_313] : memref<64x2xf32, #tpu.memory_space<vmem>>, vector<16x2xf32>
    tpu.vector_store %arg27[%c48_312, %c0_313], %360 {strides = array<i32>} : memref<64x2xf32, #tpu.memory_space<vmem>>, vector<16x2xf32>,
    %c0_314 = arith.constant 0 : index
    %c0_315 = arith.constant 0 : index
    %362 = vector.load %arg21[%c0_314, %c0_315] : memref<10x64xf32, #tpu.memory_space<vmem>>, vector<10x64xf32>
    %c0_316 = arith.constant 0 : index
    %c0_317 = arith.constant 0 : index
    %363 = vector.load %arg27[%c0_316, %c0_317] : memref<64x2xf32, #tpu.memory_space<vmem>>, vector<64x2xf32>
    %cst_318 = arith.constant dense<0.000000e+00> : vector<10x2xf32>
    %364 = tpu.matmul %362, %363, %cst_318 {dimension_numbers = #tpu.dot_dimension_numbers<[1], [0], [0], [1], [0, 0, 1, 1], [], []>} : vector<10x64xf32>, vector<64x2xf32>, vector<10x2xf32> -> vector<10x2xf32>
    %c0_319 = arith.constant 0 : index
    %c0_320 = arith.constant 0 : index
    %365 = vector.load %arg22[%c0_319, %c0_320] : memref<10x1xf32, #tpu.memory_space<vmem>>, vector<10x1xf32>
    %366 = vector.broadcast %365 : vector<10x1xf32> to vector<10x2xf32>
    %367 = arith.addf %364, %366 : vector<10x2xf32>
    %c0_321 = arith.constant 0 : index
    %c0_322 = arith.constant 0 : index
    %368 = vector.load %arg23[%c0_321, %c0_322] : memref<10x2xf32, #tpu.memory_space<vmem>>, vector<10x2xf32>
    tpu.vector_store %arg23[%c0_321, %c0_322], %367 {strides = array<i32>} : memref<10x2xf32, #tpu.memory_space<vmem>>, vector<10x2xf32>,
    return
  }
}

</mosaic_0001>

<bundles_post_ra>
// kernel: classifier_forward.1
= control target key start
LH: loop header
LB: loop body
LE: loop exit
PB: predicated region body
PF: predicated region fallthrough
CT: control target
= control target key end

     0   :  { %v20350_v0 = vmov 0   ;;  %v96_v19 = vlaneseq  ;;  %s13091_s29 = smov 126   ;;  %vm394_vm0 = vcmask 1039360   ;;  %vm672_vm1 = vcmask 1031168   ;;  %s13098_s27 = smov 123   ;;  %s20319_s1 = inlined_call_operand.vmem [shape: f32[9,16,1], index: 1, kind: input, shape index: {}]   ;;  %s20320_s0 = inlined_call_operand.vmem [shape: f32[1,2392], index: 0, kind: input, shape index: {}]   ;;  %s20321_s13 = inlined_call_operand.vmem [shape: f32[1,2312], index: 13, kind: input, shape index: {}]   ;;  %s20322_s5 = inlined_call_operand.vmem [shape: f32[16,1], index: 5, kind: input, shape index: {}]   ;;  %s20323_s9 = inlined_call_operand.vmem [shape: f32[16,1], index: 9, kind: input, shape index: {}]   ;;  %s20324_s17 = inlined_call_operand.vmem [shape: bf16[1156,324], index: 17, kind: input, shape index: {}]   ;;  %s20325_s2 = inlined_call_operand.vmem [shape: bf16[16,144], index: 2, kind: input, shape index: {}]   ;;  %s20326_s14 = inlined_call_operand.vmem [shape: f32[1,648], index: 14, kind: input, shape index: {}]   ;;  %s20327_s6 = inlined_call_operand.vmem [shape: f32[16,1], index: 6, kind: input, shape index: {}]   ;;  %s20328_s10 = inlined_call_operand.vmem [shape: f32[16,1], index: 10, kind: input, shape index: {}]   ;;  %s20329_s18 = inlined_call_operand.vmem [shape: bf16[324,100], index: 18, kind: input, shape index: {}]   ;;  %s20330_s3 = inlined_call_operand.vmem [shape: bf16[16,144], index: 3, kind: input, shape index: {}]   ;;  %s20331_s15 = inlined_call_operand.vmem [shape: f32[1,200], index: 15, kind: input, shape index: {}]   ;;  %s20332_s7 = inlined_call_operand.vmem [shape: f32[16,1], index: 7, kind: input, shape index: {}]   ;;  %s20333_s11 = inlined_call_operand.vmem [shape: f32[16,1], index: 11, kind: input, shape index: {}]   ;;  %s20334_s19 = inlined_call_operand.vmem [shape: bf16[100,36], index: 19, kind: input, shape index: {}]   ;;  %s20335_s4 = inlined_call_operand.vmem [shape: bf16[16,144], index: 4, kind: input, shape index: {}]   ;;  %s20336_s16 = inlined_call_operand.vmem [shape: f32[1,72], index: 16, kind: input, shape index: {}]   ;;  %s20337_s8 = inlined_call_operand.vmem [shape: f32[16,1], index: 8, kind: input, shape index: {}]   ;;  %s20338_s12 = inlined_call_operand.vmem [shape: f32[16,1], index: 12, kind: input, shape index: {}]   ;;  %s20339_s20 = inlined_call_operand.vmem [shape: f32[4,72,2], index: 20, kind: input, shape index: {}]   ;;  %s20340_s22 = inlined_call_operand.vmem [shape: f32[10,1], index: 22, kind: input, shape index: {}]   ;;  %s20341_s21 = inlined_call_operand.vmem [shape: f32[10,64], index: 21, kind: input, shape index: {}]   ;;  %s20342_s23 = inlined_call_operand.vmem [shape: f32[10,2], index: 23, kind: output, shape index: {}]  }
   0x1   :  { %20636 = sst [smem:[#allocation240_spill]] %s20319_s1  ;;  %12362 = vset.pattern.permute.xlu1 %v20350_v0  ;;  %12361 = vset.pattern.permute.xlu0 %v20350_v0  ;;  %s20630_s1 = smov 93   ;;  %vm950_vm2 = vcmask 769024   ;;  %vm1228_vm3 = vcmask 760832   ;;  %vm1506_vm4 = vcmask 752640   ;;  %vm20634_vm5 = vcmask 490496  }
   0x2   :  { %20637 = sst [smem:[#allocation241_spill]] %s20320_s0  ;;  %v13305_v20 = vshrl.u32 %v96_v19, 7  ;;  %s13096_s0 = smov 59   ;;  %vm2062_vm6 = vcmask 482304   ;;  %vm2340_vm7 = vcmask 474112   ;;  %vm2567_vm9 = vcmask 1006592  }
   0x3   :  { %20638 = sst [smem:[#allocation242_spill]] %s20321_s13  ;;  %s13111_s30 = smov 69  }
   0x4   :  { %20639 = sst [smem:[#allocation243_spill]] %s20322_s5  ;;  %v13308_v21 = vsub.s32 1, %v13305_v20  ;;  %v13311_v22 = vsub.s32 0, %v13305_v20  ;;  %v13327_v26 = vsub.s32 3, %v13305_v20  ;;  %v13330_v27 = vsub.s32 2, %v13305_v20  ;;  %s20628_s5 = smov 94  }
   0x5   :  { %20640 = sst [smem:[#allocation244_spill]] %s20323_s9  ;;  %v13361_v38 = vsub.s32 4, %v13305_v20  ;;  %v13402_v52 = vsub.s32 5, %v13305_v20  ;;  %s13094_s9 = smov 92  }
   0x6   :  { %20641 = sst [smem:[#allocation245_spill]] %s20324_s17  ;;  %20645 = vst [vmem:[#allocation6_spill] sm:$0xff] %v13308_v21  ;;  %20646 = vst [vmem:[#allocation7_spill] sm:$0xff] %v13311_v22  ;;  %s13095_s17 = smov 60  }
   0x7   :  { %20642 = sst [smem:[#allocation246_spill]] %s20325_s2  ;;  %20648 = vst [vmem:[#allocation8_spill] sm:$0xff] %v13327_v26  ;;  %20649 = vst [vmem:[#allocation9_spill] sm:$0xff] %v13330_v27  ;;  %s13097_s2 = smov 58  }
   0x8   :  { %20643 = sst [smem:[#allocation247_spill]] %s20326_s14  ;;  %20650 = vst [vmem:[#allocation10_spill] sm:$0xff] %v13361_v38  ;;  %20651 = vst [vmem:[#allocation11_spill] sm:$0xff] %v13402_v52  ;;  %s13100_s14 = smov 124  }
   0x9   :  { %s20644_s24 = sld [smem:[#allocation240_spill]] }
   0xa   :  { %s20647_s28 = sld [smem:[#allocation241_spill]] }
   0xb   :  { %s21221_s13 = sld [smem:[#allocation243_spill]] }
   0xc   :  { %s21223_s26 = sld [smem:[#allocation245_spill]] }
   0xf   :  { %v11173_v1 = vld [vmem:[%s20644_s24 + $0x20] sm:$0xff]  ;;  %v11171_v2 = vld [vmem:[%s20644_s24 + $0x10] sm:$0xff]  ;;  %v11174_v3 = vld [vmem:[%s20644_s24 + $0x28] sm:$0xff] }
  0x10   :  { %512 = vperm.xlu1 %12362, %v11173_v1   ;;  %234 = vperm.xlu0 %12361, %v11171_v2   ;;  %v11172_v4 = vld [vmem:[%s20644_s24 + $0x18] sm:$0xff]  ;;  %v11175_v6 = vld [vmem:[%s20644_s24 + $0x30] sm:$0xff]  ;;  %v11178_v7 = vld [vmem:[%s20644_s24 + $0x48] sm:$0xff] }
  0x11   :  { %v11176_v5 = vld [vmem:[%s20644_s24 + $0x38] sm:$0xff]  ;;  %v11177_v8 = vld [vmem:[%s20644_s24 + $0x40] sm:$0xff]  ;;  %v11179_v10 = vld [vmem:[%s20644_s24 + $0x50] sm:$0xff] }
  0x12   :  { %v11180_v9 = vld [vmem:[%s20644_s24 + $0x58] sm:$0xff]  ;;  %v11182_v11 = vld [vmem:[%s20644_s24 + $0x68] sm:$0xff]  ;;  %v11181_v12 = vld [vmem:[%s20644_s24 + $0x60] sm:$0xff] }
  0x13   :  { %v11184_v13 = vld [vmem:[%s20644_s24 + $0x78] sm:$0xff]  ;;  %v11183_v14 = vld [vmem:[%s20644_s24 + $0x70] sm:$0xff]  ;;  %v11186_v15 = vld [vmem:[%s20644_s24 + $0x88] sm:$0xff] }
  0x14   :  { %517 = vperm.xlu1 %12362, %v11174_v3   ;;  %239 = vperm.xlu0 %12361, %v11172_v4   ;;  %v11185_v16 = vld [vmem:[%s20644_s24 + $0x80] sm:$0xff]  ;;  %v79_v17 = vld [vmem:[%s20644_s24 + $0x8] sm:$0xff] }
  0x15   :  { %v78_v18 = vld [vmem:[%s20644_s24] sm:$0xff]  ;;  %s13090_s24 = smov 127  }
  0x16   :  { %v13316_v23 = vld [vmem:[%s20647_s28] sm:$0xff] }
  0x17   :  { %v13320_v24 = vrot.slane %v13316_v23, %v13308_v21  ;;  %v13324_v25 = vrot.slane %v13316_v23, %v13311_v22  ;;  %v13340_v31 = vrot.slane %v13316_v23, %v13327_v26  ;;  %v13344_v32 = vrot.slane %v13316_v23, %v13330_v27 }
  0x18   :  { %795 = vperm.xlu1 %12362, %v11176_v5   ;;  %790 = vperm.xlu0 %12361, %v11175_v6   ;;  %v13371_v41 = vrot.slane %v13316_v23, %v13361_v38  ;;  %v13412_v55 = vrot.slane %v13316_v23, %v13402_v52  ;;  %v13449_v5 = vsub.s32 6, %v13305_v20 }
  0x1a   :  { %20652 = vst [vmem:[#allocation12_spill] sm:$0xff] %v13449_v5 }
  0x1c   :  { %1073 = vperm.xlu1 %12362, %v11178_v7   ;;  %1068 = vperm.xlu0 %12361, %v11177_v8   ;;  %v13459_v8 = vrot.slane %v13316_v23, %v13449_v5 }
  0x20   :  { %1351 = vperm.xlu1 %12362, %v11180_v9   ;;  %1346 = vperm.xlu0 %12361, %v11179_v10  }
  0x24   :  { %1629 = vperm.xlu1 %12362, %v11182_v11   ;;  %1624 = vperm.xlu0 %12361, %v11181_v12  }
  0x28   :  { %1907 = vperm.xlu1 %12362, %v11184_v13   ;;  %1902 = vperm.xlu0 %12361, %v11183_v14  }
  0x2c   :  { %2185 = vperm.xlu1 %12362, %v11186_v15   ;;  %2180 = vperm.xlu0 %12361, %v11185_v16  }
  0x30   :  { %90 = vperm.xlu1 %12362, %v79_v17   ;;  %85 = vperm.xlu0 %12361, %v78_v18  }
  0x8b   :  { %v13332_v28 = vpop.permute.xlu0 %234  ;;  %v13379_v44 = vpop.permute.xlu1 %512 }
  0x8c   :  { %v243_v29 = vmul.f32 %v13332_v28, %v13320_v24  ;;  %v242_v30 = vmul.f32 %v13332_v28, %v13324_v25  ;;  %v245_v33 = vmul.f32 %v13332_v28, %v13340_v31  ;;  %v244_v34 = vmul.f32 %v13332_v28, %v13344_v32 }
  0x8d   :  { %v246_v43 = vmul.f32 %v13332_v28, %v13371_v41  ;;  %v521_v45 = vmul.f32 %v13379_v44, %v13320_v24  ;;  %v520_v46 = vmul.f32 %v13379_v44, %v13324_v25  ;;  %v523_v47 = vmul.f32 %v13379_v44, %v13340_v31 }
  0x8e   :  { %320 = vrot.lane.b32.xlu1 %v243_v29, %s13090_s24  ;;  %318 = vrot.lane.b32.xlu0 %v242_v30, %s13090_s24  ;;  %v522_v48 = vmul.f32 %v13379_v44, %v13344_v32  ;;  %v247_v57 = vmul.f32 %v13332_v28, %v13412_v55  ;;  %v524_v59 = vmul.f32 %v13379_v44, %v13371_v41 }
  0x8f   :  { %v13352_v35 = vpop.permute.xlu0 %239  ;;  %v13395_v49 = vpop.permute.xlu1 %517  ;;  %v248_v10 = vmul.f32 %v13332_v28, %v13459_v8  ;;  %v525_v12 = vmul.f32 %v13379_v44, %v13412_v55 }
  0x90   :  { %v262_v36 = vmul.f32 %v13352_v35, %v13320_v24  ;;  %v261_v37 = vmul.f32 %v13352_v35, %v13324_v25  ;;  %v264_v39 = vmul.f32 %v13352_v35, %v13340_v31  ;;  %v263_v40 = vmul.f32 %v13352_v35, %v13344_v32 }
  0x91   :  { %v265_v42 = vmul.f32 %v13352_v35, %v13371_v41  ;;  %v540_v50 = vmul.f32 %v13395_v49, %v13320_v24  ;;  %v539_v51 = vmul.f32 %v13395_v49, %v13324_v25  ;;  %v542_v53 = vmul.f32 %v13395_v49, %v13340_v31 }
  0x92   :  { %324 = vrot.lane.b32.xlu1 %v245_v33, %s13090_s24  ;;  %322 = vrot.lane.b32.xlu0 %v244_v34, %s13090_s24  ;;  %v541_v54 = vmul.f32 %v13395_v49, %v13344_v32  ;;  %v266_v56 = vmul.f32 %v13352_v35, %v13412_v55  ;;  %v543_v58 = vmul.f32 %v13395_v49, %v13371_v41  ;;  %v13502_v34 = vsub.s32 7, %v13305_v20 }
  0x93   :  { %v13426_v60 = vpop.permute.xlu0 %790  ;;  %v13442_v2 = vpop.permute.xlu1 %795  ;;  %v267_v9 = vmul.f32 %v13352_v35, %v13459_v8  ;;  %v544_v11 = vmul.f32 %v13395_v49, %v13412_v55 }
  0x94   :  { %v799_v61 = vmul.f32 %v13426_v60, %v13320_v24  ;;  %v798_v62 = vmul.f32 %v13426_v60, %v13324_v25  ;;  %v801_v63 = vmul.f32 %v13426_v60, %v13340_v31  ;;  %v800_v1 = vmul.f32 %v13426_v60, %v13344_v32  ;;  %20653 = vst [vmem:[#allocation13_spill] sm:$0xff] %v13502_v34 }
  0x95   :  { %v818_v3 = vmul.f32 %v13442_v2, %v13320_v24  ;;  %v817_v4 = vmul.f32 %v13442_v2, %v13324_v25  ;;  %v820_v6 = vmul.f32 %v13442_v2, %v13340_v31  ;;  %v819_v7 = vmul.f32 %v13442_v2, %v13344_v32 }
  0x96   :  { %358 = vrot.lane.b32.xlu1 %v262_v36, %s13090_s24  ;;  %356 = vrot.lane.b32.xlu0 %v261_v37, %s13090_s24  ;;  %v821_v13 = vmul.f32 %v13442_v2, %v13371_v41  ;;  %v802_v14 = vmul.f32 %v13426_v60, %v13371_v41 }
  0x97   :  { %v13479_v15 = vpop.permute.xlu0 %1068  ;;  %v13495_v29 = vpop.permute.xlu1 %1073 }
  0x98   :  { %v1077_v16 = vmul.f32 %v13479_v15, %v13320_v24  ;;  %v1076_v17 = vmul.f32 %v13479_v15, %v13324_v25  ;;  %v1079_v18 = vmul.f32 %v13479_v15, %v13340_v31  ;;  %v1078_v19 = vmul.f32 %v13479_v15, %v13344_v32 }
  0x99   :  { %v1096_v30 = vmul.f32 %v13495_v29, %v13320_v24  ;;  %v1095_v33 = vmul.f32 %v13495_v29, %v13324_v25  ;;  %v1098_v36 = vmul.f32 %v13495_v29, %v13340_v31  ;;  %v1097_v37 = vmul.f32 %v13495_v29, %v13344_v32 }
  0x9a   :  { %362 = vrot.lane.b32.xlu1 %v264_v39, %s13090_s24  ;;  %360 = vrot.lane.b32.xlu0 %v263_v40, %s13090_s24  ;;  %v13512_v39 = vrot.slane %v13316_v23, %v13502_v34  ;;  %v545_v23 = vmul.f32 %v13395_v49, %v13459_v8 }
  0x9b   :  { %v13516_v20 = vpop.permute.xlu1 %1351  ;;  %v13518_v40 = vpop.permute.xlu0 %1346 }
  0x9e   :  { %364 = vrot.lane.b32.xlu1 %v265_v42, %s13090_s24  ;;  %326 = vrot.lane.b32.xlu0 %v246_v43, %s13090_s24  ;;  %v268_v42 = vmul.f32 %v13352_v35, %v13512_v39  ;;  %v249_v43 = vmul.f32 %v13332_v28, %v13512_v39 }
  0xa2   :  { %598 = vrot.lane.b32.xlu1 %v521_v45, %s13091_s29  ;;  %596 = vrot.lane.b32.xlu0 %v520_v46, %s13091_s29  ;;  %v526_v45 = vmul.f32 %v13379_v44, %v13459_v8  ;;  %v13530_v46 = vpop.permute.xlu1 %1629 }
  0xa6   :  { %602 = vrot.lane.b32.xlu1 %v523_v47, %s13091_s29  ;;  %600 = vrot.lane.b32.xlu0 %v522_v48, %s13091_s29  ;;  %v13532_v47 = vpop.permute.xlu0 %1624  ;;  %v822_v48 = vmul.f32 %v13442_v2, %v13412_v55 }
  0xaa   :  { %636 = vrot.lane.b32.xlu1 %v540_v50, %s13091_s29  ;;  %634 = vrot.lane.b32.xlu0 %v539_v51, %s13091_s29  ;;  %v803_v50 = vmul.f32 %v13426_v60, %v13412_v55  ;;  %v13542_v51 = vpop.permute.xlu1 %1907 }
  0xae   :  { %640 = vrot.lane.b32.xlu1 %v542_v53, %s13091_s29  ;;  %638 = vrot.lane.b32.xlu0 %v541_v54, %s13091_s29  ;;  %v13544_v53 = vpop.permute.xlu0 %1902  ;;  %v1099_v54 = vmul.f32 %v13495_v29, %v13371_v41 }
  0xb2   :  { %366 = vrot.lane.b32.xlu1 %v266_v56, %s13090_s24  ;;  %328 = vrot.lane.b32.xlu0 %v247_v57, %s13090_s24  ;;  %v1080_v56 = vmul.f32 %v13479_v15, %v13371_v41  ;;  %v1355_v57 = vmul.f32 %v13518_v40, %v13320_v24 }
  0xb6   :  { %642 = vrot.lane.b32.xlu1 %v543_v58, %s13091_s29  ;;  %604 = vrot.lane.b32.xlu0 %v524_v59, %s13091_s29  ;;  %v1354_v58 = vmul.f32 %v13518_v40, %v13324_v25  ;;  %v13556_v59 = vpop.permute.xlu1 %2185 }
  0xba   :  { %876 = vrot.lane.b32.xlu1 %v799_v61, %s20628_s5  ;;  %874 = vrot.lane.b32.xlu0 %v798_v62, %s20628_s5  ;;  %v13558_v61 = vpop.permute.xlu0 %2180  ;;  %v1357_v62 = vmul.f32 %v13518_v40, %v13340_v31 }
  0xbe   :  { %880 = vrot.lane.b32.xlu1 %v801_v63, %s20628_s5  ;;  %878 = vrot.lane.b32.xlu0 %v800_v1, %s20628_s5  ;;  %v1356_v63 = vmul.f32 %v13518_v40, %v13344_v32  ;;  %v13568_v1 = vpop.permute.xlu1 %90 }
  0xbf   :  { %20654 = vst [vmem:[#allocation14_spill] sm:$0xff] %v13568_v1 }
  0xc2   :  { %914 = vrot.lane.b32.xlu1 %v818_v3, %s20628_s5  ;;  %912 = vrot.lane.b32.xlu0 %v817_v4, %s20628_s5  ;;  %v13570_v3 = vpop.permute.xlu0 %85  ;;  %v1374_v4 = vmul.f32 %v13516_v20, %v13320_v24 }
  0xc3   :  { %20655 = vst [vmem:[#allocation15_spill] sm:$0xff] %v13570_v3 }
  0xc6   :  { %918 = vrot.lane.b32.xlu1 %v820_v6, %s20628_s5  ;;  %916 = vrot.lane.b32.xlu0 %v819_v7, %s20628_s5  ;;  %v1373_v6 = vmul.f32 %v13516_v20, %v13324_v25  ;;  %v13579_v7 = vld [vmem:[%s20647_s28 + $0x8] sm:$0xff] }
  0xca   :  { %368 = vrot.lane.b32.xlu1 %v267_v9, %s13090_s24  ;;  %330 = vrot.lane.b32.xlu0 %v248_v10, %s13090_s24 }
  0xce   :  { %644 = vrot.lane.b32.xlu1 %v544_v11, %s13091_s29  ;;  %606 = vrot.lane.b32.xlu0 %v525_v12, %s13091_s29  ;;  %v1376_v11 = vmul.f32 %v13516_v20, %v13340_v31  ;;  %v1375_v12 = vmul.f32 %v13516_v20, %v13344_v32 }
  0xd2   :  { %920 = vrot.lane.b32.xlu1 %v821_v13, %s20628_s5  ;;  %882 = vrot.lane.b32.xlu0 %v802_v14, %s20628_s5  ;;  %v13593_v13 = vrot.slane %v13579_v7, %v13311_v22 }
  0xd6   :  { %1154 = vrot.lane.b32.xlu1 %v1077_v16, %s20630_s1  ;;  %1152 = vrot.lane.b32.xlu0 %v1076_v17, %s20630_s1  ;;  %v269_v17 = vmul.f32 %v13352_v35, %v13593_v13 }
  0xda   :  { %1158 = vrot.lane.b32.xlu1 %v1079_v18, %s20630_s1  ;;  %1156 = vrot.lane.b32.xlu0 %v1078_v19, %s20630_s1  ;;  %v250_v18 = vmul.f32 %v13332_v28, %v13593_v13 }
  0xde   :  { %1192 = vrot.lane.b32.xlu1 %v1096_v30, %s20630_s1  ;;  %1190 = vrot.lane.b32.xlu0 %v1095_v33, %s20630_s1  ;;  %v546_v33 = vmul.f32 %v13395_v49, %v13512_v39 }
  0xe2   :  { %1196 = vrot.lane.b32.xlu1 %v1098_v36, %s20630_s1  ;;  %1194 = vrot.lane.b32.xlu0 %v1097_v37, %s20630_s1  ;;  %v527_v36 = vmul.f32 %v13379_v44, %v13512_v39 }
  0xe6   :  { %370 = vrot.lane.b32.xlu1 %v268_v42, %s13090_s24  ;;  %332 = vrot.lane.b32.xlu0 %v249_v43, %s13090_s24  ;;  %v823_v43 = vmul.f32 %v13442_v2, %v13459_v8 }
  0xea   :  { %646 = vrot.lane.b32.xlu1 %v545_v23, %s13091_s29  ;;  %608 = vrot.lane.b32.xlu0 %v526_v45, %s13091_s29  ;;  %v804_v23 = vmul.f32 %v13426_v60, %v13459_v8 }
  0xee   :  { %922 = vrot.lane.b32.xlu1 %v822_v48, %s20628_s5  ;;  %884 = vrot.lane.b32.xlu0 %v803_v50, %s20628_s5  ;;  %v1100_v50 = vmul.f32 %v13495_v29, %v13412_v55 }
  0xf2   :  { %1198 = vrot.lane.b32.xlu1 %v1099_v54, %s20630_s1  ;;  %1160 = vrot.lane.b32.xlu0 %v1080_v56, %s20630_s1  ;;  %v1081_v54 = vmul.f32 %v13479_v15, %v13412_v55 }
  0xf6   :  { %1432 = vrot.lane.b32.xlu1 %v1355_v57, %s13094_s9  ;;  %1430 = vrot.lane.b32.xlu0 %v1354_v58, %s13094_s9  ;;  %v1377_v58 = vmul.f32 %v13516_v20, %v13371_v41 }
  0xfa   :  { %1436 = vrot.lane.b32.xlu1 %v1357_v62, %s13094_s9  ;;  %1434 = vrot.lane.b32.xlu0 %v1356_v63, %s13094_s9  ;;  %v1358_v62 = vmul.f32 %v13518_v40, %v13371_v41 }
  0xfe   :  { %1470 = vrot.lane.b32.xlu1 %v1374_v4, %s13094_s9  ;;  %1468 = vrot.lane.b32.xlu0 %v1373_v6, %s13094_s9  ;;  %v1633_v6 = vmul.f32 %v13532_v47, %v13320_v24 }
 0x100   :  { %v13583_v9 = vpop.permute.xlu1 %320  ;;  %v13585_v10 = vpop.permute.xlu0 %318 }
 0x102   :  { %1474 = vrot.lane.b32.xlu1 %v1376_v11, %s13094_s9  ;;  %1472 = vrot.lane.b32.xlu0 %v1375_v12, %s13094_s9  ;;  %v1632_v11 = vmul.f32 %v13532_v47, %v13324_v25 }
 0x104   :  { %v13597_v14 = vpop.permute.xlu1 %324  ;;  %v13599_v16 = vpop.permute.xlu0 %322 }
 0x106   :  { %372 = vrot.lane.b32.xlu1 %v269_v17, %s13090_s24  ;;  %334 = vrot.lane.b32.xlu0 %v250_v18, %s13090_s24  ;;  %v1635_v18 = vmul.f32 %v13532_v47, %v13340_v31 }
 0x108   :  { %v13607_v19 = vpop.permute.xlu1 %358  ;;  %v13609_v30 = vpop.permute.xlu0 %356 }
 0x10a   :  { %648 = vrot.lane.b32.xlu1 %v546_v33, %s13091_s29  ;;  %610 = vrot.lane.b32.xlu0 %v527_v36, %s13091_s29  ;;  %v1634_v33 = vmul.f32 %v13532_v47, %v13344_v32 }
 0x10c   :  { %v13617_v37 = vpop.permute.xlu1 %362  ;;  %v13619_v42 = vpop.permute.xlu0 %360 }
 0x10e   :  { %924 = vrot.lane.b32.xlu1 %v823_v43, %s20628_s5  ;;  %886 = vrot.lane.b32.xlu0 %v804_v23, %s20628_s5  ;;  %v1652_v23 = vmul.f32 %v13530_v46, %v13320_v24 }
 0x110   :  { %v13627_v45 = vpop.permute.xlu1 %364  ;;  %v13629_v48 = vpop.permute.xlu0 %326 }
 0x112   :  { %1200 = vrot.lane.b32.xlu1 %v1100_v50, %s20630_s1  ;;  %1162 = vrot.lane.b32.xlu0 %v1081_v54, %s20630_s1  ;;  %v1651_v50 = vmul.f32 %v13530_v46, %v13324_v25 }
 0x114   :  { %v13637_v56 = vpop.permute.xlu1 %598  ;;  %v13639_v57 = vpop.permute.xlu0 %596 }
 0x116   :  { %1476 = vrot.lane.b32.xlu1 %v1377_v58, %s13094_s9  ;;  %1438 = vrot.lane.b32.xlu0 %v1358_v62, %s13094_s9  ;;  %v1654_v62 = vmul.f32 %v13530_v46, %v13340_v31 }
 0x118   :  { %v13647_v63 = vpop.permute.xlu1 %602  ;;  %v13649_v4 = vpop.permute.xlu0 %600 }
 0x11a   :  { %1710 = vrot.lane.b32.xlu1 %v1633_v6, %s13095_s17  ;;  %1708 = vrot.lane.b32.xlu0 %v1632_v11, %s13095_s17  ;;  %v1653_v6 = vmul.f32 %v13530_v46, %v13344_v32  ;;  %v13687_v11 = vrot.slane %v13579_v7, %v13308_v21 }
 0x11c   :  { %v13657_v12 = vpop.permute.xlu1 %636  ;;  %v13659_v17 = vpop.permute.xlu0 %634 }
 0x11e   :  { %1714 = vrot.lane.b32.xlu1 %v1635_v18, %s13095_s17  ;;  %1712 = vrot.lane.b32.xlu0 %v1634_v33, %s13095_s17 }
 0x120   :  { %v13667_v36 = vpop.permute.xlu1 %640  ;;  %v13669_v43 = vpop.permute.xlu0 %638 }
 0x122   :  { %1748 = vrot.lane.b32.xlu1 %v1652_v23, %s13095_s17  ;;  %1746 = vrot.lane.b32.xlu0 %v1651_v50, %s13095_s17  ;;  %v270_v23 = vmul.f32 %v13352_v35, %v13687_v11  ;;  %v251_v50 = vmul.f32 %v13332_v28, %v13687_v11 }
 0x124   :  { %v13677_v54 = vpop.permute.xlu1 %366  ;;  %v13679_v58 = vpop.permute.xlu0 %328 }
 0x125   :  { %20656 = vst [vmem:[#allocation16_spill] sm:$0xff] %v13677_v54  ;;  %20657 = vst [vmem:[#allocation17_spill] sm:$0xff] %v13679_v58 }
 0x126   :  { %1752 = vrot.lane.b32.xlu1 %v1654_v62, %s13095_s17  ;;  %1750 = vrot.lane.b32.xlu0 %v1653_v6, %s13095_s17  ;;  %v547_v62 = vmul.f32 %v13395_v49, %v13593_v13  ;;  %v528_v6 = vmul.f32 %v13379_v44, %v13593_v13 }
 0x128   :  { %v13691_v18 = vpop.permute.xlu1 %642  ;;  %v13693_v33 = vpop.permute.xlu0 %604 }
 0x129   :  { %20658 = vst [vmem:[#allocation18_spill] sm:$0xff] %v13691_v18  ;;  %20659 = vst [vmem:[#allocation19_spill] sm:$0xff] %v13693_v33 }
 0x12a   :  { %374 = vrot.lane.b32.xlu1 %v270_v23, %s13090_s24  ;;  %336 = vrot.lane.b32.xlu0 %v251_v50, %s13090_s24  ;;  %v824_v23 = vmul.f32 %v13442_v2, %v13512_v39  ;;  %v805_v50 = vmul.f32 %v13426_v60, %v13512_v39 }
 0x12c   :  { %v13701_v0 = vpop.permute.xlu1 %876  ;;  %v13703_v58 = vpop.permute.xlu0 %874 }
 0x12d   :  { %20660 = vst [vmem:[#allocation20_spill] sm:$0xff] %v13701_v0  ;;  %20661 = vst [vmem:[#allocation21_spill] sm:$0xff] %v13703_v58 }
 0x12e   :  { %650 = vrot.lane.b32.xlu1 %v547_v62, %s13091_s29  ;;  %612 = vrot.lane.b32.xlu0 %v528_v6, %s13091_s29  ;;  %v1101_v62 = vmul.f32 %v13495_v29, %v13459_v8  ;;  %v1082_v6 = vmul.f32 %v13479_v15, %v13459_v8 }
 0x130   :  { %v13711_v33 = vpop.permute.xlu1 %880  ;;  %v13713_v18 = vpop.permute.xlu0 %878 }
 0x131   :  { %20662 = vst [vmem:[#allocation22_spill] sm:$0xff] %v13711_v33  ;;  %20663 = vst [vmem:[#allocation23_spill] sm:$0xff] %v13713_v18 }
 0x132   :  { %926 = vrot.lane.b32.xlu1 %v824_v23, %s20628_s5  ;;  %888 = vrot.lane.b32.xlu0 %v805_v50, %s20628_s5  ;;  %v1378_v23 = vmul.f32 %v13516_v20, %v13412_v55  ;;  %v1359_v50 = vmul.f32 %v13518_v40, %v13412_v55 }
 0x134   :  { %v13721_v58 = vpop.permute.xlu1 %914  ;;  %v13723_v0 = vpop.permute.xlu0 %912 }
 0x135   :  { %20664 = vst [vmem:[#allocation24_spill] sm:$0xff] %v13721_v58  ;;  %20665 = vst [vmem:[#allocation25_spill] sm:$0xff] %v13723_v0 }
 0x136   :  { %1202 = vrot.lane.b32.xlu1 %v1101_v62, %s20630_s1  ;;  %1164 = vrot.lane.b32.xlu0 %v1082_v6, %s20630_s1  ;;  %v1655_v62 = vmul.f32 %v13530_v46, %v13371_v41  ;;  %v1636_v6 = vmul.f32 %v13532_v47, %v13371_v41 }
 0x138   :  { %v13731_v33 = vpop.permute.xlu1 %918  ;;  %v13733_v18 = vpop.permute.xlu0 %916 }
 0x139   :  { %20666 = vst [vmem:[#allocation26_spill] sm:$0xff] %v13731_v33  ;;  %20667 = vst [vmem:[#allocation27_spill] sm:$0xff] %v13733_v18 }
 0x13a   :  { %1478 = vrot.lane.b32.xlu1 %v1378_v23, %s13094_s9  ;;  %1440 = vrot.lane.b32.xlu0 %v1359_v50, %s13094_s9  ;;  %v1911_v23 = vmul.f32 %v13544_v53, %v13320_v24  ;;  %v1910_v50 = vmul.f32 %v13544_v53, %v13324_v25 }
 0x13c   :  { %v13741_v0 = vpop.permute.xlu1 %368  ;;  %v13743_v58 = vpop.permute.xlu0 %330 }
 0x13d   :  { %20668 = vst [vmem:[#allocation28_spill] sm:$0xff] %v13741_v0  ;;  %20669 = vst [vmem:[#allocation29_spill] sm:$0xff] %v13743_v58 }
 0x13e   :  { %1754 = vrot.lane.b32.xlu1 %v1655_v62, %s13095_s17  ;;  %1716 = vrot.lane.b32.xlu0 %v1636_v6, %s13095_s17  ;;  %v1913_v6 = vmul.f32 %v13544_v53, %v13340_v31 }
 0x140   :  { %v13751_v33 = vpop.permute.xlu1 %644  ;;  %v13753_v18 = vpop.permute.xlu0 %606 }
 0x141   :  { %20670 = vst [vmem:[#allocation30_spill] sm:$0xff] %v13751_v33  ;;  %20671 = vst [vmem:[#allocation31_spill] sm:$0xff] %v13753_v18  ;;  %v1912_v18 = vmul.f32 %v13544_v53, %v13344_v32 }
 0x142   :  { %1988 = vrot.lane.b32.xlu1 %v1911_v23, %s13096_s0  ;;  %1986 = vrot.lane.b32.xlu0 %v1910_v50, %s13096_s0  ;;  %v1930_v23 = vmul.f32 %v13542_v51, %v13320_v24  ;;  %v1929_v50 = vmul.f32 %v13542_v51, %v13324_v25 }
 0x144   :  { %v13761_v58 = vpop.permute.xlu1 %920  ;;  %v13763_v62 = vpop.permute.xlu0 %882 }
 0x145   :  { %20672 = vst [vmem:[#allocation32_spill] sm:$0xff] %v13761_v58  ;;  %20673 = vst [vmem:[#allocation33_spill] sm:$0xff] %v13763_v62 }
 0x146   :  { %1992 = vrot.lane.b32.xlu1 %v1913_v6, %s13096_s0  ;;  %1990 = vrot.lane.b32.xlu0 %v1912_v18, %s13096_s0  ;;  %v1932_v18 = vmul.f32 %v13542_v51, %v13340_v31  ;;  %v1931_v6 = vmul.f32 %v13542_v51, %v13344_v32 }
 0x148   :  { %v13771_v33 = vpop.permute.xlu1 %1154  ;;  %v13773_v0 = vpop.permute.xlu0 %1152 }
 0x149   :  { %20674 = vst [vmem:[#allocation34_spill] sm:$0xff] %v13771_v33  ;;  %20675 = vst [vmem:[#allocation35_spill] sm:$0xff] %v13773_v0  ;;  %v13791_v0 = vrot.slane %v13579_v7, %v13330_v27 }
 0x14a   :  { %2026 = vrot.lane.b32.xlu1 %v1930_v23, %s13096_s0  ;;  %2024 = vrot.lane.b32.xlu0 %v1929_v50, %s13096_s0 }
 0x14c   :  { %v13781_v62 = vpop.permute.xlu1 %1158  ;;  %v13783_v58 = vpop.permute.xlu0 %1156 }
 0x14d   :  { %20676 = vst [vmem:[#allocation36_spill] sm:$0xff] %v13781_v62  ;;  %20677 = vst [vmem:[#allocation37_spill] sm:$0xff] %v13783_v58  ;;  %v271_v62 = vmul.f32 %v13352_v35, %v13791_v0  ;;  %v252_v58 = vmul.f32 %v13332_v28, %v13791_v0 }
 0x14e   :  { %2030 = vrot.lane.b32.xlu1 %v1932_v18, %s13096_s0  ;;  %2028 = vrot.lane.b32.xlu0 %v1931_v6, %s13096_s0  ;;  %v548_v18 = vmul.f32 %v13395_v49, %v13687_v11  ;;  %v529_v6 = vmul.f32 %v13379_v44, %v13687_v11 }
 0x150   :  { %v13795_v23 = vpop.permute.xlu1 %1192  ;;  %v13797_v50 = vpop.permute.xlu0 %1190 }
 0x151   :  { %20678 = vst [vmem:[#allocation38_spill] sm:$0xff] %v13795_v23  ;;  %20679 = vst [vmem:[#allocation39_spill] sm:$0xff] %v13797_v50 }
 0x152   :  { %376 = vrot.lane.b32.xlu1 %v271_v62, %s13090_s24  ;;  %338 = vrot.lane.b32.xlu0 %v252_v58, %s13090_s24  ;;  %v825_v58 = vmul.f32 %v13442_v2, %v13593_v13  ;;  %v806_v62 = vmul.f32 %v13426_v60, %v13593_v13 }
 0x154   :  { %v13805_v33 = vpop.permute.xlu1 %1196  ;;  %v13807_v54 = vpop.permute.xlu0 %1194 }
 0x155   :  { %20680 = vst [vmem:[#allocation40_spill] sm:$0xff] %v13805_v33  ;;  %20681 = vst [vmem:[#allocation41_spill] sm:$0xff] %v13807_v54 }
 0x156   :  { %652 = vrot.lane.b32.xlu1 %v548_v18, %s13091_s29  ;;  %614 = vrot.lane.b32.xlu0 %v529_v6, %s13091_s29  ;;  %v1102_v18 = vmul.f32 %v13495_v29, %v13512_v39  ;;  %v1083_v6 = vmul.f32 %v13479_v15, %v13512_v39 }
 0x158   :  { %v13815_v50 = vpop.permute.xlu1 %370  ;;  %v13817_v23 = vpop.permute.xlu0 %332 }
 0x159   :  { %20682 = vst [vmem:[#allocation42_spill] sm:$0xff] %v13815_v50  ;;  %20683 = vst [vmem:[#allocation43_spill] sm:$0xff] %v13817_v23 }
 0x15a   :  { %928 = vrot.lane.b32.xlu1 %v825_v58, %s20628_s5  ;;  %890 = vrot.lane.b32.xlu0 %v806_v62, %s20628_s5  ;;  %v1379_v58 = vmul.f32 %v13516_v20, %v13459_v8  ;;  %v1360_v62 = vmul.f32 %v13518_v40, %v13459_v8 }
 0x15c   :  { %v13825_v33 = vpop.permute.xlu1 %646  ;;  %v13827_v54 = vpop.permute.xlu0 %608 }
 0x15d   :  { %20684 = vst [vmem:[#allocation44_spill] sm:$0xff] %v13825_v33  ;;  %20685 = vst [vmem:[#allocation45_spill] sm:$0xff] %v13827_v54 }
 0x15e   :  { %1204 = vrot.lane.b32.xlu1 %v1102_v18, %s20630_s1  ;;  %1166 = vrot.lane.b32.xlu0 %v1083_v6, %s20630_s1  ;;  %v1656_v18 = vmul.f32 %v13530_v46, %v13412_v55  ;;  %v1637_v6 = vmul.f32 %v13532_v47, %v13412_v55 }
 0x160   :  { %v13835_v23 = vpop.permute.xlu1 %922  ;;  %v13837_v50 = vpop.permute.xlu0 %884 }
 0x161   :  { %20686 = vst [vmem:[#allocation46_spill] sm:$0xff] %v13835_v23  ;;  %20687 = vst [vmem:[#allocation47_spill] sm:$0xff] %v13837_v50 }
 0x162   :  { %1480 = vrot.lane.b32.xlu1 %v1379_v58, %s13094_s9  ;;  %1442 = vrot.lane.b32.xlu0 %v1360_v62, %s13094_s9  ;;  %v1933_v58 = vmul.f32 %v13542_v51, %v13371_v41  ;;  %v1914_v62 = vmul.f32 %v13544_v53, %v13371_v41 }
 0x164   :  { %v13845_v54 = vpop.permute.xlu1 %1198  ;;  %v13847_v33 = vpop.permute.xlu0 %1160 }
 0x165   :  { %20688 = vst [vmem:[#allocation48_spill] sm:$0xff] %v13845_v54  ;;  %20689 = vst [vmem:[#allocation49_spill] sm:$0xff] %v13847_v33 }
 0x166   :  { %1756 = vrot.lane.b32.xlu1 %v1656_v18, %s13095_s17  ;;  %1718 = vrot.lane.b32.xlu0 %v1637_v6, %s13095_s17  ;;  %v2189_v18 = vmul.f32 %v13558_v61, %v13320_v24  ;;  %v2188_v6 = vmul.f32 %v13558_v61, %v13324_v25 }
 0x168   :  { %v13855_v50 = vpop.permute.xlu1 %1432  ;;  %v13857_v23 = vpop.permute.xlu0 %1430 }
 0x169   :  { %20690 = vst [vmem:[#allocation50_spill] sm:$0xff] %v13855_v50  ;;  %20691 = vst [vmem:[#allocation51_spill] sm:$0xff] %v13857_v23 }
 0x16a   :  { %2032 = vrot.lane.b32.xlu1 %v1933_v58, %s13096_s0  ;;  %1994 = vrot.lane.b32.xlu0 %v1914_v62, %s13096_s0  ;;  %v2191_v62 = vmul.f32 %v13558_v61, %v13340_v31 }
 0x16c   :  { %v13865_v33 = vpop.permute.xlu1 %1436  ;;  %v13867_v54 = vpop.permute.xlu0 %1434 }
 0x16d   :  { %20692 = vst [vmem:[#allocation52_spill] sm:$0xff] %v13865_v33  ;;  %20693 = vst [vmem:[#allocation53_spill] sm:$0xff] %v13867_v54  ;;  %v2190_v33 = vmul.f32 %v13558_v61, %v13344_v32 }
 0x16e   :  { %2266 = vrot.lane.b32.xlu1 %v2189_v18, %s13097_s2  ;;  %2264 = vrot.lane.b32.xlu0 %v2188_v6, %s13097_s2  ;;  %v2208_v18 = vmul.f32 %v13556_v59, %v13320_v24  ;;  %v2207_v6 = vmul.f32 %v13556_v59, %v13324_v25 }
 0x170   :  { %v13875_v23 = vpop.permute.xlu1 %1470  ;;  %v13877_v58 = vpop.permute.xlu0 %1468 }
 0x171   :  { %20694 = vst [vmem:[#allocation54_spill] sm:$0xff] %v13875_v23  ;;  %20695 = vst [vmem:[#allocation55_spill] sm:$0xff] %v13877_v58 }
 0x172   :  { %2270 = vrot.lane.b32.xlu1 %v2191_v62, %s13097_s2  ;;  %2268 = vrot.lane.b32.xlu0 %v2190_v33, %s13097_s2  ;;  %v2210_v33 = vmul.f32 %v13556_v59, %v13340_v31  ;;  %v2209_v62 = vmul.f32 %v13556_v59, %v13344_v32 }
 0x174   :  { %v13885_v54 = vpop.permute.xlu1 %1474  ;;  %v13887_v50 = vpop.permute.xlu0 %1472 }
 0x175   :  { %20696 = vst [vmem:[#allocation56_spill] sm:$0xff] %v13885_v54  ;;  %20697 = vst [vmem:[#allocation57_spill] sm:$0xff] %v13887_v50  ;;  %v13905_v54 = vrot.slane %v13579_v7, %v13327_v26 }
 0x176   :  { %2304 = vrot.lane.b32.xlu1 %v2208_v18, %s13097_s2  ;;  %2302 = vrot.lane.b32.xlu0 %v2207_v6, %s13097_s2 }
 0x178   :  { %v13895_v58 = vpop.permute.xlu1 %372  ;;  %v13897_v23 = vpop.permute.xlu0 %334 }
 0x179   :  { %20698 = vst [vmem:[#allocation58_spill] sm:$0xff] %v13895_v58  ;;  %20699 = vst [vmem:[#allocation59_spill] sm:$0xff] %v13897_v23  ;;  %v272_v23 = vmul.f32 %v13352_v35, %v13905_v54  ;;  %v253_v58 = vmul.f32 %v13332_v28, %v13905_v54 }
 0x17a   :  { %2308 = vrot.lane.b32.xlu1 %v2210_v33, %s13097_s2  ;;  %2306 = vrot.lane.b32.xlu0 %v2209_v62, %s13097_s2  ;;  %v549_v33 = vmul.f32 %v13395_v49, %v13791_v0  ;;  %v530_v62 = vmul.f32 %v13379_v44, %v13791_v0 }
 0x17c   :  { %v13909_v18 = vpop.permute.xlu1 %648  ;;  %v13911_v6 = vpop.permute.xlu0 %610 }
 0x17d   :  { %20700 = vst [vmem:[#allocation60_spill] sm:$0xff] %v13909_v18  ;;  %20701 = vst [vmem:[#allocation61_spill] sm:$0xff] %v13911_v6 }
 0x17e   :  { %378 = vrot.lane.b32.xlu1 %v272_v23, %s13090_s24  ;;  %340 = vrot.lane.b32.xlu0 %v253_v58, %s13090_s24  ;;  %v826_v23 = vmul.f32 %v13442_v2, %v13687_v11  ;;  %v807_v58 = vmul.f32 %v13426_v60, %v13687_v11 }
 0x180   :  { %v13919_v26 = vpop.permute.xlu1 %924  ;;  %v13921_v50 = vpop.permute.xlu0 %886 }
 0x181   :  { %20702 = vst [vmem:[#allocation62_spill] sm:$0xff] %v13919_v26  ;;  %20703 = vst [vmem:[#allocation63_spill] sm:$0xff] %v13921_v50 }
 0x182   :  { %654 = vrot.lane.b32.xlu1 %v549_v33, %s13091_s29  ;;  %616 = vrot.lane.b32.xlu0 %v530_v62, %s13091_s29  ;;  %v1103_v33 = vmul.f32 %v13495_v29, %v13593_v13  ;;  %v1084_v62 = vmul.f32 %v13479_v15, %v13593_v13 }
 0x184   :  { %v13929_v6 = vpop.permute.xlu1 %1200  ;;  %v13931_v18 = vpop.permute.xlu0 %1162 }
 0x185   :  { %20704 = vst [vmem:[#allocation64_spill] sm:$0xff] %v13929_v6  ;;  %20705 = vst [vmem:[#allocation65_spill] sm:$0xff] %v13931_v18 }
 0x186   :  { %930 = vrot.lane.b32.xlu1 %v826_v23, %s20628_s5  ;;  %892 = vrot.lane.b32.xlu0 %v807_v58, %s20628_s5  ;;  %v1380_v23 = vmul.f32 %v13516_v20, %v13512_v39  ;;  %v1361_v58 = vmul.f32 %v13518_v40, %v13512_v39 }
 0x188   :  { %v13939_v50 = vpop.permute.xlu1 %1476  ;;  %v13941_v26 = vpop.permute.xlu0 %1438 }
 0x189   :  { %20706 = vst [vmem:[#allocation66_spill] sm:$0xff] %v13939_v50  ;;  %20707 = vst [vmem:[#allocation67_spill] sm:$0xff] %v13941_v26 }
 0x18a   :  { %1206 = vrot.lane.b32.xlu1 %v1103_v33, %s20630_s1  ;;  %1168 = vrot.lane.b32.xlu0 %v1084_v62, %s20630_s1  ;;  %v1657_v33 = vmul.f32 %v13530_v46, %v13459_v8  ;;  %v1638_v62 = vmul.f32 %v13532_v47, %v13459_v8 }
 0x18c   :  { %v13949_v18 = vpop.permute.xlu1 %1710  ;;  %v13951_v6 = vpop.permute.xlu0 %1708 }
 0x18d   :  { %20708 = vst [vmem:[#allocation68_spill] sm:$0xff] %v13949_v18  ;;  %20709 = vst [vmem:[#allocation69_spill] sm:$0xff] %v13951_v6 }
 0x18e   :  { %1482 = vrot.lane.b32.xlu1 %v1380_v23, %s13094_s9  ;;  %1444 = vrot.lane.b32.xlu0 %v1361_v58, %s13094_s9  ;;  %v1934_v23 = vmul.f32 %v13542_v51, %v13412_v55  ;;  %v1915_v58 = vmul.f32 %v13544_v53, %v13412_v55 }
 0x190   :  { %v13959_v26 = vpop.permute.xlu1 %1714  ;;  %v13961_v50 = vpop.permute.xlu0 %1712 }
 0x191   :  { %20710 = vst [vmem:[#allocation70_spill] sm:$0xff] %v13959_v26  ;;  %20711 = vst [vmem:[#allocation71_spill] sm:$0xff] %v13961_v50 }
 0x192   :  { %1758 = vrot.lane.b32.xlu1 %v1657_v33, %s13095_s17  ;;  %1720 = vrot.lane.b32.xlu0 %v1638_v62, %s13095_s17  ;;  %v2211_v33 = vmul.f32 %v13556_v59, %v13371_v41  ;;  %v2192_v62 = vmul.f32 %v13558_v61, %v13371_v41 }
 0x194   :  { %v13969_v6 = vpop.permute.xlu1 %1748  ;;  %v13971_v18 = vpop.permute.xlu0 %1746 }
 0x195   :  { %20712 = vst [vmem:[#allocation72_spill] sm:$0xff] %v13969_v6  ;;  %20713 = vst [vmem:[#allocation73_spill] sm:$0xff] %v13971_v18  ;;  %v13989_v18 = vrot.slane %v13579_v7, %v13361_v38 }
 0x196   :  { %2034 = vrot.lane.b32.xlu1 %v1934_v23, %s13096_s0  ;;  %1996 = vrot.lane.b32.xlu0 %v1915_v58, %s13096_s0 }
 0x198   :  { %v13979_v26 = vpop.permute.xlu1 %1752  ;;  %v13981_v50 = vpop.permute.xlu0 %1750 }
 0x199   :  { %20714 = vst [vmem:[#allocation74_spill] sm:$0xff] %v13979_v26  ;;  %20715 = vst [vmem:[#allocation75_spill] sm:$0xff] %v13981_v50  ;;  %v273_v26 = vmul.f32 %v13352_v35, %v13989_v18  ;;  %v254_v50 = vmul.f32 %v13332_v28, %v13989_v18 }
 0x19a   :  { %2310 = vrot.lane.b32.xlu1 %v2211_v33, %s13097_s2  ;;  %2272 = vrot.lane.b32.xlu0 %v2192_v62, %s13097_s2  ;;  %v550_v33 = vmul.f32 %v13395_v49, %v13905_v54  ;;  %v531_v62 = vmul.f32 %v13379_v44, %v13905_v54 }
 0x19c   :  { %v13993_v23 = vpop.permute.xlu1 %374  ;;  %v13995_v58 = vpop.permute.xlu0 %336 }
 0x19d   :  { %20716 = vst [vmem:[#allocation76_spill] sm:$0xff] %v13993_v23  ;;  %20717 = vst [vmem:[#allocation77_spill] sm:$0xff] %v13995_v58 }
 0x19e   :  { %380 = vrot.lane.b32.xlu1 %v273_v26, %s13090_s24  ;;  %342 = vrot.lane.b32.xlu0 %v254_v50, %s13090_s24  ;;  %v827_v26 = vmul.f32 %v13442_v2, %v13791_v0  ;;  %v808_v50 = vmul.f32 %v13426_v60, %v13791_v0 }
 0x1a0   :  { %v14003_v38 = vpop.permute.xlu1 %650  ;;  %v14005_v6 = vpop.permute.xlu0 %612 }
 0x1a1   :  { %20718 = vst [vmem:[#allocation78_spill] sm:$0xff] %v14003_v38  ;;  %20719 = vst [vmem:[#allocation79_spill] sm:$0xff] %v14005_v6 }
 0x1a2   :  { %656 = vrot.lane.b32.xlu1 %v550_v33, %s13091_s29  ;;  %618 = vrot.lane.b32.xlu0 %v531_v62, %s13091_s29  ;;  %v1104_v33 = vmul.f32 %v13495_v29, %v13687_v11  ;;  %v1085_v62 = vmul.f32 %v13479_v15, %v13687_v11 }
 0x1a4   :  { %v14013_v58 = vpop.permute.xlu1 %926  ;;  %v14015_v23 = vpop.permute.xlu0 %888 }
 0x1a5   :  { %20720 = vst [vmem:[#allocation80_spill] sm:$0xff] %v14013_v58  ;;  %20721 = vst [vmem:[#allocation81_spill] sm:$0xff] %v14015_v23 }
 0x1a6   :  { %932 = vrot.lane.b32.xlu1 %v827_v26, %s20628_s5  ;;  %894 = vrot.lane.b32.xlu0 %v808_v50, %s20628_s5  ;;  %v1381_v26 = vmul.f32 %v13516_v20, %v13593_v13  ;;  %v1362_v50 = vmul.f32 %v13518_v40, %v13593_v13 }
 0x1a8   :  { %v14023_v6 = vpop.permute.xlu1 %1202  ;;  %v14025_v38 = vpop.permute.xlu0 %1164 }
 0x1a9   :  { %20722 = vst [vmem:[#allocation82_spill] sm:$0xff] %v14023_v6  ;;  %20723 = vst [vmem:[#allocation83_spill] sm:$0xff] %v14025_v38 }
 0x1aa   :  { %1208 = vrot.lane.b32.xlu1 %v1104_v33, %s20630_s1  ;;  %1170 = vrot.lane.b32.xlu0 %v1085_v62, %s20630_s1  ;;  %v1658_v33 = vmul.f32 %v13530_v46, %v13512_v39  ;;  %v1639_v62 = vmul.f32 %v13532_v47, %v13512_v39 }
 0x1ac   :  { %v14033_v23 = vpop.permute.xlu1 %1478  ;;  %v14035_v58 = vpop.permute.xlu0 %1440 }
 0x1ad   :  { %20724 = vst [vmem:[#allocation84_spill] sm:$0xff] %v14033_v23  ;;  %20725 = vst [vmem:[#allocation85_spill] sm:$0xff] %v14035_v58 }
 0x1ae   :  { %1484 = vrot.lane.b32.xlu1 %v1381_v26, %s13094_s9  ;;  %1446 = vrot.lane.b32.xlu0 %v1362_v50, %s13094_s9  ;;  %v1935_v26 = vmul.f32 %v13542_v51, %v13459_v8  ;;  %v1916_v50 = vmul.f32 %v13544_v53, %v13459_v8 }
 0x1b0   :  { %v14043_v38 = vpop.permute.xlu1 %1754  ;;  %v14045_v6 = vpop.permute.xlu0 %1716 }
 0x1b1   :  { %20726 = vst [vmem:[#allocation86_spill] sm:$0xff] %v14043_v38  ;;  %20727 = vst [vmem:[#allocation87_spill] sm:$0xff] %v14045_v6 }
 0x1b2   :  { %1760 = vrot.lane.b32.xlu1 %v1658_v33, %s13095_s17  ;;  %1722 = vrot.lane.b32.xlu0 %v1639_v62, %s13095_s17  ;;  %v2212_v33 = vmul.f32 %v13556_v59, %v13412_v55  ;;  %v2193_v62 = vmul.f32 %v13558_v61, %v13412_v55 }
 0x1b4   :  { %v14053_v58 = vpop.permute.xlu1 %1988  ;;  %v14055_v23 = vpop.permute.xlu0 %1986 }
 0x1b5   :  { %20728 = vst [vmem:[#allocation88_spill] sm:$0xff] %v14053_v58  ;;  %20729 = vst [vmem:[#allocation89_spill] sm:$0xff] %v14055_v23  ;;  %v14073_v23 = vrot.slane %v13579_v7, %v13402_v52 }
 0x1b6   :  { %2036 = vrot.lane.b32.xlu1 %v1935_v26, %s13096_s0  ;;  %1998 = vrot.lane.b32.xlu0 %v1916_v50, %s13096_s0 }
 0x1b7   :  { %20732 = vst [vmem:[#allocation92_spill] sm:$0xff] %v14073_v23 }
 0x1b8   :  { %v14063_v6 = vpop.permute.xlu1 %1992  ;;  %v14065_v38 = vpop.permute.xlu0 %1990 }
 0x1b9   :  { %20730 = vst [vmem:[#allocation90_spill] sm:$0xff] %v14063_v6  ;;  %20731 = vst [vmem:[#allocation91_spill] sm:$0xff] %v14065_v38  ;;  %v274_v6 = vmul.f32 %v13352_v35, %v14073_v23  ;;  %v255_v38 = vmul.f32 %v13332_v28, %v14073_v23 }
 0x1ba   :  { %2312 = vrot.lane.b32.xlu1 %v2212_v33, %s13097_s2  ;;  %2274 = vrot.lane.b32.xlu0 %v2193_v62, %s13097_s2  ;;  %v551_v33 = vmul.f32 %v13395_v49, %v13989_v18  ;;  %v532_v62 = vmul.f32 %v13379_v44, %v13989_v18 }
 0x1bc   :  { %v14077_v26 = vpop.permute.xlu1 %2026  ;;  %v14079_v50 = vpop.permute.xlu0 %2024 }
 0x1bd   :  { %20733 = vst [vmem:[#allocation93_spill] sm:$0xff] %v14077_v26  ;;  %20734 = vst [vmem:[#allocation94_spill] sm:$0xff] %v14079_v50 }
 0x1be   :  { %382 = vrot.lane.b32.xlu1 %v274_v6, %s13090_s24  ;;  %344 = vrot.lane.b32.xlu0 %v255_v38, %s13090_s24  ;;  %v828_v38 = vmul.f32 %v13442_v2, %v13905_v54  ;;  %v809_v6 = vmul.f32 %v13426_v60, %v13905_v54 }
 0x1c0   :  { %v14087_v52 = vpop.permute.xlu1 %2030  ;;  %v14089_v58 = vpop.permute.xlu0 %2028 }
 0x1c1   :  { %20735 = vst [vmem:[#allocation95_spill] sm:$0xff] %v14087_v52  ;;  %20736 = vst [vmem:[#allocation96_spill] sm:$0xff] %v14089_v58 }
 0x1c2   :  { %658 = vrot.lane.b32.xlu1 %v551_v33, %s13091_s29  ;;  %620 = vrot.lane.b32.xlu0 %v532_v62, %s13091_s29  ;;  %v1105_v33 = vmul.f32 %v13495_v29, %v13791_v0  ;;  %v1086_v62 = vmul.f32 %v13479_v15, %v13791_v0 }
 0x1c4   :  { %v14097_v50 = vpop.permute.xlu1 %376  ;;  %v14099_v26 = vpop.permute.xlu0 %338 }
 0x1c5   :  { %20737 = vst [vmem:[#allocation97_spill] sm:$0xff] %v14097_v50  ;;  %20738 = vst [vmem:[#allocation98_spill] sm:$0xff] %v14099_v26 }
 0x1c6   :  { %934 = vrot.lane.b32.xlu1 %v828_v38, %s20628_s5  ;;  %896 = vrot.lane.b32.xlu0 %v809_v6, %s20628_s5  ;;  %v1382_v38 = vmul.f32 %v13516_v20, %v13687_v11  ;;  %v1363_v6 = vmul.f32 %v13518_v40, %v13687_v11 }
 0x1c8   :  { %v14107_v52 = vpop.permute.xlu1 %652  ;;  %v14109_v58 = vpop.permute.xlu0 %614 }
 0x1c9   :  { %20739 = vst [vmem:[#allocation99_spill] sm:$0xff] %v14107_v52  ;;  %20740 = vst [vmem:[#allocation100_spill] sm:$0xff] %v14109_v58 }
 0x1ca   :  { %1210 = vrot.lane.b32.xlu1 %v1105_v33, %s20630_s1  ;;  %1172 = vrot.lane.b32.xlu0 %v1086_v62, %s20630_s1  ;;  %v1659_v33 = vmul.f32 %v13530_v46, %v13593_v13  ;;  %v1640_v62 = vmul.f32 %v13532_v47, %v13593_v13 }
 0x1cc   :  { %v14117_v26 = vpop.permute.xlu1 %928  ;;  %v14119_v50 = vpop.permute.xlu0 %890 }
 0x1cd   :  { %20741 = vst [vmem:[#allocation101_spill] sm:$0xff] %v14117_v26  ;;  %20742 = vst [vmem:[#allocation102_spill] sm:$0xff] %v14119_v50 }
 0x1ce   :  { %1486 = vrot.lane.b32.xlu1 %v1382_v38, %s13094_s9  ;;  %1448 = vrot.lane.b32.xlu0 %v1363_v6, %s13094_s9  ;;  %v1936_v38 = vmul.f32 %v13542_v51, %v13512_v39  ;;  %v1917_v6 = vmul.f32 %v13544_v53, %v13512_v39 }
 0x1d0   :  { %v14127_v58 = vpop.permute.xlu1 %1204  ;;  %v14129_v52 = vpop.permute.xlu0 %1166 }
 0x1d1   :  { %20743 = vst [vmem:[#allocation103_spill] sm:$0xff] %v14127_v58  ;;  %20744 = vst [vmem:[#allocation104_spill] sm:$0xff] %v14129_v52 }
 0x1d2   :  { %1762 = vrot.lane.b32.xlu1 %v1659_v33, %s13095_s17  ;;  %1724 = vrot.lane.b32.xlu0 %v1640_v62, %s13095_s17  ;;  %v2213_v33 = vmul.f32 %v13556_v59, %v13459_v8  ;;  %v2194_v62 = vmul.f32 %v13558_v61, %v13459_v8 }
 0x1d4   :  { %v14137_v50 = vpop.permute.xlu1 %1480  ;;  %v14139_v26 = vpop.permute.xlu0 %1442 }
 0x1d5   :  { %20745 = vst [vmem:[#allocation105_spill] sm:$0xff] %v14137_v50  ;;  %20746 = vst [vmem:[#allocation106_spill] sm:$0xff] %v14139_v26  ;;  %v14157_v26 = vrot.slane %v13579_v7, %v13449_v5 }
 0x1d6   :  { %2038 = vrot.lane.b32.xlu1 %v1936_v38, %s13096_s0  ;;  %2000 = vrot.lane.b32.xlu0 %v1917_v6, %s13096_s0 }
 0x1d7   :  { %20749 = vst [vmem:[#allocation109_spill] sm:$0xff] %v14157_v26 }
 0x1d8   :  { %v14147_v52 = vpop.permute.xlu1 %1756  ;;  %v14149_v58 = vpop.permute.xlu0 %1718 }
 0x1d9   :  { %20747 = vst [vmem:[#allocation107_spill] sm:$0xff] %v14147_v52  ;;  %20748 = vst [vmem:[#allocation108_spill] sm:$0xff] %v14149_v58  ;;  %v275_v58 = vmul.f32 %v13352_v35, %v14157_v26  ;;  %v256_v52 = vmul.f32 %v13332_v28, %v14157_v26 }
 0x1da   :  { %2314 = vrot.lane.b32.xlu1 %v2213_v33, %s13097_s2  ;;  %2276 = vrot.lane.b32.xlu0 %v2194_v62, %s13097_s2  ;;  %v552_v33 = vmul.f32 %v13395_v49, %v14073_v23  ;;  %v533_v62 = vmul.f32 %v13379_v44, %v14073_v23 }
 0x1dc   :  { %v14161_v38 = vpop.permute.xlu1 %2032  ;;  %v14163_v6 = vpop.permute.xlu0 %1994 }
 0x1dd   :  { %20750 = vst [vmem:[#allocation110_spill] sm:$0xff] %v14161_v38  ;;  %20751 = vst [vmem:[#allocation111_spill] sm:$0xff] %v14163_v6 }
 0x1de   :  { %384 = vrot.lane.b32.xlu1 %v275_v58, %s13090_s24  ;;  %346 = vrot.lane.b32.xlu0 %v256_v52, %s13090_s24  ;;  %v829_v52 = vmul.f32 %v13442_v2, %v13989_v18  ;;  %v810_v58 = vmul.f32 %v13426_v60, %v13989_v18 }
 0x1e0   :  { %v14171_v5 = vpop.permute.xlu1 %2266  ;;  %v14173_v50 = vpop.permute.xlu0 %2264 }
 0x1e1   :  { %20752 = vst [vmem:[#allocation112_spill] sm:$0xff] %v14171_v5  ;;  %20753 = vst [vmem:[#allocation113_spill] sm:$0xff] %v14173_v50 }
 0x1e2   :  { %660 = vrot.lane.b32.xlu1 %v552_v33, %s13091_s29  ;;  %622 = vrot.lane.b32.xlu0 %v533_v62, %s13091_s29  ;;  %v1106_v33 = vmul.f32 %v13495_v29, %v13905_v54  ;;  %v1087_v62 = vmul.f32 %v13479_v15, %v13905_v54 }
 0x1e4   :  { %v14181_v6 = vpop.permute.xlu1 %2270  ;;  %v14183_v38 = vpop.permute.xlu0 %2268 }
 0x1e5   :  { %20754 = vst [vmem:[#allocation114_spill] sm:$0xff] %v14181_v6  ;;  %20755 = vst [vmem:[#allocation115_spill] sm:$0xff] %v14183_v38 }
 0x1e6   :  { %936 = vrot.lane.b32.xlu1 %v829_v52, %s20628_s5  ;;  %898 = vrot.lane.b32.xlu0 %v810_v58, %s20628_s5  ;;  %v1383_v52 = vmul.f32 %v13516_v20, %v13791_v0  ;;  %v1364_v58 = vmul.f32 %v13518_v40, %v13791_v0 }
 0x1e8   :  { %v14191_v50 = vpop.permute.xlu1 %2304  ;;  %v14193_v5 = vpop.permute.xlu0 %2302 }
 0x1e9   :  { %20756 = vst [vmem:[#allocation116_spill] sm:$0xff] %v14191_v50  ;;  %20757 = vst [vmem:[#allocation117_spill] sm:$0xff] %v14193_v5 }
 0x1ea   :  { %1212 = vrot.lane.b32.xlu1 %v1106_v33, %s20630_s1  ;;  %1174 = vrot.lane.b32.xlu0 %v1087_v62, %s20630_s1  ;;  %v1660_v33 = vmul.f32 %v13530_v46, %v13687_v11  ;;  %v1641_v62 = vmul.f32 %v13532_v47, %v13687_v11 }
 0x1ec   :  { %v14201_v6 = vpop.permute.xlu1 %2308  ;;  %v14203_v38 = vpop.permute.xlu0 %2306 }
 0x1ed   :  { %20758 = vst [vmem:[#allocation118_spill] sm:$0xff] %v14201_v6  ;;  %20759 = vst [vmem:[#allocation119_spill] sm:$0xff] %v14203_v38 }
 0x1ee   :  { %1488 = vrot.lane.b32.xlu1 %v1383_v52, %s13094_s9  ;;  %1450 = vrot.lane.b32.xlu0 %v1364_v58, %s13094_s9  ;;  %v1937_v52 = vmul.f32 %v13542_v51, %v13593_v13  ;;  %v1918_v58 = vmul.f32 %v13544_v53, %v13593_v13 }
 0x1f0   :  { %v14211_v5 = vpop.permute.xlu1 %378  ;;  %v14213_v50 = vpop.permute.xlu0 %340 }
 0x1f1   :  { %20760 = vst [vmem:[#allocation120_spill] sm:$0xff] %v14211_v5  ;;  %20761 = vst [vmem:[#allocation121_spill] sm:$0xff] %v14213_v50 }
 0x1f2   :  { %1764 = vrot.lane.b32.xlu1 %v1660_v33, %s13095_s17  ;;  %1726 = vrot.lane.b32.xlu0 %v1641_v62, %s13095_s17  ;;  %v2214_v33 = vmul.f32 %v13556_v59, %v13512_v39  ;;  %v2195_v62 = vmul.f32 %v13558_v61, %v13512_v39 }
 0x1f4   :  { %v14221_v6 = vpop.permute.xlu1 %654  ;;  %v14223_v38 = vpop.permute.xlu0 %616 }
 0x1f5   :  { %20762 = vst [vmem:[#allocation122_spill] sm:$0xff] %v14221_v6  ;;  %20763 = vst [vmem:[#allocation123_spill] sm:$0xff] %v14223_v38  ;;  %v14241_v38 = vrot.slane %v13579_v7, %v13502_v34 }
 0x1f6   :  { %2040 = vrot.lane.b32.xlu1 %v1937_v52, %s13096_s0  ;;  %2002 = vrot.lane.b32.xlu0 %v1918_v58, %s13096_s0 }
 0x1f7   :  { %20766 = vst [vmem:[#allocation126_spill] sm:$0xff] %v14241_v38 }
 0x1f8   :  { %v14231_v50 = vpop.permute.xlu1 %930  ;;  %v14233_v5 = vpop.permute.xlu0 %892 }
 0x1f9   :  { %20764 = vst [vmem:[#allocation124_spill] sm:$0xff] %v14231_v50  ;;  %20765 = vst [vmem:[#allocation125_spill] sm:$0xff] %v14233_v5  ;;  %v276_v5 = vmul.f32 %v13352_v35, %v14241_v38  ;;  %v257_v50 = vmul.f32 %v13332_v28, %v14241_v38 }
 0x1fa   :  { %2316 = vrot.lane.b32.xlu1 %v2214_v33, %s13097_s2  ;;  %2278 = vrot.lane.b32.xlu0 %v2195_v62, %s13097_s2  ;;  %v553_v33 = vmul.f32 %v13395_v49, %v14157_v26  ;;  %v534_v62 = vmul.f32 %v13379_v44, %v14157_v26 }
 0x1fc   :  { %v14245_v52 = vpop.permute.xlu1 %1206  ;;  %v14247_v58 = vpop.permute.xlu0 %1168 }
 0x1fd   :  { %20767 = vst [vmem:[#allocation127_spill] sm:$0xff] %v14245_v52  ;;  %20768 = vst [vmem:[#allocation128_spill] sm:$0xff] %v14247_v58 }
 0x1fe   :  { %386 = vrot.lane.b32.xlu1 %v276_v5, %s13090_s24  ;;  %348 = vrot.lane.b32.xlu0 %v257_v50, %s13090_s24  ;;  %v830_v5 = vmul.f32 %v13442_v2, %v14073_v23  ;;  %v811_v50 = vmul.f32 %v13426_v60, %v14073_v23 }
 0x200   :  { %v14255_v7 = vpop.permute.xlu1 %1482  ;;  %v14257_v34 = vpop.permute.xlu0 %1444 }
 0x201   :  { %20769 = vst [vmem:[#allocation129_spill] sm:$0xff] %v14255_v7  ;;  %20770 = vst [vmem:[#allocation130_spill] sm:$0xff] %v14257_v34 }
 0x202   :  { %662 = vrot.lane.b32.xlu1 %v553_v33, %s13091_s29  ;;  %624 = vrot.lane.b32.xlu0 %v534_v62, %s13091_s29  ;;  %v1107_v33 = vmul.f32 %v13495_v29, %v13989_v18  ;;  %v1088_v62 = vmul.f32 %v13479_v15, %v13989_v18 }
 0x204   :  { %v14265_v58 = vpop.permute.xlu1 %1758  ;;  %v14267_v52 = vpop.permute.xlu0 %1720 }
 0x205   :  { %20771 = vst [vmem:[#allocation131_spill] sm:$0xff] %v14265_v58  ;;  %20772 = vst [vmem:[#allocation132_spill] sm:$0xff] %v14267_v52 }
 0x206   :  { %938 = vrot.lane.b32.xlu1 %v830_v5, %s20628_s5  ;;  %900 = vrot.lane.b32.xlu0 %v811_v50, %s20628_s5  ;;  %v1384_v5 = vmul.f32 %v13516_v20, %v13905_v54  ;;  %v1365_v50 = vmul.f32 %v13518_v40, %v13905_v54 }
 0x208   :  { %v14275_v34 = vpop.permute.xlu1 %2034  ;;  %v14277_v7 = vpop.permute.xlu0 %1996 }
 0x209   :  { %20773 = vst [vmem:[#allocation133_spill] sm:$0xff] %v14275_v34  ;;  %20774 = vst [vmem:[#allocation134_spill] sm:$0xff] %v14277_v7 }
 0x20a   :  { %1214 = vrot.lane.b32.xlu1 %v1107_v33, %s20630_s1  ;;  %1176 = vrot.lane.b32.xlu0 %v1088_v62, %s20630_s1  ;;  %v1661_v33 = vmul.f32 %v13530_v46, %v13791_v0  ;;  %v1642_v62 = vmul.f32 %v13532_v47, %v13791_v0 }
 0x20c   :  { %v14285_v52 = vpop.permute.xlu1 %2310  ;;  %v14287_v58 = vpop.permute.xlu0 %2272 }
 0x20d   :  { %20775 = vst [vmem:[#allocation135_spill] sm:$0xff] %v14285_v52  ;;  %20776 = vst [vmem:[#allocation136_spill] sm:$0xff] %v14287_v58 }
 0x20e   :  { %1490 = vrot.lane.b32.xlu1 %v1384_v5, %s13094_s9  ;;  %1452 = vrot.lane.b32.xlu0 %v1365_v50, %s13094_s9  ;;  %v1938_v5 = vmul.f32 %v13542_v51, %v13687_v11  ;;  %v1919_v50 = vmul.f32 %v13544_v53, %v13687_v11 }
 0x210   :  { %v14295_v7 = vpop.permute.xlu1 %380  ;;  %v14297_v34 = vpop.permute.xlu0 %342 }
 0x211   :  { %20777 = vst [vmem:[#allocation137_spill] sm:$0xff] %v14295_v7  ;;  %20778 = vst [vmem:[#allocation138_spill] sm:$0xff] %v14297_v34  ;;  %v14316_v34 = vld [vmem:[%s20647_s28 + $0x10] sm:$0x7]  ;;  %s21222_s28 = sld [smem:[#allocation244_spill]] }
 0x212   :  { %1766 = vrot.lane.b32.xlu1 %v1661_v33, %s13095_s17  ;;  %1728 = vrot.lane.b32.xlu0 %v1642_v62, %s13095_s17  ;;  %v14330_v7 = vrot.slane %v14316_v34, %v13311_v22 }
 0x214   :  { %v14305_v58 = vpop.permute.xlu1 %656  ;;  %v14307_v52 = vpop.permute.xlu0 %618  ;;  %20783 = vst [vmem:[#allocation143_spill] sm:$0xff] %v14330_v7 }
 0x215   :  { %20779 = vst [vmem:[#allocation139_spill] sm:$0xff] %v14305_v58  ;;  %20780 = vst [vmem:[#allocation140_spill] sm:$0xff] %v14307_v52  ;;  %v2215_v52 = vmul.f32 %v13556_v59, %v13593_v13  ;;  %v2196_v58 = vmul.f32 %v13558_v61, %v13593_v13 }
 0x216   :  { %2042 = vrot.lane.b32.xlu1 %v1938_v5, %s13096_s0  ;;  %2004 = vrot.lane.b32.xlu0 %v1919_v50, %s13096_s0 }
 0x218   :  { %v14320_v33 = vpop.permute.xlu1 %932  ;;  %v14322_v62 = vpop.permute.xlu0 %894 }
 0x219   :  { %20781 = vst [vmem:[#allocation141_spill] sm:$0xff] %v14320_v33  ;;  %20782 = vst [vmem:[#allocation142_spill] sm:$0xff] %v14322_v62  ;;  %v277_v62 = vmul.f32 %v13352_v35, %v14330_v7  ;;  %v258_v33 = vmul.f32 %v13332_v28, %v14330_v7 }
 0x21a   :  { %2318 = vrot.lane.b32.xlu1 %v2215_v52, %s13097_s2  ;;  %2280 = vrot.lane.b32.xlu0 %v2196_v58, %s13097_s2  ;;  %v554_v52 = vmul.f32 %v13395_v49, %v14241_v38  ;;  %v535_v58 = vmul.f32 %v13379_v44, %v14241_v38 }
 0x21c   :  { %v14334_v5 = vpop.permute.xlu1 %1208  ;;  %v14336_v50 = vpop.permute.xlu0 %1170 }
 0x21d   :  { %20784 = vst [vmem:[#allocation144_spill] sm:$0xff] %v14334_v5  ;;  %20785 = vst [vmem:[#allocation145_spill] sm:$0xff] %v14336_v50 }
 0x21e   :  { %388 = vrot.lane.b32.xlu1 %v277_v62, %s13090_s24  ;;  %350 = vrot.lane.b32.xlu0 %v258_v33, %s13090_s24  ;;  %v831_v33 = vmul.f32 %v13442_v2, %v14157_v26  ;;  %v812_v62 = vmul.f32 %v13426_v60, %v14157_v26 }
 0x220   :  { %v14344_v22 = vpop.permute.xlu1 %1484  ;;  %v14346_v6 = vpop.permute.xlu0 %1446 }
 0x221   :  { %20786 = vst [vmem:[#allocation146_spill] sm:$0xff] %v14344_v22  ;;  %20787 = vst [vmem:[#allocation147_spill] sm:$0xff] %v14346_v6 }
 0x222   :  { %664 = vrot.lane.b32.xlu1 %v554_v52, %s13091_s29  ;;  %626 = vrot.lane.b32.xlu0 %v535_v58, %s13091_s29  ;;  %v1108_v52 = vmul.f32 %v13495_v29, %v14073_v23  ;;  %v1089_v58 = vmul.f32 %v13479_v15, %v14073_v23 }
 0x224   :  { %v14354_v50 = vpop.permute.xlu1 %1760  ;;  %v14356_v5 = vpop.permute.xlu0 %1722 }
 0x225   :  { %20788 = vst [vmem:[#allocation148_spill] sm:$0xff] %v14354_v50  ;;  %20789 = vst [vmem:[#allocation149_spill] sm:$0xff] %v14356_v5 }
 0x226   :  { %940 = vrot.lane.b32.xlu1 %v831_v33, %s20628_s5  ;;  %902 = vrot.lane.b32.xlu0 %v812_v62, %s20628_s5  ;;  %v1385_v33 = vmul.f32 %v13516_v20, %v13989_v18  ;;  %v1366_v62 = vmul.f32 %v13518_v40, %v13989_v18 }
 0x228   :  { %v14364_v6 = vpop.permute.xlu1 %2036  ;;  %v14366_v22 = vpop.permute.xlu0 %1998 }
 0x229   :  { %20790 = vst [vmem:[#allocation150_spill] sm:$0xff] %v14364_v6  ;;  %20791 = vst [vmem:[#allocation151_spill] sm:$0xff] %v14366_v22 }
 0x22a   :  { %1216 = vrot.lane.b32.xlu1 %v1108_v52, %s20630_s1  ;;  %1178 = vrot.lane.b32.xlu0 %v1089_v58, %s20630_s1  ;;  %v1662_v52 = vmul.f32 %v13530_v46, %v13905_v54  ;;  %v1643_v58 = vmul.f32 %v13532_v47, %v13905_v54 }
 0x22c   :  { %v14374_v5 = vpop.permute.xlu1 %2312  ;;  %v14376_v50 = vpop.permute.xlu0 %2274 }
 0x22d   :  { %20792 = vst [vmem:[#allocation152_spill] sm:$0xff] %v14374_v5  ;;  %20793 = vst [vmem:[#allocation153_spill] sm:$0xff] %v14376_v50 }
 0x22e   :  { %1492 = vrot.lane.b32.xlu1 %v1385_v33, %s13094_s9  ;;  %1454 = vrot.lane.b32.xlu0 %v1366_v62, %s13094_s9  ;;  %v1939_v33 = vmul.f32 %v13542_v51, %v13791_v0  ;;  %v1920_v62 = vmul.f32 %v13544_v53, %v13791_v0 }
 0x230   :  { %v14384_v22 = vpop.permute.xlu1 %382  ;;  %v14386_v6 = vpop.permute.xlu0 %344 }
 0x231   :  { %20794 = vst [vmem:[#allocation154_spill] sm:$0xff] %v14384_v22  ;;  %20795 = vst [vmem:[#allocation155_spill] sm:$0xff] %v14386_v6 }
 0x232   :  { %1768 = vrot.lane.b32.xlu1 %v1662_v52, %s13095_s17  ;;  %1730 = vrot.lane.b32.xlu0 %v1643_v58, %s13095_s17  ;;  %v2216_v52 = vmul.f32 %v13556_v59, %v13687_v11  ;;  %v2197_v58 = vmul.f32 %v13558_v61, %v13687_v11 }
 0x234   :  { %v14394_v50 = vpop.permute.xlu1 %658  ;;  %v14396_v5 = vpop.permute.xlu0 %620 }
 0x235   :  { %20796 = vst [vmem:[#allocation156_spill] sm:$0xff] %v14394_v50  ;;  %20797 = vst [vmem:[#allocation157_spill] sm:$0xff] %v14396_v5  ;;  %v14414_v5 = vrot.slane %v14316_v34, %v13308_v21 }
 0x236   :  { %2044 = vrot.lane.b32.xlu1 %v1939_v33, %s13096_s0  ;;  %2006 = vrot.lane.b32.xlu0 %v1920_v62, %s13096_s0 }
 0x237   :  { %20800 = vst [vmem:[#allocation160_spill] sm:$0xff] %v14414_v5 }
 0x238   :  { %v14404_v6 = vpop.permute.xlu1 %934  ;;  %v14406_v22 = vpop.permute.xlu0 %896 }
 0x239   :  { %20798 = vst [vmem:[#allocation158_spill] sm:$0xff] %v14404_v6  ;;  %20799 = vst [vmem:[#allocation159_spill] sm:$0xff] %v14406_v22  ;;  %v278_v22 = vmul.f32 %v13352_v35, %v14414_v5  ;;  %v259_v6 = vmul.f32 %v13332_v28, %v14414_v5 }
 0x23a   :  { %2320 = vrot.lane.b32.xlu1 %v2216_v52, %s13097_s2  ;;  %2282 = vrot.lane.b32.xlu0 %v2197_v58, %s13097_s2  ;;  %v555_v52 = vmul.f32 %v13395_v49, %v14330_v7  ;;  %v536_v58 = vmul.f32 %v13379_v44, %v14330_v7 }
 0x23c   :  { %v14418_v33 = vpop.permute.xlu1 %1210  ;;  %v14420_v62 = vpop.permute.xlu0 %1172 }
 0x23d   :  { %20801 = vst [vmem:[#allocation161_spill] sm:$0xff] %v14418_v33  ;;  %20802 = vst [vmem:[#allocation162_spill] sm:$0xff] %v14420_v62 }
 0x23e   :  { %390 = vrot.lane.b32.xlu1 %v278_v22, %s13090_s24  ;;  %352 = vrot.lane.b32.xlu0 %v259_v6, %s13090_s24  ;;  %v832_v22 = vmul.f32 %v13442_v2, %v14241_v38  ;;  %v813_v6 = vmul.f32 %v13426_v60, %v14241_v38 }
 0x240   :  { %v14428_v21 = vpop.permute.xlu1 %1486  ;;  %v14430_v50 = vpop.permute.xlu0 %1448 }
 0x241   :  { %20803 = vst [vmem:[#allocation163_spill] sm:$0xff] %v14428_v21  ;;  %20804 = vst [vmem:[#allocation164_spill] sm:$0xff] %v14430_v50 }
 0x242   :  { %666 = vrot.lane.b32.xlu1 %v555_v52, %s13091_s29  ;;  %628 = vrot.lane.b32.xlu0 %v536_v58, %s13091_s29  ;;  %v1109_v52 = vmul.f32 %v13495_v29, %v14157_v26  ;;  %v1090_v58 = vmul.f32 %v13479_v15, %v14157_v26 }
 0x244   :  { %v14438_v62 = vpop.permute.xlu1 %1762  ;;  %v14440_v33 = vpop.permute.xlu0 %1724 }
 0x245   :  { %20805 = vst [vmem:[#allocation165_spill] sm:$0xff] %v14438_v62  ;;  %20806 = vst [vmem:[#allocation166_spill] sm:$0xff] %v14440_v33 }
 0x246   :  { %942 = vrot.lane.b32.xlu1 %v832_v22, %s20628_s5  ;;  %904 = vrot.lane.b32.xlu0 %v813_v6, %s20628_s5  ;;  %v1386_v22 = vmul.f32 %v13516_v20, %v14073_v23  ;;  %v1367_v6 = vmul.f32 %v13518_v40, %v14073_v23 }
 0x248   :  { %v14448_v50 = vpop.permute.xlu1 %2038  ;;  %v14450_v21 = vpop.permute.xlu0 %2000 }
 0x249   :  { %20807 = vst [vmem:[#allocation167_spill] sm:$0xff] %v14448_v50  ;;  %20808 = vst [vmem:[#allocation168_spill] sm:$0xff] %v14450_v21 }
 0x24a   :  { %1218 = vrot.lane.b32.xlu1 %v1109_v52, %s20630_s1  ;;  %1180 = vrot.lane.b32.xlu0 %v1090_v58, %s20630_s1  ;;  %v1663_v52 = vmul.f32 %v13530_v46, %v13989_v18  ;;  %v1644_v58 = vmul.f32 %v13532_v47, %v13989_v18 }
 0x24c   :  { %v14458_v33 = vpop.permute.xlu1 %2314  ;;  %v14460_v62 = vpop.permute.xlu0 %2276 }
 0x24d   :  { %20809 = vst [vmem:[#allocation169_spill] sm:$0xff] %v14458_v33  ;;  %20810 = vst [vmem:[#allocation170_spill] sm:$0xff] %v14460_v62 }
 0x24e   :  { %1494 = vrot.lane.b32.xlu1 %v1386_v22, %s13094_s9  ;;  %1456 = vrot.lane.b32.xlu0 %v1367_v6, %s13094_s9  ;;  %v1940_v22 = vmul.f32 %v13542_v51, %v13905_v54  ;;  %v1921_v6 = vmul.f32 %v13544_v53, %v13905_v54 }
 0x250   :  { %v14468_v21 = vpop.permute.xlu1 %384  ;;  %v14470_v50 = vpop.permute.xlu0 %346 }
 0x251   :  { %20811 = vst [vmem:[#allocation171_spill] sm:$0xff] %v14468_v21  ;;  %20812 = vst [vmem:[#allocation172_spill] sm:$0xff] %v14470_v50 }
 0x252   :  { %1770 = vrot.lane.b32.xlu1 %v1663_v52, %s13095_s17  ;;  %1732 = vrot.lane.b32.xlu0 %v1644_v58, %s13095_s17  ;;  %v2217_v52 = vmul.f32 %v13556_v59, %v13791_v0  ;;  %v2198_v58 = vmul.f32 %v13558_v61, %v13791_v0 }
 0x254   :  { %v14478_v62 = vpop.permute.xlu1 %660  ;;  %v14480_v33 = vpop.permute.xlu0 %622 }
 0x255   :  { %20813 = vst [vmem:[#allocation173_spill] sm:$0xff] %v14478_v62  ;;  %20814 = vst [vmem:[#allocation174_spill] sm:$0xff] %v14480_v33  ;;  %v14498_v33 = vrot.slane %v14316_v34, %v13330_v27 }
 0x256   :  { %2046 = vrot.lane.b32.xlu1 %v1940_v22, %s13096_s0  ;;  %2008 = vrot.lane.b32.xlu0 %v1921_v6, %s13096_s0 }
 0x257   :  { %20817 = vst [vmem:[#allocation177_spill] sm:$0xff] %v14498_v33  ;;  %v279_v62 = vmul.f32 %v13352_v35, %v14498_v33 }
 0x258   :  { %v14488_v50 = vpop.permute.xlu1 %936  ;;  %v14490_v21 = vpop.permute.xlu0 %898 }
 0x259   :  { %20815 = vst [vmem:[#allocation175_spill] sm:$0xff] %v14488_v50  ;;  %20816 = vst [vmem:[#allocation176_spill] sm:$0xff] %v14490_v21  ;;  %v260_v21 = vmul.f32 %v13332_v28, %v14498_v33  ;;  %v14764_v50 = vmul.f32 %v13791_v0, %v13568_v1 }
 0x25a   :  { %2322 = vrot.lane.b32.xlu1 %v2217_v52, %s13097_s2  ;;  %2284 = vrot.lane.b32.xlu0 %v2198_v58, %s13097_s2  ;;  %v556_v52 = vmul.f32 %v13395_v49, %v14414_v5  ;;  %v537_v58 = vmul.f32 %v13379_v44, %v14414_v5 }
 0x25b   :  { %20860 = vst [vmem:[#allocation220_spill] sm:$0xff] %v14764_v50  ;;  %v14838_v50 = vmul.f32 %v13556_v59, %v14157_v26 }
 0x25c   :  { %v14502_v22 = vpop.permute.xlu1 %1212  ;;  %v14504_v6 = vpop.permute.xlu0 %1174 }
 0x25d   :  { %20818 = vst [vmem:[#allocation178_spill] sm:$0xff] %v14502_v22  ;;  %20819 = vst [vmem:[#allocation179_spill] sm:$0xff] %v14504_v6  ;;  %v14734_v6 = vmul.f32 %v13459_v8, %v13570_v3  ;;  %v14750_v22 = vmul.f32 %v13593_v13, %v13570_v3 }
 0x25e   :  { %392 = vrot.lane.b32.xlu1 %v279_v62, %s13090_s24  ;;  %354 = vrot.lane.b32.xlu0 %v260_v21, %s13090_s24  ;;  %v833_v21 = vmul.f32 %v13442_v2, %v14330_v7  ;;  %v814_v62 = vmul.f32 %v13426_v60, %v14330_v7 }
 0x25f   :  { %20857 = vst [vmem:[#allocation217_spill] sm:$0xff] %v14750_v22  ;;  %v14772_v22 = vmul.f32 %v13905_v54, %v13568_v1 }
 0x260   :  { %v14512_v34 = vpop.permute.xlu1 %1488  ;;  %v14514_v27 = vpop.permute.xlu0 %1450 }
 0x261   :  { %20820 = vst [vmem:[#allocation180_spill] sm:$0xff] %v14512_v34  ;;  %20821 = vst [vmem:[#allocation181_spill] sm:$0xff] %v14514_v27 }
 0x262   :  { %668 = vrot.lane.b32.xlu1 %v556_v52, %s13091_s29  ;;  %630 = vrot.lane.b32.xlu0 %v537_v58, %s13091_s29  ;;  %v1110_v52 = vmul.f32 %v13495_v29, %v14241_v38  ;;  %v1091_v58 = vmul.f32 %v13479_v15, %v14241_v38  ;;  %20862 = vst [vmem:[#allocation222_spill] sm:$0xff] %v14772_v22 }
 0x263   :  { %v14792_v22 = vmul.f32 %v13989_v18, %v13570_v3 }
 0x264   :  { %v14522_v35 = vpop.permute.xlu1 %1764  ;;  %v14524_v28 = vpop.permute.xlu0 %1726 }
 0x265   :  { %20822 = vst [vmem:[#allocation182_spill] sm:$0xff] %v14522_v35  ;;  %20823 = vst [vmem:[#allocation183_spill] sm:$0xff] %v14524_v28 }
 0x266   :  { %944 = vrot.lane.b32.xlu1 %v833_v21, %s20628_s5  ;;  %906 = vrot.lane.b32.xlu0 %v814_v62, %s20628_s5  ;;  %v1387_v21 = vmul.f32 %v13516_v20, %v14157_v26  ;;  %v1368_v62 = vmul.f32 %v13518_v40, %v14157_v26  ;;  %20867 = vst [vmem:[#allocation227_spill] sm:$0xff] %v14792_v22 }
 0x267   :  { %v14810_v22 = vmul.f32 %v13516_v20, %v14414_v5 }
 0x268   :  { %v14532_v27 = vpop.permute.xlu1 %2040  ;;  %v14534_v34 = vpop.permute.xlu0 %2002 }
 0x269   :  { %20824 = vst [vmem:[#allocation184_spill] sm:$0xff] %v14532_v27  ;;  %20825 = vst [vmem:[#allocation185_spill] sm:$0xff] %v14534_v34 }
 0x26a   :  { %1220 = vrot.lane.b32.xlu1 %v1110_v52, %s20630_s1  ;;  %1182 = vrot.lane.b32.xlu0 %v1091_v58, %s20630_s1  ;;  %v1664_v52 = vmul.f32 %v13530_v46, %v14073_v23  ;;  %v1645_v58 = vmul.f32 %v13532_v47, %v14073_v23 }
 0x26c   :  { %v14542_v28 = vpop.permute.xlu1 %2316  ;;  %v14544_v35 = vpop.permute.xlu0 %2278 }
 0x26d   :  { %20826 = vst [vmem:[#allocation186_spill] sm:$0xff] %v14542_v28  ;;  %20827 = vst [vmem:[#allocation187_spill] sm:$0xff] %v14544_v35 }
 0x26e   :  { %1496 = vrot.lane.b32.xlu1 %v1387_v21, %s13094_s9  ;;  %1458 = vrot.lane.b32.xlu0 %v1368_v62, %s13094_s9  ;;  %v1941_v21 = vmul.f32 %v13542_v51, %v13989_v18  ;;  %v1922_v62 = vmul.f32 %v13544_v53, %v13989_v18 }
 0x270   :  { %v14552_v34 = vpop.permute.xlu1 %386  ;;  %v14554_v27 = vpop.permute.xlu0 %348 }
 0x271   :  { %20828 = vst [vmem:[#allocation188_spill] sm:$0xff] %v14552_v34  ;;  %20829 = vst [vmem:[#allocation189_spill] sm:$0xff] %v14554_v27 }
 0x272   :  { %1772 = vrot.lane.b32.xlu1 %v1664_v52, %s13095_s17  ;;  %1734 = vrot.lane.b32.xlu0 %v1645_v58, %s13095_s17  ;;  %v2218_v52 = vmul.f32 %v13556_v59, %v13905_v54  ;;  %v2199_v58 = vmul.f32 %v13558_v61, %v13905_v54 }
 0x274   :  { %v14562_v35 = vpop.permute.xlu1 %662  ;;  %v14564_v28 = vpop.permute.xlu0 %624 }
 0x275   :  { %20830 = vst [vmem:[#allocation190_spill] sm:$0xff] %v14562_v35  ;;  %20831 = vst [vmem:[#allocation191_spill] sm:$0xff] %v14564_v28 }
 0x276   :  { %2048 = vrot.lane.b32.xlu1 %v1941_v21, %s13096_s0  ;;  %2010 = vrot.lane.b32.xlu0 %v1922_v62, %s13096_s0  ;;  %v557_v21 = vmul.f32 %v13395_v49, %v14498_v33  ;;  %v538_v62 = vmul.f32 %v13379_v44, %v14498_v33 }
 0x278   :  { %v14572_v27 = vpop.permute.xlu1 %938  ;;  %v14574_v34 = vpop.permute.xlu0 %900 }
 0x279   :  { %20832 = vst [vmem:[#allocation192_spill] sm:$0xff] %v14572_v27  ;;  %20833 = vst [vmem:[#allocation193_spill] sm:$0xff] %v14574_v34 }
 0x27a   :  { %2324 = vrot.lane.b32.xlu1 %v2218_v52, %s13097_s2  ;;  %2286 = vrot.lane.b32.xlu0 %v2199_v58, %s13097_s2  ;;  %v834_v52 = vmul.f32 %v13442_v2, %v14414_v5  ;;  %v815_v58 = vmul.f32 %v13426_v60, %v14414_v5 }
 0x27c   :  { %v14582_v28 = vpop.permute.xlu1 %1214  ;;  %v14584_v35 = vpop.permute.xlu0 %1176 }
 0x27d   :  { %20834 = vst [vmem:[#allocation194_spill] sm:$0xff] %v14582_v28  ;;  %20835 = vst [vmem:[#allocation195_spill] sm:$0xff] %v14584_v35  ;;  %v1370_v28 = vmul.f32 %v13518_v40, %v14330_v7 }
 0x27e   :  { %670 = vrot.lane.b32.xlu1 %v557_v21, %s13091_s29  ;;  %632 = vrot.lane.b32.xlu0 %v538_v62, %s13091_s29  ;;  %v1111_v21 = vmul.f32 %v13495_v29, %v14330_v7  ;;  %v1092_v62 = vmul.f32 %v13479_v15, %v14330_v7  ;;  %s21170_s29 = sld [smem:[#allocation242_spill]] }
 0x280   :  { %v14592_v34 = vpop.permute.xlu1 %1490  ;;  %v14594_v27 = vpop.permute.xlu0 %1452 }
 0x281   :  { %20836 = vst [vmem:[#allocation196_spill] sm:$0xff] %v14592_v34  ;;  %20837 = vst [vmem:[#allocation197_spill] sm:$0xff] %v14594_v27 }
 0x282   :  { %946 = vrot.lane.b32.xlu1 %v834_v52, %s20628_s5  ;;  %908 = vrot.lane.b32.xlu0 %v815_v58, %s20628_s5  ;;  %v1388_v52 = vmul.f32 %v13516_v20, %v14241_v38  ;;  %v1369_v58 = vmul.f32 %v13518_v40, %v14241_v38 }
 0x284   :  { %v14602_v49 = vpop.permute.xlu1 %1766  ;;  %v14604_v44 = vpop.permute.xlu0 %1728 }
 0x285   :  { %20838 = vst [vmem:[#allocation198_spill] sm:$0xff] %v14602_v49  ;;  %20839 = vst [vmem:[#allocation199_spill] sm:$0xff] %v14604_v44 }
 0x286   :  { %1222 = vrot.lane.b32.xlu1 %v1111_v21, %s20630_s1  ;;  %1184 = vrot.lane.b32.xlu0 %v1092_v62, %s20630_s1  ;;  %v1665_v21 = vmul.f32 %v13530_v46, %v14157_v26  ;;  %v1646_v62 = vmul.f32 %v13532_v47, %v14157_v26 }
 0x288   :  { %v14612_v27 = vpop.permute.xlu1 %2042  ;;  %v14614_v34 = vpop.permute.xlu0 %2004 }
 0x289   :  { %20840 = vst [vmem:[#allocation200_spill] sm:$0xff] %v14612_v27  ;;  %20841 = vst [vmem:[#allocation201_spill] sm:$0xff] %v14614_v34 }
 0x28a   :  { %1498 = vrot.lane.b32.xlu1 %v1388_v52, %s13094_s9  ;;  %1460 = vrot.lane.b32.xlu0 %v1369_v58, %s13094_s9  ;;  %v1942_v52 = vmul.f32 %v13542_v51, %v14073_v23  ;;  %v1923_v58 = vmul.f32 %v13544_v53, %v14073_v23 }
 0x28c   :  { %v14622_v44 = vpop.permute.xlu1 %2318  ;;  %v14624_v49 = vpop.permute.xlu0 %2280 }
 0x28d   :  { %20842 = vst [vmem:[#allocation202_spill] sm:$0xff] %v14622_v44  ;;  %20843 = vst [vmem:[#allocation203_spill] sm:$0xff] %v14624_v49  ;;  %v1389_v44 = vmul.f32 %v13516_v20, %v14330_v7 }
 0x28e   :  { %1774 = vrot.lane.b32.xlu1 %v1665_v21, %s13095_s17  ;;  %1736 = vrot.lane.b32.xlu0 %v1646_v62, %s13095_s17  ;;  %v2219_v21 = vmul.f32 %v13556_v59, %v13989_v18  ;;  %v2200_v62 = vmul.f32 %v13558_v61, %v13989_v18 }
 0x290   :  { %v14632_v34 = vpop.permute.xlu1 %388  ;;  %v14634_v27 = vpop.permute.xlu0 %350 }
 0x291   :  { %20844 = vst [vmem:[#allocation204_spill] sm:$0xff] %v14632_v34  ;;  %20845 = vst [vmem:[#allocation205_spill] sm:$0xff] %v14634_v27 }
 0x292   :  { %2050 = vrot.lane.b32.xlu1 %v1942_v52, %s13096_s0  ;;  %2012 = vrot.lane.b32.xlu0 %v1923_v58, %s13096_s0  ;;  %v835_v52 = vmul.f32 %v13442_v2, %v14498_v33  ;;  %v816_v58 = vmul.f32 %v13426_v60, %v14498_v33  ;;  %v14672_v2 = vmul.f32 %v13324_v25, %v13570_v3 }
 0x293   :  { %v14676_v60 = vmul.f32 %v13320_v24, %v13570_v3 }
 0x294   :  { %v14642_v35 = vpop.permute.xlu1 %664  ;;  %v14644_v49 = vpop.permute.xlu0 %626 }
 0x295   :  { %20846 = vst [vmem:[#allocation206_spill] sm:$0xff] %v14642_v35  ;;  %20847 = vst [vmem:[#allocation207_spill] sm:$0xff] %v14644_v49 }
 0x296   :  { %2326 = vrot.lane.b32.xlu1 %v2219_v21, %s13097_s2  ;;  %2288 = vrot.lane.b32.xlu0 %v2200_v62, %s13097_s2  ;;  %v1112_v21 = vmul.f32 %v13495_v29, %v14414_v5  ;;  %v1093_v62 = vmul.f32 %v13479_v15, %v14414_v5 }
 0x298   :  { %v14652_v27 = vpop.permute.xlu1 %940  ;;  %v14654_v34 = vpop.permute.xlu0 %902 }
 0x299   :  { %20848 = vst [vmem:[#allocation208_spill] sm:$0xff] %v14652_v27  ;;  %20849 = vst [vmem:[#allocation209_spill] sm:$0xff] %v14654_v34  ;;  %v14688_v34 = vmul.f32 %v13320_v24, %v13568_v1  ;;  %v14692_v27 = vmul.f32 %v13344_v32, %v13568_v1  ;;  %v14706_v24 = vmul.f32 %v13371_v41, %v13568_v1 }
 0x29a   :  { %948 = vrot.lane.b32.xlu1 %v835_v52, %s20628_s5  ;;  %910 = vrot.lane.b32.xlu0 %v816_v58, %s20628_s5  ;;  %v14680_v52 = vmul.f32 %v13344_v32, %v13570_v3  ;;  %v14684_v58 = vmul.f32 %v13324_v25, %v13568_v1  ;;  %v14702_v25 = vmul.f32 %v13340_v31, %v13570_v3 }
 0x29b   :  { %v14710_v32 = vmul.f32 %v13371_v41, %v13570_v3  ;;  %v14730_v41 = vmul.f32 %v13459_v8, %v13568_v1  ;;  %v14754_v8 = vmul.f32 %v13687_v11, %v13568_v1 }
 0x29c   :  { %v14662_v49 = vpop.permute.xlu1 %1216  ;;  %v14664_v35 = vpop.permute.xlu0 %1178 }
 0x29d   :  { %20850 = vst [vmem:[#allocation210_spill] sm:$0xff] %v14662_v49  ;;  %20851 = vst [vmem:[#allocation211_spill] sm:$0xff] %v14664_v35  ;;  %v14698_v35 = vmul.f32 %v13340_v31, %v13568_v1 }
 0x29e   :  { %1224 = vrot.lane.b32.xlu1 %v1112_v21, %s20630_s1  ;;  %1186 = vrot.lane.b32.xlu0 %v1093_v62, %s20630_s1  ;;  %v14714_v21 = vmul.f32 %v13412_v55, %v13568_v1  ;;  %v14718_v62 = vmul.f32 %v13412_v55, %v13570_v3  ;;  %v14738_v55 = vmul.f32 %v13512_v39, %v13568_v1 }
 0x29f   :  { %20858 = vst [vmem:[#allocation218_spill] sm:$0xff] %v14754_v8  ;;  %v14842_v8 = vmul.f32 %v13558_v61, %v14157_v26 }
 0x2a0   :  { %v14720_v49 = vpop.permute.xlu1 %1492  ;;  %v14722_v31 = vpop.permute.xlu0 %1454  ;;  %20854 = vst [vmem:[#allocation214_spill] sm:$0xff] %v14738_v55  ;;  %v14876_v55 = vmul.f32 %v13558_v61, %v14241_v38 }
 0x2a1   :  { %20852 = vst [vmem:[#allocation212_spill] sm:$0xff] %v14720_v49  ;;  %20853 = vst [vmem:[#allocation213_spill] sm:$0xff] %v14722_v31  ;;  %v14742_v31 = vmul.f32 %v13512_v39, %v13570_v3  ;;  %v14746_v49 = vmul.f32 %v13593_v13, %v13568_v1  ;;  %v14760_v39 = vmul.f32 %v13687_v11, %v13570_v3 }
 0x2a2   :  { %1500 = vrot.lane.b32.xlu1 %v1389_v44, %s13094_s9  ;;  %1462 = vrot.lane.b32.xlu0 %v1370_v28, %s13094_s9  ;;  %v14768_v13 = vmul.f32 %v13791_v0, %v13570_v3  ;;  %v14776_v44 = vmul.f32 %v13905_v54, %v13570_v3  ;;  %v14780_v11 = vmul.f32 %v13989_v18, %v13568_v1 }
 0x2a3   :  { %20855 = vst [vmem:[#allocation215_spill] sm:$0xff] %v14742_v31  ;;  %20856 = vst [vmem:[#allocation216_spill] sm:$0xff] %v14746_v49  ;;  %v1666_v0 = vmul.f32 %v13530_v46, %v14241_v38  ;;  %v1943_v54 = vmul.f32 %v13542_v51, %v14157_v26  ;;  %v1924_v1 = vmul.f32 %v13544_v53, %v14157_v26 }
 0x2a4   :  { %20859 = vst [vmem:[#allocation219_spill] sm:$0xff] %v14760_v39  ;;  %20861 = vst [vmem:[#allocation221_spill] sm:$0xff] %v14768_v13  ;;  %v14782_v28 = vpop.permute.xlu1 %1768  ;;  %v14784_v39 = vpop.permute.xlu0 %1730  ;;  %v1647_v13 = vmul.f32 %v13532_v47, %v14241_v38  ;;  %v1113_v18 = vmul.f32 %v13495_v29, %v14498_v33  ;;  %v1094_v3 = vmul.f32 %v13479_v15, %v14498_v33 }
 0x2a5   :  { %20863 = vst [vmem:[#allocation223_spill] sm:$0xff] %v14776_v44  ;;  %20864 = vst [vmem:[#allocation224_spill] sm:$0xff] %v14780_v11  ;;  %v14814_v11 = vmul.f32 %v13518_v40, %v14414_v5  ;;  %v14830_v15 = vmul.f32 %v13542_v51, %v14241_v38  ;;  %v14834_v44 = vmul.f32 %v13544_v53, %v14241_v38 }
 0x2a6   :  { %20865 = vst [vmem:[#allocation225_spill] sm:$0xff] %v14782_v28  ;;  %20866 = vst [vmem:[#allocation226_spill] sm:$0xff] %v14784_v39  ;;  %v2220_v28 = vmul.f32 %v13556_v59, %v14073_v23  ;;  %1776 = vrot.lane.b32.xlu1 %v1666_v0, %s13095_s17  ;;  %1738 = vrot.lane.b32.xlu0 %v1647_v13, %s13095_s17  ;;  %v2201_v39 = vmul.f32 %v13558_v61, %v14073_v23 }
 0x2a7   :  { %v14818_v13 = vmul.f32 %v13530_v46, %v14330_v7  ;;  %v14822_v0 = vmul.f32 %v13532_v47, %v14330_v7  ;;  %v14854_v49 = vmul.f32 %v13530_v46, %v14414_v5  ;;  %v14858_v31 = vmul.f32 %v13532_v47, %v14414_v5 }
 0x2a8   :  { %v14824_v29 = vpop.permute.xlu1 %2044  ;;  %v14826_v23 = vpop.permute.xlu0 %2006  ;;  %v14872_v26 = vmul.f32 %v13556_v59, %v14241_v38 }
 0x2a9   :  { %20868 = vst [vmem:[#allocation228_spill] sm:$0xff] %v14824_v29  ;;  %20869 = vst [vmem:[#allocation229_spill] sm:$0xff] %v14826_v23  ;;  %v14846_v29 = vmul.f32 %v13516_v20, %v14498_v33  ;;  %v14850_v23 = vmul.f32 %v13518_v40, %v14498_v33  ;;  %v14864_v20 = vmul.f32 %v13542_v51, %v14330_v7 }
 0x2aa   :  { %2052 = vrot.lane.b32.xlu1 %v1943_v54, %s13096_s0  ;;  %2014 = vrot.lane.b32.xlu0 %v1924_v1, %s13096_s0  ;;  %v14868_v40 = vmul.f32 %v13544_v53, %v14330_v7  ;;  %20872 = vst [vmem:[#allocation232_spill] sm:$0xff] %v14872_v26  ;;  %v14880_v54 = vmul.f32 %v13530_v46, %v14498_v33 }
 0x2ab   :  { %20870 = vst [vmem:[#allocation230_spill] sm:$0xff] %v14864_v20  ;;  %v14884_v1 = vmul.f32 %v13532_v47, %v14498_v33  ;;  %v14888_v20 = vmul.f32 %v13542_v51, %v14414_v5  ;;  %v395_v26 = vsel %vm394_vm0, %v13585_v10, %v13583_v9  ;;  %v14899_v46 = vmul.f32 %v13544_v53, %v14414_v5 }
 0x2ac   :  { %20871 = vst [vmem:[#allocation231_spill] sm:$0xff] %v14868_v40  ;;  %v14893_v40 = vpop.permute.xlu1 %2320  ;;  %v14895_v38 = vpop.permute.xlu0 %2282  ;;  %v14903_v47 = vmul.f32 %v13556_v59, %v14330_v7  ;;  %v396_v10 = vsel %vm394_vm0, %v13583_v9, %v13599_v16  ;;  %v413_v9 = vsel %vm394_vm0, %v13609_v30, %v13607_v19  ;;  %v14946_v30 = vmul.f32 %v13558_v61, %v14498_v33 }
 0x2ad   :  { %20873 = vst [vmem:[#allocation233_spill] sm:$0xff] %v14884_v1  ;;  %20874 = vst [vmem:[#allocation234_spill] sm:$0xff] %v14893_v40  ;;  %v14907_v1 = vmul.f32 %v13558_v61, %v14330_v7  ;;  %v14914_v40 = vmul.f32 %v13542_v51, %v14498_v33  ;;  %v397_v7 = vsel %vm394_vm0, %v13599_v16, %v13597_v14 }
 0x2ae   :  { %20875 = vst [vmem:[#allocation235_spill] sm:$0xff] %v14895_v38  ;;  %20876 = vst [vmem:[#allocation236_spill] sm:$0xff] %v14899_v46  ;;  %v14918_v38 = vmul.f32 %v13544_v53, %v14498_v33  ;;  %v14922_v46 = vmul.f32 %v13556_v59, %v14414_v5  ;;  %v414_v51 = vsel %vm394_vm0, %v13607_v19, %v13619_v42  ;;  %2328 = vrot.lane.b32.xlu1 %v2220_v28, %s13097_s2 }
 0x2af   :  { %2290 = vrot.lane.b32.xlu0 %v2201_v39, %s13097_s2  ;;  %v469_v53 = vadd.f32 %v395_v26, %v14672_v2  ;;  %v14942_v16 = vmul.f32 %v13556_v59, %v14498_v33  ;;  %v415_v19 = vsel %vm394_vm0, %v13619_v42, %v13617_v37  ;;  %v416_v26 = vsel %vm394_vm0, %v13617_v37, %v13627_v45 }
 0x2b0   :  { %20877 = vst [vmem:[#allocation237_spill] sm:$0xff] %v14922_v46  ;;  %v14938_v46 = vmul.f32 %v13558_v61, %v14414_v5  ;;  %v398_v2 = vsel %vm394_vm0, %v13597_v14, %v13629_v48  ;;  %v673_v59 = vsel %vm672_vm1, %v13639_v57, %v13637_v56  ;;  %v14960_v39 = vpop.permute.xlu1 %390  ;;  %v14962_v61 = vpop.permute.xlu0 %352  ;;  %v470_v28 = vadd.f32 %v396_v10, %v14676_v60 }
 0x2b1   :  { %20878 = vst [vmem:[#allocation238_spill] sm:$0xff] %v14960_v39  ;;  %20879 = vst [vmem:[#allocation239_spill] sm:$0xff] %v14962_v61  ;;  %v471_v42 = vadd.f32 %v397_v7, %v14680_v52  ;;  %v488_v33 = vadd.f32 %v413_v9, %v14684_v58  ;;  %v489_v37 = vadd.f32 %v414_v51, %v14688_v34  ;;  %v20880_v52 = vld [vmem:[#allocation16_spill] sm:$0xff] }
 0x2b2   :  { %v674_v14 = vsel %vm672_vm1, %v13637_v56, %v13649_v4  ;;  %v675_v57 = vsel %vm672_vm1, %v13649_v4, %v13647_v63  ;;  %v691_v61 = vsel %vm672_vm1, %v13659_v17, %v13657_v12  ;;  %1226 = vrot.lane.b32.xlu1 %v1113_v18, %s20630_s1  ;;  %v490_v7 = vadd.f32 %v415_v19, %v14692_v27  ;;  %v20887_v19 = vld [vmem:[#allocation21_spill] sm:$0xff] }
 0x2b3   :  { %1188 = vrot.lane.b32.xlu0 %v1094_v3, %s20630_s1  ;;  %v491_v34 = vadd.f32 %v416_v26, %v14698_v35  ;;  %v472_v60 = vadd.f32 %v398_v2, %v14702_v25  ;;  %v747_v56 = vadd.f32 %v673_v59, %v469_v53  ;;  %v692_v4 = vsel %vm672_vm1, %v13657_v12, %v13669_v43  ;;  %v20881_v3 = vld [vmem:[#allocation17_spill] sm:$0xff]  ;;  %v20884_v12 = vld [vmem:[#allocation18_spill] sm:$0xff]  ;;  %s21242_s1 = sld [smem:[#allocation246_spill]] }
 0x2b4   :  { %v693_v17 = vsel %vm672_vm1, %v13669_v43, %v13667_v36  ;;  %v417_v58 = vsel %vm394_vm0, %v13627_v45, %v20880_v52  ;;  %v399_v27 = vsel %vm394_vm0, %v13629_v48, %v20881_v3  ;;  %v14994_v35 = vpop.permute.xlu1 %666  ;;  %v14996_v25 = vpop.permute.xlu0 %628  ;;  %v748_v18 = vadd.f32 %v674_v14, %v470_v28  ;;  %v20885_v43 = vld [vmem:[#allocation19_spill] sm:$0xff]  ;;  %v20886_v45 = vld [vmem:[#allocation20_spill] sm:$0xff]  ;;  %v20891_v14 = vld [vmem:[#allocation25_spill] sm:$0xff] }
 0x2b5   :  { %20882 = vst [vmem:[#allocation16_spill] sm:$0xff] %v14994_v35  ;;  %20883 = vst [vmem:[#allocation17_spill] sm:$0xff] %v14996_v25  ;;  %v749_v10 = vadd.f32 %v675_v57, %v471_v42  ;;  %v766_v9 = vadd.f32 %v691_v61, %v488_v33  ;;  %v694_v51 = vsel %vm672_vm1, %v13667_v36, %v20884_v12  ;;  %v20888_v48 = vld [vmem:[#allocation23_spill] sm:$0xff]  ;;  %v20889_v61 = vld [vmem:[#allocation22_spill] sm:$0xff] }
 0x2b6   :  { %v676_v53 = vsel %vm672_vm1, %v13647_v63, %v20885_v43  ;;  %v951_v26 = vsel %vm950_vm2, %v20887_v19, %v20886_v45  ;;  %v952_v2 = vsel %vm950_vm2, %v20886_v45, %v20888_v48  ;;  %1502 = vrot.lane.b32.xlu1 %v14810_v22, %s13094_s9  ;;  %v767_v36 = vadd.f32 %v692_v4, %v489_v37  ;;  %v20890_v42 = vld [vmem:[#allocation24_spill] sm:$0xff]  ;;  %v20892_v45 = vld [vmem:[#allocation27_spill] sm:$0xff]  ;;  %v20893_v19 = vld [vmem:[#allocation26_spill] sm:$0xff] }
 0x2b7   :  { %1464 = vrot.lane.b32.xlu0 %v14814_v11, %s13094_s9  ;;  %v768_v33 = vadd.f32 %v693_v17, %v490_v7  ;;  %v492_v59 = vadd.f32 %v417_v58, %v14706_v24  ;;  %v473_v63 = vadd.f32 %v399_v27, %v14710_v32  ;;  %v953_v28 = vsel %vm950_vm2, %v20888_v48, %v20889_v61  ;;  %v20896_v58 = vld [vmem:[#allocation28_spill] sm:$0xff]  ;;  %v20897_v48 = vld [vmem:[#allocation29_spill] sm:$0xff] }
 0x2b8   :  { %v969_v57 = vsel %vm950_vm2, %v20891_v14, %v20890_v42  ;;  %v970_v22 = vsel %vm950_vm2, %v20890_v42, %v20892_v45  ;;  %v971_v11 = vsel %vm950_vm2, %v20892_v45, %v20893_v19  ;;  %v15028_v37 = vpop.permute.xlu1 %942  ;;  %v15030_v24 = vpop.permute.xlu0 %904  ;;  %v769_v32 = vadd.f32 %v694_v51, %v491_v34  ;;  %v20898_v14 = vld [vmem:[#allocation30_spill] sm:$0xff]  ;;  %v20899_v51 = vld [vmem:[#allocation31_spill] sm:$0xff]  ;;  %v20910_v25 = vld [vmem:[#allocation41_spill] sm:$0xff] }
 0x2b9   :  { %20894 = vst [vmem:[#allocation18_spill] sm:$0xff] %v15028_v37  ;;  %20895 = vst [vmem:[#allocation19_spill] sm:$0xff] %v15030_v24  ;;  %v750_v7 = vadd.f32 %v676_v53, %v472_v60  ;;  %v1025_v4 = vadd.f32 %v951_v26, %v747_v56  ;;  %v1026_v17 = vadd.f32 %v952_v2, %v748_v18  ;;  %v20900_v53 = vld [vmem:[#allocation32_spill] sm:$0xff]  ;;  %v20901_v26 = vld [vmem:[#allocation33_spill] sm:$0xff] }
 0x2ba   :  { %v418_v27 = vsel %vm394_vm0, %v20880_v52, %v20896_v58  ;;  %v400_v42 = vsel %vm394_vm0, %v20881_v3, %v20897_v48  ;;  %v695_v45 = vsel %vm672_vm1, %v20884_v12, %v20898_v14  ;;  %1778 = vrot.lane.b32.xlu1 %v14818_v13, %s13095_s17  ;;  %v1027_v34 = vadd.f32 %v953_v28, %v749_v10  ;;  %v20902_v13 = vld [vmem:[#allocation34_spill] sm:$0xff]  ;;  %v20903_v2 = vld [vmem:[#allocation35_spill] sm:$0xff]  ;;  %v20906_v28 = vld [vmem:[#allocation37_spill] sm:$0xff] }
 0x2bb   :  { %1740 = vrot.lane.b32.xlu0 %v14822_v0, %s13095_s17  ;;  %v1044_v60 = vadd.f32 %v969_v57, %v766_v9  ;;  %v1045_v56 = vadd.f32 %v970_v22, %v767_v36  ;;  %v1046_v18 = vadd.f32 %v971_v11, %v768_v33  ;;  %v677_v52 = vsel %vm672_vm1, %v20885_v43, %v20899_v51  ;;  %v20907_v22 = vld [vmem:[#allocation36_spill] sm:$0xff]  ;;  %v20909_v11 = vld [vmem:[#allocation39_spill] sm:$0xff]  ;;  %v20950_v37 = vld [vmem:[#allocation73_spill] sm:$0xff] }
 0x2bc   :  { %v972_v3 = vsel %vm950_vm2, %v20893_v19, %v20900_v53  ;;  %v954_v12 = vsel %vm950_vm2, %v20889_v61, %v20901_v26  ;;  %v1229_v0 = vsel %vm1228_vm3, %v20903_v2, %v20902_v13  ;;  %v15057_v10 = vpop.permute.xlu1 %1218  ;;  %v15059_v9 = vpop.permute.xlu0 %1180  ;;  %v493_v36 = vadd.f32 %v418_v27, %v14714_v21  ;;  %v20908_v19 = vld [vmem:[#allocation38_spill] sm:$0xff]  ;;  %v20945_v24 = vld [vmem:[#allocation68_spill] sm:$0xff] }
 0x2bd   :  { %20904 = vst [vmem:[#allocation20_spill] sm:$0xff] %v15057_v10  ;;  %20905 = vst [vmem:[#allocation21_spill] sm:$0xff] %v15059_v9  ;;  %v474_v43 = vadd.f32 %v400_v42, %v14718_v62  ;;  %v770_v33 = vadd.f32 %v695_v45, %v492_v59  ;;  %v1230_v57 = vsel %vm1228_vm3, %v20902_v13, %v20906_v28  ;;  %v20911_v42 = vld [vmem:[#allocation40_spill] sm:$0xff]  ;;  %v20912_v13 = vld [vmem:[#allocation42_spill] sm:$0xff] }
 0x2be   :  { %v1231_v61 = vsel %vm1228_vm3, %v20906_v28, %v20907_v22  ;;  %v1247_v2 = vsel %vm1228_vm3, %v20909_v11, %v20908_v19  ;;  %v1248_v35 = vsel %vm1228_vm3, %v20908_v19, %v20910_v25  ;;  %2054 = vrot.lane.b32.xlu1 %v14830_v15, %s13096_s0  ;;  %v751_v21 = vadd.f32 %v677_v52, %v473_v63  ;;  %v20913_v19 = vld [vmem:[#allocation43_spill] sm:$0xff]  ;;  %v20914_v15 = vld [vmem:[#allocation44_spill] sm:$0xff] }
 0x2bf   :  { %2016 = vrot.lane.b32.xlu0 %v14834_v44, %s13096_s0  ;;  %v1047_v62 = vadd.f32 %v972_v3, %v769_v32  ;;  %v1028_v59 = vadd.f32 %v954_v12, %v750_v7  ;;  %v1303_v27 = vadd.f32 %v1229_v0, %v1025_v4  ;;  %v1249_v45 = vsel %vm1228_vm3, %v20910_v25, %v20911_v42  ;;  %v20917_v3 = vld [vmem:[#allocation45_spill] sm:$0xff]  ;;  %v20918_v12 = vld [vmem:[#allocation46_spill] sm:$0xff]  ;;  %v20919_v0 = vld [vmem:[#allocation47_spill] sm:$0xff] }
 0x2c0   :  { %v419_v28 = vsel %vm394_vm0, %v20896_v58, %v20912_v13  ;;  %v401_v11 = vsel %vm394_vm0, %v20897_v48, %v20913_v19  ;;  %v696_v44 = vsel %vm672_vm1, %v20898_v14, %v20914_v15  ;;  %v15091_v63 = vpop.permute.xlu1 %1494  ;;  %v15093_v32 = vpop.permute.xlu0 %1456  ;;  %v1304_v7 = vadd.f32 %v1230_v57, %v1026_v17  ;;  %v20922_v57 = vld [vmem:[#allocation50_spill] sm:$0xff] }
 0x2c1   :  { %20915 = vst [vmem:[#allocation23_spill] sm:$0xff] %v15091_v63  ;;  %20916 = vst [vmem:[#allocation22_spill] sm:$0xff] %v15093_v32  ;;  %v1305_v4 = vadd.f32 %v1231_v61, %v1027_v34  ;;  %v1322_v52 = vadd.f32 %v1247_v2, %v1044_v60  ;;  %v1323_v25 = vadd.f32 %v1248_v35, %v1045_v56  ;;  %v20920_v56 = vld [vmem:[#allocation48_spill] sm:$0xff]  ;;  %v20923_v61 = vld [vmem:[#allocation51_spill] sm:$0xff] }
 0x2c2   :  { %v678_v58 = vsel %vm672_vm1, %v20899_v51, %v20917_v3  ;;  %v973_v48 = vsel %vm950_vm2, %v20900_v53, %v20918_v12  ;;  %v955_v14 = vsel %vm950_vm2, %v20901_v26, %v20919_v0  ;;  %2330 = vrot.lane.b32.xlu1 %v14838_v50, %s13097_s2  ;;  %v1324_v17 = vadd.f32 %v1249_v45, %v1046_v18  ;;  %v20921_v53 = vld [vmem:[#allocation49_spill] sm:$0xff]  ;;  %v20955_v32 = vld [vmem:[#allocation76_spill] sm:$0xff] }
 0x2c3   :  { %2292 = vrot.lane.b32.xlu0 %v14842_v8, %s13097_s2  ;;  %v494_v35 = vadd.f32 %v419_v28, %v14730_v41  ;;  %v475_v34 = vadd.f32 %v401_v11, %v14734_v6  ;;  %v771_v60 = vadd.f32 %v696_v44, %v493_v36  ;;  %v1250_v51 = vsel %vm1228_vm3, %v20911_v42, %v20920_v56  ;;  %v20924_v2 = vld [vmem:[#allocation53_spill] sm:$0xff]  ;;  %v20927_v42 = vld [vmem:[#allocation52_spill] sm:$0xff]  ;;  %v20929_v11 = vld [vmem:[#allocation55_spill] sm:$0xff] }
 0x2c4   :  { %v1232_v26 = vsel %vm1228_vm3, %v20907_v22, %v20921_v53  ;;  %v1507_v50 = vsel %vm1506_vm4, %v20923_v61, %v20922_v57  ;;  %v1508_v8 = vsel %vm1506_vm4, %v20922_v57, %v20924_v2  ;;  %v15122_v41 = vpop.permute.xlu1 %1770  ;;  %v15124_v6 = vpop.permute.xlu0 %1732  ;;  %v752_v18 = vadd.f32 %v678_v58, %v474_v43  ;;  %v20928_v22 = vld [vmem:[#allocation54_spill] sm:$0xff]  ;;  %v20930_v61 = vld [vmem:[#allocation57_spill] sm:$0xff]  ;;  %v20931_v57 = vld [vmem:[#allocation56_spill] sm:$0xff] }
 0x2c5   :  { %20925 = vst [vmem:[#allocation24_spill] sm:$0xff] %v15122_v41  ;;  %20926 = vst [vmem:[#allocation25_spill] sm:$0xff] %v15124_v6  ;;  %v1048_v36 = vadd.f32 %v973_v48, %v770_v33  ;;  %v1029_v45 = vadd.f32 %v955_v14, %v751_v21  ;;  %v1509_v28 = vsel %vm1506_vm4, %v20924_v2, %v20927_v42  ;;  %v20932_v48 = vld [vmem:[#allocation58_spill] sm:$0xff]  ;;  %v20933_v2 = vld [vmem:[#allocation59_spill] sm:$0xff] }
 0x2c6   :  { %v1525_v44 = vsel %vm1506_vm4, %v20929_v11, %v20928_v22  ;;  %v1526_v39 = vsel %vm1506_vm4, %v20928_v22, %v20930_v61  ;;  %v1527_v5 = vsel %vm1506_vm4, %v20930_v61, %v20931_v57  ;;  %1504 = vrot.lane.b32.xlu1 %v14846_v29, %s13094_s9  ;;  %v1325_v43 = vadd.f32 %v1250_v51, %v1047_v62  ;;  %v20934_v11 = vld [vmem:[#allocation60_spill] sm:$0xff]  ;;  %v20935_v29 = vld [vmem:[#allocation61_spill] sm:$0xff] }
 0x2c7   :  { %1466 = vrot.lane.b32.xlu0 %v14850_v23, %s13094_s9  ;;  %v1306_v33 = vadd.f32 %v1232_v26, %v1028_v59  ;;  %v1581_v21 = vadd.f32 %v1507_v50, %v1303_v27  ;;  %v1582_v58 = vadd.f32 %v1508_v8, %v1304_v7  ;;  %v420_v14 = vsel %vm394_vm0, %v20912_v13, %v20932_v48  ;;  %v20937_v26 = vld [vmem:[#allocation62_spill] sm:$0xff]  ;;  %v20938_v50 = vld [vmem:[#allocation63_spill] sm:$0xff]  ;;  %v20939_v8 = vld [vmem:[#allocation64_spill] sm:$0xff]  ;;  %s13110_s9 = smov 107  }
 0x2c8   :  { %v402_v22 = vsel %vm394_vm0, %v20913_v19, %v20933_v2  ;;  %v697_v61 = vsel %vm672_vm1, %v20914_v15, %v20934_v11  ;;  %v679_v23 = vsel %vm672_vm1, %v20917_v3, %v20935_v29  ;;  %v15154_v62 = vpop.permute.xlu1 %2046  ;;  %v15156_v59 = vpop.permute.xlu0 %2008  ;;  %v1583_v27 = vadd.f32 %v1509_v28, %v1305_v4  ;;  %v20941_v4 = vld [vmem:[#allocation215_spill] sm:$0xff]  ;;  %v20943_v28 = vld [vmem:[#allocation66_spill] sm:$0xff]  ;;  %v20956_v63 = vld [vmem:[#allocation77_spill] sm:$0xff] }
 0x2c9   :  { %20936 = vst [vmem:[#allocation27_spill] sm:$0xff] %v15156_v59  ;;  %v1600_v7 = vadd.f32 %v1525_v44, %v1322_v52  ;;  %v1601_v51 = vadd.f32 %v1526_v39, %v1323_v25  ;;  %v1602_v13 = vadd.f32 %v1527_v5, %v1324_v17  ;;  %v974_v19 = vsel %vm950_vm2, %v20918_v12, %v20937_v26  ;;  %v20940_v39 = vld [vmem:[#allocation214_spill] sm:$0xff]  ;;  %v20942_v17 = vld [vmem:[#allocation65_spill] sm:$0xff]  ;;  %v20944_v44 = vld [vmem:[#allocation67_spill] sm:$0xff] }
 0x2ca   :  { %v956_v15 = vsel %vm950_vm2, %v20919_v0, %v20938_v50  ;;  %v1251_v3 = vsel %vm1228_vm3, %v20920_v56, %v20939_v8  ;;  %1780 = vrot.lane.b32.xlu1 %v14854_v49, %s13095_s17  ;;  %v495_v5 = vadd.f32 %v420_v14, %v20940_v39  ;;  %v476_v52 = vadd.f32 %v402_v22, %v20941_v4  ;;  %v20981_v41 = vld [vmem:[#allocation96_spill] sm:$0xff]  ;;  %v21011_v59 = vld [vmem:[#allocation117_spill] sm:$0xff] }
 0x2cb   :  { %1742 = vrot.lane.b32.xlu0 %v14858_v31, %s13095_s17  ;;  %v772_v25 = vadd.f32 %v697_v61, %v494_v35  ;;  %v753_v12 = vadd.f32 %v679_v23, %v475_v34  ;;  %v1233_v0 = vsel %vm1228_vm3, %v20921_v53, %v20942_v17  ;;  %v1528_v56 = vsel %vm1506_vm4, %v20931_v57, %v20943_v28  ;;  %v20946_v31 = vld [vmem:[#allocation69_spill] sm:$0xff]  ;;  %v20947_v53 = vld [vmem:[#allocation71_spill] sm:$0xff]  ;;  %v20948_v57 = vld [vmem:[#allocation70_spill] sm:$0xff] }
 0x2cc   :  { %v1510_v49 = vsel %vm1506_vm4, %v20927_v42, %v20944_v44  ;;  %v1785_v14 = vsel %vm20634_vm5, %v20946_v31, %v20945_v24  ;;  %v15185_v39 = vpop.permute.xlu1 %2322  ;;  %v15187_v35 = vpop.permute.xlu0 %2284  ;;  %v1049_v34 = vadd.f32 %v974_v19, %v771_v60  ;;  %v1030_v22 = vadd.f32 %v956_v15, %v752_v18  ;;  %v20949_v42 = vld [vmem:[#allocation72_spill] sm:$0xff]  ;;  %v20951_v31 = vld [vmem:[#allocation75_spill] sm:$0xff]  ;;  %v20952_v60 = vld [vmem:[#allocation230_spill] sm:$0xff] }
 0x2cd   :  { %v1326_v61 = vadd.f32 %v1251_v3, %v1048_v36  ;;  %v1786_v23 = vsel %vm20634_vm5, %v20945_v24, %v20947_v53  ;;  %v1787_v4 = vsel %vm20634_vm5, %v20947_v53, %v20948_v57  ;;  %v1803_v9 = vsel %vm20634_vm5, %v20950_v37, %v20949_v42  ;;  %v20953_v18 = vld [vmem:[#allocation231_spill] sm:$0xff]  ;;  %v20954_v3 = vld [vmem:[#allocation74_spill] sm:$0xff] }
 0x2ce   :  { %v1804_v10 = vsel %vm20634_vm5, %v20949_v42, %v20951_v31  ;;  %2056 = vrot.lane.b32.xlu1 %v20952_v60, %s13096_s0  ;;  %v1307_v36 = vadd.f32 %v1233_v0, %v1029_v45  ;;  %v1603_v24 = vadd.f32 %v1528_v56, %v1325_v43  ;;  %v1584_v19 = vadd.f32 %v1510_v49, %v1306_v33  ;;  %v20957_v60 = vld [vmem:[#allocation78_spill] sm:$0xff]  ;;  %v20960_v49 = vld [vmem:[#allocation79_spill] sm:$0xff] }
 0x2cf   :  { %2018 = vrot.lane.b32.xlu0 %v20953_v18, %s13096_s0  ;;  %v1859_v15 = vadd.f32 %v1785_v14, %v1581_v21  ;;  %v1805_v53 = vsel %vm20634_vm5, %v20951_v31, %v20954_v3  ;;  %v421_v37 = vsel %vm394_vm0, %v20932_v48, %v20955_v32  ;;  %v403_v42 = vsel %vm394_vm0, %v20933_v2, %v20956_v63  ;;  %v20961_v14 = vld [vmem:[#allocation80_spill] sm:$0xff]  ;;  %v20962_v31 = vld [vmem:[#allocation81_spill] sm:$0xff] }
 0x2d0   :  { %v698_v18 = vsel %vm672_vm1, %v20934_v11, %v20957_v60  ;;  %v15217_v45 = vpop.permute.xlu1 %392  ;;  %v15219_v43 = vpop.permute.xlu0 %354  ;;  %v1860_v33 = vadd.f32 %v1786_v23, %v1582_v58  ;;  %v1861_v21 = vadd.f32 %v1787_v4, %v1583_v27  ;;  %v1878_v0 = vadd.f32 %v1803_v9, %v1600_v7  ;;  %v20964_v9 = vld [vmem:[#allocation216_spill] sm:$0xff]  ;;  %v20965_v27 = vld [vmem:[#allocation217_spill] sm:$0xff]  ;;  %v20967_v23 = vld [vmem:[#allocation83_spill] sm:$0xff] }
 0x2d1   :  { %20958 = vst [vmem:[#allocation26_spill] sm:$0xff] %v15217_v45  ;;  %20959 = vst [vmem:[#allocation28_spill] sm:$0xff] %v15219_v43  ;;  %v1879_v56 = vadd.f32 %v1804_v10, %v1601_v51  ;;  %v680_v48 = vsel %vm672_vm1, %v20935_v29, %v20960_v49  ;;  %v975_v2 = vsel %vm950_vm2, %v20937_v26, %v20961_v14  ;;  %v20963_v45 = vld [vmem:[#allocation232_spill] sm:$0xff]  ;;  %v20966_v51 = vld [vmem:[#allocation82_spill] sm:$0xff] }
 0x2d2   :  { %v957_v11 = vsel %vm950_vm2, %v20938_v50, %v20962_v31  ;;  %2332 = vrot.lane.b32.xlu1 %v20963_v45, %s13097_s2  ;;  %v1880_v10 = vadd.f32 %v1805_v53, %v1602_v13  ;;  %v496_v58 = vadd.f32 %v421_v37, %v20964_v9  ;;  %v477_v29 = vadd.f32 %v403_v42, %v20965_v27  ;;  %v20968_v4 = vld [vmem:[#allocation84_spill] sm:$0xff]  ;;  %v20969_v43 = vld [vmem:[#allocation85_spill] sm:$0xff] }
 0x2d3   :  { %2294 = vrot.lane.b32.xlu0 %v14876_v55, %s13097_s2  ;;  %v773_v7 = vadd.f32 %v698_v18, %v495_v5  ;;  %v1252_v26 = vsel %vm1228_vm3, %v20939_v8, %v20966_v51  ;;  %v1234_v50 = vsel %vm1228_vm3, %v20942_v17, %v20967_v23  ;;  %v1529_v45 = vsel %vm1506_vm4, %v20943_v28, %v20968_v4  ;;  %v20972_v8 = vld [vmem:[#allocation86_spill] sm:$0xff]  ;;  %v20973_v17 = vld [vmem:[#allocation87_spill] sm:$0xff]  ;;  %v20974_v28 = vld [vmem:[#allocation88_spill] sm:$0xff] }
 0x2d4   :  { %v1511_v55 = vsel %vm1506_vm4, %v20944_v44, %v20969_v43  ;;  %v15248_v13 = vpop.permute.xlu1 %668  ;;  %v15250_v53 = vpop.permute.xlu0 %630  ;;  %v754_v5 = vadd.f32 %v680_v48, %v476_v52  ;;  %v1050_v37 = vadd.f32 %v975_v2, %v772_v25  ;;  %v1031_v42 = vadd.f32 %v957_v11, %v753_v12  ;;  %v20975_v27 = vld [vmem:[#allocation89_spill] sm:$0xff]  ;;  %v20976_v44 = vld [vmem:[#allocation91_spill] sm:$0xff]  ;;  %v20978_v2 = vld [vmem:[#allocation90_spill] sm:$0xff] }
 0x2d5   :  { %20970 = vst [vmem:[#allocation29_spill] sm:$0xff] %v15248_v13  ;;  %20971 = vst [vmem:[#allocation30_spill] sm:$0xff] %v15250_v53  ;;  %v1806_v18 = vsel %vm20634_vm5, %v20954_v3, %v20972_v8  ;;  %v1788_v9 = vsel %vm20634_vm5, %v20948_v57, %v20973_v17  ;;  %v2063_v6 = vsel %vm2062_vm6, %v20975_v27, %v20974_v28  ;;  %v20977_v52 = vld [vmem:[#allocation233_spill] sm:$0xff]  ;;  %v20980_v27 = vld [vmem:[#allocation94_spill] sm:$0xff] }
 0x2d6   :  { %v2064_v13 = vsel %vm2062_vm6, %v20974_v28, %v20976_v44  ;;  %1782 = vrot.lane.b32.xlu1 %v14880_v54, %s13095_s17  ;;  %v1327_v25 = vadd.f32 %v1252_v26, %v1049_v34  ;;  %v1308_v12 = vadd.f32 %v1234_v50, %v1030_v22  ;;  %v1604_v3 = vadd.f32 %v1529_v45, %v1326_v61  ;;  %v20979_v11 = vld [vmem:[#allocation93_spill] sm:$0xff]  ;;  %v20982_v54 = vld [vmem:[#allocation95_spill] sm:$0xff] }
 0x2d7   :  { %1744 = vrot.lane.b32.xlu0 %v20977_v52, %s13095_s17  ;;  %v1585_v48 = vadd.f32 %v1511_v55, %v1307_v36  ;;  %v2065_v57 = vsel %vm2062_vm6, %v20976_v44, %v20978_v2  ;;  %v2081_v53 = vsel %vm2062_vm6, %v20980_v27, %v20979_v11  ;;  %v2082_v28 = vsel %vm2062_vm6, %v20979_v11, %v20981_v41  ;;  %v20985_v45 = vld [vmem:[#allocation97_spill] sm:$0xff]  ;;  %v20986_v44 = vld [vmem:[#allocation98_spill] sm:$0xff]  ;;  %v20987_v27 = vld [vmem:[#allocation99_spill] sm:$0xff] }
 0x2d8   :  { %v2083_v52 = vsel %vm2062_vm6, %v20981_v41, %v20982_v54  ;;  %v15280_v34 = vpop.permute.xlu1 %944  ;;  %v15282_v22 = vpop.permute.xlu0 %906  ;;  %v1881_v61 = vadd.f32 %v1806_v18, %v1603_v24  ;;  %v1862_v36 = vadd.f32 %v1788_v9, %v1584_v19  ;;  %v2137_v26 = vadd.f32 %v2063_v6, %v1859_v15  ;;  %v20988_v24 = vld [vmem:[#allocation236_spill] sm:$0xff] }
 0x2d9   :  { %20983 = vst [vmem:[#allocation31_spill] sm:$0xff] %v15280_v34  ;;  %20984 = vst [vmem:[#allocation32_spill] sm:$0xff] %v15282_v22  ;;  %v2138_v50 = vadd.f32 %v2064_v13, %v1860_v33  ;;  %v422_v55 = vsel %vm394_vm0, %v20955_v32, %v20985_v45  ;;  %v404_v11 = vsel %vm394_vm0, %v20956_v63, %v20986_v44  ;;  %v20989_v32 = vld [vmem:[#allocation100_spill] sm:$0xff]  ;;  %v20990_v63 = vld [vmem:[#allocation101_spill] sm:$0xff] }
 0x2da   :  { %v699_v41 = vsel %vm672_vm1, %v20957_v60, %v20987_v27  ;;  %2058 = vrot.lane.b32.xlu1 %v14888_v20, %s13096_s0  ;;  %v2139_v6 = vadd.f32 %v2065_v57, %v1861_v21  ;;  %v2156_v19 = vadd.f32 %v2081_v53, %v1878_v0  ;;  %v2157_v15 = vadd.f32 %v2082_v28, %v1879_v56  ;;  %v20991_v60 = vld [vmem:[#allocation102_spill] sm:$0xff]  ;;  %v20992_v20 = vld [vmem:[#allocation103_spill] sm:$0xff]  ;;  %v20997_v28 = vld [vmem:[#allocation104_spill] sm:$0xff] }
 0x2db   :  { %2020 = vrot.lane.b32.xlu0 %v20988_v24, %s13096_s0  ;;  %v2158_v33 = vadd.f32 %v2083_v52, %v1880_v10  ;;  %v681_v13 = vsel %vm672_vm1, %v20960_v49, %v20989_v32  ;;  %v976_v18 = vsel %vm950_vm2, %v20961_v14, %v20990_v63  ;;  %v958_v9 = vsel %vm950_vm2, %v20962_v31, %v20991_v60  ;;  %v20995_v56 = vld [vmem:[#allocation218_spill] sm:$0xff]  ;;  %v20996_v53 = vld [vmem:[#allocation219_spill] sm:$0xff]  ;;  %v20998_v52 = vld [vmem:[#allocation105_spill] sm:$0xff] }
 0x2dc   :  { %v1253_v24 = vsel %vm1228_vm3, %v20966_v51, %v20992_v20  ;;  %v15309_v21 = vpop.permute.xlu1 %1220  ;;  %v15311_v0 = vpop.permute.xlu0 %1182  ;;  %v497_v10 = vadd.f32 %v422_v55, %v20995_v56  ;;  %v478_v49 = vadd.f32 %v404_v11, %v20996_v53  ;;  %v774_v57 = vadd.f32 %v699_v41, %v496_v58  ;;  %v20999_v22 = vld [vmem:[#allocation106_spill] sm:$0xff]  ;;  %v21000_v34 = vld [vmem:[#allocation107_spill] sm:$0xff]  ;;  %v21001_v41 = vld [vmem:[#allocation108_spill] sm:$0xff] }
 0x2dd   :  { %20993 = vst [vmem:[#allocation33_spill] sm:$0xff] %v15309_v21  ;;  %20994 = vst [vmem:[#allocation34_spill] sm:$0xff] %v15311_v0  ;;  %v1235_v14 = vsel %vm1228_vm3, %v20967_v23, %v20997_v28  ;;  %v1530_v31 = vsel %vm1506_vm4, %v20968_v4, %v20998_v52  ;;  %v1512_v51 = vsel %vm1506_vm4, %v20969_v43, %v20999_v22  ;;  %v21002_v56 = vld [vmem:[#allocation110_spill] sm:$0xff]  ;;  %v21003_v53 = vld [vmem:[#allocation111_spill] sm:$0xff] }
 0x2de   :  { %v1807_v0 = vsel %vm20634_vm5, %v20972_v8, %v21000_v34  ;;  %2334 = vrot.lane.b32.xlu1 %v14903_v47, %s13097_s2  ;;  %v755_v58 = vadd.f32 %v681_v13, %v477_v29  ;;  %v1051_v23 = vadd.f32 %v976_v18, %v773_v7  ;;  %v1032_v55 = vadd.f32 %v958_v9, %v754_v5  ;;  %v21004_v47 = vld [vmem:[#allocation112_spill] sm:$0xff]  ;;  %v21005_v21 = vld [vmem:[#allocation113_spill] sm:$0xff]  ;;  %v21008_v18 = vld [vmem:[#allocation115_spill] sm:$0xff] }
 0x2df   :  { %2296 = vrot.lane.b32.xlu0 %v14907_v1, %s13097_s2  ;;  %v1328_v11 = vadd.f32 %v1253_v24, %v1050_v37  ;;  %v1789_v4 = vsel %vm20634_vm5, %v20973_v17, %v21001_v41  ;;  %v2084_v43 = vsel %vm2062_vm6, %v20982_v54, %v21002_v56  ;;  %v2066_v8 = vsel %vm2062_vm6, %v20978_v2, %v21003_v53  ;;  %v21009_v9 = vld [vmem:[#allocation114_spill] sm:$0xff]  ;;  %v21010_v24 = vld [vmem:[#allocation116_spill] sm:$0xff] }
 0x2e0   :  { %v2341_v1 = vsel %vm2340_vm7, %v21005_v21, %v21004_v47  ;;  %v15343_v29 = vpop.permute.xlu1 %1496  ;;  %v15345_v7 = vpop.permute.xlu0 %1458  ;;  %v1309_v5 = vadd.f32 %v1235_v14, %v1031_v42  ;;  %v1605_v37 = vadd.f32 %v1530_v31, %v1327_v25  ;;  %v1586_v13 = vadd.f32 %v1512_v51, %v1308_v12  ;;  %v21013_v31 = vld [vmem:[#allocation118_spill] sm:$0xff] }
 0x2e1   :  { %21006 = vst [vmem:[#allocation35_spill] sm:$0xff] %v15343_v29  ;;  %21007 = vst [vmem:[#allocation37_spill] sm:$0xff] %v15345_v7  ;;  %v1882_v17 = vadd.f32 %v1807_v0, %v1604_v3  ;;  %v2342_v54 = vsel %vm2340_vm7, %v21004_v47, %v21008_v18  ;;  %v2343_v2 = vsel %vm2340_vm7, %v21008_v18, %v21009_v9  ;;  %v21012_v0 = vld [vmem:[#allocation119_spill] sm:$0xff]  ;;  %v21014_v47 = vld [vmem:[#allocation120_spill] sm:$0xff] }
 0x2e2   :  { %v2359_v21 = vsel %vm2340_vm7, %v21011_v59, %v21010_v24  ;;  %2060 = vrot.lane.b32.xlu1 %v14914_v40, %s13096_s0  ;;  %v1863_v42 = vadd.f32 %v1789_v4, %v1585_v48  ;;  %v2159_v25 = vadd.f32 %v2084_v43, %v1881_v61  ;;  %v2140_v12 = vadd.f32 %v2066_v8, %v1862_v36  ;;  %v21015_v40 = vld [vmem:[#allocation121_spill] sm:$0xff]  ;;  %v21018_v43 = vld [vmem:[#allocation122_spill] sm:$0xff]  ;;  %v21020_v18 = vld [vmem:[#allocation124_spill] sm:$0xff] }
 0x2e3   :  { %2022 = vrot.lane.b32.xlu0 %v14918_v38, %s13096_s0  ;;  %v2415_v3 = vadd.f32 %v2341_v1, %v2137_v26  ;;  %v2360_v14 = vsel %vm2340_vm7, %v21010_v24, %v21012_v0  ;;  %v2361_v51 = vsel %vm2340_vm7, %v21012_v0, %v21013_v31  ;;  %v423_v59 = vsel %vm394_vm0, %v20985_v45, %v21014_v47  ;;  %v21019_v1 = vld [vmem:[#allocation123_spill] sm:$0xff]  ;;  %v21021_v24 = vld [vmem:[#allocation125_spill] sm:$0xff]  ;;  %v21026_v7 = vld [vmem:[#allocation128_spill] sm:$0xff]  ;;  %s13104_s0 = smov 71  }
 0x2e4   :  { %v405_v38 = vsel %vm394_vm0, %v20986_v44, %v21015_v40  ;;  %v15372_v48 = vpop.permute.xlu1 %1772  ;;  %v15374_v61 = vpop.permute.xlu0 %1734  ;;  %v2416_v36 = vadd.f32 %v2342_v54, %v2138_v50  ;;  %v15376_v26 = vadd.f32 %v2343_v2, %v2139_v6  ;;  %v15378_v4 = vadd.f32 %v2359_v21, %v2156_v19  ;;  %v21022_v6 = vld [vmem:[#allocation237_spill] sm:$0xff]  ;;  %v21023_v54 = vld [vmem:[#allocation220_spill] sm:$0xff]  ;;  %v21025_v0 = vld [vmem:[#allocation127_spill] sm:$0xff] }
 0x2e5   :  { %21016 = vst [vmem:[#allocation36_spill] sm:$0xff] %v15372_v48  ;;  %21017 = vst [vmem:[#allocation38_spill] sm:$0xff] %v15374_v61  ;;  %v700_v8 = vsel %vm672_vm1, %v20987_v27, %v21018_v43  ;;  %v682_v45 = vsel %vm672_vm1, %v20989_v32, %v21019_v1  ;;  %v977_v44 = vsel %vm950_vm2, %v20990_v63, %v21020_v18  ;;  %v21024_v2 = vld [vmem:[#allocation221_spill] sm:$0xff]  ;;  %v21031_v29 = vld [vmem:[#allocation132_spill] sm:$0xff] }
 0x2e6   :  { %v959_v50 = vsel %vm950_vm2, %v20991_v60, %v21021_v24  ;;  %2336 = vrot.lane.b32.xlu1 %v21022_v6, %s13097_s2  ;;  %v15396_v19 = vadd.f32 %v2360_v14, %v2157_v15  ;;  %v15398_v27 = vadd.f32 %v2361_v51, %v2158_v33  ;;  %v498_v32 = vadd.f32 %v423_v59, %v21023_v54  ;;  %v21027_v6 = vld [vmem:[#allocation129_spill] sm:$0xff]  ;;  %v21028_v15 = vld [vmem:[#allocation130_spill] sm:$0xff] }
 0x2e7   :  { %2298 = vrot.lane.b32.xlu0 %v14938_v46, %s13097_s2  ;;  %v479_v21 = vadd.f32 %v405_v38, %v21024_v2  ;;  %v1254_v63 = vsel %vm1228_vm3, %v20992_v20, %v21025_v0  ;;  %v1236_v60 = vsel %vm1228_vm3, %v20997_v28, %v21026_v7  ;;  %v1531_v46 = vsel %vm1506_vm4, %v20998_v52, %v21027_v6  ;;  %v21030_v2 = vld [vmem:[#allocation131_spill] sm:$0xff]  ;;  %v21032_v61 = vld [vmem:[#allocation133_spill] sm:$0xff] }
 0x2e8   :  { %v1513_v33 = vsel %vm1506_vm4, %v20999_v22, %v21028_v15  ;;  %v15414_v14 = vpop.permute.xlu1 %2048  ;;  %v15416_v51 = vpop.permute.xlu0 %2010  ;;  %v775_v59 = vadd.f32 %v700_v8, %v497_v10  ;;  %v756_v38 = vadd.f32 %v682_v45, %v478_v49  ;;  %v1052_v54 = vadd.f32 %v977_v44, %v774_v57  ;;  %v21033_v8 = vld [vmem:[#allocation134_spill] sm:$0xff]  ;;  %v21034_v45 = vld [vmem:[#allocation135_spill] sm:$0xff]  ;;  %v21035_v44 = vld [vmem:[#allocation136_spill] sm:$0xff] }
 0x2e9   :  { %21029 = vst [vmem:[#allocation39_spill] sm:$0xff] %v15416_v51  ;;  %v1033_v20 = vadd.f32 %v959_v50, %v755_v58  ;;  %v1808_v28 = vsel %vm20634_vm5, %v21000_v34, %v21030_v2  ;;  %v1790_v52 = vsel %vm20634_vm5, %v21001_v41, %v21031_v29  ;;  %v2085_v22 = vsel %vm2062_vm6, %v21002_v56, %v21032_v61  ;;  %v21044_v48 = vld [vmem:[#allocation145_spill] sm:$0xff] }
 0x2ea   :  { %2338 = vrot.lane.b32.xlu1 %v14942_v16, %s13097_s2  ;;  %v1329_v10 = vadd.f32 %v1254_v63, %v1051_v23  ;;  %v1310_v49 = vadd.f32 %v1236_v60, %v1032_v55  ;;  %v1606_v57 = vadd.f32 %v1531_v46, %v1328_v11  ;;  %v1587_v58 = vadd.f32 %v1513_v33, %v1309_v5  ;;  %v21036_v16 = vld [vmem:[#allocation137_spill] sm:$0xff] }
 0x2eb   :  { %2300 = vrot.lane.b32.xlu0 %v14946_v30, %s13097_s2  ;;  %v2067_v34 = vsel %vm2062_vm6, %v21003_v53, %v21033_v8  ;;  %v2362_v41 = vsel %vm2340_vm7, %v21013_v31, %v21034_v45  ;;  %v2344_v56 = vsel %vm2340_vm7, %v21009_v9, %v21035_v44  ;;  %v424_v30 = vsel %vm394_vm0, %v21014_v47, %v21036_v16  ;;  %v21037_v53 = vld [vmem:[#allocation138_spill] sm:$0xff]  ;;  %v21038_v31 = vld [vmem:[#allocation139_spill] sm:$0xff]  ;;  %v21039_v9 = vld [vmem:[#allocation140_spill] sm:$0xff]  ;;  %s13106_s2 = smov 88  }
 0x2ec   :  { %v15443_v23 = vpop.permute.xlu1 %2324  ;;  %v15445_v55 = vpop.permute.xlu0 %2286  ;;  %v1883_v11 = vadd.f32 %v1808_v28, %v1605_v37  ;;  %v1864_v5 = vadd.f32 %v1790_v52, %v1586_v13  ;;  %v2160_v50 = vadd.f32 %v2085_v22, %v1882_v17  ;;  %v406_v63 = vsel %vm394_vm0, %v21015_v40, %v21037_v53  ;;  %v21040_v47 = vld [vmem:[#allocation141_spill] sm:$0xff]  ;;  %v21041_v40 = vld [vmem:[#allocation222_spill] sm:$0xff]  ;;  %v21043_v22 = vld [vmem:[#allocation144_spill] sm:$0xff] }
 0x2ed   :  { %v701_v60 = vsel %vm672_vm1, %v21018_v43, %v21038_v31  ;;  %v683_v46 = vsel %vm672_vm1, %v21019_v1, %v21039_v9  ;;  %v978_v33 = vsel %vm950_vm2, %v21020_v18, %v21040_v47  ;;  %v2141_v37 = vadd.f32 %v2067_v34, %v1863_v42  ;;  %v21042_v52 = vld [vmem:[#allocation142_spill] sm:$0xff]  ;;  %v21051_v51 = vld [vmem:[#allocation149_spill] sm:$0xff] }
 0x2ee   :  { %2493 = vrot.lane.b32.xlu1 %v2416_v36, %s13098_s27  ;;  %v2437_v13 = vadd.f32 %v2362_v41, %v2159_v25  ;;  %v2418_v17 = vadd.f32 %v2344_v56, %v2140_v12  ;;  %v499_v28 = vadd.f32 %v424_v30, %v21041_v40  ;;  %v960_v43 = vsel %vm950_vm2, %v21021_v24, %v21042_v52  ;;  %v21045_v36 = vld [vmem:[#allocation146_spill] sm:$0xff]  ;;  %v21049_v30 = vld [vmem:[#allocation147_spill] sm:$0xff]  ;;  %v21050_v40 = vld [vmem:[#allocation148_spill] sm:$0xff] }
 0x2ef   :  { %2491 = vrot.lane.b32.xlu0 %v2415_v3, %s13098_s27  ;;  %v1255_v1 = vsel %vm1228_vm3, %v21025_v0, %v21043_v22  ;;  %v1237_v18 = vsel %vm1228_vm3, %v21026_v7, %v21044_v48  ;;  %v1532_v42 = vsel %vm1506_vm4, %v21027_v6, %v21045_v36  ;;  %v21048_v3 = vld [vmem:[#allocation223_spill] sm:$0xff]  ;;  %v776_v41 = vadd.f32 %v701_v60, %v498_v32  ;;  %v21052_v60 = vld [vmem:[#allocation150_spill] sm:$0xff] }
 0x2f0   :  { %v15474_v25 = vpop.permute.xlu1 %670  ;;  %v15476_v12 = vpop.permute.xlu0 %632  ;;  %v480_v34 = vadd.f32 %v406_v63, %v21048_v3  ;;  %v757_v24 = vadd.f32 %v683_v46, %v479_v21  ;;  %v1053_v56 = vadd.f32 %v978_v33, %v775_v59  ;;  %v1514_v0 = vsel %vm1506_vm4, %v21028_v15, %v21049_v30  ;;  %v21053_v46 = vld [vmem:[#allocation151_spill] sm:$0xff]  ;;  %v21054_v33 = vld [vmem:[#allocation152_spill] sm:$0xff] }
 0x2f1   :  { %21046 = vst [vmem:[#allocation41_spill] sm:$0xff] %v15474_v25  ;;  %21047 = vst [vmem:[#allocation40_spill] sm:$0xff] %v15476_v12  ;;  %v1809_v7 = vsel %vm20634_vm5, %v21030_v2, %v21050_v40  ;;  %v1791_v6 = vsel %vm20634_vm5, %v21031_v29, %v21051_v51  ;;  %v1034_v32 = vadd.f32 %v960_v43, %v756_v38  ;;  %v21103_v25 = vld [vmem:[#allocation212_spill] sm:$0xff] }
 0x2f2   :  { %2529 = vrot.lane.b32.xlu1 %v15378_v4, %s13098_s27  ;;  %v1330_v21 = vadd.f32 %v1255_v1, %v1052_v54  ;;  %v1311_v59 = vadd.f32 %v1237_v18, %v1033_v20  ;;  %v1607_v63 = vadd.f32 %v1532_v42, %v1329_v10  ;;  %v2086_v15 = vsel %vm2062_vm6, %v21032_v61, %v21052_v60  ;;  %v21055_v4 = vld [vmem:[#allocation153_spill] sm:$0xff]  ;;  %v21058_v61 = vld [vmem:[#allocation154_spill] sm:$0xff] }
 0x2f3   :  { %2495 = vrot.lane.b32.xlu0 %v15376_v26, %s13098_s27  ;;  %v2068_v2 = vsel %vm2062_vm6, %v21033_v8, %v21053_v46  ;;  %v2363_v29 = vsel %vm2340_vm7, %v21034_v45, %v21054_v33  ;;  %v2345_v26 = vsel %vm2340_vm7, %v21035_v44, %v21055_v4  ;;  %v1588_v20 = vadd.f32 %v1514_v0, %v1310_v49  ;;  %v21059_v8 = vld [vmem:[#allocation155_spill] sm:$0xff]  ;;  %v21060_v45 = vld [vmem:[#allocation156_spill] sm:$0xff]  ;;  %v21061_v44 = vld [vmem:[#allocation157_spill] sm:$0xff] }
 0x2f4   :  { %v15504_v38 = vpop.permute.xlu1 %946  ;;  %v15506_v54 = vpop.permute.xlu0 %908  ;;  %v1884_v10 = vadd.f32 %v1809_v7, %v1606_v57  ;;  %v1865_v43 = vadd.f32 %v1791_v6, %v1587_v58  ;;  %v425_v1 = vsel %vm394_vm0, %v21036_v16, %v21058_v61  ;;  %v407_v18 = vsel %vm394_vm0, %v21037_v53, %v21059_v8  ;;  %v21062_v0 = vld [vmem:[#allocation224_spill] sm:$0xff]  ;;  %v21063_v7 = vld [vmem:[#allocation158_spill] sm:$0xff]  ;;  %v21064_v6 = vld [vmem:[#allocation159_spill] sm:$0xff] }
 0x2f5   :  { %21056 = vst [vmem:[#allocation42_spill] sm:$0xff] %v15504_v38  ;;  %21057 = vst [vmem:[#allocation43_spill] sm:$0xff] %v15506_v54  ;;  %v702_v42 = vsel %vm672_vm1, %v21038_v31, %v21060_v45  ;;  %v684_v3 = vsel %vm672_vm1, %v21039_v9, %v21061_v44  ;;  %v2161_v49 = vadd.f32 %v2086_v15, %v1883_v11  ;;  %v21065_v54 = vld [vmem:[#allocation161_spill] sm:$0xff] }
 0x2f6   :  { %2533 = vrot.lane.b32.xlu1 %v15398_v27, %s13098_s27  ;;  %v2142_v57 = vadd.f32 %v2068_v2, %v1864_v5  ;;  %v2438_v58 = vadd.f32 %v2363_v29, %v2160_v50  ;;  %v2419_v16 = vadd.f32 %v2345_v26, %v2141_v37  ;;  %v15525_v53 = vadd.f32 %v425_v1, %v21062_v0  ;;  %v21066_v5 = vld [vmem:[#allocation227_spill] sm:$0xff]  ;;  %v21067_v2 = vld [vmem:[#allocation162_spill] sm:$0xff]  ;;  %v21069_v26 = vld [vmem:[#allocation164_spill] sm:$0xff] }
 0x2f7   :  { %2531 = vrot.lane.b32.xlu0 %v15396_v19, %s13098_s27  ;;  %v979_v31 = vsel %vm950_vm2, %v21040_v47, %v21063_v7  ;;  %v961_v9 = vsel %vm950_vm2, %v21042_v52, %v21064_v6  ;;  %v1256_v27 = vsel %vm1228_vm3, %v21043_v22, %v21065_v54  ;;  %v15541_v50 = vadd.f32 %v407_v18, %v21066_v5  ;;  %v21068_v29 = vld [vmem:[#allocation163_spill] sm:$0xff]  ;;  %v21070_v1 = vld [vmem:[#allocation165_spill] sm:$0xff]  ;;  %v21073_v5 = vld [vmem:[#allocation168_spill] sm:$0xff] }
 0x2f8   :  { %v15536_v19 = vpop.permute.xlu1 %1222  ;;  %v15538_v11 = vpop.permute.xlu0 %1184  ;;  %v777_v37 = vadd.f32 %v702_v42, %v499_v28  ;;  %v758_v15 = vadd.f32 %v684_v3, %v480_v34  ;;  %v1238_v47 = vsel %vm1228_vm3, %v21044_v48, %v21067_v2  ;;  %v1533_v52 = vsel %vm1506_vm4, %v21045_v36, %v21068_v29  ;;  %v21071_v48 = vld [vmem:[#allocation166_spill] sm:$0xff]  ;;  %v21072_v3 = vld [vmem:[#allocation167_spill] sm:$0xff]  ;;  %v21074_v38 = vld [vmem:[#allocation169_spill] sm:$0xff] }
 0x2f9   :  { %v1515_v22 = vsel %vm1506_vm4, %v21049_v30, %v21069_v26  ;;  %v1810_v0 = vsel %vm20634_vm5, %v21050_v40, %v21070_v1  ;;  %v1054_v28 = vadd.f32 %v979_v31, %v776_v41  ;;  %v1035_v34 = vadd.f32 %v961_v9, %v757_v24  ;;  %v21076_v9 = vld [vmem:[#allocation175_spill] sm:$0xff] }
 0x2fa   :  { %2535 = vrot.lane.b32.xlu1 %v2437_v13, %s13098_s27  ;;  %v1331_v18 = vadd.f32 %v1256_v27, %v1053_v56  ;;  %v1792_v42 = vsel %vm20634_vm5, %v21051_v51, %v21071_v48  ;;  %v1312_v36 = vadd.f32 %v1238_v47, %v1034_v32  ;;  %v2087_v30 = vsel %vm2062_vm6, %v21052_v60, %v21072_v3  ;;  %v21075_v32 = vld [vmem:[#allocation170_spill] sm:$0xff]  ;;  %v21077_v27 = vld [vmem:[#allocation176_spill] sm:$0xff] }
 0x2fb   :  { %2497 = vrot.lane.b32.xlu0 %v2418_v17, %s13098_s27  ;;  %v2069_v40 = vsel %vm2062_vm6, %v21053_v46, %v21073_v5  ;;  %v2364_v13 = vsel %vm2340_vm7, %v21054_v33, %v21074_v38  ;;  %v1608_v24 = vadd.f32 %v1533_v52, %v1330_v21  ;;  %v1589_v56 = vadd.f32 %v1515_v22, %v1311_v59  ;;  %v21078_v47 = vld [vmem:[#allocation178_spill] sm:$0xff]  ;;  %v21079_v52 = vld [vmem:[#allocation173_spill] sm:$0xff]  ;;  %v21080_v22 = vld [vmem:[#allocation179_spill] sm:$0xff] }
 0x2fc   :  { %v15569_v17 = vpop.permute.xlu1 %1498  ;;  %v15571_v41 = vpop.permute.xlu0 %1460  ;;  %v1885_v51 = vadd.f32 %v1810_v0, %v1607_v63  ;;  %v2346_v31 = vsel %vm2340_vm7, %v21055_v4, %v21075_v32  ;;  %v1866_v60 = vadd.f32 %v1792_v42, %v1588_v20  ;;  %v980_v46 = vsel %vm950_vm2, %v21063_v7, %v21076_v9 }
 0x2fd   :  { %v962_v33 = vsel %vm950_vm2, %v21064_v6, %v21077_v27  ;;  %v2162_v21 = vadd.f32 %v2087_v30, %v1884_v10  ;;  %v2143_v59 = vadd.f32 %v2069_v40, %v1865_v43  ;;  %v2439_v63 = vadd.f32 %v2364_v13, %v2161_v49 }
 0x2fe   :  { %2537 = vrot.lane.b32.xlu1 %v2438_v58, %s13098_s27  ;;  %v1257_v4 = vsel %vm1228_vm3, %v21065_v54, %v21078_v47  ;;  %v2420_v20 = vadd.f32 %v2346_v31, %v2142_v57  ;;  %v15590_v7 = vsel %vm672_vm1, %v21060_v45, %v21079_v52  ;;  %v1239_v6 = vsel %vm1228_vm3, %v21067_v2, %v21080_v22  ;;  %v21081_v58 = vld [vmem:[#allocation180_spill] sm:$0xff]  ;;  %v21082_v57 = vld [vmem:[#allocation186_spill] sm:$0xff]  ;;  %v21083_v45 = vld [vmem:[#allocation187_spill] sm:$0xff] }
 0x2ff   :  { %2499 = vrot.lane.b32.xlu0 %v2419_v16, %s13098_s27  ;;  %v1534_v10 = vsel %vm1506_vm4, %v21068_v29, %v21081_v58  ;;  %v1055_v16 = vadd.f32 %v980_v46, %v777_v37  ;;  %v1036_v54 = vadd.f32 %v962_v33, %v758_v15  ;;  %v2365_v0 = vsel %vm2340_vm7, %v21074_v38, %v21082_v57  ;;  %v21084_v2 = vld [vmem:[#allocation181_spill] sm:$0xff]  ;;  %v21085_v29 = vld [vmem:[#allocation182_spill] sm:$0xff]  ;;  %v21086_v38 = vld [vmem:[#allocation184_spill] sm:$0xff] }
 0x300   :  { %v15598_v43 = vpop.permute.xlu1 %1774  ;;  %v15600_v49 = vpop.permute.xlu0 %1736  ;;  %v2347_v42 = vsel %vm2340_vm7, %v21075_v32, %v21083_v45  ;;  %v1332_v30 = vadd.f32 %v1257_v4, %v1054_v28  ;;  %v1516_v40 = vsel %vm1506_vm4, %v21069_v26, %v21084_v2  ;;  %v1811_v13 = vsel %vm20634_vm5, %v21070_v1, %v21085_v29  ;;  %v21087_v32 = vld [vmem:[#allocation185_spill] sm:$0xff]  ;;  %v21088_v46 = vld [vmem:[#allocation183_spill] sm:$0xff]  ;;  %v21089_v4 = vld [vmem:[#allocation194_spill] sm:$0xff] }
 0x301   :  { %v1313_v37 = vadd.f32 %v1239_v6, %v1035_v34  ;;  %v1609_v15 = vadd.f32 %v1534_v10, %v1331_v18  ;;  %v2088_v31 = vsel %vm2062_vm6, %v21072_v3, %v21086_v38  ;;  %v2070_v28 = vsel %vm2062_vm6, %v21073_v5, %v21087_v32  ;;  %v21090_v6 = vld [vmem:[#allocation202_spill] sm:$0xff]  ;;  %v21091_v10 = vld [vmem:[#allocation203_spill] sm:$0xff] }
 0x302   :  { %2539 = vrot.lane.b32.xlu1 %v2439_v63, %s13098_s27  ;;  %v1793_v26 = vsel %vm20634_vm5, %v21071_v48, %v21088_v46  ;;  %v2440_v33 = vadd.f32 %v2365_v0, %v2162_v21  ;;  %v2421_v1 = vadd.f32 %v2347_v42, %v2143_v59  ;;  %v1258_v63 = vsel %vm1228_vm3, %v21078_v47, %v21089_v4  ;;  %v21092_v0 = vld [vmem:[#allocation195_spill] sm:$0xff]  ;;  %v21093_v42 = vld [vmem:[#allocation200_spill] sm:$0xff] }
 0x303   :  { %2501 = vrot.lane.b32.xlu0 %v2420_v20, %s13098_s27  ;;  %v1590_v20 = vadd.f32 %v1516_v40, %v1312_v36  ;;  %v1886_v3 = vadd.f32 %v1811_v13, %v1608_v24  ;;  %v2366_v5 = vsel %vm2340_vm7, %v21082_v57, %v21090_v6  ;;  %v2348_v48 = vsel %vm2340_vm7, %v21083_v45, %v21091_v10  ;;  %v21094_v40 = vld [vmem:[#allocation201_spill] sm:$0xff]  ;;  %v21096_v13 = vld [vmem:[#allocation198_spill] sm:$0xff] }
 0x304   :  { %v15628_v34 = vpop.permute.xlu1 %2050  ;;  %v15630_v18 = vpop.permute.xlu0 %2012  ;;  %v2163_v21 = vadd.f32 %v2088_v31, %v1885_v51  ;;  %v2144_v59 = vadd.f32 %v2070_v28, %v1866_v60  ;;  %v1240_v47 = vsel %vm1228_vm3, %v21080_v22, %v21092_v0  ;;  %v1867_v36 = vadd.f32 %v1793_v26, %v1589_v56  ;;  %v21095_v51 = vld [vmem:[#allocation196_spill] sm:$0xff] }
 0x305   :  { %v1333_v24 = vadd.f32 %v1258_v63, %v1055_v16  ;;  %v2089_v57 = vsel %vm2062_vm6, %v21086_v38, %v21093_v42  ;;  %v2071_v45 = vsel %vm2062_vm6, %v21087_v32, %v21094_v40  ;;  %v1535_v60 = vsel %vm1506_vm4, %v21081_v58, %v21095_v51  ;;  %v21097_v38 = vld [vmem:[#allocation199_spill] sm:$0xff]  ;;  %v21098_v32 = vld [vmem:[#allocation234_spill] sm:$0xff] }
 0x306   :  { %2541 = vrot.lane.b32.xlu1 %v2440_v33, %s13098_s27  ;;  %v1812_v22 = vsel %vm20634_vm5, %v21085_v29, %v21096_v13  ;;  %v2441_v31 = vadd.f32 %v2366_v5, %v2163_v21  ;;  %v2422_v28 = vadd.f32 %v2348_v48, %v2144_v59  ;;  %v1314_v26 = vadd.f32 %v1240_v47, %v1036_v54  ;;  %v21099_v58 = vld [vmem:[#allocation235_spill] sm:$0xff]  ;;  %v21100_v29 = vld [vmem:[#allocation197_spill] sm:$0xff]  ;;  %v21101_v59 = vld [vmem:[#allocation228_spill] sm:$0xff] }
 0x307   :  { %2503 = vrot.lane.b32.xlu0 %v2421_v1, %s13098_s27  ;;  %v1794_v33 = vsel %vm20634_vm5, %v21088_v46, %v21097_v38  ;;  %v2367_v1 = vsel %vm2340_vm7, %v21090_v6, %v21098_v32  ;;  %v2349_v63 = vsel %vm2340_vm7, %v21091_v10, %v21099_v58  ;;  %v1517_v5 = vsel %vm1506_vm4, %v21084_v2, %v21100_v29  ;;  %v21102_v47 = vld [vmem:[#allocation229_spill] sm:$0xff] }
 0x308   :  { %v15655_v56 = vpop.permute.xlu1 %2326  ;;  %v15657_v16 = vpop.permute.xlu0 %2288  ;;  %v2164_v48 = vadd.f32 %v2089_v57, %v1886_v3  ;;  %v2145_v21 = vadd.f32 %v2071_v45, %v1867_v36  ;;  %v1610_v54 = vadd.f32 %v1535_v60, %v1332_v30  ;;  %v1887_v46 = vadd.f32 %v1812_v22, %v1609_v15  ;;  %v21104_v30 = vld [vmem:[#allocation225_spill] sm:$0xff] }
 0x309   :  { %v2090_v6 = vsel %vm2062_vm6, %v21093_v42, %v21101_v59  ;;  %v2072_v10 = vsel %vm2062_vm6, %v21094_v40, %v21102_v47  ;;  %v1868_v12 = vadd.f32 %v1794_v33, %v1590_v20  ;;  %v1536_v2 = vsel %vm1506_vm4, %v21095_v51, %v21103_v25  ;;  %v21105_v42 = vld [vmem:[#allocation226_spill] sm:$0xff] }
 0x30a   :  { %2543 = vrot.lane.b32.xlu1 %v2441_v31, %s13098_s27  ;;  %v2442_v3 = vadd.f32 %v2367_v1, %v2164_v48  ;;  %v2423_v36 = vadd.f32 %v2349_v63, %v2145_v21  ;;  %v1813_v15 = vsel %vm20634_vm5, %v21096_v13, %v21104_v30  ;;  %v1795_v60 = vsel %vm20634_vm5, %v21097_v38, %v21105_v42  ;;  %v21109_v21 = vld [vmem:[#allocation25_spill] sm:$0xff] }
 0x30b   :  { %2505 = vrot.lane.b32.xlu0 %v2422_v28, %s13098_s27  ;;  %v2368_v20 = vsel %vm2340_vm7, %v21098_v32, %v15185_v39  ;;  %v2350_v40 = vsel %vm2340_vm7, %v21099_v58, %v15187_v35  ;;  %v1591_v51 = vadd.f32 %v1517_v5, %v1313_v37  ;;  %v2165_v22 = vadd.f32 %v2090_v6, %v1887_v46  ;;  %v21106_v28 = vld [vmem:[#allocation213_spill] sm:$0xff]  ;;  %v21107_v32 = vld [vmem:[#allocation27_spill] sm:$0xff] }
 0x30c   :  { %v15682_v57 = vpop.permute.xlu1 %948  ;;  %v15684_v45 = vpop.permute.xlu0 %910  ;;  %v2146_v31 = vadd.f32 %v2072_v10, %v1868_v12  ;;  %v1611_v13 = vadd.f32 %v1536_v2, %v1333_v24  ;;  %v1518_v38 = vsel %vm1506_vm4, %v21100_v29, %v21106_v28  ;;  %v2091_v33 = vsel %vm2062_vm6, %v21101_v59, %v15154_v62  ;;  %v21108_v24 = vld [vmem:[#allocation24_spill] sm:$0xff] }
 0x30d   :  { %v2073_v1 = vsel %vm2062_vm6, %v21102_v47, %v21107_v32  ;;  %v1888_v37 = vadd.f32 %v1813_v15, %v1610_v54  ;;  %v1869_v58 = vadd.f32 %v1795_v60, %v1591_v51  ;;  %v2443_v12 = vadd.f32 %v2368_v20, %v2165_v22 }
 0x30e   :  { %2545 = vrot.lane.b32.xlu1 %v2442_v3, %s13098_s27  ;;  %v2424_v63 = vadd.f32 %v2350_v40, %v2146_v31  ;;  %v1814_v29 = vsel %vm20634_vm5, %v21104_v30, %v21108_v24  ;;  %v1796_v46 = vsel %vm20634_vm5, %v21105_v42, %v21109_v21  ;;  %v2369_v59 = vsel %vm2340_vm7, %v15185_v39, %v15443_v23  ;;  %v21110_v3 = vld [vmem:[#allocation174_spill] sm:$0xff]  ;;  %v21111_v30 = vld [vmem:[#allocation39_spill] sm:$0xff] }
 0x30f   :  { %2507 = vrot.lane.b32.xlu0 %v2423_v36, %s13098_s27  ;;  %v2351_v54 = vsel %vm2340_vm7, %v15187_v35, %v15445_v55  ;;  %v1592_v6 = vadd.f32 %v1518_v38, %v1314_v26  ;;  %v2166_v47 = vadd.f32 %v2091_v33, %v1888_v37  ;;  %v2147_v10 = vadd.f32 %v2073_v1, %v1869_v58  ;;  %v21115_v33 = vld [vmem:[#allocation211_spill] sm:$0xff] }
 0x310   :  { %v15709_v5 = vpop.permute.xlu1 %1224  ;;  %v15711_v48 = vpop.permute.xlu0 %1186  ;;  %v778_v2 = vadd.f32 %v15590_v7, %v15525_v53  ;;  %v685_v36 = vsel %vm672_vm1, %v21061_v44, %v21110_v3  ;;  %v2092_v39 = vsel %vm2062_vm6, %v15154_v62, %v15414_v14  ;;  %v2074_v35 = vsel %vm2062_vm6, %v21107_v32, %v21111_v30  ;;  %v21112_v53 = vld [vmem:[#allocation192_spill] sm:$0xff]  ;;  %v21113_v7 = vld [vmem:[#allocation193_spill] sm:$0xff] }
 0x311   :  { %v1889_v26 = vadd.f32 %v1814_v29, %v1611_v13  ;;  %v1870_v15 = vadd.f32 %v1796_v46, %v1592_v6  ;;  %v2444_v42 = vadd.f32 %v2369_v59, %v2166_v47  ;;  %v2425_v60 = vadd.f32 %v2351_v54, %v2147_v10  ;;  %v21117_v29 = vld [vmem:[#allocation22_spill] sm:$0xff] }
 0x312   :  { %2547 = vrot.lane.b32.xlu1 %v2443_v12, %s13098_s27  ;;  %v981_v44 = vsel %vm950_vm2, %v21076_v9, %v21112_v53  ;;  %v963_v62 = vsel %vm950_vm2, %v21077_v27, %v21113_v7  ;;  %v2370_v51 = vsel %vm2340_vm7, %v15443_v23, %v15655_v56  ;;  %v2352_v22 = vsel %vm2340_vm7, %v15445_v55, %v15657_v16  ;;  %v21114_v9 = vld [vmem:[#allocation210_spill] sm:$0xff]  ;;  %v21116_v12 = vld [vmem:[#allocation23_spill] sm:$0xff] }
 0x313   :  { %2509 = vrot.lane.b32.xlu0 %v2424_v63, %s13098_s27  ;;  %v759_v31 = vadd.f32 %v685_v36, %v15541_v50  ;;  %v2167_v13 = vadd.f32 %v2092_v39, %v1889_v26  ;;  %v2148_v38 = vadd.f32 %v2074_v35, %v1870_v15  ;;  %v1259_v27 = vsel %vm1228_vm3, %v21089_v4, %v21114_v9  ;;  %v21119_v6 = vld [vmem:[#allocation38_spill] sm:$0xff] }
 0x314   :  { %v15738_v20 = vpop.permute.xlu1 %1500  ;;  %v15740_v40 = vpop.permute.xlu0 %1462  ;;  %v1241_v23 = vsel %vm1228_vm3, %v21092_v0, %v21115_v33  ;;  %v1056_v32 = vadd.f32 %v981_v44, %v778_v2  ;;  %v1537_v63 = vsel %vm1506_vm4, %v21103_v25, %v21116_v12  ;;  %v1519_v4 = vsel %vm1506_vm4, %v21106_v28, %v21117_v29  ;;  %v21118_v0 = vld [vmem:[#allocation36_spill] sm:$0xff] }
 0x315   :  { %v1037_v1 = vadd.f32 %v963_v62, %v759_v31  ;;  %v2445_v37 = vadd.f32 %v2370_v51, %v2167_v13  ;;  %v2426_v55 = vadd.f32 %v2352_v22, %v2148_v38  ;;  %v1815_v54 = vsel %vm20634_vm5, %v21108_v24, %v21118_v0  ;;  %v21121_v13 = vld [vmem:[#allocation172_spill] sm:$0xff]  ;;  %v21122_v38 = vld [vmem:[#allocation14_spill] sm:$0xff] }
 0x316   :  { %2549 = vrot.lane.b32.xlu1 %v2444_v42, %s13098_s27  ;;  %v1334_v46 = vadd.f32 %v1259_v27, %v1056_v32  ;;  %v1797_v47 = vsel %vm20634_vm5, %v21109_v21, %v21119_v6  ;;  %v2093_v28 = vsel %vm2062_vm6, %v15414_v14, %v15628_v34  ;;  %v2075_v39 = vsel %vm2062_vm6, %v21111_v30, %v15630_v18  ;;  %v21120_v30 = vld [vmem:[#allocation171_spill] sm:$0xff] }
 0x317   :  { %2511 = vrot.lane.b32.xlu0 %v2425_v60, %s13098_s27  ;;  %v1315_v59 = vadd.f32 %v1241_v23, %v1037_v1  ;;  %v426_v31 = vsel %vm394_vm0, %v21058_v61, %v21120_v30  ;;  %v21124_v23 = vld [vmem:[#allocation15_spill] sm:$0xff]  ;;  %v21125_v1 = vld [vmem:[#allocation190_spill] sm:$0xff] }
 0x318   :  { %v15763_v58 = vpop.permute.xlu1 %1776  ;;  %v15765_v50 = vpop.permute.xlu0 %1738  ;;  %v1612_v10 = vadd.f32 %v1537_v63, %v1334_v46 }
 0x319   :  { %v1593_v25 = vadd.f32 %v1519_v4, %v1315_v59 }
 0x31a   :  { %2551 = vrot.lane.b32.xlu1 %v2445_v37, %s13098_s27  ;;  %v1890_v35 = vadd.f32 %v1815_v54, %v1612_v10  ;;  %v704_v37 = vsel %vm672_vm1, %v21079_v52, %v21125_v1 }
 0x31b   :  { %2513 = vrot.lane.b32.xlu0 %v2426_v55, %s13098_s27  ;;  %v1871_v24 = vadd.f32 %v1797_v47, %v1593_v25  ;;  %v21126_v55 = vld [vmem:[#allocation191_spill] sm:$0xff]  ;;  %v21128_v47 = vld [vmem:[#allocation209_spill] sm:$0xff] }
 0x31c   :  { %v15781_v2 = vpop.permute.xlu1 %2052  ;;  %v15783_v36 = vpop.permute.xlu0 %2014  ;;  %v2168_v26 = vadd.f32 %v2093_v28, %v1890_v35  ;;  %v686_v63 = vsel %vm672_vm1, %v21110_v3, %v21126_v55  ;;  %v964_v10 = vsel %vm950_vm2, %v21113_v7, %v21128_v47  ;;  %v21129_v28 = vld [vmem:[#allocation20_spill] sm:$0xff] }
 0x31d   :  { %v2149_v15 = vadd.f32 %v2075_v39, %v1871_v24  ;;  %v1260_v3 = vsel %vm1228_vm3, %v21114_v9, %v21129_v28  ;;  %v21130_v39 = vld [vmem:[#allocation21_spill] sm:$0xff] }
 0x31e   :  { %v1242_v35 = vsel %vm1228_vm3, %v21115_v33, %v21130_v39  ;;  %v1816_v33 = vsel %vm20634_vm5, %v21118_v0, %v15598_v43 }
 0x320   :  { %v2329_v42 = vpop.permute.xlu1 %2328 }
 0x321   :  { %v2291_v21 = vpop.permute.xlu0 %2290  ;;  %v2371_v60 = vsel %vm2340_vm7, %v15655_v56, %v2329_v42  ;;  %v408_v56 = vsel %vm394_vm0, %v21059_v8, %v21121_v13  ;;  %v21127_v8 = vld [vmem:[#allocation208_spill] sm:$0xff] }
 0x322   :  { %v2353_v44 = vsel %vm2340_vm7, %v15657_v16, %v2291_v21  ;;  %v2446_v62 = vadd.f32 %v2371_v60, %v2168_v26  ;;  %v21123_v16 = vld [vmem:[#allocation92_spill] sm:$0xff]  ;;  %v982_v54 = vsel %vm950_vm2, %v21112_v53, %v21127_v8  ;;  %v21131_v53 = vld [vmem:[#allocation35_spill] sm:$0xff] }
 0x323   :  { %v2427_v51 = vadd.f32 %v2353_v44, %v2149_v15  ;;  %v223_v27 = vmul.f32 %v21123_v16, %v21122_v38  ;;  %v204_v32 = vmul.f32 %v21123_v16, %v21124_v23  ;;  %v1538_v7 = vsel %vm1506_vm4, %v21116_v12, %v21131_v53  ;;  %v21132_v44 = vld [vmem:[#allocation37_spill] sm:$0xff] }
 0x324   :  { %v15795_v22 = vpop.permute.xlu1 %1226  ;;  %2553 = vrot.lane.b32.xlu1 %v2446_v62, %s13098_s27  ;;  %v1520_v62 = vsel %vm1506_vm4, %v21117_v29, %v21132_v44  ;;  %v2094_v12 = vsel %vm2062_vm6, %v15628_v34, %v15781_v2  ;;  %v2076_v29 = vsel %vm2062_vm6, %v15630_v18, %v15783_v36 }
 0x325   :  { %v15797_v14 = vpop.permute.xlu0 %1188  ;;  %2515 = vrot.lane.b32.xlu0 %v2427_v51, %s13098_s27  ;;  %v501_v4 = vadd.f32 %v426_v31, %v223_v27  ;;  %v482_v61 = vadd.f32 %v408_v56, %v204_v32  ;;  %v1798_v31 = vsel %vm20634_vm5, %v21119_v6, %v15600_v49 }
 0x327   :  { %v779_v25 = vadd.f32 %v704_v37, %v501_v4  ;;  %v760_v52 = vadd.f32 %v686_v63, %v482_v61 }
 0x328   :  { %v15817_v46 = vpop.permute.xlu1 %1502 }
 0x329   :  { %v15819_v59 = vpop.permute.xlu0 %1464  ;;  %v1057_v24 = vadd.f32 %v982_v54, %v779_v25  ;;  %v1038_v26 = vadd.f32 %v964_v10, %v760_v52  ;;  %v21133_v54 = vld [vmem:[#allocation188_spill] sm:$0xff]  ;;  %v21134_v25 = vld [vmem:[#allocation189_spill] sm:$0xff] }
 0x32a   :  { %v427_v10 = vsel %vm394_vm0, %v21120_v30, %v21133_v54  ;;  %v409_v34 = vsel %vm394_vm0, %v21121_v13, %v21134_v25 }
 0x32b   :  { %v1335_v51 = vadd.f32 %v1260_v3, %v1057_v24  ;;  %v1316_v9 = vadd.f32 %v1242_v35, %v1038_v26  ;;  %v21135_v3 = vld [vmem:[#allocation109_spill] sm:$0xff] }
 0x32c   :  { %v15833_v15 = vpop.permute.xlu1 %1778  ;;  %v224_v35 = vmul.f32 %v21135_v3, %v21122_v38  ;;  %v205_v24 = vmul.f32 %v21135_v3, %v21124_v23 }
 0x32d   :  { %v15835_v60 = vpop.permute.xlu0 %1740  ;;  %v1613_v56 = vadd.f32 %v1538_v7, %v1335_v51  ;;  %v1594_v16 = vadd.f32 %v1520_v62, %v1316_v9  ;;  %v21136_v62 = vld [vmem:[#allocation206_spill] sm:$0xff]  ;;  %v21137_v51 = vld [vmem:[#allocation207_spill] sm:$0xff] }
 0x32e   :  { %v705_v30 = vsel %vm672_vm1, %v21125_v1, %v21136_v62  ;;  %v687_v13 = vsel %vm672_vm1, %v21126_v55, %v21137_v51  ;;  %v483_v9 = vadd.f32 %v409_v34, %v205_v24  ;;  %v21142_v55 = vld [vmem:[#allocation126_spill] sm:$0xff]  ;;  %v21144_v34 = vld [vmem:[#allocation33_spill] sm:$0xff] }
 0x32f   :  { %v1891_v37 = vadd.f32 %v1816_v33, %v1613_v56  ;;  %v1872_v0 = vadd.f32 %v1798_v31, %v1594_v16  ;;  %v21140_v31 = vld [vmem:[#allocation18_spill] sm:$0xff]  ;;  %v21141_v16 = vld [vmem:[#allocation19_spill] sm:$0xff] }
 0x330   :  { %v15849_v27 = vpop.permute.xlu1 %2054  ;;  %v983_v56 = vsel %vm950_vm2, %v21127_v8, %v21140_v31  ;;  %v965_v1 = vsel %vm950_vm2, %v21128_v47, %v21141_v16  ;;  %v1261_v8 = vsel %vm1228_vm3, %v21129_v28, %v21144_v34 }
 0x331   :  { %v15851_v32 = vpop.permute.xlu0 %2016  ;;  %v2169_v63 = vadd.f32 %v2094_v12, %v1891_v37  ;;  %v2150_v4 = vadd.f32 %v2076_v29, %v1872_v0  ;;  %v225_v12 = vmul.f32 %v21142_v55, %v21122_v38  ;;  %v206_v29 = vmul.f32 %v21142_v55, %v21124_v23 }
 0x332   :  { %v761_v0 = vadd.f32 %v687_v13, %v483_v9  ;;  %v1521_v9 = vsel %vm1506_vm4, %v21132_v44, %v15571_v41  ;;  %v1817_v44 = vsel %vm20634_vm5, %v15598_v43, %v15763_v58 }
 0x334   :  { %v15859_v61 = vpop.permute.xlu1 %2330  ;;  %v1039_v3 = vadd.f32 %v965_v1, %v761_v0  ;;  %v21151_v1 = vld [vmem:[#allocation205_spill] sm:$0xff] }
 0x335   :  { %v15861_v6 = vpop.permute.xlu0 %2292  ;;  %v2372_v52 = vsel %vm2340_vm7, %v2329_v42, %v15859_v61  ;;  %v502_v42 = vadd.f32 %v427_v10, %v224_v35  ;;  %v21146_v35 = vld [vmem:[#allocation160_spill] sm:$0xff]  ;;  %v410_v55 = vsel %vm394_vm0, %v21134_v25, %v21151_v1 }
 0x336   :  { %v2354_v18 = vsel %vm2340_vm7, %v2291_v21, %v15861_v6  ;;  %v2447_v26 = vadd.f32 %v2372_v52, %v2169_v63  ;;  %v21143_v63 = vld [vmem:[#allocation143_spill] sm:$0xff]  ;;  %v21145_v52 = vld [vmem:[#allocation34_spill] sm:$0xff]  ;;  %v227_v24 = vmul.f32 %v21146_v35, %v21122_v38  ;;  %v484_v43 = vadd.f32 %v410_v55, %v206_v29  ;;  %v21157_v29 = vld [vmem:[#allocation28_spill] sm:$0xff] }
 0x337   :  { %v2428_v7 = vadd.f32 %v2354_v18, %v2150_v4  ;;  %v780_v37 = vadd.f32 %v705_v30, %v502_v42  ;;  %v226_v4 = vmul.f32 %v21143_v63, %v21122_v38  ;;  %v207_v10 = vmul.f32 %v21143_v63, %v21124_v23  ;;  %v21152_v63 = vld [vmem:[#allocation238_spill] sm:$0xff] }
 0x338   :  { %v15883_v33 = vpop.permute.xlu1 %1504  ;;  %2555 = vrot.lane.b32.xlu1 %v2447_v26, %s13098_s27  ;;  %v1243_v47 = vsel %vm1228_vm3, %v21130_v39, %v21145_v52  ;;  %v21147_v26 = vld [vmem:[#allocation177_spill] sm:$0xff]  ;;  %v208_v42 = vmul.f32 %v21146_v35, %v21124_v23  ;;  %v1539_v39 = vsel %vm1506_vm4, %v21131_v53, %v15569_v17  ;;  %v21153_v35 = vld [vmem:[#allocation239_spill] sm:$0xff] }
 0x339   :  { %21138 = vst [vmem:[#allocation44_spill] sm:$0xff] %v15883_v33  ;;  %v15885_v21 = vpop.permute.xlu0 %1466  ;;  %2517 = vrot.lane.b32.xlu0 %v2428_v7, %s13098_s27  ;;  %v1058_v18 = vadd.f32 %v983_v56, %v780_v37  ;;  %v228_v7 = vmul.f32 %v21147_v26, %v21122_v38  ;;  %v209_v28 = vmul.f32 %v21147_v26, %v21124_v23  ;;  %v21150_v56 = vld [vmem:[#allocation204_spill] sm:$0xff] }
 0x33a   :  { %21139 = vst [vmem:[#allocation45_spill] sm:$0xff] %v15885_v21  ;;  %v428_v38 = vsel %vm394_vm0, %v21133_v54, %v21150_v56  ;;  %v1317_v0 = vadd.f32 %v1243_v47, %v1039_v3  ;;  %v429_v23 = vsel %vm394_vm0, %v21150_v56, %v21152_v63  ;;  %v411_v53 = vsel %vm394_vm0, %v21151_v1, %v21153_v35  ;;  %v21154_v26 = vld [vmem:[#allocation16_spill] sm:$0xff] }
 0x33b   :  { %v1336_v37 = vadd.f32 %v1261_v8, %v1058_v18  ;;  %v1799_v54 = vsel %vm20634_vm5, %v15600_v49, %v15765_v50  ;;  %v706_v25 = vsel %vm672_vm1, %v21136_v62, %v21154_v26  ;;  %v21155_v8 = vld [vmem:[#allocation17_spill] sm:$0xff]  ;;  %v503_v21 = vadd.f32 %v428_v38, %v225_v12 }
 0x33c   :  { %v15913_v30 = vpop.permute.xlu1 %1780  ;;  %v688_v47 = vsel %vm672_vm1, %v21137_v51, %v21155_v8  ;;  %v1595_v3 = vadd.f32 %v1521_v9, %v1317_v0  ;;  %v2095_v49 = vsel %vm2062_vm6, %v15781_v2, %v15849_v27  ;;  %v2077_v62 = vsel %vm2062_vm6, %v15783_v36, %v15851_v32  ;;  %v21158_v38 = vld [vmem:[#allocation29_spill] sm:$0xff] }
 0x33d   :  { %21148 = vst [vmem:[#allocation46_spill] sm:$0xff] %v15913_v30  ;;  %v15915_v13 = vpop.permute.xlu0 %1742  ;;  %v1614_v18 = vadd.f32 %v1539_v39, %v1336_v37  ;;  %v504_v33 = vadd.f32 %v429_v23, %v226_v4  ;;  %v781_v39 = vadd.f32 %v706_v25, %v503_v21  ;;  %v762_v9 = vadd.f32 %v688_v47, %v484_v43  ;;  %v21156_v37 = vld [vmem:[#allocation26_spill] sm:$0xff]  ;;  %v21159_v21 = vld [vmem:[#allocation31_spill] sm:$0xff] }
 0x33e   :  { %21149 = vst [vmem:[#allocation47_spill] sm:$0xff] %v15915_v13  ;;  %v485_v13 = vadd.f32 %v411_v53, %v207_v10  ;;  %v1873_v51 = vadd.f32 %v1799_v54, %v1595_v3  ;;  %v430_v0 = vsel %vm394_vm0, %v21152_v63, %v21156_v37  ;;  %v506_v12 = vadd.f32 %v21156_v37, %v228_v7 }
 0x33f   :  { %v1892_v30 = vadd.f32 %v1817_v44, %v1614_v18  ;;  %v412_v2 = vsel %vm394_vm0, %v21153_v35, %v21157_v29  ;;  %v707_v36 = vsel %vm672_vm1, %v21154_v26, %v21158_v38  ;;  %v984_v53 = vsel %vm950_vm2, %v21140_v31, %v21159_v21  ;;  %v21160_v44 = vld [vmem:[#allocation32_spill] sm:$0xff] }
 0x340   :  { %v15951_v56 = vpop.permute.xlu1 %2056  ;;  %v2151_v10 = vadd.f32 %v2077_v62, %v1873_v51  ;;  %v966_v7 = vsel %vm950_vm2, %v21141_v16, %v21160_v44  ;;  %v487_v54 = vadd.f32 %v21157_v29, %v209_v28  ;;  %v505_v18 = vadd.f32 %v430_v0, %v227_v24  ;;  %v21163_v62 = vld [vmem:[#allocation40_spill] sm:$0xff]  ;;  %v21165_v0 = vld [vmem:[#allocation43_spill] sm:$0xff] }
 0x341   :  { %v15953_v1 = vpop.permute.xlu0 %2018  ;;  %v2170_v4 = vadd.f32 %v2095_v49, %v1892_v30  ;;  %v21161_v30 = vld [vmem:[#allocation30_spill] sm:$0xff]  ;;  %v486_v31 = vadd.f32 %v412_v2, %v208_v42  ;;  %v1262_v16 = vsel %vm1228_vm3, %v21144_v34, %v15536_v19  ;;  %v782_v3 = vadd.f32 %v707_v36, %v504_v33  ;;  %v21162_v42 = vld [vmem:[#allocation41_spill] sm:$0xff] }
 0x342   :  { %v689_v26 = vsel %vm672_vm1, %v21155_v8, %v21161_v30  ;;  %v1040_v43 = vadd.f32 %v966_v7, %v762_v9  ;;  %v708_v34 = vsel %vm672_vm1, %v21158_v38, %v21162_v42  ;;  %v1522_v33 = vsel %vm1506_vm4, %v15571_v41, %v15740_v40  ;;  %v21164_v9 = vld [vmem:[#allocation42_spill] sm:$0xff] }
 0x343   :  { %v763_v24 = vadd.f32 %v689_v26, %v485_v13  ;;  %v784_v8 = vadd.f32 %v21162_v42, %v506_v12  ;;  %v690_v51 = vsel %vm672_vm1, %v21161_v30, %v21163_v62  ;;  %v985_v37 = vsel %vm950_vm2, %v21159_v21, %v21164_v9 }
 0x344   :  { %v2333_v55 = vpop.permute.xlu1 %2332  ;;  %v1818_v41 = vsel %vm20634_vm5, %v15763_v58, %v15833_v15  ;;  %v1800_v12 = vsel %vm20634_vm5, %v15765_v50, %v15835_v60  ;;  %v783_v29 = vadd.f32 %v708_v34, %v505_v18  ;;  %v765_v2 = vadd.f32 %v21163_v62, %v487_v54  ;;  %v21166_v42 = vld [vmem:[#allocation46_spill] sm:$0xff] }
 0x345   :  { %v2295_v23 = vpop.permute.xlu0 %2294  ;;  %v2373_v63 = vsel %vm2340_vm7, %v15859_v61, %v2333_v55  ;;  %v1244_v61 = vsel %vm1228_vm3, %v21145_v52, %v15538_v11  ;;  %v1540_v52 = vsel %vm1506_vm4, %v15569_v17, %v15738_v20  ;;  %v967_v17 = vsel %vm950_vm2, %v21160_v44, %v21165_v0  ;;  %v21167_v34 = vld [vmem:[#allocation47_spill] sm:$0xff] }
 0x346   :  { %v2355_v35 = vsel %vm2340_vm7, %v15861_v6, %v2295_v23  ;;  %v2448_v25 = vadd.f32 %v2373_v63, %v2170_v4  ;;  %v1059_v6 = vadd.f32 %v984_v53, %v781_v39  ;;  %v1318_v13 = vadd.f32 %v1244_v61, %v1040_v43 }
 0x347   :  { %v2429_v47 = vadd.f32 %v2355_v35, %v2151_v10  ;;  %v764_v21 = vadd.f32 %v690_v51, %v486_v31  ;;  %v986_v53 = vsel %vm950_vm2, %v21164_v9, %v15682_v57  ;;  %v2096_v58 = vsel %vm2062_vm6, %v15849_v27, %v15951_v56  ;;  %v21169_v51 = vld [vmem:[#allocation45_spill] sm:$0xff] }
 0x348   :  { %v15991_v28 = vpop.permute.xlu1 %1782  ;;  %2557 = vrot.lane.b32.xlu1 %v2448_v25, %s13098_s27  ;;  %v1337_v39 = vadd.f32 %v1262_v16, %v1059_v6  ;;  %v1596_v36 = vadd.f32 %v1522_v33, %v1318_v13  ;;  %v2078_v50 = vsel %vm2062_vm6, %v15851_v32, %v15953_v1  ;;  %v1060_v44 = vadd.f32 %v985_v37, %v782_v3 }
 0x349   :  { %v15993_v49 = vpop.permute.xlu0 %1744  ;;  %2519 = vrot.lane.b32.xlu0 %v2429_v47, %s13098_s27  ;;  %v1041_v7 = vadd.f32 %v967_v17, %v763_v24  ;;  %v1062_v54 = vadd.f32 %v15682_v57, %v784_v8  ;;  %v968_v30 = vsel %vm950_vm2, %v21165_v0, %v15684_v45  ;;  %v1263_v26 = vsel %vm1228_vm3, %v15536_v19, %v15709_v5 }
 0x34a   :  { %v1615_v38 = vadd.f32 %v1540_v52, %v1337_v39  ;;  %v1874_v35 = vadd.f32 %v1800_v12, %v1596_v36  ;;  %v1245_v27 = vsel %vm1228_vm3, %v15538_v11, %v15711_v48  ;;  %v1061_v25 = vadd.f32 %v986_v53, %v783_v29 }
 0x34b   :  { %v1043_v32 = vadd.f32 %v15684_v45, %v765_v2  ;;  %v1541_v57 = vsel %vm1506_vm4, %v15738_v20, %v15817_v46  ;;  %v1523_v61 = vsel %vm1506_vm4, %v15740_v40, %v15819_v59  ;;  %v1338_v11 = vadd.f32 %v1263_v26, %v1060_v44 }
 0x34c   :  { %v2059_v4 = vpop.permute.xlu1 %2058  ;;  %v1893_v63 = vadd.f32 %v1818_v41, %v1615_v38  ;;  %v2152_v18 = vadd.f32 %v2078_v50, %v1874_v35  ;;  %v1319_v6 = vadd.f32 %v1245_v27, %v1041_v7  ;;  %v1264_v24 = vsel %vm1228_vm3, %v15709_v5, %v15795_v22  ;;  %v21168_v5 = vld [vmem:[#allocation44_spill] sm:$0xff] }
 0x34d   :  { %v2021_v10 = vpop.permute.xlu0 %2020  ;;  %v1246_v20 = vsel %vm1228_vm3, %v15711_v48, %v15797_v14  ;;  %v1819_v40 = vsel %vm20634_vm5, %v15833_v15, %v21166_v42  ;;  %v1616_v52 = vadd.f32 %v1541_v57, %v1338_v11  ;;  %v1542_v48 = vsel %vm1506_vm4, %v15817_v46, %v21168_v5 }
 0x34e   :  { %v2171_v47 = vadd.f32 %v2096_v58, %v1893_v63  ;;  %v1597_v33 = vadd.f32 %v1523_v61, %v1319_v6  ;;  %v1524_v15 = vsel %vm1506_vm4, %v15819_v59, %v21169_v51  ;;  %v2079_v39 = vsel %vm2062_vm6, %v15953_v1, %v2021_v10 }
 0x34f   :  { %v1339_v13 = vadd.f32 %v1264_v24, %v1061_v25  ;;  %v1894_v37 = vadd.f32 %v1819_v40, %v1616_v52  ;;  %v1340_v17 = vadd.f32 %v15795_v22, %v1062_v54  ;;  %v1321_v41 = vadd.f32 %v15797_v14, %v1043_v32  ;;  %v2722_v52 = vld [vmem:[%s21170_s29] sm:$0xff] }
 0x350   :  { %v2335_v31 = vpop.permute.xlu1 %2334  ;;  %v1820_v46 = vsel %vm20634_vm5, %v21166_v42, %v15991_v28  ;;  %v1802_v59 = vsel %vm20634_vm5, %v21167_v34, %v15993_v49  ;;  %vm2725_vm8 = vcmp.gt.f32.partialorder %v2722_v52, 0.5 }
 0x351   :  { %v2297_v16 = vpop.permute.xlu0 %2296  ;;  %v2374_v19 = vsel %vm2340_vm7, %v2333_v55, %v2335_v31  ;;  %v1801_v55 = vsel %vm20634_vm5, %v15835_v60, %v21167_v34  ;;  %v2097_v60 = vsel %vm2062_vm6, %v15951_v56, %v2059_v4  ;;  %v1617_v56 = vadd.f32 %v1542_v48, %v1339_v13  ;;  %v21172_v48 = vld [vmem:[#allocation6_spill] sm:$0xff]  ;;  %v21174_v13 = vld [vmem:[#allocation9_spill] sm:$0xff] }
 0x352   :  { %v2356_v3 = vsel %vm2340_vm7, %v2295_v23, %v2297_v16  ;;  %v2449_v43 = vadd.f32 %v2374_v19, %v2171_v47  ;;  %v1042_v23 = vadd.f32 %v968_v30, %v764_v21  ;;  %v1875_v0 = vadd.f32 %v1801_v55, %v1597_v33 }
 0x353   :  { %v2430_v45 = vadd.f32 %v2356_v3, %v2152_v18  ;;  %v2172_v29 = vadd.f32 %v2097_v60, %v1894_v37  ;;  %v1895_v53 = vadd.f32 %v1820_v46, %v1617_v56  ;;  %v1618_v7 = vadd.f32 %v21168_v5, %v1340_v17  ;;  %v21173_v60 = vld [vmem:[#allocation7_spill] sm:$0xff]  ;;  %v2724_v37 = vld [vmem:[%s21170_s29 + $0x10] sm:$0x7] }
 0x354   :  { %v2061_v8 = vpop.permute.xlu1 %2060  ;;  %2559 = vrot.lane.b32.xlu1 %v2449_v43, %s13098_s27  ;;  %v1320_v9 = vadd.f32 %v1246_v20, %v1042_v23  ;;  %v2153_v1 = vadd.f32 %v2079_v39, %v1875_v0  ;;  %v1599_v63 = vadd.f32 %v21169_v51, %v1321_v41  ;;  %vm7766_vm5 = vcmask 64516  }
 0x355   :  { %v2023_v62 = vpop.permute.xlu0 %2022  ;;  %2521 = vrot.lane.b32.xlu0 %v2430_v45, %s13098_s27  ;;  %v2098_v36 = vsel %vm2062_vm6, %v2059_v4, %v2061_v8  ;;  %v1896_v27 = vadd.f32 %v15991_v28, %v1618_v7 }
 0x356   :  { %v1598_v12 = vadd.f32 %v1524_v15, %v1320_v9  ;;  %v2080_v22 = vsel %vm2062_vm6, %v2021_v10, %v2023_v62  ;;  %v2173_v35 = vadd.f32 %v2098_v36, %v1895_v53  ;;  %v1877_v25 = vadd.f32 %v15993_v49, %v1599_v63  ;;  %v2723_v15 = vld [vmem:[%s21170_s29 + $0x8] sm:$0xff]  ;;  %s13109_s29 = smov 106  }
 0x357   :  { %v2174_v18 = vadd.f32 %v2061_v8, %v1896_v27  ;;  %vm2726_vm11 = vcmp.gt.f32.partialorder %v2723_v15, 0.5 }
 0x358   :  { %v2337_v2 = vpop.permute.xlu1 %2336  ;;  %v1876_v58 = vadd.f32 %v1802_v59, %v1598_v12  ;;  %v21177_v59 = vld [vmem:[#allocation8_spill] sm:$0xff] }
 0x359   :  { %v2299_v38 = vpop.permute.xlu0 %2298  ;;  %v2375_v14 = vsel %vm2340_vm7, %v2335_v31, %v2337_v2  ;;  %v2155_v31 = vadd.f32 %v2023_v62, %v1877_v25  ;;  %v21171_v62 = vmov 0  }
 0x35a   :  { %v2357_v21 = vsel %vm2340_vm7, %v2297_v16, %v2299_v38  ;;  %v2450_v50 = vadd.f32 %v2375_v14, %v2172_v29  ;;  %v2154_v54 = vadd.f32 %v2080_v22, %v1876_v58  ;;  %v2728_v5 = vsel %vm2725_vm8, 1, %v21171_v62  ;;  %v21178_v29 = vld [vmem:[#allocation10_spill] sm:$0xff] }
 0x35b   :  { %v2431_v44 = vadd.f32 %v2357_v21, %v2153_v1  ;;  %v2738_v51 = vrot.slane %v2728_v5, %v21172_v48  ;;  %v2734_v39 = vrot.slane %v2728_v5, %v21173_v60  ;;  %v2742_v9 = vrot.slane %v2728_v5, %v21174_v13  ;;  %v21182_v21 = vld [vmem:[#allocation12_spill] sm:$0xff] }
 0x35c   :  { %v2339_v30 = vpop.permute.xlu1 %2338  ;;  %2561 = vrot.lane.b32.xlu1 %v2450_v50, %s13098_s27  ;;  %v2746_v56 = vrot.slane %v2728_v5, %v21177_v59  ;;  %v2750_v1 = vrot.slane %v2728_v5, %v21178_v29  ;;  %v16155_v14 = vsel %vm2726_vm11, 1, %v21171_v62  ;;  %v2758_v53 = vrot.slane %v2728_v5, %v21182_v21 }
 0x35d   :  { %v2301_v26 = vpop.permute.xlu0 %2300  ;;  %2523 = vrot.lane.b32.xlu0 %v2431_v44, %s13098_s27  ;;  %v2376_v4 = vsel %vm2340_vm7, %v2337_v2, %v2339_v30  ;;  %v2452_v16 = vadd.f32 %v2339_v30, %v2174_v18  ;;  %vm16127_vm10 = vcmp.eq.s32.totalorder %v2738_v51, 1  ;;  %v21179_v2 = vld [vmem:[#allocation11_spill] sm:$0xff]  ;;  %vm2807_vm12 = vcmp.eq.s32.totalorder %v2734_v39, 1 }
 0x35e   :  { %v2358_v10 = vsel %vm2340_vm7, %v2299_v38, %v2301_v26  ;;  %v2451_v32 = vadd.f32 %v2376_v4, %v2173_v35  ;;  %v2433_v57 = vadd.f32 %v2301_v26, %v2155_v31  ;;  %v2754_v38 = vrot.slane %v2728_v5, %v21179_v2 }
 0x35f   :  { %v2432_v47 = vadd.f32 %v2358_v10, %v2154_v54  ;;  %vm16150_vm13 = vcmp.eq.s32.totalorder %v2742_v9, 1  ;;  %vm16168_vm14 = vcmp.eq.s32.totalorder %v2746_v56, 1  ;;  %v21185_v54 = vld [vmem:[#allocation13_spill] sm:$0xff]  ;;  %vm16176_vm15 = vcmp.eq.s32.totalorder %v2750_v1, 1 }
 0x360   :  { %2563 = vrot.lane.b32.xlu1 %v2451_v32, %s13098_s27  ;;  %v2494_v61 = vpop.permute.xlu1 %2493  ;;  %v2762_v30 = vrot.slane %v2728_v5, %v21185_v54  ;;  %vm16180_vm1 = vcmp.eq.s32.totalorder %v2754_v38, 1  ;;  %vm16200_vm3 = vcmp.eq.s32.totalorder %v2758_v53, 1  ;;  %vm2727_vm7 = vcmp.gt.f32.partialorder %v2724_v37, 0.5 }
 0x361   :  { %2525 = vrot.lane.b32.xlu0 %v2432_v47, %s13098_s27  ;;  %v2492_v19 = vpop.permute.xlu0 %2491  ;;  %v2766_v47 = vrot.slane %v16155_v14, %v21173_v60 }
 0x362   :  { %v16148_v36 = vsel %vm2567_vm9, %v2492_v19, %v2494_v61  ;;  %vm16228_vm4 = vcmp.eq.s32.totalorder %v2762_v30, 1 }
 0x363   :  { %v2826_v10 = vsel %vm2807_vm12, %v16148_v36, 0.0  ;;  %vm16262_vm6 = vcmp.eq.s32.totalorder %v2766_v47, 1 }
 0x364   :  { %2565 = vrot.lane.b32.xlu1 %v2452_v16, %s13098_s27  ;;  %v2530_v3 = vpop.permute.xlu1 %2529 }
 0x365   :  { %2527 = vrot.lane.b32.xlu0 %v2433_v57, %s13098_s27  ;;  %v2496_v28 = vpop.permute.xlu0 %2495  ;;  %s13101_s27 = smov 40  }
 0x366   :  { %v16132_v0 = vsel %vm2567_vm9, %v2494_v61, %v2496_v28 }
 0x367   :  { %v2827_v58 = vsel %vm16127_vm10, %v16132_v0, 0.0 }
 0x368   :  { %v2534_v11 = vpop.permute.xlu1 %2533  ;;  %v2910_v18 = vmul.f32 %v2827_v58, %v16132_v0  ;;  %v2864_v52 = vadd.f32 %v2827_v58, %v2826_v10 }
 0x369   :  { %v2532_v49 = vpop.permute.xlu0 %2531 }
 0x36a   :  { %v16135_v17 = vsel %vm2567_vm9, %v2530_v3, %v2532_v49  ;;  %v16143_v12 = vsel %vm2567_vm9, %v2532_v49, %v2534_v11  ;;  %v2909_v49 = vmul.f32 %v2826_v10, %v16148_v36 }
 0x36b   :  { %v2845_v50 = vsel %vm2807_vm12, %v16135_v17, 0.0  ;;  %v2846_v35 = vsel %vm16127_vm10, %v16143_v12, 0.0 }
 0x36c   :  { %v2536_v6 = vpop.permute.xlu1 %2535  ;;  %v2928_v31 = vmul.f32 %v2845_v50, %v16135_v17  ;;  %v2929_v19 = vmul.f32 %v2846_v35, %v16143_v12  ;;  %v2885_v5 = vadd.f32 %v2846_v35, %v2845_v50  ;;  %v2947_v1 = vadd.f32 %v2910_v18, %v2909_v49 }
 0x36d   :  { %v2498_v43 = vpop.permute.xlu0 %2497  ;;  %v16163_v44 = vsel %vm2567_vm9, %v2534_v11, %v2536_v6  ;;  %v2774_v11 = vrot.slane %v16155_v14, %v21174_v13  ;;  %v21205_v18 = vrot.slane %v16155_v14, %v21179_v2 }
 0x36e   :  { %v16166_v7 = vsel %vm2567_vm9, %v2496_v28, %v2498_v43  ;;  %v2847_v61 = vsel %vm16150_vm13, %v16163_v44, 0.0  ;;  %v2770_v28 = vrot.slane %v16155_v14, %v21172_v48  ;;  %v2968_v38 = vadd.f32 %v2929_v19, %v2928_v31 }
 0x36f   :  { %v2828_v3 = vsel %vm16150_vm13, %v16166_v7, 0.0  ;;  %v2930_v39 = vmul.f32 %v2847_v61, %v16163_v44  ;;  %v2886_v58 = vadd.f32 %v2885_v5, %v2847_v61  ;;  %vm16308_vm10 = vcmp.eq.s32.totalorder %v2774_v11, 1 }
 0x370   :  { %v16099_v45 = vpop.permute.xlu1 %2537  ;;  %v2911_v9 = vmul.f32 %v2828_v3, %v16166_v7  ;;  %v2865_v63 = vadd.f32 %v2864_v52, %v2828_v3  ;;  %vm16287_vm8 = vcmp.eq.s32.totalorder %v2770_v28, 1  ;;  %vm16399_vm13 = vcmp.eq.s32.totalorder %v21205_v18, 1 }
 0x371   :  { %v2500_v24 = vpop.permute.xlu0 %2499  ;;  %v16187_v27 = vsel %vm2567_vm9, %v2536_v6, %v16099_v45  ;;  %v2969_v3 = vadd.f32 %v2968_v38, %v2930_v39 }
 0x372   :  { %v16198_v16 = vsel %vm2567_vm9, %v2498_v43, %v2500_v24  ;;  %v2848_v43 = vsel %vm16168_vm14, %v16187_v27, 0.0  ;;  %v2948_v19 = vadd.f32 %v2947_v1, %v2911_v9 }
 0x373   :  { %v2931_v50 = vmul.f32 %v2848_v43, %v16187_v27  ;;  %v2887_v47 = vadd.f32 %v2886_v58, %v2848_v43 }
 0x374   :  { %v16101_v20 = vpop.permute.xlu1 %2539 }
 0x375   :  { %v16103_v42 = vpop.permute.xlu0 %2501  ;;  %v16226_v51 = vsel %vm2567_vm9, %v16099_v45, %v16101_v20  ;;  %v2778_v45 = vrot.slane %v16155_v14, %v21177_v59  ;;  %v2970_v1 = vadd.f32 %v2969_v3, %v2931_v50 }
 0x376   :  { %v16218_v6 = vsel %vm2567_vm9, %v2500_v24, %v16103_v42  ;;  %v2829_v24 = vsel %vm16168_vm14, %v16198_v16, 0.0  ;;  %v2849_v31 = vsel %vm16176_vm15, %v16226_v51, 0.0  ;;  %vm2660_vm14 = vcmask 64512  }
 0x377   :  { %v2830_v35 = vsel %vm16176_vm15, %v16218_v6, 0.0  ;;  %v2912_v61 = vmul.f32 %v2829_v24, %v16198_v16  ;;  %v2866_v49 = vadd.f32 %v2865_v63, %v2829_v24  ;;  %v2932_v24 = vmul.f32 %v2849_v31, %v16226_v51 }
 0x378   :  { %v16105_v40 = vpop.permute.xlu1 %2541  ;;  %v2913_v52 = vmul.f32 %v2830_v35, %v16218_v6  ;;  %v2888_v4 = vadd.f32 %v2887_v47, %v2849_v31  ;;  %vm16331_vm11 = vcmp.eq.s32.totalorder %v2778_v45, 1  ;;  %vm2681_vm15 = vcmask 392256  }
 0x379   :  { %v16107_v34 = vpop.permute.xlu0 %2503  ;;  %v16255_v30 = vsel %vm2567_vm9, %v16101_v20, %v16105_v40  ;;  %v2949_v28 = vadd.f32 %v2948_v19, %v2912_v61  ;;  %v2867_v20 = vadd.f32 %v2866_v49, %v2830_v35  ;;  %v2794_v35 = vrot.slane %v16155_v14, %v21185_v54 }
 0x37a   :  { %v16260_v10 = vsel %vm2567_vm9, %v16103_v42, %v16107_v34  ;;  %v2971_v49 = vadd.f32 %v2970_v1, %v2932_v24 }
 0x37b   :  { %v2831_v43 = vsel %vm16180_vm1, %v16260_v10, 0.0  ;;  %v2950_v47 = vadd.f32 %v2949_v28, %v2913_v52 }
 0x37c   :  { %v16109_v55 = vpop.permute.xlu1 %2543  ;;  %v2914_v11 = vmul.f32 %v2831_v43, %v16260_v10  ;;  %v2868_v56 = vadd.f32 %v2867_v20, %v2831_v43 }
 0x37d   :  { %v16111_v23 = vpop.permute.xlu0 %2505  ;;  %v16281_v26 = vsel %vm2567_vm9, %v16105_v40, %v16109_v55  ;;  %v16299_v40 = vsel %vm2727_vm7, 1, %v21171_v62  ;;  %vm20635_vm7 = vcmask 1041408  }
 0x37e   :  { %v16275_v42 = vsel %vm2567_vm9, %v16107_v34, %v16111_v23  ;;  %v2850_v34 = vsel %vm16180_vm1, %v16255_v30, 0.0  ;;  %v2798_v45 = vrot.slane %v16299_v40, %v21173_v60  ;;  %v2951_v28 = vadd.f32 %v2950_v47, %v2914_v11 }
 0x37f   :  { %v2832_v63 = vsel %vm16200_vm3, %v16275_v42, 0.0  ;;  %v2933_v50 = vmul.f32 %v2850_v34, %v16255_v30 }
 0x380   :  { %v16116_v33 = vpop.permute.xlu1 %2545  ;;  %v2915_v59 = vmul.f32 %v2832_v63, %v16275_v42  ;;  %v2869_v24 = vadd.f32 %v2868_v56, %v2832_v63  ;;  %v2802_v63 = vrot.slane %v16299_v40, %v21172_v48 }
 0x381   :  { %v16118_v8 = vpop.permute.xlu0 %2507  ;;  %v16318_v61 = vsel %vm2567_vm9, %v16109_v55, %v16116_v33  ;;  %v2889_v55 = vadd.f32 %v2888_v4, %v2850_v34  ;;  %v2972_v20 = vadd.f32 %v2971_v49, %v2933_v50 }
 0x382   :  { %v16306_v38 = vsel %vm2567_vm9, %v16111_v23, %v16118_v8  ;;  %v2851_v23 = vsel %vm16200_vm3, %v16281_v26, 0.0  ;;  %v2952_v11 = vadd.f32 %v2951_v28, %v2915_v59  ;;  %vm16438_vm3 = vcmp.eq.s32.totalorder %v2794_v35, 1 }
 0x383   :  { %v2833_v9 = vsel %vm16228_vm4, %v16306_v38, 0.0  ;;  %v2934_v52 = vmul.f32 %v2851_v23, %v16281_v26  ;;  %v2890_v34 = vadd.f32 %v2889_v55, %v2851_v23 }
 0x384   :  { %v16137_v41 = vpop.permute.xlu1 %2547  ;;  %v2916_v4 = vmul.f32 %v2833_v9, %v16306_v38  ;;  %v2870_v49 = vadd.f32 %v2869_v24, %v2833_v9 }
 0x385   :  { %v16139_v46 = vpop.permute.xlu0 %2509  ;;  %v16347_v54 = vsel %vm2567_vm9, %v16116_v33, %v16137_v41  ;;  %v2973_v48 = vadd.f32 %v2972_v20, %v2934_v52 }
 0x386   :  { %v16338_v57 = vsel %vm2567_vm9, %v16118_v8, %v16139_v46  ;;  %v2852_v8 = vsel %vm16228_vm4, %v16318_v61, 0.0  ;;  %v2953_v28 = vadd.f32 %v2952_v11, %v2916_v4  ;;  %v21208_v11 = vrot.slane %v16155_v14, %v21182_v21 }
 0x387   :  { %v2834_v56 = vsel %vm16262_vm6, %v16338_v57, 0.0  ;;  %v2935_v50 = vmul.f32 %v2852_v8, %v16318_v61  ;;  %v2891_v47 = vadd.f32 %v2890_v34, %v2852_v8  ;;  %vm16460_vm4 = vcmp.eq.s32.totalorder %v2798_v45, 1 }
 0x388   :  { %v16189_v25 = vpop.permute.xlu1 %2549  ;;  %v2917_v8 = vmul.f32 %v2834_v56, %v16338_v57  ;;  %v2871_v2 = vadd.f32 %v2870_v49, %v2834_v56  ;;  %vm16434_vm1 = vcmp.eq.s32.totalorder %v21208_v11, 1 }
 0x389   :  { %v16191_v32 = vpop.permute.xlu0 %2511  ;;  %v16358_v43 = vsel %vm2567_vm9, %v16137_v41, %v16189_v25  ;;  %v21202_v41 = vrot.slane %v16155_v14, %v21178_v29  ;;  %v2974_v29 = vadd.f32 %v2973_v48, %v2935_v50 }
 0x38a   :  { %v16363_v33 = vsel %vm2567_vm9, %v16139_v46, %v16191_v32  ;;  %v2853_v46 = vsel %vm16262_vm6, %v16347_v54, 0.0  ;;  %v2954_v56 = vadd.f32 %v2953_v28, %v2917_v8  ;;  %vm16475_vm6 = vcmp.eq.s32.totalorder %v2802_v63, 1 }
 0x38b   :  { %vm16378_vm12 = vcmp.eq.s32.totalorder %v21202_v41, 1  ;;  %v2835_v9 = vsel %vm16287_vm8, %v16363_v33, 0.0  ;;  %v2936_v20 = vmul.f32 %v2853_v46, %v16347_v54  ;;  %v2892_v18 = vadd.f32 %v2891_v47, %v2853_v46 }
 0x38c   :  { %v16244_v22 = vpop.permute.xlu1 %2551  ;;  %v2918_v4 = vmul.f32 %v2835_v9, %v16363_v33  ;;  %v2872_v60 = vadd.f32 %v2871_v2, %v2835_v9 }
 0x38d   :  { %v16246_v53 = vpop.permute.xlu0 %2513  ;;  %v16394_v41 = vsel %vm2567_vm9, %v16189_v25, %v16244_v22  ;;  %v2975_v14 = vadd.f32 %v2974_v29, %v2936_v20 }
 0x38e   :  { %v16389_v55 = vsel %vm2567_vm9, %v16191_v32, %v16246_v53  ;;  %v2854_v32 = vsel %vm16287_vm8, %v16358_v43, 0.0  ;;  %v2855_v24 = vsel %vm16308_vm10, %v16394_v41, 0.0  ;;  %v2955_v9 = vadd.f32 %v2954_v56, %v2918_v4 }
 0x38f   :  { %v2836_v39 = vsel %vm16308_vm10, %v16389_v55, 0.0  ;;  %v2937_v46 = vmul.f32 %v2854_v32, %v16358_v43  ;;  %v2893_v49 = vadd.f32 %v2892_v18, %v2854_v32  ;;  %v2938_v32 = vmul.f32 %v2855_v24, %v16394_v41 }
 0x390   :  { %v2919_v62 = vmul.f32 %v2836_v39, %v16389_v55  ;;  %v2873_v20 = vadd.f32 %v2872_v60, %v2836_v39  ;;  %vm5227_vm8 = vcmask 31744   ;;  %vm75_vm10 = vcmask 322560  }
 0x391   :  { %v2894_v45 = vadd.f32 %v2893_v49, %v2855_v24 }
 0x396   :  { %v16283_v5 = vpop.permute.xlu1 %2553 }
 0x397   :  { %v16285_v37 = vpop.permute.xlu0 %2515 }
 0x398   :  { %v16413_v25 = vsel %vm2567_vm9, %v16246_v53, %v16285_v37  ;;  %v16424_v53 = vsel %vm2567_vm9, %v16244_v22, %v16283_v5 }
 0x399   :  { %v2837_v58 = vsel %vm16331_vm11, %v16413_v25, 0.0  ;;  %v2856_v8 = vsel %vm16331_vm11, %v16424_v53, 0.0  ;;  %vm6054_vm11 = vcmask 1014784  }
 0x39a   :  { %v2920_v29 = vmul.f32 %v2837_v58, %v16413_v25  ;;  %v2895_v24 = vadd.f32 %v2894_v45, %v2856_v8  ;;  %v2874_v23 = vadd.f32 %v2873_v20, %v2837_v58 }
 0x3aa   :  { %v16325_v19 = vpop.permute.xlu1 %2555 }
 0x3ab   :  { %v16327_v31 = vpop.permute.xlu0 %2517  ;;  %v16449_v21 = vsel %vm2567_vm9, %v16283_v5, %v16325_v19  ;;  %v2976_v5 = vadd.f32 %v2975_v14, %v2937_v46  ;;  %v2956_v46 = vadd.f32 %v2955_v9, %v2919_v62 }
 0x3ac   :  { %21213 = vst [vmem:[#allocation48_spill] sm:$0xff] %v16449_v21  ;;  %v16454_v35 = vsel %vm2567_vm9, %v16285_v37, %v16327_v31  ;;  %v2857_v4 = vsel %vm16378_vm12, %v16449_v21, 0.0 }
 0x3ad   :  { %v2977_v39 = vadd.f32 %v2976_v5, %v2938_v32  ;;  %v2957_v49 = vadd.f32 %v2956_v46, %v2920_v29  ;;  %v2940_v20 = vmul.f32 %v2857_v4, %v16449_v21 }
 0x3ba   :  { %v16365_v1 = vpop.permute.xlu1 %2557 }
 0x3bb   :  { %v16367_v15 = vpop.permute.xlu0 %2519  ;;  %v16468_v28 = vsel %vm2567_vm9, %v16325_v19, %v16365_v1  ;;  %v2838_v19 = vsel %vm16378_vm12, %v16454_v35, 0.0  ;;  %vm5697_vm12 = vcmask 1047556  }
 0x3bc   :  { %v16473_v37 = vsel %vm2567_vm9, %v16327_v31, %v16367_v15  ;;  %v2939_v31 = vmul.f32 %v2856_v8, %v16424_v53  ;;  %v2858_v56 = vsel %vm16399_vm13, %v16468_v28, 0.0  ;;  %v2921_v8 = vmul.f32 %v2838_v19, %v16454_v35 }
 0x3bd   :  { %v2839_v62 = vsel %vm16399_vm13, %v16473_v37, 0.0  ;;  %v2875_v58 = vadd.f32 %v2874_v23, %v2838_v19  ;;  %v2941_v21 = vmul.f32 %v2858_v56, %v16468_v28  ;;  %vm20632_vm13 = vcmask 326656  }
 0x3be   :  { %v2978_v29 = vadd.f32 %v2977_v39, %v2939_v31  ;;  %v2922_v45 = vmul.f32 %v2839_v62, %v16473_v37  ;;  %v2958_v39 = vadd.f32 %v2957_v49, %v2921_v8  ;;  %v21218_v49 = vrot.slane %v16299_v40, %v21174_v13 }
 0x3bf   :  { %v2876_v19 = vadd.f32 %v2875_v58, %v2839_v62 }
 0x3c6   :  { %v2560_v52 = vpop.permute.xlu1 %2559 }
 0x3c7   :  { %v2522_v34 = vpop.permute.xlu0 %2521  ;;  %v16488_v63 = vsel %vm2567_vm9, %v16365_v1, %v2560_v52 }
 0x3c8   :  { %v16492_v60 = vsel %vm2567_vm9, %v16367_v15, %v2522_v34  ;;  %v2896_v15 = vadd.f32 %v2895_v24, %v2857_v4  ;;  %v2859_v5 = vsel %vm16434_vm1, %v16488_v63, 0.0  ;;  %v20610_v24 = vmov 0.0  }
 0x3c9   :  { %v2840_v59 = vsel %vm16434_vm1, %v16492_v60, 0.0 }
 0x3ca   :  { %v2923_v31 = vmul.f32 %v2840_v59, %v16492_v60 }
 0x3ce   :  { %v2562_v50 = vpop.permute.xlu1 %2561 }
 0x3cf   :  { %v2524_v47 = vpop.permute.xlu0 %2523  ;;  %v16501_v14 = vsel %vm2567_vm9, %v2560_v52, %v2562_v50 }
 0x3d0   :  { %v16504_v1 = vsel %vm2567_vm9, %v2522_v34, %v2524_v47  ;;  %v2897_v34 = vadd.f32 %v2896_v15, %v2858_v56  ;;  %v2860_v48 = vsel %vm16438_vm3, %v16501_v14, 0.0 }
 0x3d2   :  { %v2564_v18 = vpop.permute.xlu1 %2563 }
 0x3d3   :  { %v2526_v11 = vpop.permute.xlu0 %2525  ;;  %v16514_v52 = vsel %vm2567_vm9, %v2562_v50, %v2564_v18  ;;  %v2841_v50 = vsel %vm16438_vm3, %v16504_v1, 0.0  ;;  %vm7705_vm3 = vcmask 1044320  }
 0x3d4   :  { %v16521_v46 = vsel %vm2567_vm9, %v2524_v47, %v2526_v11  ;;  %v2898_v47 = vadd.f32 %v2897_v34, %v2859_v5  ;;  %v2861_v15 = vsel %vm16460_vm4, %v16514_v52, 0.0  ;;  %v2924_v62 = vmul.f32 %v2841_v50, %v16504_v1 }
 0x3d5   :  { %v2942_v34 = vmul.f32 %v2859_v5, %v16488_v63 }
 0x3d6   :  { %v2566_v32 = vpop.permute.xlu1 %2565  ;;  %v2899_v22 = vadd.f32 %v2898_v47, %v2860_v48 }
 0x3d7   :  { %v2528_v9 = vpop.permute.xlu0 %2527  ;;  %2680 = vst.msk [vmem:[#allocation4 + $0x128] sm:$0xff] %vm2660_vm14, %v2566_v32  ;;  %v16534_v4 = vsel %vm2567_vm9, %v2564_v18, %v2566_v32  ;;  %v2842_v18 = vsel %vm16460_vm4, %v16521_v46, 0.0  ;;  %v2959_v32 = vadd.f32 %v2958_v39, %v2922_v45  ;;  %vm7693_vm4 = vcmask 883712  }
 0x3d8   :  { %2661 = vst.msk [vmem:[#allocation4 + $0x90] sm:$0xff] %vm2660_vm14, %v2528_v9  ;;  %v16538_v23 = vsel %vm2567_vm9, %v2526_v11, %v2528_v9  ;;  %vm16551_vm9 = vcmp.eq.s32.totalorder %v21218_v49, 1  ;;  %v2862_v8 = vsel %vm16475_vm6, %v16534_v4, 0.0  ;;  %v2979_v9 = vadd.f32 %v2978_v29, %v2940_v20 }
 0x3d9   :  { %2683 = vst.msk [vmem:[#allocation4 + $0x128] sm:$0xff] %vm2681_vm15, %v20610_v24  ;;  %2682 = vst.msk [vmem:[#allocation4 + $0x90] sm:$0xff] %vm2681_vm15, %v20610_v24  ;;  %v2877_v24 = vadd.f32 %v2876_v19, %v2840_v59  ;;  %v2900_v59 = vadd.f32 %v2899_v22, %v2861_v15  ;;  %v2843_v2 = vsel %vm16475_vm6, %v16538_v23, 0.0  ;;  %v2960_v58 = vadd.f32 %v2959_v32, %v2923_v31 }
 0x3da   :  { %v2925_v40 = vmul.f32 %v2842_v18, %v16521_v46  ;;  %v2980_v29 = vadd.f32 %v2979_v9, %v2941_v21  ;;  %vm5700_vm6 = vcmask 879616  }
 0x3db   :  { %v2878_v56 = vadd.f32 %v2877_v24, %v2841_v50  ;;  %v2901_v47 = vadd.f32 %v2900_v59, %v2862_v8  ;;  %v2961_v49 = vadd.f32 %v2960_v58, %v2924_v62  ;;  %v2943_v24 = vmul.f32 %v2860_v48, %v16501_v14 }
 0x3dc   :  { %v2926_v50 = vmul.f32 %v2843_v2, %v16538_v23  ;;  %v2981_v62 = vadd.f32 %v2980_v29, %v2942_v34 }
 0x3dd   :  { %v2879_v45 = vadd.f32 %v2878_v56, %v2842_v18  ;;  %v2962_v32 = vadd.f32 %v2961_v49, %v2925_v40  ;;  %v2944_v56 = vmul.f32 %v2861_v15, %v16514_v52 }
 0x3de   :  { %v2982_v58 = vadd.f32 %v2981_v62, %v2943_v24 }
 0x3df   :  { %v2880_v20 = vadd.f32 %v2879_v45, %v2843_v2  ;;  %v2963_v59 = vadd.f32 %v2962_v32, %v2926_v50  ;;  %v2945_v2 = vmul.f32 %v2862_v8, %v16534_v4 }
 0x3e0   :  { %v16563_v19 = vld [vmem:[#allocation4 + $0x128] sm:$0xff]  ;;  %v16565_v39 = vld [vmem:[#allocation4 + $0x90] sm:$0xff]  ;;  %v2983_v13 = vadd.f32 %v2982_v58, %v2944_v56  ;;  %v3003_v56 = vld [vmem:[%s21222_s28] sm:$0xff] }
 0x3e1   :  { %v2863_v3 = vsel %vm16551_vm9, %v16563_v19, 0.0  ;;  %v2844_v5 = vsel %vm16551_vm9, %v16565_v39, 0.0  ;;  %vm7706_vm9 = vmor %vm5697_vm12, %vm7705_vm3  ;;  %vm8121_vm3 = vcmask 572416  }
 0x3e2   :  { %v2902_v31 = vsel %vm2660_vm14, %v2863_v3, 0.0  ;;  %v2881_v22 = vsel %vm2660_vm14, %v2844_v5, 0.0  ;;  %v2927_v18 = vmul.f32 %v2844_v5, %v16565_v39  ;;  %v2946_v11 = vmul.f32 %v2863_v3, %v16563_v19 }
 0x3e3   :  { %v2903_v48 = vadd.f32 %v2902_v31, %v2901_v47  ;;  %v2882_v21 = vadd.f32 %v2881_v22, %v2880_v20  ;;  %v2984_v34 = vadd.f32 %v2983_v13, %v2945_v2  ;;  %v2995_v13 = vld [vmem:[%s21221_s13] sm:$0xff] }
 0x3e4   :  { %v2964_v9 = vsel %vm2660_vm14, %v2927_v18, 0.0  ;;  %v2985_v5 = vsel %vm2660_vm14, %v2946_v11, 0.0 }
 0x3e5   :  { %2904 = vadd.xlane.f32.xlu1 %v2903_v48  ;;  %2883 = vadd.xlane.f32.xlu0 %v2882_v21  ;;  %v2965_v45 = vadd.f32 %v2964_v9, %v2963_v59  ;;  %v2986_v47 = vadd.f32 %v2985_v5, %v2984_v34  ;;  %v2996_v9 = vld [vmem:[%s21221_s13 + $0x8] sm:$0xff]  ;;  %s13107_s13 = smov 89  }
 0x3e9   :  { %2966 = vadd.xlane.f32.xlu0 %v2965_v45  ;;  %v3004_v45 = vld [vmem:[%s21222_s28 + $0x8] sm:$0xff]  ;;  %s13108_s28 = smov 105  }
 0x3ed   :  { %2987 = vadd.xlane.f32.xlu0 %v2986_v47 }
 0x46e   :  { %v2884_v40 = vpop.xlane.xlu0 %2883  ;;  %v2905_v49 = vpop.xlane.xlu1 %2904 }
 0x46f   :  { %v2907_v15 = vmul.f32 0.00048828125, %v2884_v40  ;;  %v2908_v20 = vmul.f32 0.00048828125, %v2905_v49 }
 0x471   :  { %v2991_v3 = vmul.f32 %v2907_v15, %v2907_v15  ;;  %v2992_v18 = vmul.f32 %v2908_v20, %v2908_v20 }
 0x472   :  { %v2967_v29 = vpop.xlane.xlu0 %2966 }
 0x473   :  { %v2989_v31 = vmul.f32 0.00048828125, %v2967_v29 }
 0x475   :  { %v2993_v22 = vsub.f32 %v2989_v31, %v2991_v3 }
 0x476   :  { %v2988_v50 = vpop.xlane.xlu0 %2987 }
 0x477   :  { %v2997_v8 = vadd.f32 1e-05, %v2993_v22  ;;  %v2990_v24 = vmul.f32 0.00048828125, %v2988_v50 }
 0x479   :  { %13073 = vrsqrt.f32 %v2997_v8  ;;  %v2994_v62 = vsub.f32 %v2990_v24, %v2992_v18 }
 0x47b   :  { %v2998_v48 = vadd.f32 1e-05, %v2994_v62 }
 0x47d   :  { %13075 = vrsqrt.f32 %v2998_v48 }
 0x486   :  { %v13074_v21 = vpop.eup %13073 }
 0x487   :  { %v3001_v32 = vmul.f32 %v13074_v21, %v2995_v13 }
 0x489   :  { %3011 = vperm.xlu1 %12362, %v3001_v32   ;;  %v3005_v11 = vmul.f32 %v3001_v32, %v2907_v15 }
 0x48a   :  { %v13076_v59 = vpop.eup %13075 }
 0x48b   :  { %v3007_v2 = vsub.f32 %v3003_v56, %v3005_v11  ;;  %v3002_v58 = vmul.f32 %v13076_v59, %v2996_v9 }
 0x48d   :  { %3059 = vperm.xlu1 %12362, %v3007_v2   ;;  %3016 = vperm.xlu0 %12361, %v3002_v58   ;;  %v3006_v5 = vmul.f32 %v3002_v58, %v2908_v20 }
 0x48f   :  { %v3008_v34 = vsub.f32 %v3004_v45, %v3006_v5 }
 0x491   :  { %3064 = vperm.xlu1 %12362, %v3008_v34  }
 0x504   :  { %v16595_v47 = vpop.permute.xlu1 %3011 }
 0x505   :  { %v3020_v40 = vmul.f32 %v16595_v47, %v16132_v0  ;;  %v3021_v15 = vmul.f32 %v16595_v47, %v16166_v7  ;;  %v3022_v20 = vmul.f32 %v16595_v47, %v16198_v16 }
 0x508   :  { %v16601_v49 = vpop.permute.xlu1 %3059  ;;  %v16603_v29 = vpop.permute.xlu0 %3016 }
 0x509   :  { %v16606_v3 = vadd.f32 %v16601_v49, %v3020_v40  ;;  %v16609_v31 = vadd.f32 %v16601_v49, %v3021_v15  ;;  %v16616_v50 = vadd.f32 %v16601_v49, %v3022_v20  ;;  %v3039_v7 = vmul.f32 %v16603_v29, %v16143_v12 }
 0x50a   :  { %v3040_v8 = vmul.f32 %v16603_v29, %v16163_v44  ;;  %v3041_v24 = vmul.f32 %v16603_v29, %v16187_v27  ;;  %v3019_v44 = vmul.f32 %v16595_v47, %v16148_v36  ;;  %v3038_v27 = vmul.f32 %v16603_v29, %v16135_v17 }
 0x50b   :  { %v3106_v22 = vmax.f32 %v16606_v3, 0.0  ;;  %v3107_v0 = vmax.f32 %v16609_v31, 0.0  ;;  %v3108_v12 = vmax.f32 %v16616_v50, 0.0  ;;  %v3023_v17 = vmul.f32 %v16595_v47, %v16218_v6  ;;  %v12438_v3 = vld [vmem:[%s21223_s26 + $0x2a4] ss:$12 sps:$4 sm:$0xff]  }
 0x50c   :  { %v16620_v18 = vpop.permute.xlu1 %3064  ;;  %v16656_v56 = vadd.f32 %v16601_v49, %v3019_v44  ;;  %v3024_v36 = vmul.f32 %v16595_v47, %v16260_v10  ;;  %v3042_v6 = vmul.f32 %v16603_v29, %v16226_v51  ;;  %v3043_v10 = vmul.f32 %v16603_v29, %v16255_v30  ;;  %v12444_v31 = vld [vmem:[%s21223_s26 + $0x28c] ss:$12 sps:$4 sm:$0xff]  }
 0x50d   :  { %3259 = vrot.lane.b32.xlu0 %v3106_v22, %s13090_s24  ;;  %3261 = vrot.lane.b32.xlu1 %v3107_v0, %s13090_s24  ;;  %v16629_v16 = vadd.f32 %v16620_v18, %v3039_v7  ;;  %v16638_v48 = vadd.f32 %v16620_v18, %v3040_v8  ;;  %v16641_v13 = vadd.f32 %v16620_v18, %v3041_v24 }
 0x50e   :  { %v16659_v9 = vadd.f32 %v16620_v18, %v3038_v27  ;;  %v3105_v11 = vmax.f32 %v16656_v56, 0.0  ;;  %v16674_v2 = vadd.f32 %v16601_v49, %v3023_v17  ;;  %v16677_v58 = vadd.f32 %v16601_v49, %v3024_v36  ;;  %v12455_v56 = vld [vmem:[%s21223_s26 + $0x3ac] ss:$12 sps:$4 sm:$0xff]  }
 0x50f   :  { %v3125_v62 = vmax.f32 %v16629_v16, 0.0  ;;  %v3126_v21 = vmax.f32 %v16638_v48, 0.0  ;;  %v3127_v32 = vmax.f32 %v16641_v13, 0.0  ;;  %v16692_v34 = vadd.f32 %v16620_v18, %v3042_v6  ;;  %v12447_v16 = vld [vmem:[%s21223_s26 + $0xc4] ss:$12 sps:$4 sm:$0xff]  }
 0x510   :  { %v3124_v59 = vmax.f32 %v16659_v9, 0.0  ;;  %v3109_v45 = vmax.f32 %v16674_v2, 0.0  ;;  %v3110_v5 = vmax.f32 %v16677_v58, 0.0  ;;  %v16695_v40 = vadd.f32 %v16620_v18, %v3043_v10 }
 0x511   :  { %3263 = vrot.lane.b32.xlu0 %v3108_v12, %s13090_s24  ;;  %3297 = vrot.lane.b32.xlu1 %v3125_v62, %s13090_s24  ;;  %v3025_v15 = vmul.f32 %v16595_v47, %v16275_v42  ;;  %v3026_v51 = vmul.f32 %v16595_v47, %v16306_v38  ;;  %v3037_v20 = vmul.f32 %v16595_v47, %v16565_v39  ;;  %v3128_v7 = vmax.f32 %v16692_v34, 0.0 }
 0x512   :  { %v20621_v42 = vmax.f32 %v16695_v40, 0.0  ;;  %v3056_v24 = vmul.f32 %v16603_v29, %v16563_v19  ;;  %v3044_v38 = vmul.f32 %v16603_v29, %v16281_v26  ;;  %v3045_v39 = vmul.f32 %v16603_v29, %v16318_v61 }
 0x513   :  { %v16708_v30 = vadd.f32 %v16601_v49, %v3025_v15  ;;  %v16715_v8 = vadd.f32 %v16601_v49, %v3026_v51  ;;  %v16720_v44 = vadd.f32 %v16601_v49, %v3037_v20  ;;  %v3027_v61 = vmul.f32 %v16595_v47, %v16338_v57 }
 0x514   :  { %v16733_v27 = vadd.f32 %v16620_v18, %v3056_v24  ;;  %v16739_v6 = vadd.f32 %v16620_v18, %v3044_v38  ;;  %v16742_v10 = vadd.f32 %v16620_v18, %v3045_v39  ;;  %v3028_v15 = vmul.f32 %v16595_v47, %v16363_v33  ;;  %v12363_v39 = vld [vmem:[%s21223_s26 + $0xac] ss:$12 sps:$4 sm:$0xff]  }
 0x515   :  { %3299 = vrot.lane.b32.xlu0 %v3126_v21, %s13090_s24  ;;  %3301 = vrot.lane.b32.xlu1 %v3127_v32, %s13090_s24  ;;  %v20622_v19 = vmax.f32 %v16708_v30, 0.0  ;;  %v20615_v17 = vmax.f32 %v16720_v44, 0.0  ;;  %v20619_v36 = vmax.f32 %v16715_v8, 0.0  ;;  %v16764_v24 = vadd.f32 %v16601_v49, %v3027_v61  ;;  %v12365_v61 = vld [vmem:[%s21223_s26 + $0xa8] ss:$12 sps:$4 sm:$0xff]  }
 0x516   :  { %v20614_v26 = vmax.f32 %v16733_v27, 0.0  ;;  %v20620_v51 = vmax.f32 %v16739_v6, 0.0  ;;  %v20617_v20 = vmax.f32 %v16742_v10, 0.0  ;;  %v16767_v38 = vadd.f32 %v16601_v49, %v3028_v15  ;;  %5241 = vmatprep.subr.bf16.mxu0 %v12363_v39  ;;  %v12366_v15 = vld [vmem:[%s21223_s26 + $0x94] ss:$12 sps:$4 sm:$0xff]  }
 0x517   :  { %3161 = vst.msk [vmem:[#allocation4 + $0x90] sm:$0xff] %vm2660_vm14, %v20615_v17  ;;  %v20618_v57 = vmax.f32 %v16764_v24, 0.0  ;;  %5242 = vmatpush1.bf16.msra.mxu0 %v12365_v61  ;;  %v12369_v17 = vld [vmem:[%s21223_s26 + $0x7c] ss:$12 sps:$4 sm:$0xff]   ;;  %v12371_v61 = vld [vmem:[%s21223_s26 + $0x78] ss:$12 sps:$4 sm:$0xff]   ;;  %v3029_v13 = vmul.f32 %v16595_v47, %v16389_v55  ;;  %v3048_v55 = vmul.f32 %v16603_v29, %v16394_v41 }
 0x518   :  { %3180 = vst.msk [vmem:[#allocation4 + $0x128] sm:$0xff] %vm2660_vm14, %v20614_v26  ;;  %v20616_v33 = vmax.f32 %v16767_v38, 0.0  ;;  %v12368_v26 = vld [vmem:[%s21223_s26 + $0x90] ss:$12 sps:$4 sm:$0xff]   ;;  %5243 = vmatprep.subr.bf16.mxu0 %v12366_v15  ;;  %v12374_v39 = vld [vmem:[%s21223_s26 + $0x228] ss:$12 sps:$4 sm:$0xff]  }
 0x519   :  { %3257 = vrot.lane.b32.xlu0 %v3105_v11, %s13090_s24  ;;  %3295 = vrot.lane.b32.xlu1 %v3124_v59, %s13090_s24  ;;  %v12380_v15 = vld [vmem:[%s21223_s26 + $0x210] ss:$12 sps:$4 sm:$0xff]   ;;  %v17065_v34 = vadd.f32 %v16601_v49, %v3029_v13  ;;  %v21225_v58 = vmax.f32 %v16695_v40, 0.0 }
 0x51b   :  { %5244 = vmatpush1.bf16.msra.mxu0 %v12368_v26  ;;  %v12384_v26 = vld [vmem:[%s21223_s26 + $0x1fc] ss:$12 sps:$4 sm:$0xff]  }
 0x51c   :  { %5245 = vmatprep.subr.bf16.mxu0 %v12369_v17  ;;  %v12386_v17 = vld [vmem:[%s21223_s26 + $0x1f8] ss:$12 sps:$4 sm:$0xff]  }
 0x51d   :  { %3265 = vrot.lane.b32.xlu0 %v3109_v45, %s13090_s24  ;;  %3267 = vrot.lane.b32.xlu1 %v3110_v5, %s13090_s24 }
 0x51f   :  { %5246 = vmatpush1.bf16.msra.mxu0 %v12371_v61  ;;  %v12387_v61 = vld [vmem:[%s21223_s26 + $0x34] ss:$12 sps:$4 sm:$0xff]  }
 0x521   :  { %3303 = vrot.lane.b32.xlu0 %v3128_v7, %s13090_s24  ;;  %3305 = vrot.lane.b32.xlu1 %v20621_v42, %s13090_s24  ;;  %v12411_v42 = vld [vmem:[%s21223_s26 + $0x154] ss:$12 sps:$4 sm:$0xff]  }
 0x525   :  { %3269 = vrot.lane.b32.xlu0 %v20622_v19, %s13090_s24  ;;  %3271 = vrot.lane.b32.xlu1 %v20619_v36, %s13090_s24  ;;  %v12383_v36 = vld [vmem:[%s21223_s26 + $0x48] ss:$12 sps:$4 sm:$0xff]   ;;  %v12437_v19 = vld [vmem:[%s21223_s26 + $0xf0] ss:$12 sps:$4 sm:$0xff]  }
 0x529   :  { %3307 = vrot.lane.b32.xlu0 %v20620_v51, %s13090_s24  ;;  %3309 = vrot.lane.b32.xlu1 %v20617_v20, %s13090_s24  ;;  %v12378_v20 = vld [vmem:[%s21223_s26 + $0x214] ss:$12 sps:$4 sm:$0xff]   ;;  %v12410_v51 = vld [vmem:[%s21223_s26 + $0x198] ss:$12 sps:$4 sm:$0xff]  }
 0x52d   :  { %3273 = vrot.lane.b32.xlu0 %v20618_v57, %s13090_s24  ;;  %3275 = vrot.lane.b32.xlu1 %v20616_v33, %s13090_s24  ;;  %v12372_v33 = vld [vmem:[%s21223_s26 + $0x22c] ss:$12 sps:$4 sm:$0xff]   ;;  %v12375_v57 = vld [vmem:[%s21223_s26 + $0x64] ss:$12 sps:$4 sm:$0xff]  }
 0x52e   :  { %5284 = vmatprep.subr.bf16.mxu1 %v12372_v33  ;;  %v12377_v33 = vld [vmem:[%s21223_s26 + $0x60] ss:$12 sps:$4 sm:$0xff]   ;;  %5247 = vmatprep.subr.bf16.mxu0 %v12375_v57 }
 0x52f   :  { %5285 = vmatpush1.bf16.msra.mxu1 %v12374_v39  ;;  %v12381_v39 = vld [vmem:[%s21223_s26 + $0x4c] ss:$12 sps:$4 sm:$0xff]   ;;  %5248 = vmatpush1.bf16.msra.mxu0 %v12377_v33  ;;  %v12393_v33 = vld [vmem:[%s21223_s26 + $0x1c] ss:$12 sps:$4 sm:$0xff]  }
 0x530   :  { %5286 = vmatprep.subr.bf16.mxu1 %v12378_v20  ;;  %v12390_v20 = vld [vmem:[%s21223_s26 + $0x1e4] ss:$12 sps:$4 sm:$0xff]   ;;  %5249 = vmatprep.subr.bf16.mxu0 %v12381_v39  ;;  %v12396_v57 = vld [vmem:[%s21223_s26 + $0x1cc] ss:$12 sps:$4 sm:$0xff]   ;;  %v12402_v39 = vld [vmem:[%s21223_s26 + $0x1b4] ss:$12 sps:$4 sm:$0xff]  }
 0x533   :  { %5287 = vmatpush1.bf16.msra.mxu1 %v12380_v15  ;;  %v12392_v15 = vld [vmem:[%s21223_s26 + $0x1e0] ss:$12 sps:$4 sm:$0xff]   ;;  %5250 = vmatpush1.bf16.msra.mxu0 %v12383_v36  ;;  %v12399_v36 = vld [vmem:[%s21223_s26 + $0x4] ss:$12 sps:$4 sm:$0xff]  }
 0x534   :  { %5288 = vmatprep.subr.bf16.mxu1 %v12384_v26  ;;  %v12389_v26 = vld [vmem:[%s21223_s26 + $0x30] ss:$12 sps:$4 sm:$0xff]   ;;  %5251 = vmatprep.subr.bf16.mxu0 %v12387_v61 }
 0x535   :  { %v12408_v61 = vld [vmem:[%s21223_s26 + $0x19c] ss:$12 sps:$4 sm:$0xff]  }
 0x537   :  { %5289 = vmatpush1.bf16.msra.mxu1 %v12386_v17  ;;  %v12398_v17 = vld [vmem:[%s21223_s26 + $0x1c8] ss:$12 sps:$4 sm:$0xff]   ;;  %5252 = vmatpush1.bf16.msra.mxu0 %v12389_v26  ;;  %v12405_v26 = vld [vmem:[%s21223_s26 + $0x16c] ss:$12 sps:$4 sm:$0xff]  }
 0x538   :  { %5290 = vmatprep.subr.bf16.mxu1 %v12390_v20  ;;  %v12395_v20 = vld [vmem:[%s21223_s26 + $0x18] ss:$12 sps:$4 sm:$0xff]   ;;  %5253 = vmatprep.subr.bf16.mxu0 %v12393_v33  ;;  %v12407_v33 = vld [vmem:[%s21223_s26 + $0x168] ss:$12 sps:$4 sm:$0xff]  }
 0x53b   :  { %5291 = vmatpush1.bf16.msra.mxu1 %v12392_v15  ;;  %v12404_v15 = vld [vmem:[%s21223_s26 + $0x1b0] ss:$12 sps:$4 sm:$0xff]   ;;  %5254 = vmatpush1.bf16.msra.mxu0 %v12395_v20 }
 0x53c   :  { %5292 = vmatprep.subr.bf16.mxu1 %v12396_v57  ;;  %v12401_v57 = vld [vmem:[%s21223_s26] ss:$12 sps:$4 sm:$0xff]   ;;  %5255 = vmatprep.subr.bf16.mxu0 %v12399_v36  ;;  %v12413_v20 = vld [vmem:[%s21223_s26 + $0x150] ss:$12 sps:$4 sm:$0xff]  }
 0x53d   :  { %v12417_v36 = vld [vmem:[%s21223_s26 + $0x13c] ss:$12 sps:$4 sm:$0xff]  }
 0x53f   :  { %5293 = vmatpush1.bf16.msra.mxu1 %v12398_v17  ;;  %v12414_v17 = vld [vmem:[%s21223_s26 + $0x184] ss:$12 sps:$4 sm:$0xff]   ;;  %5256 = vmatpush1.bf16.msra.mxu0 %v12401_v57  ;;  %v12425_v57 = vld [vmem:[%s21223_s26 + $0x120] ss:$12 sps:$4 sm:$0xff]  }
 0x540   :  { %5294 = vmatprep.subr.bf16.mxu1 %v12402_v39  ;;  %v12416_v39 = vld [vmem:[%s21223_s26 + $0x180] ss:$12 sps:$4 sm:$0xff]   ;;  %5257 = vmatprep.subr.bf16.mxu0 %v12405_v26 }
 0x541   :  { %v12426_v26 = vld [vmem:[%s21223_s26 + $0x2d4] ss:$12 sps:$4 sm:$0xff]  }
 0x543   :  { %5295 = vmatpush1.bf16.msra.mxu1 %v12404_v15  ;;  %5258 = vmatpush2.bf16.msra.mxu0 %v12407_v33  ;;  %v12419_v15 = vld [vmem:[%s21223_s26 + $0x138] ss:$12 sps:$4 sm:$0xff]  }
 0x544   :  { %5296 = vmatprep.subr.bf16.mxu1 %v12408_v61  ;;  %5259 = vmatprep.subr.bf16.mxu0 %v12411_v42  ;;  %v12422_v61 = vld [vmem:[%s21223_s26 + $0x2e8] ss:$12 sps:$4 sm:$0xff]   ;;  %v12423_v42 = vld [vmem:[%s21223_s26 + $0x124] ss:$12 sps:$4 sm:$0xff]  }
 0x547   :  { %5297 = vmatpush1.bf16.msra.mxu1 %v12410_v51  ;;  %5260 = vmatpush2.bf16.msra.mxu0 %v12413_v20  ;;  %v12420_v51 = vld [vmem:[%s21223_s26 + $0x2ec] ss:$12 sps:$4 sm:$0xff]  }
 0x548   :  { %5298 = vmatprep.subr.bf16.mxu1 %v12414_v17  ;;  %5261 = vmatprep.subr.bf16.mxu0 %v12417_v36  ;;  %v12428_v17 = vld [vmem:[%s21223_s26 + $0x2d0] ss:$12 sps:$4 sm:$0xff]   ;;  %v12429_v20 = vld [vmem:[%s21223_s26 + $0x10c] ss:$12 sps:$4 sm:$0xff]   ;;  %v12431_v36 = vld [vmem:[%s21223_s26 + $0x108] ss:$12 sps:$4 sm:$0xff]  }
 0x54b   :  { %5299 = vmatpush1.bf16.msra.mxu1 %v12416_v39  ;;  %5262 = vmatpush2.bf16.msra.mxu0 %v12419_v15  ;;  %v12432_v15 = vld [vmem:[%s21223_s26 + $0x2bc] ss:$12 sps:$4 sm:$0xff]  }
 0x54c   :  { %5300 = vmatprep.subr.bf16.mxu1 %v12420_v51  ;;  %5263 = vmatprep.subr.bf16.mxu0 %v12423_v42 }
 0x54f   :  { %5301 = vmatpush2.bf16.msra.mxu1 %v12422_v61  ;;  %5264 = vmatpush2.bf16.msra.mxu0 %v12425_v57  ;;  %v12434_v61 = vld [vmem:[%s21223_s26 + $0x2b8] ss:$12 sps:$4 sm:$0xff]  }
 0x550   :  { %5302 = vmatprep.subr.bf16.mxu1 %v12426_v26  ;;  %5265 = vmatprep.subr.bf16.mxu0 %v12429_v20  ;;  %v12440_v20 = vld [vmem:[%s21223_s26 + $0x2a0] ss:$12 sps:$4 sm:$0xff]  }
 0x553   :  { %5303 = vmatpush2.bf16.msra.mxu1 %v12428_v17  ;;  %5266 = vmatpush2.bf16.msra.mxu0 %v12431_v36  ;;  %v12435_v17 = vld [vmem:[%s21223_s26 + $0xf4] ss:$12 sps:$4 sm:$0xff]  }
 0x554   :  { %5304 = vmatprep.subr.bf16.mxu1 %v12432_v15  ;;  %5267 = vmatprep.subr.bf16.mxu0 %v12435_v17  ;;  %v12446_v17 = vld [vmem:[%s21223_s26 + $0x288] ss:$12 sps:$4 sm:$0xff]  }
 0x557   :  { %5305 = vmatpush2.bf16.msra.mxu1 %v12434_v61  ;;  %5268 = vmatpush2.bf16.msra.mxu0 %v12437_v19  ;;  %v12443_v61 = vld [vmem:[%s21223_s26 + $0xd8] ss:$12 sps:$4 sm:$0xff]  }
 0x558   :  { %5306 = vmatprep.subr.bf16.mxu1 %v12438_v3 }
 0x55b   :  { %5307 = vmatpush2.bf16.msra.mxu1 %v12440_v20 }
 0x55c   :  { %5308 = vmatprep.subr.bf16.mxu1 %v12444_v31 }
 0x55f   :  { %5309 = vmatpush2.bf16.msra.mxu1 %v12446_v17 }
 0x57f   :  { %v3260_v33 = vpop.permute.xlu0 %3259  ;;  %v3262_v39 = vpop.permute.xlu1 %3261 }
 0x580   :  { %v3334_v51 = vsel %vm394_vm0, %v3260_v33, %v3262_v39 }
 0x581   :  { %v16930_v42 = vmax.f32 %v3106_v22, %v3334_v51 }
 0x583   :  { %v3264_v57 = vpop.permute.xlu0 %3263  ;;  %3523 = vrot.lane.b32.xlu0 %v16930_v42, %s20628_s5  ;;  %v3298_v26 = vpop.permute.xlu1 %3297 }
 0x584   :  { %v3335_v22 = vsel %vm394_vm0, %v3262_v39, %v3264_v57  ;;  %v12441_v39 = vld [vmem:[%s21223_s26 + $0xdc] ss:$12 sps:$4 sm:$0xff]  }
 0x585   :  { %v16949_v36 = vmax.f32 %v3107_v0, %v3335_v22  ;;  %5269 = vmatprep.subr.bf16.mxu0 %v12441_v39  ;;  %v12450_v39 = vld [vmem:[%s21223_s26 + $0x274] ss:$12 sps:$4 sm:$0xff]  }
 0x586   :  { %5270 = vmatpush2.bf16.msra.mxu0 %v12443_v61  ;;  %v12452_v61 = vld [vmem:[%s21223_s26 + $0x270] ss:$12 sps:$4 sm:$0xff]   ;;  %5310 = vmatprep.subr.bf16.mxu1 %v12450_v39 }
 0x587   :  { %v3300_v15 = vpop.permute.xlu0 %3299  ;;  %3525 = vrot.lane.b32.xlu1 %v16949_v36, %s20628_s5  ;;  %v3302_v51 = vpop.permute.xlu1 %3301  ;;  %5271 = vmatprep.subr.bf16.mxu0 %v12447_v16 }
 0x588   :  { %v3352_v0 = vsel %vm394_vm0, %v3298_v26, %v3300_v15  ;;  %v3353_v19 = vsel %vm394_vm0, %v3300_v15, %v3302_v51  ;;  %5311 = vmatpush2.bf16.msra.mxu1 %v12452_v61 }
 0x589   :  { %v16969_v3 = vmax.f32 %v3125_v62, %v3352_v0  ;;  %v16973_v22 = vmax.f32 %v3126_v21, %v3353_v19  ;;  %v12449_v62 = vld [vmem:[%s21223_s26 + $0xc0] ss:$12 sps:$4 sm:$0xff]   ;;  %v12458_v19 = vld [vmem:[%s21223_s26 + $0x258] ss:$12 sps:$4 sm:$0xff]  }
 0x58a   :  { %5272 = vmatpush2.bf16.msra.mxu0 %v12449_v62  ;;  %v12464_v62 = vld [vmem:[%s21223_s26 + $0x240] ss:$12 sps:$4 sm:$0xff]  }
 0x58b   :  { %v3258_v20 = vpop.permute.xlu0 %3257  ;;  %3561 = vrot.lane.b32.xlu0 %v16969_v3, %s20628_s5  ;;  %3563 = vrot.lane.b32.xlu1 %v16973_v22, %s20628_s5  ;;  %v3296_v15 = vpop.permute.xlu1 %3295 }
 0x58c   :  { %v3333_v48 = vsel %vm394_vm0, %v3258_v20, %v3260_v33  ;;  %v3351_v21 = vsel %vm394_vm0, %v3296_v15, %v3298_v26  ;;  %v3047_v15 = vmul.f32 %v16603_v29, %v16358_v43  ;;  %5327 = vmatprep.subr.bf16.mxu0 %v12455_v56  ;;  %v3115_v56 = vmax.f32 %v17065_v34, 0.0 }
 0x58d   :  { %v16995_v31 = vmax.f32 %v3105_v11, %v3333_v48  ;;  %v16999_v0 = vmax.f32 %v3124_v59, %v3351_v21  ;;  %v12456_v59 = vld [vmem:[%s21223_s26 + $0x25c] ss:$12 sps:$4 sm:$0xff]  }
 0x58e   :  { %5312 = vmatprep.subr.bf16.mxu1 %v12456_v59  ;;  %v17036_v2 = vadd.f32 %v16620_v18, %v3047_v15 }
 0x58f   :  { %v3266_v33 = vpop.permute.xlu0 %3265  ;;  %3521 = vrot.lane.b32.xlu0 %v16995_v31, %s20628_s5  ;;  %3559 = vrot.lane.b32.xlu1 %v16999_v0, %s20628_s5  ;;  %v3268_v26 = vpop.permute.xlu1 %3267 }
 0x590   :  { %v3336_v11 = vsel %vm394_vm0, %v3264_v57, %v3266_v33  ;;  %v3337_v9 = vsel %vm394_vm0, %v3266_v33, %v3268_v26  ;;  %v3046_v57 = vmul.f32 %v16603_v29, %v16347_v54  ;;  %5313 = vmatpush2.bf16.msra.mxu1 %v12458_v19  ;;  %v3133_v39 = vmax.f32 %v17036_v2, 0.0 }
 0x591   :  { %v17018_v17 = vmax.f32 %v3108_v12, %v3336_v11  ;;  %v17022_v20 = vmax.f32 %v3109_v45, %v3337_v9  ;;  %v12462_v45 = vld [vmem:[%s21223_s26 + $0x244] ss:$12 sps:$4 sm:$0xff]   ;;  %v17083_v9 = vadd.f32 %v16620_v18, %v3048_v55 }
 0x592   :  { %v17033_v12 = vadd.f32 %v16620_v18, %v3046_v57  ;;  %5314 = vmatprep.subr.bf16.mxu1 %v12462_v45 }
 0x593   :  { %v3304_v16 = vpop.permute.xlu0 %3303  ;;  %3527 = vrot.lane.b32.xlu0 %v17018_v17, %s20628_s5  ;;  %3529 = vrot.lane.b32.xlu1 %v17022_v20, %s20628_s5  ;;  %v3306_v50 = vpop.permute.xlu1 %3305  ;;  %v3134_v19 = vmax.f32 %v17083_v9, 0.0 }
 0x594   :  { %v3354_v54 = vsel %vm394_vm0, %v3302_v51, %v3304_v16  ;;  %v3355_v43 = vsel %vm394_vm0, %v3304_v16, %v3306_v50  ;;  %v3132_v51 = vmax.f32 %v17033_v12, 0.0  ;;  %5315 = vmatpush2.bf16.msra.mxu1 %v12464_v62 }
 0x595   :  { %v17048_v48 = vmax.f32 %v3127_v32, %v3354_v54  ;;  %v17052_v21 = vmax.f32 %v3128_v7, %v3355_v43  ;;  %v3030_v32 = vmul.f32 %v16595_v47, %v16413_v25  ;;  %v3049_v25 = vmul.f32 %v16603_v29, %v16424_v53 }
 0x596   :  { %v21224_v43 = vmax.f32 %v16708_v30, 0.0  ;;  %v21226_v30 = vmax.f32 %v16739_v6, 0.0 }
 0x597   :  { %3565 = vrot.lane.b32.xlu0 %v17048_v48, %s20628_s5  ;;  %3567 = vrot.lane.b32.xlu1 %v17052_v21, %s20628_s5  ;;  %v17068_v7 = vadd.f32 %v16601_v49, %v3030_v32  ;;  %v3270_v61 = vpop.permute.xlu0 %3269  ;;  %v3272_v33 = vpop.permute.xlu1 %3271  ;;  %v17086_v59 = vadd.f32 %v16620_v18, %v3049_v25  ;;  %v21227_v25 = vmax.f32 %v16715_v8, 0.0 }
 0x598   :  { %v3338_v15 = vsel %vm394_vm0, %v3268_v26, %v3270_v61  ;;  %v3339_v16 = vsel %vm394_vm0, %v3270_v61, %v3272_v33 }
 0x599   :  { %v3116_v11 = vmax.f32 %v17068_v7, 0.0  ;;  %v20623_v57 = vmax.f32 %v17086_v59, 0.0  ;;  %v17108_v54 = vmax.f32 %v3110_v5, %v3338_v15  ;;  %v17112_v45 = vmax.f32 %v21224_v43, %v3339_v16  ;;  %v12590_v7 = vld [vmem:[%s21223_s26 + $0x458] ss:$12 sps:$4 sm:$0xff]  }
 0x59b   :  { %3311 = vrot.lane.b32.xlu0 %v3132_v51, %s13090_s24  ;;  %3313 = vrot.lane.b32.xlu1 %v3133_v39, %s13090_s24  ;;  %v3308_v41 = vpop.permute.xlu0 %3307  ;;  %v17094_v53 = vpop.permute.xlu1 %3309 }
 0x59c   :  { %v3356_v26 = vsel %vm394_vm0, %v3306_v50, %v3308_v41  ;;  %v3357_v62 = vsel %vm394_vm0, %v3308_v41, %v17094_v53  ;;  %v21228_v41 = vmax.f32 %v16764_v24, 0.0 }
 0x59d   :  { %v17125_v5 = vmax.f32 %v21225_v58, %v3356_v26  ;;  %v17129_v61 = vmax.f32 %v21226_v30, %v3357_v62 }
 0x59f   :  { %3277 = vrot.lane.b32.xlu0 %v3115_v56, %s13090_s24  ;;  %3279 = vrot.lane.b32.xlu1 %v3116_v11, %s13090_s24  ;;  %v3274_v13 = vpop.permute.xlu0 %3273  ;;  %v17117_v32 = vpop.permute.xlu1 %3275 }
 0x5a0   :  { %v3340_v50 = vsel %vm394_vm0, %v3272_v33, %v3274_v13  ;;  %v3341_v55 = vsel %vm394_vm0, %v3274_v13, %v17117_v32  ;;  %v12509_v33 = vld [vmem:[%s21223_s26 + $0x52c] ss:$12 sps:$4 sm:$0xff]  }
 0x5a1   :  { %v17140_v40 = vmax.f32 %v21227_v25, %v3340_v50  ;;  %v17144_v6 = vmax.f32 %v21228_v41, %v3341_v55  ;;  %5370 = vmatprep.subr.bf16.mxu1 %v12509_v33  ;;  %v12453_v41 = vld [vmem:[%s21223_s26 + $0x3a8] ss:$12 sps:$4 sm:$0xff]  }
 0x5a3   :  { %3315 = vrot.lane.b32.xlu0 %v3134_v19, %s13090_s24  ;;  %3317 = vrot.lane.b32.xlu1 %v20623_v57, %s13090_s24 }
 0x5a7   :  { %3531 = vrot.lane.b32.xlu0 %v17108_v54, %s20628_s5  ;;  %3533 = vrot.lane.b32.xlu1 %v17112_v45, %s20628_s5 }
 0x5ab   :  { %3569 = vrot.lane.b32.xlu0 %v17125_v5, %s20628_s5  ;;  %3571 = vrot.lane.b32.xlu1 %v17129_v61, %s20628_s5 }
 0x5af   :  { %3535 = vrot.lane.b32.xlu0 %v17140_v40, %s20628_s5  ;;  %3537 = vrot.lane.b32.xlu1 %v17144_v6, %s20628_s5 }
 0x5f5   :  { %v3524_v15 = vpop.permute.xlu0 %3523 }
 0x5f9   :  { %v3526_v16 = vpop.permute.xlu1 %3525 }
 0x5fa   :  { %v3598_v8 = vsel %vm950_vm2, %v3524_v15, %v3526_v16 }
 0x5fb   :  { %v3672_v62 = vmax.f32 %v16930_v42, %v3598_v8  ;;  %v12461_v42 = vld [vmem:[%s21223_s26 + $0x394] ss:$12 sps:$4 sm:$0xff]  }
 0x5fd   :  { %v3562_v43 = vpop.permute.xlu0 %3561  ;;  %v3564_v26 = vpop.permute.xlu1 %3563 }
 0x5fe   :  { %v3616_v24 = vsel %vm950_vm2, %v3562_v43, %v3564_v26 }
 0x5ff   :  { %v3691_v13 = vmax.f32 %v16969_v3, %v3616_v24  ;;  %v12467_v24 = vld [vmem:[%s21223_s26 + $0x37c] ss:$12 sps:$4 sm:$0xff]  }
 0x601   :  { %v3522_v58 = vpop.permute.xlu0 %3521  ;;  %v3560_v30 = vpop.permute.xlu1 %3559  ;;  %v17157_v50 = vpack.c.bf16 %v3691_v13, %v3672_v62 }
 0x602   :  { %v3597_v55 = vsel %vm950_vm2, %v3522_v58, %v3524_v15  ;;  %v3615_v25 = vsel %vm950_vm2, %v3560_v30, %v3562_v43  ;;  %v12459_v43 = vld [vmem:[%s21223_s26 + $0x390] ss:$12 sps:$4 sm:$0xff]  }
 0x603   :  { %v3671_v33 = vmax.f32 %v16995_v31, %v3597_v55  ;;  %v3690_v57 = vmax.f32 %v16999_v0, %v3615_v25  ;;  %5273 = vmatprep.mubr.bf16.mxu0 %v17157_v50 }
 0x605   :  { %v3528_v3 = vpop.permute.xlu0 %3527  ;;  %v17170_v8 = vpop.permute.xlu1 %3529  ;;  %v17172_v15 = vpack.c.bf16 %v3690_v57, %v3671_v33  ;;  %v12507_v33 = vld [vmem:[%s21223_s26 + $0x528] ss:$12 sps:$4 sm:$0xff]  }
 0x606   :  { %v3599_v31 = vsel %vm950_vm2, %v3526_v16, %v3528_v3  ;;  %v3600_v0 = vsel %vm950_vm2, %v3528_v3, %v17170_v8 }
 0x607   :  { %5274 = vmatmul.mubr.bf16.vlgmr.msra.gmra.mxu0 %v17172_v15  ;;  %v3673_v30 = vmax.f32 %v16949_v36, %v3599_v31  ;;  %v3674_v16 = vmax.f32 %v17018_v17, %v3600_v0 }
 0x608   :  { %5328 = vmatpush1.bf16.msra.mxu0 %v12453_v41  ;;  %v12465_v41 = vld [vmem:[%s21223_s26 + $0x378] ss:$12 sps:$4 sm:$0xff]  }
 0x609   :  { %v3566_v62 = vpop.permute.xlu0 %3565  ;;  %v17184_v13 = vpop.permute.xlu1 %3567  ;;  %5329 = vmatprep.subr.bf16.mxu0 %v12461_v42 }
 0x60a   :  { %v3617_v57 = vsel %vm950_vm2, %v3564_v26, %v3566_v62  ;;  %v3618_v58 = vsel %vm950_vm2, %v3566_v62, %v17184_v13  ;;  %v12470_v26 = vld [vmem:[%s21223_s26 + $0x364] ss:$12 sps:$4 sm:$0xff]  }
 0x60b   :  { %v3692_v55 = vmax.f32 %v16973_v22, %v3617_v57  ;;  %v3693_v25 = vmax.f32 %v17048_v48, %v3618_v58  ;;  %v12471_v58 = vld [vmem:[%s21223_s26 + $0x348] ss:$12 sps:$4 sm:$0xff]  }
 0x60c   :  { %5330 = vmatpush1.bf16.msra.mxu0 %v12459_v43  ;;  %v21229_v43 = vmax.f32 %v16742_v10, 0.0 }
 0x60d   :  { %v3312_v36 = vpop.permute.xlu0 %3311  ;;  %v3314_v42 = vpop.permute.xlu1 %3313  ;;  %5331 = vmatprep.subr.bf16.mxu0 %v12467_v24  ;;  %v17202_v17 = vpack.c.bf16 %v3693_v25, %v3674_v16  ;;  %v17204_v22 = vpack.c.bf16 %v3692_v55, %v3673_v30  ;;  %v12512_v24 = vld [vmem:[%s21223_s26 + $0x514] ss:$12 sps:$4 sm:$0xff]   ;;  %v12510_v30 = vld [vmem:[%s21223_s26 + $0x510] ss:$12 sps:$4 sm:$0xff]   ;;  %v21230_v55 = vmax.f32 %v16767_v38, 0.0 }
 0x60e   :  { %v3358_v48 = vsel %vm394_vm0, %v17094_v53, %v3312_v36  ;;  %v3359_v3 = vsel %vm394_vm0, %v3312_v36, %v3314_v42  ;;  %v12468_v53 = vld [vmem:[%s21223_s26 + $0x360] ss:$12 sps:$4 sm:$0xff]   ;;  %v12515_v16 = vld [vmem:[%s21223_s26 + $0x4fc] ss:$12 sps:$4 sm:$0xff]  }
 0x60f   :  { %v17211_v31 = vmax.f32 %v21229_v43, %v3358_v48  ;;  %v17215_v0 = vmax.f32 %v3132_v51, %v3359_v3  ;;  %5316 = vmatprep.mubr.bf16.mxu1 %v17202_v17  ;;  %v12473_v51 = vld [vmem:[%s21223_s26 + $0x34c] ss:$12 sps:$4 sm:$0xff]   ;;  %v12474_v3 = vld [vmem:[%s21223_s26 + $0x330] ss:$12 sps:$4 sm:$0xff]  }
 0x610   :  { %5332 = vmatpush1.bf16.msra.mxu0 %v12465_v41  ;;  %5317 = vmatmul.mubr.bf16.vlgmr.msra.gmra.mxu1 %v17204_v22  ;;  %v3031_v41 = vmul.f32 %v16595_v47, %v16454_v35  ;;  %v12476_v35 = vld [vmem:[%s21223_s26 + $0x334] ss:$12 sps:$4 sm:$0xff]   ;;  %v12518_v43 = vld [vmem:[%s21223_s26 + $0x4e4] ss:$12 sps:$4 sm:$0xff]  }
 0x611   :  { %v3278_v10 = vpop.permute.xlu0 %3277  ;;  %3573 = vrot.lane.b32.xlu0 %v17211_v31, %s20628_s5  ;;  %3575 = vrot.lane.b32.xlu1 %v17215_v0, %s20628_s5  ;;  %v17229_v12 = vpop.permute.xlu1 %3279 }
 0x612   :  { %v3342_v62 = vsel %vm394_vm0, %v17117_v32, %v3278_v10  ;;  %v3343_v57 = vsel %vm394_vm0, %v3278_v10, %v17229_v12  ;;  %5333 = vmatprep.subr.bf16.mxu0 %v12470_v26  ;;  %5371 = vmatpush1.bf16.msra.mxu1 %v12507_v33  ;;  %v3032_v26 = vmul.f32 %v16595_v47, %v16473_v37  ;;  %v12513_v37 = vld [vmem:[%s21223_s26 + $0x4f8] ss:$12 sps:$4 sm:$0xff]  }
 0x613   :  { %v17249_v32 = vmax.f32 %v21230_v55, %v3342_v62  ;;  %v17253_v25 = vmax.f32 %v3115_v56, %v3343_v57  ;;  %5372 = vmatprep.subr.bf16.mxu1 %v12512_v24  ;;  %v17266_v34 = vadd.f32 %v16601_v49, %v3031_v41  ;;  %v3051_v62 = vmul.f32 %v16603_v29, %v16468_v28  ;;  %v12479_v57 = vld [vmem:[%s21223_s26 + $0x31c] ss:$12 sps:$4 sm:$0xff]   ;;  %v12521_v28 = vld [vmem:[%s21223_s26 + $0x4cc] ss:$12 sps:$4 sm:$0xff]  }
 0x614   :  { %5334 = vmatpush1.bf16.msra.mxu0 %v12468_v53  ;;  %v17269_v56 = vadd.f32 %v16601_v49, %v3032_v26  ;;  %v21231_v53 = vld [vmem:[#allocation48_spill] sm:$0xff]  ;;  %v3033_v26 = vmul.f32 %v16595_v47, %v16492_v60 }
 0x615   :  { %v3316_v33 = vpop.permute.xlu0 %3315  ;;  %3539 = vrot.lane.b32.xlu0 %v17249_v32, %s20628_s5  ;;  %3541 = vrot.lane.b32.xlu1 %v17253_v25, %s20628_s5  ;;  %v17263_v38 = vpop.permute.xlu1 %3317  ;;  %v3050_v10 = vmul.f32 %v16603_v29, %v21231_v53  ;;  %v17325_v41 = vadd.f32 %v16620_v18, %v3051_v62  ;;  %v3053_v62 = vmul.f32 %v16603_v29, %v16501_v14 }
 0x616   :  { %v3360_v36 = vsel %vm394_vm0, %v3314_v42, %v3316_v33  ;;  %v3361_v48 = vsel %vm394_vm0, %v3316_v33, %v17263_v38  ;;  %5335 = vmatprep.subr.bf16.mxu0 %v12473_v51  ;;  %5373 = vmatpush1.bf16.msra.mxu1 %v12510_v30  ;;  %v20625_v9 = vmax.f32 %v17269_v56, 0.0  ;;  %v12477_v30 = vld [vmem:[%s21223_s26 + $0x318] ss:$12 sps:$4 sm:$0xff]   ;;  %v3034_v33 = vmul.f32 %v16595_v47, %v16504_v1 }
 0x617   :  { %v17288_v24 = vmax.f32 %v3133_v39, %v3360_v36  ;;  %v17292_v42 = vmax.f32 %v3134_v19, %v3361_v48  ;;  %5374 = vmatprep.subr.bf16.mxu1 %v12515_v16  ;;  %v3117_v39 = vmax.f32 %v17266_v34, 0.0  ;;  %v17305_v19 = vadd.f32 %v16620_v18, %v3050_v10  ;;  %v12516_v16 = vld [vmem:[%s21223_s26 + $0x4e0] ss:$12 sps:$4 sm:$0xff]   ;;  %v12482_v48 = vld [vmem:[%s21223_s26 + $0x304] ss:$12 sps:$4 sm:$0xff]  }
 0x618   :  { %5336 = vmatpush1.bf16.msra.mxu0 %v12471_v58  ;;  %v17346_v1 = vadd.f32 %v16601_v49, %v3033_v26  ;;  %v17349_v36 = vadd.f32 %v16601_v49, %v3034_v33  ;;  %v20624_v53 = vmax.f32 %v17325_v41, 0.0  ;;  %v3052_v10 = vmul.f32 %v16603_v29, %v16488_v63  ;;  %v12522_v63 = vld [vmem:[%s21223_s26 + $0x4b0] ss:$12 sps:$4 sm:$0xff]  }
 0x619   :  { %v17296_v51 = vpop.permute.xlu0 %3531  ;;  %3577 = vrot.lane.b32.xlu0 %v17288_v24, %s20628_s5  ;;  %3579 = vrot.lane.b32.xlu1 %v17292_v42, %s20628_s5  ;;  %v3534_v2 = vpop.permute.xlu1 %3533 }
 0x61a   :  { %v3602_v58 = vsel %vm950_vm2, %v17296_v51, %v3534_v2  ;;  %5337 = vmatprep.subr.bf16.mxu0 %v12476_v35  ;;  %5375 = vmatpush1.bf16.msra.mxu1 %v12513_v37  ;;  %v3136_v37 = vmax.f32 %v17305_v19, 0.0  ;;  %v3055_v19 = vmul.f32 %v16603_v29, %v16534_v4 }
 0x61b   :  { %v3676_v55 = vmax.f32 %v17108_v54, %v3602_v58  ;;  %5376 = vmatprep.subr.bf16.mxu1 %v12518_v43  ;;  %v12524_v58 = vld [vmem:[%s21223_s26 + $0x4b4] ss:$12 sps:$4 sm:$0xff]  }
 0x61c   :  { %5338 = vmatpush1.bf16.msra.mxu0 %v12474_v3  ;;  %v12519_v3 = vld [vmem:[%s21223_s26 + $0x4c8] ss:$12 sps:$4 sm:$0xff]   ;;  %v17735_v4 = vadd.f32 %v16620_v18, %v3055_v19 }
 0x61d   :  { %3714 = vst [vmem:[#allocation4 + $0x28] sm:$0xff] %v3676_v55  ;;  %v17331_v35 = vpop.permute.xlu0 %3569  ;;  %3281 = vrot.lane.b32.xlu0 %v3117_v39, %s13090_s24  ;;  %3283 = vrot.lane.b32.xlu1 %v20625_v9, %s13090_s24  ;;  %v17339_v54 = vpop.permute.xlu1 %3571  ;;  %v12491_v9 = vld [vmem:[%s21223_s26 + $0x43c] ss:$12 sps:$4 sm:$0xff]  }
 0x61e   :  { %v3620_v60 = vsel %vm950_vm2, %v17331_v35, %v17339_v54  ;;  %5339 = vmatprep.subr.bf16.mxu0 %v12479_v57  ;;  %5377 = vmatpush1.bf16.msra.mxu1 %v12516_v16  ;;  %v12480_v57 = vld [vmem:[%s21223_s26 + $0x300] ss:$12 sps:$4 sm:$0xff]  }
 0x61f   :  { %v3695_v43 = vmax.f32 %v17125_v5, %v3620_v60  ;;  %5378 = vmatprep.subr.bf16.mxu1 %v12521_v28  ;;  %v12485_v5 = vld [vmem:[%s21223_s26 + $0x46c] ss:$12 sps:$4 sm:$0xff]   ;;  %v17387_v28 = vadd.f32 %v16620_v18, %v3053_v62  ;;  %v20626_v62 = vmax.f32 %v17346_v1, 0.0 }
 0x620   :  { %5340 = vmatpush1.bf16.msra.mxu0 %v12477_v30  ;;  %v17384_v30 = vadd.f32 %v16620_v18, %v3052_v10  ;;  %v17835_v19 = vld [vmem:[#allocation4 + $0x128] sm:$0xff] }
 0x621   :  { %3733 = vst [vmem:[#allocation4 + $0xc0] sm:$0xff] %v3695_v43  ;;  %v3536_v14 = vpop.permute.xlu0 %3535  ;;  %3319 = vrot.lane.b32.xlu0 %v3136_v37, %s13090_s24  ;;  %3321 = vrot.lane.b32.xlu1 %v20624_v53, %s13090_s24  ;;  %v17381_v16 = vpop.permute.xlu1 %3537  ;;  %v17389_v26 = vpack.c.bf16 %v3695_v43, %v3676_v55  ;;  %v20627_v55 = vmax.f32 %v17349_v36, 0.0  ;;  %v12525_v43 = vld [vmem:[%s21223_s26 + $0x498] ss:$12 sps:$4 sm:$0xff]  }
 0x622   :  { %v17392_v33 = vsel %vm950_vm2, %v3534_v2, %v3536_v14  ;;  %v17396_v60 = vsel %vm950_vm2, %v3536_v14, %v17381_v16  ;;  %5341 = vmatprep.subr.bf16.mxu0 %v12482_v48  ;;  %5379 = vmatpush1.bf16.msra.mxu1 %v12519_v3  ;;  %v12483_v2 = vld [vmem:[%s21223_s26 + $0x468] ss:$12 sps:$4 sm:$0xff]   ;;  %v12486_v14 = vld [vmem:[%s21223_s26 + $0x450] ss:$12 sps:$4 sm:$0xff]  }
 0x623   :  { %v3677_v53 = vmax.f32 %v17112_v45, %v17392_v33  ;;  %v3678_v10 = vmax.f32 %v17140_v40, %v17396_v60  ;;  %5359 = vmatprep.mubr.bf16.mxu0 %v17389_v26  ;;  %5380 = vmatprep.subr.bf16.mxu1 %v12524_v58  ;;  %v12527_v48 = vld [vmem:[%s21223_s26 + $0x49c] ss:$12 sps:$4 sm:$0xff]   ;;  %v12488_v3 = vld [vmem:[%s21223_s26 + $0x454] ss:$12 sps:$4 sm:$0xff]   ;;  %v3138_v58 = vmax.f32 %v17384_v30, 0.0 }
 0x624   :  { %5342 = vmatpush1.bf16.msra.mxu0 %v12480_v57  ;;  %v3139_v57 = vmax.f32 %v17387_v28, 0.0  ;;  %v12582_v40 = vld [vmem:[%s21223_s26 + $0x158] ss:$12 sps:$4 sm:$0xff]   ;;  %v17830_v30 = vld [vmem:[#allocation4 + $0x90] sm:$0xff] }
 0x625   :  { %3285 = vrot.lane.b32.xlu0 %v20626_v62, %s13090_s24  ;;  %3287 = vrot.lane.b32.xlu1 %v20627_v55, %s13090_s24  ;;  %v12530_v62 = vld [vmem:[%s21223_s26 + $0x484] ss:$12 sps:$4 sm:$0xff]   ;;  %v12528_v55 = vld [vmem:[%s21223_s26 + $0x480] ss:$12 sps:$4 sm:$0xff]  }
 0x626   :  { %5343 = vmatprep.subr.bf16.mxu0 %v12485_v5  ;;  %5381 = vmatpush1.bf16.msra.mxu1 %v12522_v63  ;;  %v12533_v5 = vld [vmem:[%s21223_s26 + $0x5ec] ss:$12 sps:$4 sm:$0xff]  }
 0x627   :  { %5382 = vmatprep.subr.bf16.mxu1 %v12527_v48  ;;  %v12489_v63 = vld [vmem:[%s21223_s26 + $0x438] ss:$12 sps:$4 sm:$0xff]   ;;  %v12492_v48 = vld [vmem:[%s21223_s26 + $0x420] ss:$12 sps:$4 sm:$0xff]  }
 0x628   :  { %5344 = vmatpush2.bf16.msra.mxu0 %v12483_v2  ;;  %v12494_v2 = vld [vmem:[%s21223_s26 + $0x424] ss:$12 sps:$4 sm:$0xff]  }
 0x629   :  { %3323 = vrot.lane.b32.xlu0 %v3138_v58, %s13090_s24  ;;  %3325 = vrot.lane.b32.xlu1 %v3139_v57, %s13090_s24 }
 0x62a   :  { %5345 = vmatprep.subr.bf16.mxu0 %v12488_v3  ;;  %5383 = vmatpush1.bf16.msra.mxu1 %v12525_v43  ;;  %v12536_v3 = vld [vmem:[%s21223_s26 + $0x5d4] ss:$12 sps:$4 sm:$0xff]   ;;  %v12534_v43 = vld [vmem:[%s21223_s26 + $0x5d0] ss:$12 sps:$4 sm:$0xff]  }
 0x62b   :  { %5384 = vmatprep.subr.bf16.mxu1 %v12530_v62  ;;  %v12531_v62 = vld [vmem:[%s21223_s26 + $0x5e8] ss:$12 sps:$4 sm:$0xff]  }
 0x62c   :  { %5346 = vmatpush2.bf16.msra.mxu0 %v12486_v14  ;;  %v12495_v14 = vld [vmem:[%s21223_s26 + $0x408] ss:$12 sps:$4 sm:$0xff]  }
 0x62d   :  { %5347 = vmatprep.subr.bf16.mxu0 %v12491_v9  ;;  %v12497_v9 = vld [vmem:[%s21223_s26 + $0x40c] ss:$12 sps:$4 sm:$0xff]  }
 0x62e   :  { %5385 = vmatpush1.bf16.msra.mxu1 %v12528_v55  ;;  %v12542_v55 = vld [vmem:[%s21223_s26 + $0x5bc] ss:$12 sps:$4 sm:$0xff]  }
 0x62f   :  { %5386 = vmatprep.subr.bf16.mxu1 %v12533_v5  ;;  %v12500_v5 = vld [vmem:[%s21223_s26 + $0x3f4] ss:$12 sps:$4 sm:$0xff]  }
 0x630   :  { %5348 = vmatpush2.bf16.msra.mxu0 %v12489_v63  ;;  %v12540_v63 = vld [vmem:[%s21223_s26 + $0x5b8] ss:$12 sps:$4 sm:$0xff]  }
 0x631   :  { %5349 = vmatprep.subr.bf16.mxu0 %v12494_v2  ;;  %v12548_v2 = vld [vmem:[%s21223_s26 + $0x5a4] ss:$12 sps:$4 sm:$0xff]  }
 0x632   :  { %5387 = vmatpush2.bf16.msra.mxu1 %v12531_v62  ;;  %v12503_v62 = vld [vmem:[%s21223_s26 + $0x3dc] ss:$12 sps:$4 sm:$0xff]  }
 0x633   :  { %5388 = vmatprep.subr.bf16.mxu1 %v12536_v3  ;;  %v12546_v3 = vld [vmem:[%s21223_s26 + $0x5a0] ss:$12 sps:$4 sm:$0xff]  }
 0x634   :  { %5350 = vmatpush2.bf16.msra.mxu0 %v12492_v48  ;;  %v12498_v48 = vld [vmem:[%s21223_s26 + $0x3f0] ss:$12 sps:$4 sm:$0xff]  }
 0x635   :  { %5351 = vmatprep.subr.bf16.mxu0 %v12497_v9  ;;  %v12554_v9 = vld [vmem:[%s21223_s26 + $0x58c] ss:$12 sps:$4 sm:$0xff]  }
 0x636   :  { %5389 = vmatpush2.bf16.msra.mxu1 %v12534_v43  ;;  %v12501_v43 = vld [vmem:[%s21223_s26 + $0x3d8] ss:$12 sps:$4 sm:$0xff]  }
 0x637   :  { %5390 = vmatprep.subr.bf16.mxu1 %v12542_v55  ;;  %v12506_v55 = vld [vmem:[%s21223_s26 + $0x3c4] ss:$12 sps:$4 sm:$0xff]  }
 0x638   :  { %5352 = vmatpush2.bf16.msra.mxu0 %v12495_v14  ;;  %v3619_v14 = vsel %vm950_vm2, %v17184_v13, %v17331_v35  ;;  %v12539_v35 = vld [vmem:[%s21223_s26 + $0x6ac] ss:$12 sps:$4 sm:$0xff]  }
 0x639   :  { %5353 = vmatprep.subr.bf16.mxu0 %v12500_v5  ;;  %v12552_v5 = vld [vmem:[%s21223_s26 + $0x588] ss:$12 sps:$4 sm:$0xff]   ;;  %v3694_v13 = vmax.f32 %v17052_v21, %v3619_v14 }
 0x63a   :  { %5391 = vmatpush2.bf16.msra.mxu1 %v12540_v63  ;;  %v12560_v63 = vld [vmem:[%s21223_s26 + $0x574] ss:$12 sps:$4 sm:$0xff]   ;;  %v12551_v14 = vld [vmem:[%s21223_s26 + $0x67c] ss:$12 sps:$4 sm:$0xff]  }
 0x63b   :  { %5392 = vmatprep.subr.bf16.mxu1 %v12548_v2  ;;  %v3601_v2 = vsel %vm950_vm2, %v17170_v8, %v17296_v51  ;;  %v12566_v8 = vld [vmem:[%s21223_s26 + $0x55c] ss:$12 sps:$4 sm:$0xff]  }
 0x63c   :  { %5354 = vmatpush2.bf16.msra.mxu0 %v12498_v48  ;;  %v12504_v48 = vld [vmem:[%s21223_s26 + $0x3c0] ss:$12 sps:$4 sm:$0xff]   ;;  %v12537_v21 = vld [vmem:[%s21223_s26 + $0x6a8] ss:$12 sps:$4 sm:$0xff]  }
 0x63d   :  { %5355 = vmatprep.subr.bf16.mxu0 %v12503_v62  ;;  %v12558_v62 = vld [vmem:[%s21223_s26 + $0x570] ss:$12 sps:$4 sm:$0xff]  }
 0x63e   :  { %5393 = vmatpush2.bf16.msra.mxu1 %v12546_v3  ;;  %v3675_v3 = vmax.f32 %v17022_v20, %v3601_v2  ;;  %v12564_v20 = vld [vmem:[%s21223_s26 + $0x558] ss:$12 sps:$4 sm:$0xff]  }
 0x63f   :  { %5394 = vmatprep.subr.bf16.mxu1 %v12554_v9  ;;  %v12545_v9 = vld [vmem:[%s21223_s26 + $0x694] ss:$12 sps:$4 sm:$0xff]   ;;  %v12549_v2 = vld [vmem:[%s21223_s26 + $0x678] ss:$12 sps:$4 sm:$0xff]  }
 0x640   :  { %5356 = vmatpush2.bf16.msra.mxu0 %v12501_v43  ;;  %v17529_v51 = vpack.c.bf16 %v3694_v13, %v3675_v3  ;;  %v12572_v43 = vld [vmem:[%s21223_s26 + $0x544] ss:$12 sps:$4 sm:$0xff]   ;;  %v12555_v13 = vld [vmem:[%s21223_s26 + $0x660] ss:$12 sps:$4 sm:$0xff]  }
 0x641   :  { %5357 = vmatprep.subr.bf16.mxu0 %v12506_v55  ;;  %v12543_v55 = vld [vmem:[%s21223_s26 + $0x690] ss:$12 sps:$4 sm:$0xff]   ;;  %v12569_v3 = vld [vmem:[%s21223_s26 + $0x634] ss:$12 sps:$4 sm:$0xff]  }
 0x642   :  { %5395 = vmatpush2.bf16.msra.mxu1 %v12552_v5  ;;  %v12570_v5 = vld [vmem:[%s21223_s26 + $0x540] ss:$12 sps:$4 sm:$0xff]  }
 0x643   :  { %5396 = vmatprep.subr.bf16.mxu1 %v12560_v63  ;;  %v12579_v63 = vld [vmem:[%s21223_s26 + $0x170] ss:$12 sps:$4 sm:$0xff]  }
 0x644   :  { %5358 = vmatpush2.bf16.msra.mxu0 %v12504_v48  ;;  %v12557_v48 = vld [vmem:[%s21223_s26 + $0x664] ss:$12 sps:$4 sm:$0xff]  }
 0x645   :  { %5413 = vmatprep.subr.bf16.mxu0 %v12539_v35  ;;  %v12563_v35 = vld [vmem:[%s21223_s26 + $0x64c] ss:$12 sps:$4 sm:$0xff]  }
 0x646   :  { %5397 = vmatpush2.bf16.msra.mxu1 %v12558_v62  ;;  %v12561_v62 = vld [vmem:[%s21223_s26 + $0x648] ss:$12 sps:$4 sm:$0xff]  }
 0x647   :  { %5360 = vmatmul.mubr.bf16.vlgmr.msra.gmra.mxu0 %v17529_v51  ;;  %5398 = vmatprep.subr.bf16.mxu1 %v12566_v8  ;;  %v12567_v8 = vld [vmem:[%s21223_s26 + $0x630] ss:$12 sps:$4 sm:$0xff]  }
 0x648   :  { %5414 = vmatpush1.bf16.msra.mxu0 %v12537_v21  ;;  %v12575_v21 = vld [vmem:[%s21223_s26 + $0x61c] ss:$12 sps:$4 sm:$0xff]  }
 0x649   :  { %5415 = vmatprep.subr.bf16.mxu0 %v12545_v9  ;;  %v12573_v9 = vld [vmem:[%s21223_s26 + $0x618] ss:$12 sps:$4 sm:$0xff]  }
 0x64a   :  { %5399 = vmatpush2.bf16.msra.mxu1 %v12564_v20  ;;  %v12578_v20 = vld [vmem:[%s21223_s26 + $0x604] ss:$12 sps:$4 sm:$0xff]  }
 0x64b   :  { %5400 = vmatprep.subr.bf16.mxu1 %v12572_v43  ;;  %v4065_v43 = vld [vmem:[%s21223_s26 + $0x6c0] sm:$0x33] }
 0x64c   :  { %5416 = vmatpush1.bf16.msra.mxu0 %v12543_v55  ;;  %v12576_v55 = vld [vmem:[%s21223_s26 + $0x600] ss:$12 sps:$4 sm:$0xff]  }
 0x64d   :  { %5417 = vmatprep.subr.bf16.mxu0 %v12551_v14  ;;  %v11404_v14 = vcombine.high %v4065_v43, %v4065_v43 }
 0x64e   :  { %5401 = vmatpush2.bf16.msra.mxu1 %v12570_v5  ;;  %v11403_v5 = vcombine.low %v4065_v43, %v4065_v43 }
 0x64f   :  { %11852 = vmatprep.subr.bf16.mxu1 %v12579_v63 }
 0x650   :  { %5418 = vmatpush1.bf16.msra.mxu0 %v12549_v2  ;;  %v5233_v63 = vsel %vm20635_vm7, %v11403_v5, 0  ;;  %v12586_v2 = vld [vmem:[%s21223_s26 + $0x470] ss:$12 sps:$4 sm:$0xff]  }
 0x651   :  { %5419 = vmatprep.subr.bf16.mxu0 %v12557_v48 }
 0x654   :  { %5420 = vmatpush1.bf16.msra.mxu0 %v12555_v13 }
 0x655   :  { %5421 = vmatprep.subr.bf16.mxu0 %v12563_v35 }
 0x658   :  { %5422 = vmatpush1.bf16.msra.mxu0 %v12561_v62 }
 0x659   :  { %5423 = vmatprep.subr.bf16.mxu0 %v12569_v3 }
 0x65c   :  { %5424 = vmatpush1.bf16.msra.mxu0 %v12567_v8 }
 0x65d   :  { %5425 = vmatprep.subr.bf16.mxu0 %v12575_v21 }
 0x660   :  { %5426 = vmatpush1.bf16.msra.mxu0 %v12573_v9 }
 0x661   :  { %5427 = vmatprep.subr.bf16.mxu0 %v12578_v20 }
 0x664   :  { %5428 = vmatpush1.bf16.msra.mxu0 %v12576_v55 }
 0x665   :  { %11406 = vmatprep.subr.msk.bf16.mxu0 %vm20635_vm7, %v11404_v14 }
 0x668   :  { %5444 = vmatpush2.bf16.msra.mxu0 %v5233_v63 }
 0x669   :  { %11896 = vmatprep.subr.bf16.mxu0 %v12586_v2 }
 0x683   :  { %v3574_v48 = vpop.permute.xlu0 %3573  ;;  %v3576_v13 = vpop.permute.xlu1 %3575 }
 0x684   :  { %v3621_v35 = vsel %vm950_vm2, %v17339_v54, %v3574_v48  ;;  %v3622_v62 = vsel %vm950_vm2, %v3574_v48, %v3576_v13  ;;  %v12580_v54 = vld [vmem:[%s21223_s26 + $0xb0] ss:$12 sps:$4 sm:$0xff]  }
 0x685   :  { %v3696_v3 = vmax.f32 %v17129_v61, %v3621_v35  ;;  %v3697_v8 = vmax.f32 %v17211_v31, %v3622_v62 }
 0x687   :  { %v3540_v21 = vpop.permute.xlu0 %3539  ;;  %v17599_v9 = vpop.permute.xlu1 %3541  ;;  %v17604_v20 = vpack.c.bf16 %v3697_v8, %v3678_v10  ;;  %v17609_v43 = vpack.c.bf16 %v3696_v3, %v3677_v53  ;;  %v3035_v3 = vmul.f32 %v16595_v47, %v16521_v46 }
 0x688   :  { %v3605_v61 = vsel %vm950_vm2, %v17381_v16, %v3540_v21  ;;  %v3606_v31 = vsel %vm950_vm2, %v3540_v21, %v17599_v9  ;;  %v12584_v16 = vld [vmem:[%s21223_s26 + $0x98] ss:$12 sps:$4 sm:$0xff]  }
 0x689   :  { %v3679_v60 = vmax.f32 %v17144_v6, %v3605_v61  ;;  %v3680_v45 = vmax.f32 %v17249_v32, %v3606_v31  ;;  %5402 = vmatprep.mubr.bf16.mxu1 %v17604_v20  ;;  %v12585_v32 = vld [vmem:[%s21223_s26 + $0x140] ss:$12 sps:$4 sm:$0xff]   ;;  %v17687_v21 = vadd.f32 %v16601_v49, %v3035_v3  ;;  %v12592_v61 = vld [vmem:[%s21223_s26 + $0x398] ss:$12 sps:$4 sm:$0xff]   ;;  %v21233_v3 = vmax.f32 %v17269_v56, 0.0 }
 0x68a   :  { %5403 = vmatmul.mubr.bf16.vlgmr.msra.gmra.mxu1 %v17609_v43 }
 0x68b   :  { %3718 = vst [vmem:[#allocation4 + $0x48] sm:$0xff] %v3680_v45  ;;  %v3578_v53 = vpop.permute.xlu0 %3577  ;;  %v17625_v33 = vpop.permute.xlu1 %3579  ;;  %11853 = vmatpush3.bf16.msra.mxu1 %v12580_v54  ;;  %5488 = vmatprep.mubr.bf16.mxu1 %v17157_v50  ;;  %v12591_v54 = vld [vmem:[%s21223_s26 + $0x68] ss:$12 sps:$4 sm:$0xff]  }
 0x68c   :  { %v3623_v10 = vsel %vm950_vm2, %v3576_v13, %v3578_v53  ;;  %v3624_v6 = vsel %vm950_vm2, %v3578_v53, %v17625_v33  ;;  %11854 = vmatprep.subr.bf16.mxu1 %v12582_v40  ;;  %v12593_v40 = vld [vmem:[%s21223_s26 + $0x110] ss:$12 sps:$4 sm:$0xff]   ;;  %v3121_v53 = vmax.f32 %v17687_v21, 0.0 }
 0x68d   :  { %v3698_v55 = vmax.f32 %v17215_v0, %v3623_v10  ;;  %v3699_v14 = vmax.f32 %v17288_v24, %v3624_v6  ;;  %v12587_v0 = vld [vmem:[%s21223_s26 + $0x80] ss:$12 sps:$4 sm:$0xff]   ;;  %v12588_v24 = vld [vmem:[%s21223_s26 + $0x3b0] ss:$12 sps:$4 sm:$0xff]   ;;  %v12598_v10 = vld [vmem:[%s21223_s26 + $0x428] ss:$12 sps:$4 sm:$0xff]  }
 0x68e   :  { %v12600_v6 = vld [vmem:[%s21223_s26 + $0x368] ss:$12 sps:$4 sm:$0xff]  }
 0x68f   :  { %3737 = vst [vmem:[#allocation4 + $0xe0] sm:$0xff] %v3699_v14  ;;  %v3282_v50 = vpop.permute.xlu0 %3281  ;;  %v17639_v5 = vpop.permute.xlu1 %3283  ;;  %11855 = vmatpush3.bf16.msra.mxu1 %v12584_v16  ;;  %v17641_v63 = vpack.c.bf16 %v3699_v14, %v3680_v45  ;;  %v17643_v2 = vpack.c.bf16 %v3698_v55, %v3679_v60  ;;  %v3141_v55 = vmax.f32 %v17735_v4, 0.0  ;;  %v12601_v14 = vld [vmem:[%s21223_s26 + $0xe0] ss:$12 sps:$4 sm:$0xff]  }
 0x690   :  { %v3344_v48 = vsel %vm394_vm0, %v17229_v12, %v3282_v50  ;;  %v3345_v13 = vsel %vm394_vm0, %v3282_v50, %v17639_v5  ;;  %11856 = vmatprep.subr.bf16.mxu1 %v12585_v32  ;;  %v12589_v12 = vld [vmem:[%s21223_s26 + $0x128] ss:$12 sps:$4 sm:$0xff]   ;;  %v12602_v50 = vld [vmem:[%s21223_s26 + $0x410] ss:$12 sps:$4 sm:$0xff]  }
 0x691   :  { %v17657_v35 = vmax.f32 %v3116_v11, %v3344_v48  ;;  %v17661_v62 = vmax.f32 %v3117_v39, %v3345_v13  ;;  %11407 = vmatprep.mubr.msk.bf16.mxu0 %vm5227_vm8, %v17641_v63  ;;  %v3036_v39 = vmul.f32 %v16595_v47, %v16538_v23  ;;  %v21232_v23 = vmax.f32 %v17086_v59, 0.0  ;;  %v12594_v59 = vld [vmem:[%s21223_s26 + $0x440] ss:$12 sps:$4 sm:$0xff]  }
 0x692   :  { %5446 = vmatmul.mubr.bf16.vlgmr.msra.gmra.mxu0 %v17643_v2 }
 0x693   :  { %v3320_v11 = vpop.permute.xlu0 %3319  ;;  %3543 = vrot.lane.b32.xlu0 %v17657_v35, %s20628_s5  ;;  %3545 = vrot.lane.b32.xlu1 %v17661_v62, %s20628_s5  ;;  %v17678_v34 = vpop.permute.xlu1 %3321  ;;  %v17705_v31 = vadd.f32 %v16601_v49, %v3036_v39  ;;  %v3054_v49 = vmul.f32 %v16603_v29, %v16514_v52  ;;  %v12597_v29 = vld [vmem:[%s21223_s26 + $0xf8] ss:$12 sps:$4 sm:$0xff]  }
 0x694   :  { %v3362_v8 = vsel %vm394_vm0, %v17263_v38, %v3320_v11  ;;  %v3363_v46 = vsel %vm394_vm0, %v3320_v11, %v17678_v34  ;;  %11857 = vmatpush3.bf16.msra.mxu1 %v12587_v0  ;;  %11897 = vmatpush3.bf16.msra.mxu0 %v12588_v24  ;;  %v21234_v11 = vmax.f32 %v17346_v1, 0.0  ;;  %v12607_v1 = vld [vmem:[%s21223_s26 + $0x8] ss:$12 sps:$4 sm:$0xff]  }
 0x695   :  { %v17697_v47 = vmax.f32 %v21232_v23, %v3362_v8  ;;  %v17701_v38 = vmax.f32 %v3136_v37, %v3363_v46  ;;  %5570 = vmatprep.mubr.bf16.mxu0 %v17389_v26  ;;  %11858 = vmatprep.subr.bf16.mxu1 %v12589_v12  ;;  %v12595_v37 = vld [vmem:[%s21223_s26 + $0x50] ss:$12 sps:$4 sm:$0xff]   ;;  %v12596_v26 = vld [vmem:[%s21223_s26 + $0x380] ss:$12 sps:$4 sm:$0xff]   ;;  %v3122_v52 = vmax.f32 %v17705_v31, 0.0  ;;  %v17732_v16 = vadd.f32 %v16620_v18, %v3054_v49 }
 0x696   :  { %11898 = vmatprep.subr.bf16.mxu0 %v12590_v7  ;;  %v12599_v18 = vld [vmem:[%s21223_s26 + $0x38] ss:$12 sps:$4 sm:$0xff]   ;;  %v12604_v12 = vld [vmem:[%s21223_s26 + $0x350] ss:$12 sps:$4 sm:$0xff]   ;;  %v12605_v8 = vld [vmem:[%s21223_s26 + $0xc8] ss:$12 sps:$4 sm:$0xff]  }
 0x697   :  { %3581 = vrot.lane.b32.xlu0 %v17697_v47, %s20628_s5  ;;  %3583 = vrot.lane.b32.xlu1 %v17701_v38, %s20628_s5  ;;  %v3286_v60 = vpop.permute.xlu0 %3285  ;;  %v17727_v45 = vpop.permute.xlu1 %3287  ;;  %v3140_v32 = vmax.f32 %v17732_v16, 0.0  ;;  %v12606_v46 = vld [vmem:[%s21223_s26 + $0x3f8] ss:$12 sps:$4 sm:$0xff]   ;;  %v12610_v49 = vld [vmem:[%s21223_s26 + $0x3e0] ss:$12 sps:$4 sm:$0xff]  }
 0x698   :  { %11859 = vmatpush3.bf16.msra.mxu1 %v12591_v54  ;;  %11899 = vmatpush3.bf16.msra.mxu0 %v12592_v61  ;;  %v3346_v48 = vsel %vm394_vm0, %v17639_v5, %v3286_v60  ;;  %v3347_v13 = vsel %vm394_vm0, %v3286_v60, %v17727_v45  ;;  %v12603_v5 = vld [vmem:[%s21223_s26 + $0x20] ss:$12 sps:$4 sm:$0xff]   ;;  %v12608_v61 = vld [vmem:[%s21223_s26 + $0x338] ss:$12 sps:$4 sm:$0xff]   ;;  %v12616_v60 = vld [vmem:[%s21223_s26 + $0x308] ss:$12 sps:$4 sm:$0xff]  }
 0x699   :  { %11860 = vmatprep.subr.bf16.mxu1 %v12593_v40  ;;  %11900 = vmatprep.subr.bf16.mxu0 %v12594_v59  ;;  %v17783_v7 = vmax.f32 %v21233_v3, %v3346_v48  ;;  %v17787_v39 = vmax.f32 %v21234_v11, %v3347_v13  ;;  %v12609_v59 = vld [vmem:[%s21223_s26 + $0x2f0] ss:$12 sps:$4 sm:$0xff]   ;;  %v12626_v13 = vld [vmem:[%s21223_s26 + $0x278] ss:$12 sps:$4 sm:$0xff]   ;;  %v12630_v11 = vld [vmem:[%s21223_s26 + $0x1a0] ss:$12 sps:$4 sm:$0xff]  }
 0x69a   :  { %v12624_v48 = vld [vmem:[%s21223_s26 + $0x1d0] ss:$12 sps:$4 sm:$0xff]   ;;  %v12744_v31 = vld [vmem:[%s21223_s26 + $0x258] ss:$12 sps:$4 sm:$0xff]  }
 0x69b   :  { %3289 = vrot.lane.b32.xlu0 %v3121_v53, %s13090_s24  ;;  %3291 = vrot.lane.b32.xlu1 %v3122_v52, %s13090_s24  ;;  %v3324_v0 = vpop.permute.xlu0 %3323  ;;  %v17767_v24 = vpop.permute.xlu1 %3325  ;;  %v12631_v3 = vld [vmem:[%s21223_s26 + $0x650] ss:$12 sps:$4 sm:$0xff]  }
 0x69c   :  { %11861 = vmatpush3.bf16.msra.mxu1 %v12595_v37  ;;  %11901 = vmatpush3.bf16.msra.mxu0 %v12596_v26  ;;  %v3364_v54 = vsel %vm394_vm0, %v17678_v34, %v3324_v0  ;;  %v3365_v56 = vsel %vm394_vm0, %v3324_v0, %v17767_v24  ;;  %v21235_v34 = vmax.f32 %v17325_v41, 0.0  ;;  %v12612_v41 = vld [vmem:[%s21223_s26 + $0x320] ss:$12 sps:$4 sm:$0xff]   ;;  %v12613_v37 = vld [vmem:[%s21223_s26 + $0x2d8] ss:$12 sps:$4 sm:$0xff]  }
 0x69d   :  { %11862 = vmatprep.subr.bf16.mxu1 %v12597_v29  ;;  %11902 = vmatprep.subr.bf16.mxu0 %v12598_v10  ;;  %v17815_v40 = vmax.f32 %v3138_v58, %v3365_v56  ;;  %v12611_v58 = vld [vmem:[%s21223_s26 + $0x230] ss:$12 sps:$4 sm:$0xff]   ;;  %v12614_v26 = vld [vmem:[%s21223_s26 + $0x3c8] ss:$12 sps:$4 sm:$0xff]   ;;  %v12615_v29 = vld [vmem:[%s21223_s26 + $0x218] ss:$12 sps:$4 sm:$0xff]  }
 0x69e   :  { %v17811_v23 = vmax.f32 %v21235_v34, %v3364_v54  ;;  %v12617_v10 = vld [vmem:[%s21223_s26 + $0x2c0] ss:$12 sps:$4 sm:$0xff]   ;;  %v12628_v0 = vld [vmem:[%s21223_s26 + $0x668] ss:$12 sps:$4 sm:$0xff]   ;;  %v12635_v56 = vld [vmem:[%s21223_s26 + $0x5f0] ss:$12 sps:$4 sm:$0xff]  }
 0x69f   :  { %3327 = vrot.lane.b32.xlu0 %v3140_v32, %s13090_s24  ;;  %3329 = vrot.lane.b32.xlu1 %v3141_v55, %s13090_s24  ;;  %v12633_v54 = vld [vmem:[%s21223_s26 + $0x188] ss:$12 sps:$4 sm:$0xff]   ;;  %v12638_v34 = vld [vmem:[%s21223_s26 + $0x5d8] ss:$12 sps:$4 sm:$0xff]  }
 0x6a0   :  { %11863 = vmatpush3.bf16.msra.mxu1 %v12599_v18  ;;  %11903 = vmatpush3.bf16.msra.mxu0 %v12600_v6  ;;  %v21236_v18 = vmov 0   ;;  %v12620_v6 = vld [vmem:[%s21223_s26 + $0x2a8] ss:$12 sps:$4 sm:$0xff]  }
 0x6a1   :  { %11864 = vmatprep.subr.bf16.mxu1 %v12601_v14  ;;  %11904 = vmatprep.subr.bf16.mxu0 %v12602_v50  ;;  %v12622_v14 = vld [vmem:[%s21223_s26 + $0x698] ss:$12 sps:$4 sm:$0xff]   ;;  %v12621_v50 = vld [vmem:[%s21223_s26 + $0x1e8] ss:$12 sps:$4 sm:$0xff]   ;;  %76 = vst.msk [vmem:[#allocation2] sm:$0xf] %vm75_vm10, %v21236_v18 }
 0x6a2   :  { %77 = vst.msk [vmem:[#allocation2 + $0x18] sm:$0xf] %vm75_vm10, %v21236_v18  ;;  %vm7709_vm10 = vcmask 392196  }
 0x6a3   :  { %3547 = vrot.lane.b32.xlu0 %v17783_v7, %s20628_s5  ;;  %3549 = vrot.lane.b32.xlu1 %v17787_v39, %s20628_s5 }
 0x6a4   :  { %11865 = vmatpush3.bf16.msra.mxu1 %v12603_v5  ;;  %11905 = vmatpush3.bf16.msra.mxu0 %v12604_v12  ;;  %v12627_v5 = vld [vmem:[%s21223_s26 + $0x1b8] ss:$12 sps:$4 sm:$0xff]   ;;  %v12629_v12 = vld [vmem:[%s21223_s26 + $0x260] ss:$12 sps:$4 sm:$0xff]  }
 0x6a5   :  { %11866 = vmatprep.subr.bf16.mxu1 %v12605_v8  ;;  %11906 = vmatprep.subr.bf16.mxu0 %v12606_v46  ;;  %v12632_v8 = vld [vmem:[%s21223_s26 + $0x248] ss:$12 sps:$4 sm:$0xff]   ;;  %v12634_v46 = vld [vmem:[%s21223_s26 + $0x638] ss:$12 sps:$4 sm:$0xff]  }
 0x6a7   :  { %3585 = vrot.lane.b32.xlu0 %v17811_v23, %s20628_s5  ;;  %3587 = vrot.lane.b32.xlu1 %v17815_v40, %s20628_s5 }
 0x6a8   :  { %11867 = vmatpush3.bf16.msra.mxu1 %v12607_v1  ;;  %11907 = vmatpush3.bf16.msra.mxu0 %v12608_v61  ;;  %v12637_v1 = vld [vmem:[%s21223_s26 + $0x620] ss:$12 sps:$4 sm:$0xff]   ;;  %v12636_v61 = vld [vmem:[%s21223_s26 + $0x530] ss:$12 sps:$4 sm:$0xff]  }
 0x6a9   :  { %11874 = vmatprep.subr.bf16.mxu1 %v12609_v59  ;;  %11908 = vmatprep.subr.bf16.mxu0 %v12610_v49  ;;  %v12640_v59 = vld [vmem:[%s21223_s26 + $0x608] ss:$12 sps:$4 sm:$0xff]   ;;  %v12639_v49 = vld [vmem:[%s21223_s26 + $0x518] ss:$12 sps:$4 sm:$0xff]  }
 0x6ab   :  { %3293 = vrot.lane.b32.xlu0 %v17830_v30, %s13090_s24  ;;  %3331 = vrot.lane.b32.xlu1 %v17835_v19, %s13090_s24 }
 0x6ac   :  { %5489 = vmatmul.mubr.bf16.vlgmr.msra.gmra.mxu1 %v17172_v15  ;;  %11909 = vmatpush3.bf16.msra.mxu0 %v12612_v41  ;;  %v12619_v15 = vld [vmem:[%s21223_s26 + $0x6b0] ss:$12 sps:$4 sm:$0xff]   ;;  %v12643_v41 = vld [vmem:[%s21223_s26 + $0x6c8] ss:$0 sps:$4 sm:$0x33]  }
 0x6ad   :  { %11875 = vmatpush3.bf16.msra.mxu1 %v12611_v58  ;;  %5529 = vmatprep.mubr.bf16.mxu1 %v17202_v17  ;;  %v12618_v17 = vld [vmem:[%s21223_s26 + $0x200] ss:$12 sps:$4 sm:$0xff]   ;;  %v5239_v58 = vsel %vm20635_vm7, %v12643_v41, 0 }
 0x6ae   :  { %11876 = vmatprep.subr.bf16.mxu1 %v12613_v37  ;;  %11910 = vmatprep.subr.bf16.mxu0 %v12614_v26  ;;  %v12644_v37 = vld [vmem:[%s21223_s26 + $0x5a8] ss:$12 sps:$4 sm:$0xff]   ;;  %v12677_v41 = vld [vmem:[%s21223_s26 + $0x4c] ss:$12 sps:$4 sm:$0xff]  }
 0x6af   :  { %v12645_v26 = vld [vmem:[%s21223_s26 + $0x4e8] ss:$12 sps:$4 sm:$0xff]  }
 0x6b0   :  { %11911 = vmatpush3.bf16.msra.mxu0 %v12616_v60  ;;  %v12646_v60 = vld [vmem:[%s21223_s26 + $0x590] ss:$12 sps:$4 sm:$0xff]  }
 0x6b1   :  { %11877 = vmatpush3.bf16.msra.mxu1 %v12615_v29  ;;  %5620 = vmatprep.subr.bf16.mxu0 %v21236_v18  ;;  %v12647_v29 = vld [vmem:[%s21223_s26 + $0x4d0] ss:$12 sps:$4 sm:$0xff]  }
 0x6b2   :  { %11878 = vmatprep.subr.bf16.mxu1 %v12617_v10  ;;  %v12648_v10 = vld [vmem:[%s21223_s26 + $0x578] ss:$12 sps:$4 sm:$0xff]  }
 0x6b3   :  { %5571 = vmatmul.mubr.bf16.vlgmr.msra.gmra.mxu0 %v17529_v51  ;;  %v12623_v51 = vld [vmem:[%s21223_s26 + $0x290] ss:$12 sps:$4 sm:$0xff]  }
 0x6b4   :  { %5621 = vmatpush1.bf16.msra.mxu0 %v12619_v15  ;;  %11408 = vmatprep.mubr.msk.bf16.mxu0 %vm5227_vm8, %v17641_v63  ;;  %v12625_v63 = vld [vmem:[%s21223_s26 + $0x680] ss:$12 sps:$4 sm:$0xff]   ;;  %v12660_v15 = vld [vmem:[%s21223_s26 + $0x228] ss:$12 sps:$4 sm:$0xff]  }
 0x6b5   :  { %11879 = vmatpush3.bf16.msra.mxu1 %v12618_v17  ;;  %5622 = vmatprep.subr.bf16.mxu0 %v21236_v18  ;;  %v12662_v17 = vld [vmem:[%s21223_s26 + $0x22c] ss:$12 sps:$4 sm:$0xff]  }
 0x6b6   :  { %11880 = vmatprep.subr.bf16.mxu1 %v12620_v6  ;;  %v12650_v6 = vld [vmem:[%s21223_s26 + $0x560] ss:$12 sps:$4 sm:$0xff]  }
 0x6b8   :  { %5623 = vmatpush1.bf16.msra.mxu0 %v12622_v14  ;;  %v12668_v14 = vld [vmem:[%s21223_s26 + $0x214] ss:$12 sps:$4 sm:$0xff]  }
 0x6b9   :  { %11881 = vmatpush3.bf16.msra.mxu1 %v12621_v50  ;;  %5624 = vmatprep.subr.bf16.mxu0 %v21236_v18  ;;  %v12666_v50 = vld [vmem:[%s21223_s26 + $0x210] ss:$12 sps:$4 sm:$0xff]  }
 0x6ba   :  { %11882 = vmatprep.subr.bf16.mxu1 %v12623_v51  ;;  %v12674_v51 = vld [vmem:[%s21223_s26 + $0x1fc] ss:$12 sps:$4 sm:$0xff]  }
 0x6bc   :  { %5625 = vmatpush1.bf16.msra.mxu0 %v12625_v63  ;;  %v12651_v63 = vld [vmem:[%s21223_s26 + $0x4a0] ss:$12 sps:$4 sm:$0xff]  }
 0x6bd   :  { %11883 = vmatpush3.bf16.msra.mxu1 %v12624_v48  ;;  %5626 = vmatprep.subr.bf16.mxu0 %v21236_v18  ;;  %v12652_v48 = vld [vmem:[%s21223_s26 + $0x548] ss:$12 sps:$4 sm:$0xff]  }
 0x6be   :  { %11884 = vmatprep.subr.bf16.mxu1 %v12626_v13  ;;  %v12672_v13 = vld [vmem:[%s21223_s26 + $0x1f8] ss:$12 sps:$4 sm:$0xff]  }
 0x6c0   :  { %5627 = vmatpush1.bf16.msra.mxu0 %v12628_v0  ;;  %v12653_v0 = vld [vmem:[%s21223_s26 + $0x488] ss:$12 sps:$4 sm:$0xff]  }
 0x6c1   :  { %11885 = vmatpush3.bf16.msra.mxu1 %v12627_v5  ;;  %5628 = vmatprep.subr.bf16.mxu0 %v21236_v18  ;;  %v12656_v5 = vld [vmem:[%s21223_s26 + $0xac] ss:$12 sps:$4 sm:$0xff]  }
 0x6c2   :  { %11886 = vmatprep.subr.bf16.mxu1 %v12629_v12  ;;  %v12654_v12 = vld [vmem:[%s21223_s26 + $0xa8] ss:$12 sps:$4 sm:$0xff]  }
 0x6c4   :  { %5629 = vmatpush1.bf16.msra.mxu0 %v12631_v3  ;;  %v12659_v3 = vld [vmem:[%s21223_s26 + $0x94] ss:$12 sps:$4 sm:$0xff]  }
 0x6c5   :  { %11887 = vmatpush3.bf16.msra.mxu1 %v12630_v11  ;;  %5630 = vmatprep.subr.bf16.mxu0 %v21236_v18  ;;  %v12678_v11 = vld [vmem:[%s21223_s26 + $0x1e0] ss:$12 sps:$4 sm:$0xff]  }
 0x6c6   :  { %11888 = vmatprep.subr.bf16.mxu1 %v12632_v8  ;;  %v12657_v8 = vld [vmem:[%s21223_s26 + $0x90] ss:$12 sps:$4 sm:$0xff]  }
 0x6c8   :  { %5631 = vmatpush1.bf16.msra.mxu0 %v12634_v46  ;;  %v12680_v46 = vld [vmem:[%s21223_s26 + $0x1e4] ss:$12 sps:$4 sm:$0xff]  }
 0x6c9   :  { %11889 = vmatpush3.bf16.msra.mxu1 %v12633_v54  ;;  %5632 = vmatprep.subr.bf16.mxu0 %v21236_v18  ;;  %v12665_v54 = vld [vmem:[%s21223_s26 + $0x7c] ss:$12 sps:$4 sm:$0xff]  }
 0x6ca   :  { %11918 = vmatprep.subr.bf16.mxu1 %v12635_v56  ;;  %v12663_v56 = vld [vmem:[%s21223_s26 + $0x78] ss:$12 sps:$4 sm:$0xff]  }
 0x6cc   :  { %5530 = vmatmul.mubr.bf16.vlgmr.msra.gmra.mxu1 %v17204_v22  ;;  %5633 = vmatpush1.bf16.msra.mxu0 %v12637_v1  ;;  %v12641_v22 = vld [vmem:[%s21223_s26 + $0x5c0] ss:$12 sps:$4 sm:$0xff]  }
 0x6cd   :  { %11919 = vmatpush3.bf16.msra.mxu1 %v12636_v61  ;;  %5611 = vmatprep.mubr.bf16.mxu1 %v17604_v20  ;;  %v12642_v20 = vld [vmem:[%s21223_s26 + $0x500] ss:$12 sps:$4 sm:$0xff]   ;;  %v12671_v61 = vld [vmem:[%s21223_s26 + $0x64] ss:$12 sps:$4 sm:$0xff]  }
 0x6ce   :  { %11920 = vmatprep.subr.bf16.mxu1 %v12638_v34  ;;  %5634 = vmatprep.subr.bf16.mxu0 %v21236_v18  ;;  %v12686_v1 = vld [vmem:[%s21223_s26 + $0x1cc] ss:$12 sps:$4 sm:$0xff]   ;;  %v12690_v34 = vld [vmem:[%s21223_s26 + $0x1b0] ss:$12 sps:$4 sm:$0xff]  }
 0x6d0   :  { %5635 = vmatpush1.bf16.msra.mxu0 %v12640_v59  ;;  %v12692_v59 = vld [vmem:[%s21223_s26 + $0x1b4] ss:$12 sps:$4 sm:$0xff]  }
 0x6d1   :  { %11921 = vmatpush3.bf16.msra.mxu1 %v12639_v49  ;;  %5650 = vmatprep.subr.bf16.mxu0 %v21236_v18  ;;  %v12669_v49 = vld [vmem:[%s21223_s26 + $0x60] ss:$12 sps:$4 sm:$0xff]  }
 0x6d2   :  { %11922 = vmatprep.subr.bf16.mxu1 %v12641_v22  ;;  %v12696_v22 = vld [vmem:[%s21223_s26 + $0x198] ss:$12 sps:$4 sm:$0xff]  }
 0x6d4   :  { %5651 = vmatpush2.bf16.msra.mxu0 %v5239_v58  ;;  %v12675_v58 = vld [vmem:[%s21223_s26 + $0x48] ss:$12 sps:$4 sm:$0xff]  }
 0x6d5   :  { %11923 = vmatpush3.bf16.msra.mxu1 %v12642_v20  ;;  %7288 = vmatprep.subr.bf16.mxu0 %v12662_v17  ;;  %v12698_v20 = vld [vmem:[%s21223_s26 + $0x19c] ss:$12 sps:$4 sm:$0xff]   ;;  %v12695_v17 = vld [vmem:[%s21223_s26 + $0x4] ss:$12 sps:$4 sm:$0xff]  }
 0x6d6   :  { %11924 = vmatprep.subr.bf16.mxu1 %v12644_v37  ;;  %v12683_v37 = vld [vmem:[%s21223_s26 + $0x34] ss:$12 sps:$4 sm:$0xff]  }
 0x6d7   :  { %5653 = vmatmul.mubr.bf16.vlgmr.msra.gmra.mxu0 %v17643_v2  ;;  %v12649_v2 = vld [vmem:[%s21223_s26 + $0x4b8] ss:$12 sps:$4 sm:$0xff]  }
 0x6d8   :  { %7289 = vmatpush1.bf16.msra.mxu0 %v12660_v15  ;;  %v12687_v15 = vld [vmem:[%s21223_s26 + $0x18] ss:$12 sps:$4 sm:$0xff]  }
 0x6d9   :  { %11925 = vmatpush3.bf16.msra.mxu1 %v12645_v26  ;;  %7290 = vmatprep.subr.bf16.mxu0 %v12668_v14  ;;  %v12704_v26 = vld [vmem:[%s21223_s26 + $0x184] ss:$12 sps:$4 sm:$0xff]   ;;  %v12693_v14 = vld [vmem:[%s21223_s26] ss:$12 sps:$4 sm:$0xff]  }
 0x6da   :  { %11926 = vmatprep.subr.bf16.mxu1 %v12646_v60  ;;  %v12702_v60 = vld [vmem:[%s21223_s26 + $0x180] ss:$12 sps:$4 sm:$0xff]  }
 0x6dc   :  { %7291 = vmatpush1.bf16.msra.mxu0 %v12666_v50 }
 0x6dd   :  { %11927 = vmatpush3.bf16.msra.mxu1 %v12647_v29  ;;  %7292 = vmatprep.subr.bf16.mxu0 %v12674_v51  ;;  %v12681_v29 = vld [vmem:[%s21223_s26 + $0x30] ss:$12 sps:$4 sm:$0xff]  }
 0x6de   :  { %11928 = vmatprep.subr.bf16.mxu1 %v12648_v10  ;;  %v12689_v10 = vld [vmem:[%s21223_s26 + $0x1c] ss:$12 sps:$4 sm:$0xff]  }
 0x6e0   :  { %7293 = vmatpush1.bf16.msra.mxu0 %v12672_v13 }
 0x6e1   :  { %11929 = vmatpush3.bf16.msra.mxu1 %v12649_v2  ;;  %7294 = vmatprep.subr.bf16.mxu0 %v12680_v46  ;;  %v12707_v46 = vld [vmem:[%s21223_s26 + $0x154] ss:$12 sps:$4 sm:$0xff]  }
 0x6e2   :  { %11930 = vmatprep.subr.bf16.mxu1 %v12650_v6 }
 0x6e4   :  { %7295 = vmatpush1.bf16.msra.mxu0 %v12678_v11 }
 0x6e5   :  { %11931 = vmatpush3.bf16.msra.mxu1 %v12651_v63  ;;  %7296 = vmatprep.subr.bf16.mxu0 %v12686_v1  ;;  %v12701_v63 = vld [vmem:[%s21223_s26 + $0x16c] ss:$12 sps:$4 sm:$0xff]  }
 0x6e6   :  { %11932 = vmatprep.subr.bf16.mxu1 %v12652_v48 }
 0x6e9   :  { %11933 = vmatpush3.bf16.msra.mxu1 %v12653_v0  ;;  %v12708_v0 = vld [vmem:[%s21223_s26 + $0x2e8] ss:$12 sps:$4 sm:$0xff]  }
 0x6ea   :  { %7245 = vmatprep.subr.bf16.mxu1 %v12656_v5 }
 0x6ec   :  { %5612 = vmatmul.mubr.bf16.vlgmr.msra.gmra.mxu1 %v17609_v43  ;;  %v12684_v43 = vld [vmem:[%s21223_s26 + $0x1c8] ss:$12 sps:$4 sm:$0xff]  }
 0x6ed   :  { %7246 = vmatpush1.bf16.msra.mxu1 %v12654_v12  ;;  %7297 = vmatpush1.bf16.msra.mxu0 %v12684_v43 }
 0x6ee   :  { %7247 = vmatprep.subr.bf16.mxu1 %v12659_v3  ;;  %7298 = vmatprep.subr.bf16.mxu0 %v12692_v59  ;;  %v12699_v3 = vld [vmem:[%s21223_s26 + $0x168] ss:$12 sps:$4 sm:$0xff]  }
 0x6f1   :  { %7248 = vmatpush1.bf16.msra.mxu1 %v12657_v8  ;;  %7299 = vmatpush1.bf16.msra.mxu0 %v12690_v34  ;;  %v12722_v34 = vld [vmem:[%s21223_s26 + $0x2bc] ss:$12 sps:$4 sm:$0xff]  }
 0x6f2   :  { %7249 = vmatprep.subr.bf16.mxu1 %v12665_v54  ;;  %7300 = vmatprep.subr.bf16.mxu0 %v12698_v20 }
 0x6f5   :  { %7250 = vmatpush1.bf16.msra.mxu1 %v12663_v56  ;;  %7301 = vmatpush1.bf16.msra.mxu0 %v12696_v22  ;;  %v12716_v56 = vld [vmem:[%s21223_s26 + $0x2d4] ss:$12 sps:$4 sm:$0xff]   ;;  %v21237_v22 = vmax.f32 %v17349_v36, 0.0  ;;  %v12728_v36 = vld [vmem:[%s21223_s26 + $0x2a4] ss:$12 sps:$4 sm:$0xff]  }
 0x6f6   :  { %7251 = vmatprep.subr.bf16.mxu1 %v12671_v61  ;;  %7302 = vmatprep.subr.bf16.mxu0 %v12704_v26 }
 0x6f9   :  { %7252 = vmatpush1.bf16.msra.mxu1 %v12669_v49  ;;  %7303 = vmatpush1.bf16.msra.mxu0 %v12702_v60 }
 0x6fa   :  { %7253 = vmatprep.subr.bf16.mxu1 %v12677_v41  ;;  %v12705_v41 = vld [vmem:[%s21223_s26 + $0x150] ss:$12 sps:$4 sm:$0xff]  }
 0x6fd   :  { %7254 = vmatpush1.bf16.msra.mxu1 %v12675_v58 }
 0x6fe   :  { %7255 = vmatprep.subr.bf16.mxu1 %v12683_v37  ;;  %v12720_v37 = vld [vmem:[%s21223_s26 + $0x2b8] ss:$12 sps:$4 sm:$0xff]  }
 0x701   :  { %7256 = vmatpush1.bf16.msra.mxu1 %v12681_v29  ;;  %v12711_v29 = vld [vmem:[%s21223_s26 + $0x138] ss:$12 sps:$4 sm:$0xff]  }
 0x702   :  { %7257 = vmatprep.subr.bf16.mxu1 %v12689_v10 }
 0x705   :  { %v3544_v2 = vpop.permute.xlu0 %3543  ;;  %v3546_v6 = vpop.permute.xlu1 %3545  ;;  %7258 = vmatpush1.bf16.msra.mxu1 %v12687_v15 }
 0x706   :  { %v18081_v50 = vsel %vm950_vm2, %v17599_v9, %v3544_v2  ;;  %v18084_v51 = vsel %vm950_vm2, %v3544_v2, %v3546_v6  ;;  %7259 = vmatprep.subr.bf16.mxu1 %v12695_v17  ;;  %v12710_v9 = vld [vmem:[%s21223_s26 + $0x2ec] ss:$12 sps:$4 sm:$0xff]  }
 0x707   :  { %v3681_v48 = vmax.f32 %v17253_v25, %v18081_v50  ;;  %v3682_v13 = vmax.f32 %v17657_v35, %v18084_v51  ;;  %7304 = vmatprep.subr.bf16.mxu0 %v12710_v9  ;;  %v12726_v17 = vld [vmem:[%s21223_s26 + $0x2a0] ss:$12 sps:$4 sm:$0xff]  }
 0x708   :  { %7305 = vmatpush2.bf16.msra.mxu0 %v12708_v0  ;;  %v12732_v0 = vld [vmem:[%s21223_s26 + $0x288] ss:$12 sps:$4 sm:$0xff]   ;;  %v12734_v9 = vld [vmem:[%s21223_s26 + $0x28c] ss:$12 sps:$4 sm:$0xff]   ;;  %v5714_v35 = vld [vmem:[#allocation4 + $0xe0] sm:$0xff] }
 0x709   :  { %v3582_v5 = vpop.permute.xlu0 %3581  ;;  %v3584_v12 = vpop.permute.xlu1 %3583  ;;  %7260 = vmatpush1.bf16.msra.mxu1 %v12693_v14  ;;  %7306 = vmatprep.subr.bf16.mxu0 %v12716_v56  ;;  %v5704_v51 = vld [vmem:[#allocation4 + $0x48] sm:$0xff] }
 0x70a   :  { %v18104_v11 = vsel %vm950_vm2, %v17625_v33, %v3582_v5  ;;  %v18107_v8 = vsel %vm950_vm2, %v3582_v5, %v3584_v12  ;;  %7261 = vmatprep.subr.bf16.mxu1 %v12701_v63  ;;  %v12714_v33 = vld [vmem:[%s21223_s26 + $0x2d0] ss:$12 sps:$4 sm:$0xff]   ;;  %v12767_v50 = vld [vmem:[%s21223_s26 + $0x52c] ss:$12 sps:$4 sm:$0xff]  }
 0x70b   :  { %v3700_v54 = vmax.f32 %v17292_v42, %v18104_v11  ;;  %v3701_v43 = vmax.f32 %v17697_v47, %v18107_v8  ;;  %v12752_v42 = vld [vmem:[%s21223_s26 + $0x3ac] ss:$12 sps:$4 sm:$0xff]  }
 0x70c   :  { %7307 = vmatpush2.bf16.msra.mxu0 %v12714_v33  ;;  %v12723_v33 = vld [vmem:[%s21223_s26 + $0x108] ss:$12 sps:$4 sm:$0xff]  }
 0x70d   :  { %v3290_v1 = vpop.permute.xlu0 %3289  ;;  %v3292_v61 = vpop.permute.xlu1 %3291  ;;  %7262 = vmatpush2.bf16.msra.mxu1 %v12699_v3  ;;  %7308 = vmatprep.subr.bf16.mxu0 %v12722_v34  ;;  %v12731_v34 = vld [vmem:[%s21223_s26 + $0xf4] ss:$12 sps:$4 sm:$0xff]   ;;  %v5726_v4 = vpack.c.bf16 %v3701_v43, %v3682_v13  ;;  %v5724_v13 = vpack.c.bf16 %v5714_v35, %v5704_v51 }
 0x70e   :  { %v3348_v59 = vsel %vm394_vm0, %v17727_v45, %v3290_v1  ;;  %v3349_v49 = vsel %vm394_vm0, %v3290_v1, %v3292_v61  ;;  %7263 = vmatprep.subr.bf16.mxu1 %v12707_v46  ;;  %v12713_v45 = vld [vmem:[%s21223_s26 + $0x13c] ss:$12 sps:$4 sm:$0xff]  }
 0x70f   :  { %v18133_v20 = vmax.f32 %v21237_v22, %v3348_v59  ;;  %v18137_v58 = vmax.f32 %v3121_v53, %v3349_v49  ;;  %v12729_v22 = vld [vmem:[%s21223_s26 + $0xf0] ss:$12 sps:$4 sm:$0xff]  }
 0x710   :  { %7309 = vmatpush2.bf16.msra.mxu0 %v12720_v37 }
 0x711   :  { %v3328_v26 = vpop.permute.xlu0 %3327  ;;  %3551 = vrot.lane.b32.xlu0 %v18133_v20, %s20628_s5  ;;  %3553 = vrot.lane.b32.xlu1 %v18137_v58, %s20628_s5  ;;  %v3330_v21 = vpop.permute.xlu1 %3329 }
 0x712   :  { %v3366_v53 = vsel %vm394_vm0, %v17767_v24, %v3328_v26  ;;  %v3367_v60 = vsel %vm394_vm0, %v3328_v26, %v3330_v21  ;;  %7264 = vmatpush2.bf16.msra.mxu1 %v12705_v41  ;;  %v12719_v24 = vld [vmem:[%s21223_s26 + $0x124] ss:$12 sps:$4 sm:$0xff]   ;;  %7310 = vmatprep.subr.bf16.mxu0 %v12728_v36 }
 0x713   :  { %v18160_v10 = vmax.f32 %v3139_v57, %v3366_v53  ;;  %v18164_v15 = vmax.f32 %v3140_v32, %v3367_v60  ;;  %7265 = vmatprep.subr.bf16.mxu1 %v12713_v45  ;;  %v12717_v32 = vld [vmem:[%s21223_s26 + $0x120] ss:$12 sps:$4 sm:$0xff]   ;;  %v12746_v45 = vld [vmem:[%s21223_s26 + $0x25c] ss:$12 sps:$4 sm:$0xff]   ;;  %v12735_v36 = vld [vmem:[%s21223_s26 + $0xd8] ss:$12 sps:$4 sm:$0xff]   ;;  %v5725_v60 = vpack.c.bf16 %v3700_v54, %v3681_v48  ;;  %v18299_v48 = vpop.f32.mrf.mxu0 }
 0x714   :  { %7311 = vmatpush2.bf16.msra.mxu0 %v12726_v17  ;;  %v12749_v26 = vld [vmem:[%s21223_s26 + $0x244] ss:$12 sps:$4 sm:$0xff]  }
 0x715   :  { %v3548_v2 = vpop.permute.xlu0 %3547  ;;  %3589 = vrot.lane.b32.xlu0 %v18160_v10, %s20628_s5  ;;  %3591 = vrot.lane.b32.xlu1 %v18164_v15, %s20628_s5  ;;  %v18176_v28 = vpop.permute.xlu1 %3549  ;;  %v12743_v53 = vld [vmem:[%s21223_s26 + $0xc4] ss:$12 sps:$4 sm:$0xff]  }
 0x716   :  { %v18179_v57 = vsel %vm950_vm2, %v3546_v6, %v3548_v2  ;;  %v18183_v16 = vsel %vm950_vm2, %v3548_v2, %v18176_v28  ;;  %7266 = vmatpush2.bf16.msra.mxu1 %v12711_v29  ;;  %v12725_v6 = vld [vmem:[%s21223_s26 + $0x10c] ss:$12 sps:$4 sm:$0xff]   ;;  %7312 = vmatprep.subr.bf16.mxu0 %v12734_v9  ;;  %v5277_v11 = vpop.f32.mrf.mxu0 }
 0x717   :  { %v3683_v14 = vmax.f32 %v17661_v62, %v18179_v57  ;;  %v3684_v63 = vmax.f32 %v17783_v7, %v18183_v16  ;;  %7267 = vmatprep.subr.bf16.mxu1 %v12719_v24 }
 0x718   :  { %7313 = vmatpush2.bf16.msra.mxu0 %v12732_v0  ;;  %v18301_v8 = vpop.f32.mrf.mxu0 }
 0x719   :  { %v3586_v5 = vpop.permute.xlu0 %3585  ;;  %v18201_v3 = vpop.permute.xlu1 %3587 }
 0x71a   :  { %v3627_v62 = vsel %vm950_vm2, %v3584_v12, %v3586_v5  ;;  %v3628_v46 = vsel %vm950_vm2, %v3586_v5, %v18201_v3  ;;  %7268 = vmatpush2.bf16.msra.mxu1 %v12717_v32  ;;  %v12740_v12 = vld [vmem:[%s21223_s26 + $0x274] ss:$12 sps:$4 sm:$0xff]   ;;  %v18303_v54 = vpop.f32.mrf.mxu0  ;;  %v5318_v32 = vpop.f32.mrf.mxu1 }
 0x71b   :  { %v3702_v56 = vmax.f32 %v17701_v38, %v3627_v62  ;;  %v3703_v1 = vmax.f32 %v17811_v23, %v3628_v46  ;;  %7269 = vmatprep.subr.bf16.mxu1 %v12725_v6  ;;  %v12738_v38 = vld [vmem:[%s21223_s26 + $0x270] ss:$12 sps:$4 sm:$0xff]   ;;  %7314 = vmatprep.subr.bf16.mxu0 %v12740_v12 }
 0x71c   :  { %7315 = vmatpush2.bf16.msra.mxu0 %v12738_v38  ;;  %v18305_v7 = vpop.f32.mrf.mxu0  ;;  %v5320_v6 = vpop.f32.mrf.mxu1 }
 0x71d   :  { %v18217_v59 = vpop.permute.xlu0 %3293  ;;  %v18219_v49 = vpop.permute.xlu1 %3331  ;;  %7316 = vmatprep.subr.bf16.mxu0 %v12746_v45  ;;  %v5727_v47 = vpack.c.bf16 %v3702_v56, %v3683_v14  ;;  %v5728_v25 = vpack.c.bf16 %v3703_v1, %v3684_v63 }
 0x71e   :  { %v3350_v23 = vsel %vm394_vm0, %v3292_v61, %v18217_v59  ;;  %v3463_v41 = vmax.f32 %v17830_v30, %v18217_v59  ;;  %7270 = vmatpush2.bf16.msra.mxu1 %v12723_v33  ;;  %v12737_v61 = vld [vmem:[%s21223_s26 + $0xdc] ss:$12 sps:$4 sm:$0xff]   ;;  %v3368_v30 = vsel %vm394_vm0, %v3330_v21, %v18219_v49  ;;  %v5363_v43 = vpop.f32.mrf.mxu0  ;;  %v18321_v62 = vpop.f32.mrf.mxu1 }
 0x71f   :  { %v18236_v37 = vmax.f32 %v3122_v52, %v3350_v23  ;;  %7271 = vmatprep.subr.bf16.mxu1 %v12731_v34  ;;  %v3482_v52 = vmax.f32 %v17835_v19, %v18219_v49  ;;  %v18259_v21 = vmax.f32 %v3141_v55, %v3368_v30  ;;  %v12747_v19 = vld [vmem:[%s21223_s26 + $0x240] ss:$12 sps:$4 sm:$0xff]  }
 0x720   :  { %3557 = vrot.lane.b32.xlu1 %v3463_v41, %s20628_s5  ;;  %7317 = vmatpush2.bf16.msra.mxu0 %v12744_v31  ;;  %v12741_v55 = vld [vmem:[%s21223_s26 + $0xc0] ss:$12 sps:$4 sm:$0xff]   ;;  %v18307_v29 = vpop.f32.mrf.mxu0  ;;  %v5324_v33 = vpop.f32.mrf.mxu1 }
 0x721   :  { %3555 = vrot.lane.b32.xlu0 %v18236_v37, %s20628_s5  ;;  %7318 = vmatprep.subr.bf16.mxu0 %v12749_v26 }
 0x722   :  { %7272 = vmatpush2.bf16.msra.mxu1 %v12729_v22  ;;  %v18309_v24 = vpop.f32.mrf.mxu0 }
 0x723   :  { %7273 = vmatprep.subr.bf16.mxu1 %v12737_v61 }
 0x724   :  { %3595 = vrot.lane.b32.xlu1 %v3482_v52, %s20628_s5  ;;  %7319 = vmatpush2.bf16.msra.mxu0 %v12747_v19 }
 0x725   :  { %3593 = vrot.lane.b32.xlu0 %v18259_v21, %s20628_s5  ;;  %7374 = vmatprep.subr.bf16.mxu0 %v12767_v50  ;;  %s13103_s5 = smov 70  }
 0x726   :  { %7274 = vmatpush2.bf16.msra.mxu1 %v12735_v36 }
 0x727   :  { %7275 = vmatprep.subr.bf16.mxu1 %v12743_v53 }
 0x728   :  { %6038 = vrot.lane.b32.xlu1 %v5726_v4, %s13100_s14 }
 0x729   :  { %6036 = vrot.lane.b32.xlu0 %v5725_v60, %s13100_s14 }
 0x72a   :  { %7276 = vmatpush2.bf16.msra.mxu1 %v12741_v55 }
 0x72b   :  { %7331 = vmatprep.subr.bf16.mxu1 %v12752_v42 }
 0x72c   :  { %6040 = vrot.lane.b32.xlu1 %v5727_v47, %s13100_s14 }
 0x72d   :  { %6034 = vrot.lane.b32.xlu0 %v5724_v13, %s13100_s14  ;;  %v5321_v13 = vadd.f32 %v5320_v6, %v5277_v11 }
 0x731   :  { %6042 = vrot.lane.b32.xlu0 %v5728_v25, %s13100_s14 }
 0x74a   :  { %v5404_v56 = vpop.f32.mrf.mxu1 }
 0x74c   :  { %v5406_v12 = vpop.f32.mrf.mxu1 }
 0x74e   :  { %v18330_v30 = vpop.f32.mrf.mxu1 }
 0x750   :  { %v5410_v19 = vpop.f32.mrf.mxu1 }
 0x752   :  { %v18311_v17 = vpop.f32.mrf.mxu0 }
 0x754   :  { %v18313_v2 = vpop.f32.mrf.mxu0 }
 0x756   :  { %v18315_v57 = vpop.f32.mrf.mxu0 }
 0x758   :  { %v18317_v16 = vpop.f32.mrf.mxu0 }
 0x773   :  { %v11912_v14 = vpop.f32.mrf.mxu0 }
 0x775   :  { %v11913_v63 = vpop.f32.mrf.mxu0 }
 0x776   :  { %v18319_v0 = vadd.f32 %v11913_v63, %v11912_v14 }
 0x777   :  { %v11915_v9 = vpop.f32.mrf.mxu0 }
 0x779   :  { %v11916_v5 = vpop.f32.mrf.mxu0 }
 0x77a   :  { %v18323_v46 = vadd.f32 %v11916_v5, %v11915_v9  ;;  %v5364_v9 = vadd.f32 %v5363_v43, %v5321_v13 }
 0x783   :  { %v3552_v1 = vpop.permute.xlu0 %3551  ;;  %v3554_v34 = vpop.permute.xlu1 %3553 }
 0x784   :  { %v3611_v38 = vsel %vm950_vm2, %v18176_v28, %v3552_v1  ;;  %v3612_v23 = vsel %vm950_vm2, %v3552_v1, %v3554_v34  ;;  %v5407_v1 = vadd.f32 %v5406_v12, %v5364_v9  ;;  %v12764_v9 = vld [vmem:[%s21223_s26 + $0x34c] ss:$12 sps:$4 sm:$0xff]  }
 0x785   :  { %v3685_v41 = vmax.f32 %v17787_v39, %v3611_v38  ;;  %v3686_v22 = vmax.f32 %v18133_v20, %v3612_v23  ;;  %v18339_v39 = vpop.f32.mrf.mxu1  ;;  %v21238_v20 = vmax.f32 %v16720_v44, 0.0  ;;  %v21239_v44 = vmax.f32 %v16733_v27, 0.0 }
 0x787   :  { %v3590_v45 = vpop.permute.xlu0 %3589  ;;  %v3592_v61 = vpop.permute.xlu1 %3591  ;;  %v3425_v4 = vmax.f32 %v21238_v20, %v18217_v59  ;;  %v3444_v59 = vmax.f32 %v21239_v44, %v18219_v49 }
 0x788   :  { %v3629_v31 = vsel %vm950_vm2, %v18201_v3, %v3590_v45  ;;  %v3630_v52 = vsel %vm950_vm2, %v3590_v45, %v3592_v61  ;;  %v18344_v3 = vpop.f32.mrf.mxu1 }
 0x789   :  { %v3704_v36 = vmax.f32 %v17815_v40, %v3629_v31  ;;  %v3705_v26 = vmax.f32 %v18160_v10, %v3630_v52  ;;  %v11870_v13 = vadd.f32 %v18344_v3, %v18339_v39  ;;  %v12777_v39 = vld [vmem:[%s21223_s26 + $0x4f8] ss:$12 sps:$4 sm:$0xff]  }
 0x78a   :  { %v18356_v25 = vpop.f32.mrf.mxu1 }
 0x78b   :  { %v5729_v28 = vpack.c.bf16 %v3704_v36, %v3685_v41  ;;  %v5730_v53 = vpack.c.bf16 %v3705_v26, %v3686_v22 }
 0x78d   :  { %6044 = vrot.lane.b32.xlu1 %v5729_v28, %s13100_s14  ;;  %6046 = vrot.lane.b32.xlu0 %v5730_v53, %s13100_s14 }
 0x792   :  { %v3558_v55 = vpop.permute.xlu1 %3557 }
 0x793   :  { %v3689_v60 = vmax.f32 %v3425_v4, %v3558_v55  ;;  %v3556_v40 = vpop.permute.xlu0 %3555 }
 0x794   :  { %v3613_v10 = vsel %vm950_vm2, %v3554_v34, %v3556_v40  ;;  %v3614_v35 = vsel %vm950_vm2, %v3556_v40, %v3558_v55  ;;  %v18367_v34 = vpop.f32.mrf.mxu1 }
 0x795   :  { %3727 = vst.msk [vmem:[#allocation4 + $0x90] sm:$0xff] %vm2660_vm14, %v3689_v60  ;;  %v3687_v47 = vmax.f32 %v18137_v58, %v3613_v10  ;;  %v3688_v51 = vmax.f32 %v18236_v37, %v3614_v35  ;;  %v5319_v58 = vadd.f32 %v5318_v32, %v18299_v48  ;;  %v5325_v48 = vadd.f32 %v5324_v33, %v18303_v54  ;;  %v12765_v60 = vld [vmem:[%s21223_s26 + $0x528] ss:$12 sps:$4 sm:$0xff]   ;;  %v12756_v35 = vld [vmem:[%s21223_s26 + $0x378] ss:$12 sps:$4 sm:$0xff]  }
 0x796   :  { %v3596_v42 = vpop.permute.xlu1 %3595  ;;  %v11890_v45 = vpop.f32.mrf.mxu1  ;;  %v12773_v10 = vld [vmem:[%s21223_s26 + $0x514] ss:$12 sps:$4 sm:$0xff]   ;;  %v11873_v3 = vadd.f32 %v18367_v34, %v18356_v25 }
 0x797   :  { %v3708_v50 = vmax.f32 %v3444_v59, %v3596_v42  ;;  %v3594_v14 = vpop.permute.xlu0 %3593  ;;  %v18358_v63 = vpop.f32.mrf.mxu0  ;;  %v5362_v5 = vadd.f32 %v18305_v7, %v5319_v58  ;;  %v5323_v7 = vadd.f32 %v18321_v62, %v18301_v8  ;;  %v5368_v12 = vadd.f32 %v18309_v24, %v5325_v48  ;;  %v12755_v8 = vld [vmem:[%s21223_s26 + $0x394] ss:$12 sps:$4 sm:$0xff]   ;;  %v12771_v59 = vld [vmem:[%s21223_s26 + $0x510] ss:$12 sps:$4 sm:$0xff]  }
 0x798   :  { %v3631_v37 = vsel %vm950_vm2, %v3592_v61, %v3594_v14  ;;  %v3632_v27 = vsel %vm950_vm2, %v3594_v14, %v3596_v42  ;;  %v11891_v62 = vpop.f32.mrf.mxu1  ;;  %v12779_v42 = vld [vmem:[%s21223_s26 + $0x4fc] ss:$12 sps:$4 sm:$0xff]   ;;  %v12770_v25 = vld [vmem:[%s21223_s26 + $0x334] ss:$12 sps:$4 sm:$0xff]   ;;  %vm20633_vm2 = vcmask 1043776  }
 0x799   :  { %3746 = vst.msk [vmem:[#allocation4 + $0x128] sm:$0xff] %vm2660_vm14, %v3708_v50  ;;  %v3706_v49 = vmax.f32 %v18164_v15, %v3631_v37  ;;  %v3707_v11 = vmax.f32 %v18259_v21, %v3632_v27  ;;  %v5656_v6 = vpop.f32.mrf.mxu0  ;;  %v5405_v22 = vadd.f32 %v5404_v56, %v5362_v5  ;;  %v5450_v15 = vadd.f32 %v18313_v2, %v5407_v1  ;;  %v12750_v2 = vld [vmem:[%s21223_s26 + $0x3a8] ss:$12 sps:$4 sm:$0xff]   ;;  %v12759_v50 = vld [vmem:[%s21223_s26 + $0x360] ss:$12 sps:$4 sm:$0xff]   ;;  %vm18679_vm1 = vmor %vm5697_vm12, %vm20633_vm2 }
 0x79a   :  { %v6039_v38 = vpop.permute.xlu1 %6038  ;;  %v5366_v56 = vadd.f32 %v18307_v29, %v5323_v7  ;;  %v5411_v61 = vadd.f32 %v5410_v19, %v5368_v12  ;;  %v12753_v19 = vld [vmem:[%s21223_s26 + $0x390] ss:$12 sps:$4 sm:$0xff]   ;;  %v12789_v7 = vld [vmem:[%s21223_s26 + $0x4c8] ss:$12 sps:$4 sm:$0xff]   ;;  %vm7714_vm12 = vcmask 716160   ;;  %vm8174_vm2 = vcmask 564224  }
 0x79b   :  { %v6037_v43 = vpop.permute.xlu0 %6036  ;;  %v18370_v32 = vpop.f32.mrf.mxu0  ;;  %v5731_v23 = vpack.c.bf16 %v3706_v49, %v3687_v47  ;;  %v5732_v41 = vpack.c.bf16 %v3707_v11, %v3688_v51  ;;  %v5448_v33 = vadd.f32 %v18311_v17, %v5405_v22  ;;  %v11892_v47 = vadd.f32 %v11891_v62, %v11890_v45  ;;  %v12761_v51 = vld [vmem:[%s21223_s26 + $0x364] ss:$12 sps:$4 sm:$0xff]   ;;  %v12762_v11 = vld [vmem:[%s21223_s26 + $0x348] ss:$12 sps:$4 sm:$0xff]  }
 0x79c   :  { %v18374_v21 = vsel %vm6054_vm11, %v6037_v43, %v6039_v38  ;;  %v5713_v17 = vld [vmem:[#allocation4 + $0x90] sm:$0xff]  ;;  %v5409_v26 = vadd.f32 %v18330_v30, %v5366_v56  ;;  %v5454_v28 = vadd.f32 %v18317_v16, %v5411_v61  ;;  %v12758_v16 = vld [vmem:[%s21223_s26 + $0x37c] ss:$12 sps:$4 sm:$0xff]   ;;  %v11893_v30 = vpop.f32.mrf.mxu1  ;;  %v12788_v61 = vld [vmem:[%s21223_s26 + $0x46c] ss:$12 sps:$4 sm:$0xff]  }
 0x79d   :  { %7277 = vmatprep.mubr.bf16.mxu1 %v18374_v21  ;;  %v5659_v54 = vpop.f32.mrf.mxu0  ;;  %6048 = vrot.lane.b32.xlu1 %v5731_v23, %s13100_s14  ;;  %v11836_v24 = vpack.c.bf16 %v5450_v15, %v5448_v33  ;;  %v5532_v14 = vadd.f32 %v11892_v47, %v11870_v13  ;;  %v12785_v27 = vld [vmem:[%s21223_s26 + $0x4e4] ss:$12 sps:$4 sm:$0xff]   ;;  %v12776_v45 = vld [vmem:[%s21223_s26 + $0x31c] ss:$12 sps:$4 sm:$0xff]   ;;  %v12794_v62 = vld [vmem:[%s21223_s26 + $0x454] ss:$12 sps:$4 sm:$0xff]  }
 0x79e   :  { %6050 = vrot.lane.b32.xlu0 %v5732_v41, %s13100_s14  ;;  %v6041_v53 = vpop.permute.xlu1 %6040  ;;  %v5452_v20 = vadd.f32 %v18315_v57, %v5409_v26  ;;  %v11894_v44 = vpop.f32.mrf.mxu1  ;;  %v12782_v33 = vld [vmem:[%s21223_s26 + $0x304] ss:$12 sps:$4 sm:$0xff]   ;;  %v12803_v56 = vld [vmem:[%s21223_s26 + $0x49c] ss:$12 sps:$4 sm:$0xff]  }
 0x79f   :  { %v6035_v31 = vpop.permute.xlu0 %6034  ;;  %v18416_v57 = vsel %vm6054_vm11, %v6039_v38, %v6041_v53  ;;  %v11895_v58 = vadd.f32 %v11894_v44, %v11893_v30  ;;  %v5573_v5 = vadd.f32 %v18319_v0, %v5532_v14  ;;  %v12783_v38 = vld [vmem:[%s21223_s26 + $0x4e0] ss:$12 sps:$4 sm:$0xff]   ;;  %v12768_v0 = vld [vmem:[%s21223_s26 + $0x330] ss:$12 sps:$4 sm:$0xff]   ;;  %v12810_v47 = vld [vmem:[%s21223_s26 + $0x408] ss:$12 sps:$4 sm:$0xff]  }
 0x7a0   :  { %v18391_v52 = vsel %vm6054_vm11, %v6035_v31, %v6037_v43  ;;  %v5723_v36 = vld [vmem:[#allocation4 + $0x128] sm:$0xff]  ;;  %v11838_v40 = vpack.c.bf16 %v5454_v28, %v5452_v20  ;;  %v12801_v31 = vld [vmem:[%s21223_s26 + $0x498] ss:$12 sps:$4 sm:$0xff]   ;;  %v12792_v26 = vld [vmem:[%s21223_s26 + $0x450] ss:$12 sps:$4 sm:$0xff]  }
 0x7a1   :  { %7278 = vmatmul.mubr.bf16.vlgmr.msra.gmra.mxu1 %v18391_v52  ;;  %v5733_v29 = vpack.c.bf16 %v5723_v36, %v5713_v17  ;;  %v5535_v6 = vadd.f32 %v11895_v58, %v11873_v3  ;;  %v12791_v43 = vld [vmem:[%s21223_s26 + $0x4cc] ss:$12 sps:$4 sm:$0xff]   ;;  %v12800_v28 = vld [vmem:[%s21223_s26 + $0x43c] ss:$12 sps:$4 sm:$0xff]   ;;  %v12806_v20 = vld [vmem:[%s21223_s26 + $0x424] ss:$12 sps:$4 sm:$0xff]  }
 0x7a2   :  { %5677 = vrot.lane.b32.xlu0 %v11836_v24, %s13101_s27  ;;  %7332 = vmatpush1.bf16.msra.mxu1 %v12750_v2  ;;  %v12795_v2 = vld [vmem:[%s21223_s26 + $0x4b0] ss:$12 sps:$4 sm:$0xff]   ;;  %v12786_v24 = vld [vmem:[%s21223_s26 + $0x468] ss:$12 sps:$4 sm:$0xff]   ;;  %v12807_v17 = vld [vmem:[%s21223_s26 + $0x480] ss:$12 sps:$4 sm:$0xff]  }
 0x7a3   :  { %v18401_v4 = vpop.permute.xlu0 %6042  ;;  %6052 = vrot.lane.b32.xlu1 %v5733_v29, %s13100_s14  ;;  %7333 = vmatprep.subr.bf16.mxu1 %v12755_v8  ;;  %v5576_v22 = vadd.f32 %v18323_v46, %v5535_v6  ;;  %v12774_v46 = vld [vmem:[%s21223_s26 + $0x318] ss:$12 sps:$4 sm:$0xff]   ;;  %v12813_v29 = vld [vmem:[%s21223_s26 + $0x5e8] ss:$12 sps:$4 sm:$0xff]   ;;  %v12831_v44 = vld [vmem:[%s21223_s26 + $0x5a0] ss:$12 sps:$4 sm:$0xff]  }
 0x7a4   :  { %v18409_v55 = vsel %vm6054_vm11, %v6041_v53, %v18401_v4  ;;  %v12809_v8 = vld [vmem:[%s21223_s26 + $0x484] ss:$12 sps:$4 sm:$0xff]   ;;  %v12815_v36 = vld [vmem:[%s21223_s26 + $0x5ec] ss:$12 sps:$4 sm:$0xff]   ;;  %v12821_v53 = vld [vmem:[%s21223_s26 + $0x5d4] ss:$12 sps:$4 sm:$0xff]  }
 0x7a5   :  { %7320 = vmatprep.mubr.bf16.mxu0 %v18409_v55  ;;  %v12827_v30 = vld [vmem:[%s21223_s26 + $0x5bc] ss:$12 sps:$4 sm:$0xff]   ;;  %v12842_v14 = vld [vmem:[%s21223_s26 + $0x574] ss:$12 sps:$4 sm:$0xff]   ;;  %v12822_v58 = vld [vmem:[%s21223_s26 + $0x3d8] ss:$12 sps:$4 sm:$0xff]  }
 0x7a6   :  { %7321 = vmatmul.mubr.bf16.vlgmr.msra.gmra.mxu0 %v18416_v57  ;;  %7334 = vmatpush1.bf16.msra.mxu1 %v12753_v19  ;;  %v12798_v19 = vld [vmem:[%s21223_s26 + $0x438] ss:$12 sps:$4 sm:$0xff]   ;;  %v12816_v13 = vld [vmem:[%s21223_s26 + $0x3f0] ss:$12 sps:$4 sm:$0xff]   ;;  %v12828_v3 = vld [vmem:[%s21223_s26 + $0x3c0] ss:$12 sps:$4 sm:$0xff]  }
 0x7a7   :  { %5681 = vrot.lane.b32.xlu1 %v11838_v40, %s13101_s27  ;;  %7335 = vmatprep.subr.bf16.mxu1 %v12758_v16  ;;  %v12819_v16 = vld [vmem:[%s21223_s26 + $0x5d0] ss:$12 sps:$4 sm:$0xff]   ;;  %v12812_v40 = vld [vmem:[%s21223_s26 + $0x40c] ss:$12 sps:$4 sm:$0xff]   ;;  %s13105_s14 = smov 87  }
 0x7a8   :  { %7375 = vmatpush1.bf16.msra.mxu0 %v12765_v60  ;;  %v12804_v60 = vld [vmem:[%s21223_s26 + $0x420] ss:$12 sps:$4 sm:$0xff]  }
 0x7a9   :  { %7376 = vmatprep.subr.bf16.mxu0 %v12773_v10  ;;  %v12825_v10 = vld [vmem:[%s21223_s26 + $0x5b8] ss:$12 sps:$4 sm:$0xff]   ;;  %v12852_v6 = vld [vmem:[%s21223_s26 + $0x540] ss:$12 sps:$4 sm:$0xff]  }
 0x7aa   :  { %7336 = vmatpush1.bf16.msra.mxu1 %v12756_v35  ;;  %v12833_v35 = vld [vmem:[%s21223_s26 + $0x5a4] ss:$12 sps:$4 sm:$0xff]  }
 0x7ab   :  { %7337 = vmatprep.subr.bf16.mxu1 %v12761_v51  ;;  %v12818_v51 = vld [vmem:[%s21223_s26 + $0x3f4] ss:$12 sps:$4 sm:$0xff]  }
 0x7ac   :  { %v11934_v37 = vpop.f32.mrf.mxu1  ;;  %7377 = vmatpush1.bf16.msra.mxu0 %v12771_v59  ;;  %v12836_v59 = vld [vmem:[%s21223_s26 + $0x58c] ss:$12 sps:$4 sm:$0xff]  }
 0x7ad   :  { %7378 = vmatprep.subr.bf16.mxu0 %v12779_v42  ;;  %v12824_v42 = vld [vmem:[%s21223_s26 + $0x3dc] ss:$12 sps:$4 sm:$0xff]  }
 0x7ae   :  { %v11935_v49 = vpop.f32.mrf.mxu1  ;;  %7338 = vmatpush1.bf16.msra.mxu1 %v12759_v50  ;;  %v12834_v50 = vld [vmem:[%s21223_s26 + $0x588] ss:$12 sps:$4 sm:$0xff]  }
 0x7af   :  { %v11936_v1 = vadd.f32 %v11935_v49, %v11934_v37  ;;  %7339 = vmatprep.subr.bf16.mxu1 %v12764_v9  ;;  %v12830_v9 = vld [vmem:[%s21223_s26 + $0x3c4] ss:$12 sps:$4 sm:$0xff]  }
 0x7b0   :  { %v11937_v34 = vpop.f32.mrf.mxu1  ;;  %7379 = vmatpush1.bf16.msra.mxu0 %v12777_v39  ;;  %v12840_v37 = vld [vmem:[%s21223_s26 + $0x570] ss:$12 sps:$4 sm:$0xff]   ;;  %v12846_v49 = vld [vmem:[%s21223_s26 + $0x558] ss:$12 sps:$4 sm:$0xff]  }
 0x7b1   :  { %v5614_v48 = vadd.f32 %v11936_v1, %v5573_v5  ;;  %7380 = vmatprep.subr.bf16.mxu0 %v12785_v27  ;;  %v12848_v39 = vld [vmem:[%s21223_s26 + $0x55c] ss:$12 sps:$4 sm:$0xff]   ;;  %v12839_v27 = vld [vmem:[%s21223_s26 + $0x6ac] ss:$12 sps:$4 sm:$0xff]  }
 0x7b2   :  { %v11938_v23 = vpop.f32.mrf.mxu1  ;;  %7340 = vmatpush1.bf16.msra.mxu1 %v12762_v11  ;;  %v12854_v11 = vld [vmem:[%s21223_s26 + $0x544] ss:$12 sps:$4 sm:$0xff]  }
 0x7b3   :  { %v18468_v41 = vadd.f32 %v18358_v63, %v5614_v48  ;;  %v11939_v15 = vadd.f32 %v11938_v23, %v11937_v34  ;;  %7341 = vmatprep.subr.bf16.mxu1 %v12770_v25  ;;  %v12797_v63 = vld [vmem:[%s21223_s26 + $0x4b4] ss:$12 sps:$4 sm:$0xff]   ;;  %v12861_v5 = vld [vmem:[%s21223_s26 + $0x170] ss:$12 sps:$4 sm:$0xff]  }
 0x7b4   :  { %7381 = vmatpush1.bf16.msra.mxu0 %v12783_v38  ;;  %v12837_v34 = vld [vmem:[%s21223_s26 + $0x6a8] ss:$12 sps:$4 sm:$0xff]   ;;  %v12843_v23 = vld [vmem:[%s21223_s26 + $0x690] ss:$12 sps:$4 sm:$0xff]  }
 0x7b5   :  { %v5617_v12 = vadd.f32 %v11939_v15, %v5576_v22  ;;  %7382 = vmatprep.subr.bf16.mxu0 %v12791_v43  ;;  %v12845_v43 = vld [vmem:[%s21223_s26 + $0x694] ss:$12 sps:$4 sm:$0xff]   ;;  %v12857_v22 = vld [vmem:[%s21223_s26 + $0x664] ss:$12 sps:$4 sm:$0xff]  }
 0x7b6   :  { %7342 = vmatpush1.bf16.msra.mxu1 %v12768_v0  ;;  %v12851_v0 = vld [vmem:[%s21223_s26 + $0x67c] ss:$12 sps:$4 sm:$0xff]   ;;  %v12855_v15 = vld [vmem:[%s21223_s26 + $0x660] ss:$12 sps:$4 sm:$0xff]  }
 0x7b7   :  { %v18484_v54 = vadd.f32 %v18370_v32, %v5617_v12  ;;  %7343 = vmatprep.subr.bf16.mxu1 %v12776_v45  ;;  %v12780_v32 = vld [vmem:[%s21223_s26 + $0x300] ss:$12 sps:$4 sm:$0xff]   ;;  %v12858_v12 = vld [vmem:[%s21223_s26 + $0x648] ss:$12 sps:$4 sm:$0xff]  }
 0x7b8   :  { %7383 = vmatpush1.bf16.msra.mxu0 %v12789_v7  ;;  %v12860_v45 = vld [vmem:[%s21223_s26 + $0x64c] ss:$12 sps:$4 sm:$0xff]  }
 0x7b9   :  { %7384 = vmatprep.subr.bf16.mxu0 %v12797_v63 }
 0x7ba   :  { %7344 = vmatpush1.bf16.msra.mxu1 %v12774_v46 }
 0x7bb   :  { %7345 = vmatprep.subr.bf16.mxu1 %v12782_v33  ;;  %v12862_v33 = vld [vmem:[%s21223_s26 + $0xb0] ss:$12 sps:$4 sm:$0xff]  }
 0x7bc   :  { %7385 = vmatpush1.bf16.msra.mxu0 %v12795_v2 }
 0x7bd   :  { %7386 = vmatprep.subr.bf16.mxu0 %v12803_v56  ;;  %v12865_v56 = vld [vmem:[%s21223_s26 + $0x634] ss:$12 sps:$4 sm:$0xff]  }
 0x7be   :  { %7346 = vmatpush1.bf16.msra.mxu1 %v12780_v32  ;;  %v12866_v32 = vld [vmem:[%s21223_s26 + $0x158] ss:$12 sps:$4 sm:$0xff]  }
 0x7bf   :  { %7347 = vmatprep.subr.bf16.mxu1 %v12788_v61  ;;  %v12863_v61 = vld [vmem:[%s21223_s26 + $0x630] ss:$12 sps:$4 sm:$0xff]  }
 0x7c0   :  { %7387 = vmatpush1.bf16.msra.mxu0 %v12801_v31 }
 0x7c1   :  { %7388 = vmatprep.subr.bf16.mxu0 %v12809_v8  ;;  %v12867_v8 = vld [vmem:[%s21223_s26 + $0x98] ss:$12 sps:$4 sm:$0xff]  }
 0x7c2   :  { %7348 = vmatpush2.bf16.msra.mxu1 %v12786_v24  ;;  %v12870_v24 = vld [vmem:[%s21223_s26 + $0x61c] ss:$12 sps:$4 sm:$0xff]  }
 0x7c3   :  { %7349 = vmatprep.subr.bf16.mxu1 %v12794_v62  ;;  %v12916_v62 = vld [vmem:[%s21223_s26 + $0x338] ss:$12 sps:$4 sm:$0xff]  }
 0x7c4   :  { %7389 = vmatpush1.bf16.msra.mxu0 %v12807_v17 }
 0x7c5   :  { %7390 = vmatprep.subr.bf16.mxu0 %v12815_v36 }
 0x7c6   :  { %7350 = vmatpush2.bf16.msra.mxu1 %v12792_v26 }
 0x7c7   :  { %7351 = vmatprep.subr.bf16.mxu1 %v12800_v28  ;;  %v12868_v28 = vld [vmem:[%s21223_s26 + $0x618] ss:$12 sps:$4 sm:$0xff]  }
 0x7c8   :  { %7391 = vmatpush2.bf16.msra.mxu0 %v12813_v29  ;;  %v12872_v29 = vld [vmem:[%s21223_s26 + $0x80] ss:$12 sps:$4 sm:$0xff]  }
 0x7c9   :  { %7392 = vmatprep.subr.bf16.mxu0 %v12821_v53  ;;  %v12875_v53 = vld [vmem:[%s21223_s26 + $0x604] ss:$12 sps:$4 sm:$0xff]  }
 0x7ca   :  { %7352 = vmatpush2.bf16.msra.mxu1 %v12798_v19 }
 0x7cb   :  { %7353 = vmatprep.subr.bf16.mxu1 %v12806_v20  ;;  %v12876_v20 = vld [vmem:[%s21223_s26 + $0x128] ss:$12 sps:$4 sm:$0xff]  }
 0x7cc   :  { %7393 = vmatpush2.bf16.msra.mxu0 %v12819_v16  ;;  %v6022_v16 = vld [vmem:[%s21223_s26 + $0x6c0] sm:$0x33] }
 0x7cd   :  { %7394 = vmatprep.subr.bf16.mxu0 %v12827_v30 }
 0x7ce   :  { %7354 = vmatpush2.bf16.msra.mxu1 %v12804_v60  ;;  %v12873_v60 = vld [vmem:[%s21223_s26 + $0x600] ss:$12 sps:$4 sm:$0xff]  }
 0x7cf   :  { %7355 = vmatprep.subr.bf16.mxu1 %v12812_v40 }
 0x7d0   :  { %7395 = vmatpush2.bf16.msra.mxu0 %v12825_v10  ;;  %v12877_v10 = vld [vmem:[%s21223_s26 + $0x68] ss:$12 sps:$4 sm:$0xff]  }
 0x7d1   :  { %7396 = vmatprep.subr.bf16.mxu0 %v12833_v35  ;;  %v11630_v35 = vcombine.high %v6022_v16, %v6022_v16 }
 0x7d2   :  { %7356 = vmatpush2.bf16.msra.mxu1 %v12810_v47  ;;  %v11629_v47 = vcombine.low %v6022_v16, %v6022_v16  ;;  %v12926_v16 = vld [vmem:[%s21223_s26 + $0x5a8] ss:$12 sps:$4 sm:$0xff]  }
 0x7d3   :  { %7357 = vmatprep.subr.bf16.mxu1 %v12818_v51  ;;  %v12879_v51 = vld [vmem:[%s21223_s26 + $0x110] ss:$12 sps:$4 sm:$0xff]  }
 0x7d4   :  { %7397 = vmatpush2.bf16.msra.mxu0 %v12831_v44  ;;  %v7237_v44 = vsel %vm20635_vm7, %v11629_v47, 0  ;;  %v12931_v47 = vld [vmem:[%s21223_s26 + $0x698] ss:$12 sps:$4 sm:$0xff]  }
 0x7d5   :  { %7398 = vmatprep.subr.bf16.mxu0 %v12836_v59  ;;  %v12881_v59 = vld [vmem:[%s21223_s26 + $0x50] ss:$12 sps:$4 sm:$0xff]  }
 0x7d6   :  { %7358 = vmatpush2.bf16.msra.mxu1 %v12816_v13  ;;  %v12883_v13 = vld [vmem:[%s21223_s26 + $0x2f0] ss:$12 sps:$4 sm:$0xff]  }
 0x7d7   :  { %7359 = vmatprep.subr.bf16.mxu1 %v12824_v42  ;;  %v12882_v42 = vld [vmem:[%s21223_s26 + $0xf8] ss:$12 sps:$4 sm:$0xff]  }
 0x7d8   :  { %7399 = vmatpush2.bf16.msra.mxu0 %v12834_v50  ;;  %v12885_v50 = vld [vmem:[%s21223_s26 + $0x230] ss:$12 sps:$4 sm:$0xff]  }
 0x7d9   :  { %7400 = vmatprep.subr.bf16.mxu0 %v12842_v14  ;;  %v12884_v14 = vld [vmem:[%s21223_s26 + $0x38] ss:$12 sps:$4 sm:$0xff]  }
 0x7da   :  { %7360 = vmatpush2.bf16.msra.mxu1 %v12822_v58  ;;  %v12887_v58 = vld [vmem:[%s21223_s26 + $0x2d8] ss:$12 sps:$4 sm:$0xff]  }
 0x7db   :  { %7361 = vmatprep.subr.bf16.mxu1 %v12830_v9 }
 0x7dc   :  { %7401 = vmatpush2.bf16.msra.mxu0 %v12840_v37  ;;  %v12886_v37 = vld [vmem:[%s21223_s26 + $0xe0] ss:$12 sps:$4 sm:$0xff]  }
 0x7dd   :  { %7402 = vmatprep.subr.bf16.mxu0 %v12848_v39  ;;  %v12889_v39 = vld [vmem:[%s21223_s26 + $0x218] ss:$12 sps:$4 sm:$0xff]  }
 0x7de   :  { %7362 = vmatpush2.bf16.msra.mxu1 %v12828_v3  ;;  %v12888_v3 = vld [vmem:[%s21223_s26 + $0x20] ss:$12 sps:$4 sm:$0xff]  }
 0x7df   :  { %7417 = vmatprep.subr.bf16.mxu1 %v12839_v27  ;;  %v12891_v27 = vld [vmem:[%s21223_s26 + $0x2c0] ss:$12 sps:$4 sm:$0xff]  }
 0x7e0   :  { %7403 = vmatpush2.bf16.msra.mxu0 %v12846_v49  ;;  %v12890_v49 = vld [vmem:[%s21223_s26 + $0xc8] ss:$12 sps:$4 sm:$0xff]  }
 0x7e1   :  { %7404 = vmatprep.subr.bf16.mxu0 %v12854_v11  ;;  %v12892_v11 = vld [vmem:[%s21223_s26 + $0x8] ss:$12 sps:$4 sm:$0xff]  }
 0x7e4   :  { %7405 = vmatpush2.bf16.msra.mxu0 %v12852_v6  ;;  %v12894_v6 = vld [vmem:[%s21223_s26 + $0x2a8] ss:$12 sps:$4 sm:$0xff]  }
 0x7e5   :  { %11940 = vmatprep.subr.bf16.mxu0 %v12861_v5  ;;  %v12895_v5 = vld [vmem:[%s21223_s26 + $0x470] ss:$12 sps:$4 sm:$0xff]  }
 0x7ff   :  { %v6047_v1 = vpop.permute.xlu0 %6046  ;;  %v6045_v25 = vpop.permute.xlu1 %6044 }
 0x800   :  { %v18613_v38 = vsel %vm6054_vm11, %v6045_v25, %v6047_v1  ;;  %v18617_v48 = vsel %vm6054_vm11, %v18401_v4, %v6045_v25  ;;  %v12849_v4 = vld [vmem:[%s21223_s26 + $0x678] ss:$12 sps:$4 sm:$0xff]   ;;  %v12897_v25 = vld [vmem:[%s21223_s26 + $0x3b0] ss:$12 sps:$4 sm:$0xff]  }
 0x801   :  { %7363 = vmatprep.mubr.bf16.mxu1 %v18613_v38 }
 0x802   :  { %7364 = vmatmul.mubr.bf16.vlgmr.msra.gmra.mxu1 %v18617_v48 }
 0x803   :  { %7418 = vmatpush1.bf16.msra.mxu1 %v12837_v34  ;;  %v12898_v34 = vld [vmem:[%s21223_s26 + $0x290] ss:$12 sps:$4 sm:$0xff]  }
 0x804   :  { %7419 = vmatprep.subr.bf16.mxu1 %v12845_v43  ;;  %v12899_v43 = vld [vmem:[%s21223_s26 + $0x458] ss:$12 sps:$4 sm:$0xff]  }
 0x807   :  { %7420 = vmatpush1.bf16.msra.mxu1 %v12843_v23  ;;  %v12900_v23 = vld [vmem:[%s21223_s26 + $0x1d0] ss:$12 sps:$4 sm:$0xff]  }
 0x808   :  { %7421 = vmatprep.subr.bf16.mxu1 %v12851_v0  ;;  %v12901_v0 = vld [vmem:[%s21223_s26 + $0x398] ss:$12 sps:$4 sm:$0xff]  }
 0x80b   :  { %7422 = vmatpush1.bf16.msra.mxu1 %v12849_v4  ;;  %v12902_v4 = vld [vmem:[%s21223_s26 + $0x278] ss:$12 sps:$4 sm:$0xff]  }
 0x80c   :  { %7423 = vmatprep.subr.bf16.mxu1 %v12857_v22  ;;  %v12904_v22 = vld [vmem:[%s21223_s26 + $0x1b8] ss:$12 sps:$4 sm:$0xff]  }
 0x80f   :  { %7424 = vmatpush1.bf16.msra.mxu1 %v12855_v15  ;;  %v6049_v7 = vpop.permute.xlu1 %6048  ;;  %v12906_v15 = vld [vmem:[%s21223_s26 + $0x260] ss:$12 sps:$4 sm:$0xff]  }
 0x810   :  { %v18645_v63 = vpop.permute.xlu0 %6050  ;;  %7425 = vmatprep.subr.bf16.mxu1 %v12860_v45  ;;  %v18648_v46 = vsel %vm6054_vm11, %v6047_v1, %v6049_v7  ;;  %v12896_v1 = vld [vmem:[%s21223_s26 + $0x1e8] ss:$12 sps:$4 sm:$0xff]  }
 0x811   :  { %v18655_v2 = vsel %vm6054_vm11, %v6049_v7, %v18645_v63  ;;  %v12907_v45 = vld [vmem:[%s21223_s26 + $0x428] ss:$12 sps:$4 sm:$0xff]   ;;  %v12908_v7 = vld [vmem:[%s21223_s26 + $0x1a0] ss:$12 sps:$4 sm:$0xff]  }
 0x812   :  { %7406 = vmatprep.mubr.bf16.mxu0 %v18655_v2 }
 0x813   :  { %7407 = vmatmul.mubr.bf16.vlgmr.msra.gmra.mxu0 %v18648_v46  ;;  %7426 = vmatpush1.bf16.msra.mxu1 %v12858_v12  ;;  %v12909_v12 = vld [vmem:[%s21223_s26 + $0x368] ss:$12 sps:$4 sm:$0xff]  }
 0x814   :  { %11941 = vmatpush3.bf16.msra.mxu0 %v12862_v33  ;;  %v18668_v31 = vpop.permute.xlu0 %5677  ;;  %7492 = vmatprep.mubr.bf16.mxu0 %v18374_v21  ;;  %v12871_v21 = vld [vmem:[%s21223_s26 + $0x140] ss:$12 sps:$4 sm:$0xff]   ;;  %v12911_v33 = vld [vmem:[%s21223_s26 + $0x410] ss:$12 sps:$4 sm:$0xff]  }
 0x815   :  { %v5685_v17 = vrot.slane %v18668_v31, 4  ;;  %v18684_v36 = vpop.permute.xlu1 %6052  ;;  %7427 = vmatprep.subr.bf16.mxu1 %v12865_v56  ;;  %11942 = vmatprep.subr.bf16.mxu0 %v12866_v32  ;;  %v12912_v56 = vld [vmem:[%s21223_s26 + $0x188] ss:$12 sps:$4 sm:$0xff]   ;;  %v12913_v32 = vld [vmem:[%s21223_s26 + $0x350] ss:$12 sps:$4 sm:$0xff]  }
 0x816   :  { %11633 = vmatprep.mubr.msk.bf16.mxu1 %vm5227_vm8, %v18684_v36  ;;  %v18753_v9 = vsel %vm6054_vm11, %v18645_v63, %v18684_v36  ;;  %v12910_v63 = vld [vmem:[%s21223_s26 + $0x248] ss:$12 sps:$4 sm:$0xff]  }
 0x817   :  { %v5688_v26 = vsel %vm20632_vm13, %v5685_v17, %v18668_v31  ;;  %7428 = vmatpush1.bf16.msra.mxu1 %v12863_v61  ;;  %v12915_v61 = vld [vmem:[%s21223_s26 + $0x5f0] ss:$12 sps:$4 sm:$0xff]  }
 0x818   :  { %5699 = vst.msk [vmem:[#allocation2] sm:$0xff] %vm18679_vm1, %v5688_v26  ;;  %11943 = vmatpush3.bf16.msra.mxu0 %v12867_v8  ;;  %7429 = vmatprep.subr.bf16.mxu1 %v12870_v24  ;;  %v12914_v8 = vld [vmem:[%s21223_s26 + $0x3f8] ss:$12 sps:$4 sm:$0xff]   ;;  %v12917_v24 = vld [vmem:[%s21223_s26 + $0x530] ss:$12 sps:$4 sm:$0xff]  }
 0x819   :  { %v18706_v19 = vpop.permute.xlu1 %5681  ;;  %11944 = vmatprep.subr.bf16.mxu0 %v12871_v21  ;;  %v12919_v21 = vld [vmem:[%s21223_s26 + $0x5d8] ss:$12 sps:$4 sm:$0xff]   ;;  %v12918_v26 = vld [vmem:[%s21223_s26 + $0x3e0] ss:$12 sps:$4 sm:$0xff]  }
 0x81a   :  { %v5686_v30 = vrot.slane %v18706_v19, 4 }
 0x81b   :  { %7430 = vmatpush1.bf16.msra.mxu1 %v12868_v28  ;;  %v12921_v28 = vld [vmem:[%s21223_s26 + $0x518] ss:$12 sps:$4 sm:$0xff]  }
 0x81c   :  { %v5690_v40 = vsel %vm20632_vm13, %v5686_v30, %v18706_v19  ;;  %11945 = vmatpush3.bf16.msra.mxu0 %v12872_v29  ;;  %7431 = vmatprep.subr.bf16.mxu1 %v12875_v53  ;;  %v12920_v29 = vld [vmem:[%s21223_s26 + $0x320] ss:$12 sps:$4 sm:$0xff]  }
 0x81d   :  { %5702 = vst.msk [vmem:[#allocation2 + $0x18] sm:$0xff] %vm18679_vm1, %v5690_v40  ;;  %11946 = vmatprep.subr.bf16.mxu0 %v12876_v20  ;;  %v12923_v53 = vld [vmem:[%s21223_s26 + $0x5c0] ss:$12 sps:$4 sm:$0xff]   ;;  %v12924_v20 = vld [vmem:[%s21223_s26 + $0x308] ss:$12 sps:$4 sm:$0xff]   ;;  %vm8531_vm1 = vcmask 130048  }
 0x81e   :  { %v12928_v40 = vld [vmem:[%s21223_s26 + $0x6b0] ss:$12 sps:$4 sm:$0xff]  }
 0x81f   :  { %7432 = vmatpush1.bf16.msra.mxu1 %v12873_v60  ;;  %v12927_v60 = vld [vmem:[%s21223_s26 + $0x4e8] ss:$12 sps:$4 sm:$0xff]  }
 0x820   :  { %11947 = vmatpush3.bf16.msra.mxu0 %v12877_v10  ;;  %11632 = vmatprep.subr.msk.bf16.mxu1 %vm20635_vm7, %v11630_v35  ;;  %v12929_v10 = vld [vmem:[%s21223_s26 + $0x590] ss:$12 sps:$4 sm:$0xff]  }
 0x821   :  { %11948 = vmatprep.subr.bf16.mxu0 %v12879_v51  ;;  %v12930_v35 = vld [vmem:[%s21223_s26 + $0x4d0] ss:$12 sps:$4 sm:$0xff]   ;;  %v12932_v51 = vld [vmem:[%s21223_s26 + $0x578] ss:$12 sps:$4 sm:$0xff]  }
 0x823   :  { %7448 = vmatpush2.bf16.msra.mxu1 %v7237_v44  ;;  %v12935_v44 = vld [vmem:[%s21223_s26 + $0x560] ss:$12 sps:$4 sm:$0xff]  }
 0x824   :  { %11949 = vmatpush3.bf16.msra.mxu0 %v12881_v59  ;;  %11962 = vmatprep.subr.bf16.mxu1 %v12883_v13  ;;  %v12936_v59 = vld [vmem:[%s21223_s26 + $0x4a0] ss:$12 sps:$4 sm:$0xff]   ;;  %v12937_v13 = vld [vmem:[%s21223_s26 + $0x668] ss:$12 sps:$4 sm:$0xff]  }
 0x825   :  { %11950 = vmatprep.subr.bf16.mxu0 %v12882_v42  ;;  %v12938_v42 = vld [vmem:[%s21223_s26 + $0x548] ss:$12 sps:$4 sm:$0xff]  }
 0x826   :  { %7450 = vmatmul.mubr.bf16.vlgmr.msra.gmra.mxu1 %v18753_v9 }
 0x827   :  { %11963 = vmatpush3.bf16.msra.mxu1 %v12885_v50  ;;  %7533 = vmatprep.mubr.bf16.mxu1 %v18409_v55  ;;  %v12893_v55 = vld [vmem:[%s21223_s26 + $0x200] ss:$12 sps:$4 sm:$0xff]   ;;  %v12939_v50 = vld [vmem:[%s21223_s26 + $0x488] ss:$12 sps:$4 sm:$0xff]  }
 0x828   :  { %11951 = vmatpush3.bf16.msra.mxu0 %v12884_v14  ;;  %11964 = vmatprep.subr.bf16.mxu1 %v12887_v58  ;;  %v12940_v14 = vld [vmem:[%s21223_s26 + $0x650] ss:$12 sps:$4 sm:$0xff]   ;;  %v12941_v58 = vld [vmem:[%s21223_s26 + $0x638] ss:$12 sps:$4 sm:$0xff]  }
 0x829   :  { %11952 = vmatprep.subr.bf16.mxu0 %v12886_v37  ;;  %v12942_v37 = vld [vmem:[%s21223_s26 + $0x620] ss:$12 sps:$4 sm:$0xff]  }
 0x82b   :  { %11965 = vmatpush3.bf16.msra.mxu1 %v12889_v39  ;;  %v12943_v39 = vld [vmem:[%s21223_s26 + $0x608] ss:$12 sps:$4 sm:$0xff]  }
 0x82c   :  { %11953 = vmatpush3.bf16.msra.mxu0 %v12888_v3  ;;  %11966 = vmatprep.subr.bf16.mxu1 %v12891_v27  ;;  %v12944_v3 = vld [vmem:[%s21223_s26 + $0x6c8] ss:$0 sps:$4 sm:$0x33]  }
 0x82d   :  { %11954 = vmatprep.subr.bf16.mxu0 %v12890_v49 }
 0x82f   :  { %11967 = vmatpush3.bf16.msra.mxu1 %v12893_v55 }
 0x830   :  { %11955 = vmatpush3.bf16.msra.mxu0 %v12892_v11  ;;  %11968 = vmatprep.subr.bf16.mxu1 %v12894_v6 }
 0x831   :  { %11984 = vmatprep.subr.bf16.mxu0 %v12895_v5 }
 0x833   :  { %7493 = vmatmul.mubr.bf16.vlgmr.msra.gmra.mxu0 %v18391_v52  ;;  %11969 = vmatpush3.bf16.msra.mxu1 %v12896_v1  ;;  %v12903_v52 = vld [vmem:[%s21223_s26 + $0x440] ss:$12 sps:$4 sm:$0xff]  }
 0x834   :  { %11985 = vmatpush3.bf16.msra.mxu0 %v12897_v25  ;;  %7574 = vmatprep.mubr.bf16.mxu0 %v18613_v38  ;;  %v12905_v38 = vld [vmem:[%s21223_s26 + $0x380] ss:$12 sps:$4 sm:$0xff]  }
 0x835   :  { %11970 = vmatprep.subr.bf16.mxu1 %v12898_v34  ;;  %11986 = vmatprep.subr.bf16.mxu0 %v12899_v43 }
 0x837   :  { %11971 = vmatpush3.bf16.msra.mxu1 %v12900_v23 }
 0x838   :  { %11987 = vmatpush3.bf16.msra.mxu0 %v12901_v0  ;;  %11972 = vmatprep.subr.bf16.mxu1 %v12902_v4 }
 0x839   :  { %11988 = vmatprep.subr.bf16.mxu0 %v12903_v52 }
 0x83b   :  { %11973 = vmatpush3.bf16.msra.mxu1 %v12904_v22 }
 0x83c   :  { %11989 = vmatpush3.bf16.msra.mxu0 %v12905_v38  ;;  %11974 = vmatprep.subr.bf16.mxu1 %v12906_v15 }
 0x83d   :  { %11990 = vmatprep.subr.bf16.mxu0 %v12907_v45 }
 0x83f   :  { %11975 = vmatpush3.bf16.msra.mxu1 %v12908_v7 }
 0x840   :  { %11991 = vmatpush3.bf16.msra.mxu0 %v12909_v12  ;;  %11976 = vmatprep.subr.bf16.mxu1 %v12910_v63 }
 0x841   :  { %11992 = vmatprep.subr.bf16.mxu0 %v12911_v33 }
 0x843   :  { %11977 = vmatpush3.bf16.msra.mxu1 %v12912_v56 }
 0x844   :  { %11993 = vmatpush3.bf16.msra.mxu0 %v12913_v32  ;;  %12006 = vmatprep.subr.bf16.mxu1 %v12915_v61 }
 0x845   :  { %11994 = vmatprep.subr.bf16.mxu0 %v12914_v8 }
 0x846   :  { %7534 = vmatmul.mubr.bf16.vlgmr.msra.gmra.mxu1 %v18416_v57  ;;  %v12922_v57 = vld [vmem:[%s21223_s26 + $0x3c8] ss:$12 sps:$4 sm:$0xff]  }
 0x847   :  { %12007 = vmatpush3.bf16.msra.mxu1 %v12917_v24  ;;  %7615 = vmatprep.mubr.bf16.mxu1 %v18655_v2  ;;  %v12925_v2 = vld [vmem:[%s21223_s26 + $0x500] ss:$12 sps:$4 sm:$0xff]  }
 0x848   :  { %11995 = vmatpush3.bf16.msra.mxu0 %v12916_v62  ;;  %12008 = vmatprep.subr.bf16.mxu1 %v12919_v21 }
 0x849   :  { %11996 = vmatprep.subr.bf16.mxu0 %v12918_v26 }
 0x84b   :  { %12009 = vmatpush3.bf16.msra.mxu1 %v12921_v28 }
 0x84c   :  { %11997 = vmatpush3.bf16.msra.mxu0 %v12920_v29  ;;  %12010 = vmatprep.subr.bf16.mxu1 %v12923_v53 }
 0x84d   :  { %11998 = vmatprep.subr.bf16.mxu0 %v12922_v57 }
 0x84f   :  { %12011 = vmatpush3.bf16.msra.mxu1 %v12925_v2 }
 0x850   :  { %11999 = vmatpush3.bf16.msra.mxu0 %v12924_v20  ;;  %12012 = vmatprep.subr.bf16.mxu1 %v12926_v16  ;;  %v11837_v16 = vpack.c.bf16 %v18468_v41, %v18468_v41 }
 0x851   :  { %7624 = vmatprep.subr.bf16.mxu0 %v21236_v18 }
 0x853   :  { %7575 = vmatmul.mubr.bf16.vlgmr.msra.gmra.mxu0 %v18617_v48  ;;  %12013 = vmatpush3.bf16.msra.mxu1 %v12927_v60  ;;  %v12933_v48 = vld [vmem:[%s21223_s26 + $0x4b8] ss:$12 sps:$4 sm:$0xff]  }
 0x854   :  { %7625 = vmatpush1.bf16.msra.mxu0 %v12928_v40  ;;  %11634 = vmatprep.mubr.msk.bf16.mxu0 %vm5227_vm8, %v18684_v36  ;;  %v12934_v36 = vld [vmem:[%s21223_s26 + $0x680] ss:$12 sps:$4 sm:$0xff]   ;;  %s13102_s26 = smov 108   ;;  %v11839_v40 = vpack.c.bf16 %v18484_v54, %v18484_v54  ;;  %vm7695_vm8 = vcmask 1043456  }
 0x855   :  { %12014 = vmatprep.subr.bf16.mxu1 %v12929_v10  ;;  %7626 = vmatprep.subr.bf16.mxu0 %v21236_v18  ;;  %v18957_v10 = vld [vmem:[#allocation2] sm:$0xff]  ;;  %vm7710_vm11 = vmor %vm7709_vm10, %vm7695_vm8  ;;  %vm7909_vm10 = vcmask 728064  }
 0x857   :  { %12015 = vmatpush3.bf16.msra.mxu1 %v12930_v35 }
 0x858   :  { %7627 = vmatpush1.bf16.msra.mxu0 %v12931_v47  ;;  %12016 = vmatprep.subr.bf16.mxu1 %v12932_v51 }
 0x859   :  { %7628 = vmatprep.subr.bf16.mxu0 %v21236_v18 }
 0x85b   :  { %12017 = vmatpush3.bf16.msra.mxu1 %v12933_v48 }
 0x85c   :  { %7629 = vmatpush1.bf16.msra.mxu0 %v12934_v36  ;;  %12018 = vmatprep.subr.bf16.mxu1 %v12935_v44 }
 0x85d   :  { %7630 = vmatprep.subr.bf16.mxu0 %v21236_v18 }
 0x85f   :  { %12019 = vmatpush3.bf16.msra.mxu1 %v12936_v59 }
 0x860   :  { %7631 = vmatpush1.bf16.msra.mxu0 %v12937_v13  ;;  %12020 = vmatprep.subr.bf16.mxu1 %v12938_v42 }
 0x861   :  { %7632 = vmatprep.subr.bf16.mxu0 %v21236_v18  ;;  %v7279_v27 = vpop.f32.mrf.mxu1 }
 0x863   :  { %12021 = vmatpush3.bf16.msra.mxu1 %v12939_v50  ;;  %v7281_v49 = vpop.f32.mrf.mxu1 }
 0x864   :  { %7633 = vmatpush1.bf16.msra.mxu0 %v12940_v14 }
 0x865   :  { %7634 = vmatprep.subr.bf16.mxu0 %v21236_v18  ;;  %v7283_v11 = vpop.f32.mrf.mxu1 }
 0x866   :  { %7616 = vmatmul.mubr.bf16.vlgmr.msra.gmra.mxu1 %v18648_v46  ;;  %v7243_v46 = vsel %vm20635_vm7, %v12944_v3, 0  ;;  %v7322_v55 = vpop.f32.mrf.mxu0  ;;  %vm19259_vm7 = vmor %vm7766_vm5, %vm7695_vm8 }
 0x867   :  { %v7285_v5 = vpop.f32.mrf.mxu1  ;;  %v7323_v52 = vadd.f32 %v7322_v55, %v7279_v27 }
 0x868   :  { %7635 = vmatpush1.bf16.msra.mxu0 %v12941_v58  ;;  %v7324_v6 = vpop.f32.mrf.mxu0 }
 0x869   :  { %7636 = vmatprep.subr.bf16.mxu0 %v21236_v18  ;;  %v7325_v22 = vadd.f32 %v7324_v6, %v7281_v49 }
 0x86a   :  { %v7326_v1 = vpop.f32.mrf.mxu0 }
 0x86b   :  { %v7327_v12 = vadd.f32 %v7326_v1, %v7283_v11 }
 0x86c   :  { %7637 = vmatpush1.bf16.msra.mxu0 %v12942_v37  ;;  %v7328_v34 = vpop.f32.mrf.mxu0 }
 0x86d   :  { %7638 = vmatprep.subr.bf16.mxu0 %v21236_v18  ;;  %v7329_v63 = vadd.f32 %v7328_v34, %v7285_v5 }
 0x870   :  { %7639 = vmatpush1.bf16.msra.mxu0 %v12943_v39 }
 0x871   :  { %7654 = vmatprep.subr.bf16.mxu0 %v21236_v18 }
 0x874   :  { %7655 = vmatpush2.bf16.msra.mxu0 %v7243_v46 }
 0x877   :  { %7657 = vmatmul.mubr.bf16.vlgmr.msra.gmra.mxu0 %v18753_v9 }
 0x8c2   :  { %v7365_v25 = vpop.f32.mrf.mxu1 }
 0x8c3   :  { %v7366_v45 = vadd.f32 %v7365_v25, %v7323_v52 }
 0x8c4   :  { %v7367_v43 = vpop.f32.mrf.mxu1 }
 0x8c5   :  { %v7368_v7 = vadd.f32 %v7367_v43, %v7325_v22 }
 0x8c6   :  { %v7369_v0 = vpop.f32.mrf.mxu1 }
 0x8c7   :  { %v7370_v8 = vadd.f32 %v7369_v0, %v7327_v12  ;;  %v8093_v12 = vld [vmem:[#allocation2 + $0x18] sm:$0xff] }
 0x8c8   :  { %v7371_v38 = vpop.f32.mrf.mxu1 }
 0x8c9   :  { %v7372_v24 = vadd.f32 %v7371_v38, %v7329_v63 }
 0x8d3   :  { %v7408_v23 = vpop.f32.mrf.mxu0 }
 0x8d4   :  { %v7409_v33 = vadd.f32 %v7408_v23, %v7366_v45 }
 0x8d5   :  { %v7410_v4 = vpop.f32.mrf.mxu0 }
 0x8d6   :  { %v7411_v56 = vadd.f32 %v7410_v4, %v7368_v7 }
 0x8d7   :  { %v7412_v15 = vpop.f32.mrf.mxu0 }
 0x8d8   :  { %v7413_v28 = vadd.f32 %v7412_v15, %v7370_v8 }
 0x8d9   :  { %v7414_v32 = vpop.f32.mrf.mxu0 }
 0x8da   :  { %v7415_v29 = vadd.f32 %v7414_v32, %v7372_v24 }
 0x8e6   :  { %v7451_v9 = vpop.f32.mrf.mxu1 }
 0x8e7   :  { %v7452_v62 = vadd.f32 %v7451_v9, %v7409_v33 }
 0x8e8   :  { %v7453_v61 = vpop.f32.mrf.mxu1 }
 0x8e9   :  { %v7454_v21 = vadd.f32 %v7453_v61, %v7411_v56 }
 0x8ea   :  { %v7455_v26 = vpop.f32.mrf.mxu1 }
 0x8eb   :  { %v11840_v53 = vpack.c.bf16 %v7454_v21, %v7452_v62  ;;  %v7456_v2 = vadd.f32 %v7455_v26, %v7413_v28 }
 0x8ec   :  { %v7457_v57 = vpop.f32.mrf.mxu1 }
 0x8ed   :  { %v7458_v20 = vadd.f32 %v7457_v57, %v7415_v29  ;;  %7681 = vrot.lane.b32.xlu0 %v11840_v53, %s13102_s26 }
 0x8ef   :  { %v11842_v60 = vpack.c.bf16 %v7458_v20, %v7456_v2 }
 0x8f1   :  { %7685 = vrot.lane.b32.xlu1 %v11842_v60, %s13102_s26  ;;  %5679 = vrot.lane.b32.xlu0 %v11837_v16, %s13101_s27 }
 0x8f3   :  { %v11956_v35 = vpop.f32.mrf.mxu0 }
 0x8f5   :  { %5683 = vrot.lane.b32.xlu1 %v11839_v40, %s13101_s27  ;;  %8102 = vrot.lane.b32.xlu0 %v18957_v10, %s13103_s5  ;;  %v11957_v51 = vpop.f32.mrf.mxu0 }
 0x8f6   :  { %v11958_v39 = vadd.f32 %v11957_v51, %v11956_v35 }
 0x8f7   :  { %v11959_v48 = vpop.f32.mrf.mxu0 }
 0x8f9   :  { %v11960_v44 = vpop.f32.mrf.mxu0 }
 0x8fa   :  { %v11961_v6 = vadd.f32 %v11960_v44, %v11959_v48 }
 0x906   :  { %v11978_v47 = vpop.f32.mrf.mxu1 }
 0x908   :  { %v11979_v41 = vpop.f32.mrf.mxu1 }
 0x909   :  { %v11980_v58 = vadd.f32 %v11979_v41, %v11978_v47  ;;  %v19033_v41 = vld [vmem:[%s21242_s1 + $0x4] ss:$8 sps:$4 sm:$0xff]  }
 0x90a   :  { %v11981_v36 = vpop.f32.mrf.mxu1  ;;  %11695 = vmatprep.mubr.msk.bf16.mxu1 %vm8531_vm1, %v19033_v41  ;;  %11696 = vmatprep.mubr.msk.bf16.mxu0 %vm8531_vm1, %v19033_v41 }
 0x90b   :  { %v7536_v27 = vadd.f32 %v11980_v58, %v11958_v39 }
 0x90c   :  { %v11982_v59 = vpop.f32.mrf.mxu1 }
 0x90d   :  { %v11983_v49 = vadd.f32 %v11982_v59, %v11981_v36 }
 0x90f   :  { %v7539_v25 = vadd.f32 %v11983_v49, %v11961_v6 }
 0x913   :  { %v12000_v13 = vpop.f32.mrf.mxu0 }
 0x915   :  { %v12001_v50 = vpop.f32.mrf.mxu0 }
 0x916   :  { %v12002_v3 = vadd.f32 %v12001_v50, %v12000_v13 }
 0x917   :  { %v12003_v14 = vpop.f32.mrf.mxu0 }
 0x918   :  { %v7577_v5 = vadd.f32 %v12002_v3, %v7536_v27 }
 0x919   :  { %v12004_v46 = vpop.f32.mrf.mxu0 }
 0x91a   :  { %v12005_v1 = vadd.f32 %v12004_v46, %v12003_v14 }
 0x91c   :  { %v7580_v0 = vadd.f32 %v12005_v1, %v7539_v25 }
 0x926   :  { %v12022_v42 = vpop.f32.mrf.mxu1 }
 0x928   :  { %v12023_v54 = vpop.f32.mrf.mxu1 }
 0x929   :  { %v12024_v55 = vadd.f32 %v12023_v54, %v12022_v42 }
 0x92a   :  { %v12025_v37 = vpop.f32.mrf.mxu1 }
 0x92b   :  { %v7618_v43 = vadd.f32 %v12024_v55, %v7577_v5 }
 0x92c   :  { %v12026_v11 = vpop.f32.mrf.mxu1 }
 0x92d   :  { %v12027_v34 = vadd.f32 %v12026_v11, %v12025_v37 }
 0x92f   :  { %v7621_v38 = vadd.f32 %v12027_v34, %v7580_v0 }
 0x937   :  { %v7658_v23 = vpop.f32.mrf.mxu0 }
 0x938   :  { %v7659_v4 = vadd.f32 %v7658_v23, %v7618_v43 }
 0x939   :  { %v7660_v52 = vpop.f32.mrf.mxu0 }
 0x93a   :  { %v11841_v22 = vpack.c.bf16 %v7659_v4, %v7659_v4 }
 0x93b   :  { %v7661_v15 = vpop.f32.mrf.mxu0 }
 0x93c   :  { %v7662_v45 = vadd.f32 %v7661_v15, %v7621_v38  ;;  %7683 = vrot.lane.b32.xlu0 %v11841_v22, %s13102_s26 }
 0x93d   :  { %v7663_v7 = vpop.f32.mrf.mxu0 }
 0x93e   :  { %v11843_v9 = vpack.c.bf16 %v7662_v45, %v7662_v45 }
 0x940   :  { %7687 = vrot.lane.b32.xlu1 %v11843_v9, %s13102_s26  ;;  %8108 = vrot.lane.b32.xlu0 %v8093_v12, %s13103_s5 }
 0x944   :  { %8049 = vrot.lane.b32.xlu0 %v18957_v10, %s13104_s0 }
 0x948   :  { %8055 = vrot.lane.b32.xlu0 %v8093_v12, %s13104_s0 }
 0x94c   :  { %7996 = vrot.lane.b32.xlu0 %v18957_v10, %s13105_s14 }
 0x950   :  { %8002 = vrot.lane.b32.xlu0 %v8093_v12, %s13105_s14 }
 0x954   :  { %7943 = vrot.lane.b32.xlu0 %v18957_v10, %s13106_s2 }
 0x958   :  { %7949 = vrot.lane.b32.xlu0 %v8093_v12, %s13106_s2 }
 0x95c   :  { %7890 = vrot.lane.b32.xlu0 %v18957_v10, %s13107_s13 }
 0x95f   :  { %v7682_v63 = vpop.permute.xlu0 %7681 }
 0x960   :  { %7896 = vrot.lane.b32.xlu0 %v8093_v12, %s13107_s13  ;;  %v7689_v33 = vrot.slane %v7682_v63, 4 }
 0x962   :  { %v7694_v8 = vsel %vm7693_vm4, %v7689_v33, %v7682_v63 }
 0x963   :  { %v5680_v56 = vpop.permute.xlu0 %5679  ;;  %v7686_v32 = vpop.permute.xlu1 %7685 }
 0x964   :  { %v5689_v61 = vsel %vm20632_vm13, %v5685_v17, %v5680_v56  ;;  %7837 = vrot.lane.b32.xlu0 %v18957_v10, %s13108_s28  ;;  %v7691_v24 = vrot.slane %v7686_v32, 4 }
 0x965   :  { %5701 = vst.msk [vmem:[#allocation2 + $0x8] sm:$0xf] %vm5700_vm6, %v5689_v61 }
 0x966   :  { %7707 = vst.msk [vmem:[#allocation2 + $0x8] sm:$0xff] %vm7706_vm9, %v7694_v8  ;;  %v7698_v31 = vsel %vm7693_vm4, %v7691_v24, %v7686_v32 }
 0x967   :  { %v5684_v62 = vpop.permute.xlu1 %5683 }
 0x968   :  { %7843 = vrot.lane.b32.xlu0 %v8093_v12, %s13108_s28  ;;  %v5691_v21 = vsel %vm20632_vm13, %v5686_v30, %v5684_v62  ;;  %v8103_v30 = vpop.permute.xlu0 %8102  ;;  %vm7748_vm13 = vcmask 875520  }
 0x969   :  { %5703 = vst.msk [vmem:[#allocation2 + $0x20] sm:$0xf] %vm5700_vm6, %v5691_v21  ;;  %v8114_v14 = vrot.slane %v8103_v30, 4  ;;  %vm8015_vm6 = vcmask 711680  }
 0x96a   :  { %7712 = vst.msk [vmem:[#allocation2 + $0x20] sm:$0xff] %vm7706_vm9, %v7698_v31  ;;  %vm7962_vm9 = vcmask 719872  }
 0x96c   :  { %7784 = vrot.lane.b32.xlu0 %v18957_v10, %s13109_s29 }
 0x96d   :  { %v8091_v17 = vld [vmem:[#allocation2 + $0x8] sm:$0xff] }
 0x96e   :  { %8104 = vrot.lane.b32.xlu1 %v8091_v17, %s13103_s5 }
 0x970   :  { %7790 = vrot.lane.b32.xlu0 %v8093_v12, %s13109_s29 }
 0x971   :  { %v8094_v19 = vld [vmem:[#allocation2 + $0x20] sm:$0xff] }
 0x972   :  { %8051 = vrot.lane.b32.xlu1 %v8091_v17, %s13104_s0 }
 0x974   :  { %7729 = vrot.lane.b32.xlu0 %v18957_v10, %s13110_s9 }
 0x976   :  { %7998 = vrot.lane.b32.xlu1 %v8091_v17, %s13105_s14 }
 0x978   :  { %7735 = vrot.lane.b32.xlu0 %v8093_v12, %s13110_s9 }
 0x97a   :  { %7945 = vrot.lane.b32.xlu1 %v8091_v17, %s13106_s2 }
 0x97c   :  { %8155 = vrot.lane.b32.xlu0 %v18957_v10, %s13111_s30 }
 0x97e   :  { %7892 = vrot.lane.b32.xlu1 %v8091_v17, %s13107_s13 }
 0x980   :  { %8161 = vrot.lane.b32.xlu0 %v8093_v12, %s13111_s30 }
 0x982   :  { %7839 = vrot.lane.b32.xlu1 %v8091_v17, %s13108_s28 }
 0x986   :  { %7786 = vrot.lane.b32.xlu1 %v8091_v17, %s13109_s29 }
 0x98a   :  { %7731 = vrot.lane.b32.xlu1 %v8091_v17, %s13110_s9 }
 0x98e   :  { %8157 = vrot.lane.b32.xlu1 %v8091_v17, %s13111_s30 }
 0x992   :  { %8110 = vrot.lane.b32.xlu1 %v8094_v19, %s13103_s5 }
 0x996   :  { %8057 = vrot.lane.b32.xlu1 %v8094_v19, %s13104_s0 }
 0x99a   :  { %8004 = vrot.lane.b32.xlu1 %v8094_v19, %s13105_s14 }
 0x99e   :  { %7951 = vrot.lane.b32.xlu1 %v8094_v19, %s13106_s2 }
 0x9a2   :  { %7898 = vrot.lane.b32.xlu1 %v8094_v19, %s13107_s13 }
 0x9a6   :  { %7845 = vrot.lane.b32.xlu1 %v8094_v19, %s13108_s28 }
 0x9aa   :  { %7792 = vrot.lane.b32.xlu1 %v8094_v19, %s13109_s29 }
 0x9ae   :  { %v7684_v26 = vpop.permute.xlu0 %7683  ;;  %7737 = vrot.lane.b32.xlu1 %v8094_v19, %s13110_s9 }
 0x9af   :  { %v7690_v28 = vrot.slane %v7684_v26, 4 }
 0x9b1   :  { %v7696_v29 = vsel %vm7695_vm8, %v7689_v33, %v7690_v28 }
 0x9b2   :  { %v7697_v53 = vsel %vm7693_vm4, %v7696_v29, %v7684_v26  ;;  %v19018_v57 = vpop.permute.xlu0 %8108  ;;  %v7688_v2 = vpop.permute.xlu1 %7687  ;;  %8163 = vrot.lane.b32.xlu1 %v8094_v19, %s13111_s30 }
 0x9b3   :  { %7711 = vst.msk [vmem:[#allocation2 + $0x10] sm:$0xff] %vm7710_vm11, %v7697_v53  ;;  %v7692_v20 = vrot.slane %v7688_v2, 4 }
 0x9b4   :  { %7715 = vst.msk [vmem:[#allocation2 + $0x14] sm:$0xf] %vm7714_vm12, %v21236_v18 }
 0x9b5   :  { %v7699_v16 = vsel %vm7695_vm8, %v7691_v24, %v7692_v20 }
 0x9b6   :  { %v7700_v60 = vsel %vm7693_vm4, %v7699_v16, %v7688_v2  ;;  %v8050_v40 = vpop.permute.xlu0 %8049  ;;  %vm8068_vm4 = vcmask 580608  }
 0x9b7   :  { %7713 = vst.msk [vmem:[#allocation2 + $0x28] sm:$0xff] %vm7710_vm11, %v7700_v60  ;;  %v8061_v46 = vrot.slane %v8050_v40, 4  ;;  %vm7856_vm11 = vcmask 859136  }
 0x9b8   :  { %7716 = vst.msk [vmem:[#allocation2 + $0x2c] sm:$0xf] %vm7714_vm12, %v21236_v18  ;;  %vm7803_vm12 = vcmask 867328  }
 0x9ba   :  { %v19025_v10 = vpop.permute.xlu0 %8055 }
 0x9bb   :  { %v8092_v35 = vld [vmem:[#allocation2 + $0x10] sm:$0xff] }
 0x9bc   :  { %8106 = vrot.lane.b32.xlu0 %v8092_v35, %s13103_s5 }
 0x9be   :  { %v7997_v47 = vpop.permute.xlu0 %7996 }
 0x9bf   :  { %v8095_v51 = vld [vmem:[#allocation2 + $0x28] sm:$0xff]  ;;  %v8008_v5 = vrot.slane %v7997_v47, 4 }
 0x9c0   :  { %8053 = vrot.lane.b32.xlu0 %v8092_v35, %s13104_s0  ;;  %8112 = vrot.lane.b32.xlu1 %v8095_v51, %s13103_s5  ;;  %s13116_s5 = smov 79  }
 0x9c2   :  { %v19035_v48 = vpop.permute.xlu0 %8002 }
 0x9c4   :  { %8000 = vrot.lane.b32.xlu0 %v8092_v35, %s13105_s14  ;;  %8059 = vrot.lane.b32.xlu1 %v8095_v51, %s13104_s0  ;;  %s13117_s0 = smov 97  }
 0x9c6   :  { %v7944_v36 = vpop.permute.xlu0 %7943 }
 0x9c7   :  { %v7955_v0 = vrot.slane %v7944_v36, 4 }
 0x9c8   :  { %7947 = vrot.lane.b32.xlu0 %v8092_v35, %s13106_s2  ;;  %8006 = vrot.lane.b32.xlu1 %v8095_v51, %s13105_s14 }
 0x9ca   :  { %v19045_v44 = vpop.permute.xlu0 %7949 }
 0x9cc   :  { %7894 = vrot.lane.b32.xlu0 %v8092_v35, %s13107_s13  ;;  %7953 = vrot.lane.b32.xlu1 %v8095_v51, %s13106_s2 }
 0x9ce   :  { %v7891_v59 = vpop.permute.xlu0 %7890 }
 0x9cf   :  { %v7902_v15 = vrot.slane %v7891_v59, 4 }
 0x9d0   :  { %7841 = vrot.lane.b32.xlu0 %v8092_v35, %s13108_s28  ;;  %7900 = vrot.lane.b32.xlu1 %v8095_v51, %s13107_s13 }
 0x9d2   :  { %v19051_v13 = vpop.permute.xlu0 %7896 }
 0x9d4   :  { %7788 = vrot.lane.b32.xlu0 %v8092_v35, %s13109_s29  ;;  %7847 = vrot.lane.b32.xlu1 %v8095_v51, %s13108_s28  ;;  %s13119_s28 = smov 99  }
 0x9d6   :  { %v7838_v42 = vpop.permute.xlu0 %7837 }
 0x9d7   :  { %v7849_v33 = vrot.slane %v7838_v42, 4 }
 0x9d8   :  { %7733 = vrot.lane.b32.xlu0 %v8092_v35, %s13110_s9  ;;  %7794 = vrot.lane.b32.xlu1 %v8095_v51, %s13109_s29  ;;  %s21246_s29 = sld [smem:[#allocation247_spill]] }
 0x9da   :  { %v19059_v50 = vpop.permute.xlu0 %7843 }
 0x9dc   :  { %8159 = vrot.lane.b32.xlu0 %v8092_v35, %s13111_s30  ;;  %7739 = vrot.lane.b32.xlu1 %v8095_v51, %s13110_s9  ;;  %s13112_s9 = smov 110  }
 0x9de   :  { %v7785_v49 = vpop.permute.xlu0 %7784 }
 0x9df   :  { %v7796_v62 = vrot.slane %v7785_v49, 4 }
 0x9e0   :  { %8165 = vrot.lane.b32.xlu1 %v8095_v51, %s13111_s30  ;;  %v19062_v54 = vpop.permute.xlu1 %8104 }
 0x9e1   :  { %v8115_v58 = vrot.slane %v19062_v54, 4 }
 0x9e2   :  { %v19088_v34 = vpop.permute.xlu0 %7790 }
 0x9e3   :  { %v8120_v37 = vsel %vm7695_vm8, %v8114_v14, %v8115_v58  ;;  %v8064_v14 = vrot.slane %v19025_v10, 4 }
 0x9e4   :  { %v19069_v39 = vsel %vm8121_vm3, %v8103_v30, %v8120_v37  ;;  %v19071_v3 = vpop.permute.xlu1 %8051 }
 0x9e5   :  { %8137 = vst [vmem:[#allocation3 + $0x150] sm:$0xff] %v19069_v39  ;;  %v8062_v27 = vrot.slane %v19071_v3, 4 }
 0x9e6   :  { %v7730_v7 = vpop.permute.xlu0 %7729 }
 0x9e7   :  { %v8067_v55 = vsel %vm7695_vm8, %v8061_v46, %v8062_v27  ;;  %v7741_v30 = vrot.slane %v7730_v7, 4 }
 0x9e8   :  { %v19079_v11 = vsel %vm8068_vm4, %v8050_v40, %v8067_v55  ;;  %v19081_v6 = vpop.permute.xlu1 %7998 }
 0x9e9   :  { %8084 = vst [vmem:[#allocation3 + $0x120] sm:$0xff] %v19079_v11  ;;  %v8009_v1 = vrot.slane %v19081_v6, 4 }
 0x9ea   :  { %v19120_v61 = vpop.permute.xlu0 %7735 }
 0x9eb   :  { %v8014_v25 = vsel %vm7695_vm8, %v8008_v5, %v8009_v1 }
 0x9ec   :  { %v19091_v43 = vsel %vm8015_vm6, %v7997_v47, %v8014_v25  ;;  %v19093_v23 = vpop.permute.xlu1 %7945  ;;  %v8117_v47 = vrot.slane %v19018_v57, 4  ;;  %v8011_v25 = vrot.slane %v19035_v48, 4 }
 0x9ed   :  { %8031 = vst [vmem:[#allocation3 + $0xf0] sm:$0xff] %v19091_v43  ;;  %v7956_v4 = vrot.slane %v19093_v23, 4 }
 0x9ee   :  { %v8156_v28 = vpop.permute.xlu0 %8155 }
 0x9ef   :  { %v7961_v52 = vsel %vm7695_vm8, %v7955_v0, %v7956_v4  ;;  %v8167_v20 = vrot.slane %v8156_v28, 4 }
 0x9f0   :  { %v19101_v22 = vsel %vm7962_vm9, %v7944_v36, %v7961_v52  ;;  %v19103_v38 = vpop.permute.xlu1 %7892 }
 0x9f1   :  { %7978 = vst [vmem:[#allocation3 + $0xc0] sm:$0xff] %v19101_v22  ;;  %v7903_v45 = vrot.slane %v19103_v38, 4 }
 0x9f3   :  { %v7908_v9 = vsel %vm7695_vm8, %v7902_v15, %v7903_v45 }
 0x9f4   :  { %v19111_v12 = vsel %vm7909_vm10, %v7891_v59, %v7908_v9  ;;  %v19113_v63 = vpop.permute.xlu1 %7839  ;;  %v7958_v9 = vrot.slane %v19045_v44, 4 }
 0x9f5   :  { %7925 = vst [vmem:[#allocation3 + $0x90] sm:$0xff] %v19111_v12  ;;  %v7850_v56 = vrot.slane %v19113_v63, 4 }
 0x9f7   :  { %v7855_v32 = vsel %vm7695_vm8, %v7849_v33, %v7850_v56 }
 0x9f8   :  { %v19123_v8 = vsel %vm7856_vm11, %v7838_v42, %v7855_v32  ;;  %v19125_v24 = vpop.permute.xlu1 %7786 }
 0x9f9   :  { %7872 = vst [vmem:[#allocation3 + $0x60] sm:$0xff] %v19123_v8  ;;  %v7797_v21 = vrot.slane %v19125_v24, 4 }
 0x9fb   :  { %v7802_v31 = vsel %vm7695_vm8, %v7796_v62, %v7797_v21 }
 0x9fc   :  { %v19133_v17 = vsel %vm7803_vm12, %v7785_v49, %v7802_v31  ;;  %v19135_v19 = vpop.permute.xlu1 %7731 }
 0x9fd   :  { %7819 = vst [vmem:[#allocation3 + $0x30] sm:$0xff] %v19133_v17  ;;  %v7742_v26 = vrot.slane %v19135_v19, 4 }
 0x9ff   :  { %v7747_v29 = vsel %vm7695_vm8, %v7741_v30, %v7742_v26  ;;  %v7905_v30 = vrot.slane %v19051_v13, 4 }
 0xa00   :  { %v19143_v53 = vsel %vm7748_vm13, %v7730_v7, %v7747_v29  ;;  %v19145_v2 = vpop.permute.xlu1 %8157 }
 0xa01   :  { %7764 = vst [vmem:[#allocation3] sm:$0xff] %v19143_v53  ;;  %v8168_v16 = vrot.slane %v19145_v2, 4 }
 0xa03   :  { %v8173_v60 = vsel %vm7695_vm8, %v8167_v20, %v8168_v16 }
 0xa04   :  { %v19153_v40 = vsel %vm8174_vm2, %v8156_v28, %v8173_v60  ;;  %v19155_v35 = vpop.permute.xlu1 %8110 }
 0xa05   :  { %8190 = vst [vmem:[#allocation3 + $0x180] sm:$0xff] %v19153_v40  ;;  %v8118_v51 = vrot.slane %v19155_v35, 4 }
 0xa07   :  { %v8126_v36 = vsel %vm7695_vm8, %v8117_v47, %v8118_v51  ;;  %v7852_v47 = vrot.slane %v19059_v50, 4 }
 0xa08   :  { %v8127_v59 = vsel %vm8121_vm3, %v19018_v57, %v8126_v36  ;;  %v19165_v42 = vpop.permute.xlu1 %8057 }
 0xa09   :  { %8140 = vst [vmem:[#allocation3 + $0x168] sm:$0xff] %v8127_v59  ;;  %v8065_v37 = vrot.slane %v19165_v42, 4  ;;  %v11684_v46 = vcombine.high %v19069_v39, %v8127_v59  ;;  %v11683_v49 = vcombine.low %v19069_v39, %v8127_v59 }
 0xa0b   :  { %v8073_v55 = vsel %vm7695_vm8, %v8064_v14, %v8065_v37  ;;  %8535 = vmatprep.subr.bf16.mxu1 %v11684_v46 }
 0xa0c   :  { %v8074_v5 = vsel %vm8068_vm4, %v19025_v10, %v8073_v55  ;;  %v19176_v57 = vpop.permute.xlu1 %8004  ;;  %8536 = vmatpush1.bf16.msra.mxu1 %v11683_v49  ;;  %v7799_v49 = vrot.slane %v19088_v34, 4 }
 0xa0d   :  { %8087 = vst [vmem:[#allocation3 + $0x138] sm:$0xff] %v8074_v5  ;;  %v8012_v0 = vrot.slane %v19176_v57, 4  ;;  %v11678_v52 = vcombine.high %v19079_v11, %v8074_v5  ;;  %v11677_v39 = vcombine.low %v19079_v11, %v8074_v5 }
 0xa0f   :  { %v8020_v15 = vsel %vm7695_vm8, %v8011_v25, %v8012_v0  ;;  %8537 = vmatprep.subr.bf16.mxu1 %v11678_v52 }
 0xa10   :  { %v8021_v10 = vsel %vm8015_vm6, %v19035_v48, %v8020_v15  ;;  %v19187_v7 = vpop.permute.xlu1 %7951  ;;  %8538 = vmatpush1.bf16.msra.mxu1 %v11677_v39  ;;  %v7744_v39 = vrot.slane %v19120_v61, 4 }
 0xa11   :  { %8034 = vst [vmem:[#allocation3 + $0x108] sm:$0xff] %v8021_v10  ;;  %v7959_v33 = vrot.slane %v19187_v7, 4  ;;  %v11672_v32 = vcombine.high %v19091_v43, %v8021_v10  ;;  %v11671_v11 = vcombine.low %v19091_v43, %v8021_v10 }
 0xa13   :  { %v7967_v62 = vsel %vm7695_vm8, %v7958_v9, %v7959_v33  ;;  %8539 = vmatprep.subr.bf16.mxu1 %v11672_v32  ;;  %v8162_v9 = vpop.permute.xlu0 %8161 }
 0xa14   :  { %v7968_v48 = vsel %vm7962_vm9, %v19045_v44, %v7967_v62  ;;  %v19198_v31 = vpop.permute.xlu1 %7898  ;;  %8540 = vmatpush1.bf16.msra.mxu1 %v11671_v11  ;;  %v8170_v62 = vrot.slane %v8162_v9, 4 }
 0xa15   :  { %7981 = vst [vmem:[#allocation3 + $0xd8] sm:$0xff] %v7968_v48  ;;  %v7906_v28 = vrot.slane %v19198_v31, 4  ;;  %v11666_v29 = vcombine.high %v19101_v22, %v7968_v48  ;;  %v11665_v43 = vcombine.low %v19101_v22, %v7968_v48 }
 0xa17   :  { %v7914_v20 = vsel %vm7695_vm8, %v7905_v30, %v7906_v28  ;;  %8541 = vmatprep.subr.bf16.mxu1 %v11666_v29 }
 0xa18   :  { %v7915_v44 = vsel %vm7909_vm10, %v19051_v13, %v7914_v20  ;;  %v19209_v60 = vpop.permute.xlu1 %7845  ;;  %8542 = vmatpush1.bf16.msra.mxu1 %v11665_v43 }
 0xa19   :  { %7928 = vst [vmem:[#allocation3 + $0xa8] sm:$0xff] %v7915_v44  ;;  %v7853_v36 = vrot.slane %v19209_v60, 4  ;;  %v11660_v59 = vcombine.high %v19111_v12, %v7915_v44  ;;  %v11659_v22 = vcombine.low %v19111_v12, %v7915_v44  ;;  %v19256_v44 = vld [vmem:[%s21242_s1] ss:$8 sps:$4 sm:$0xff]   ;;  %s13118_s1 = smov 98  }
 0xa1b   :  { %v7861_v14 = vsel %vm7695_vm8, %v7852_v47, %v7853_v36  ;;  %8543 = vmatprep.subr.bf16.mxu1 %v11660_v59  ;;  %v8690_v47 = vld [vmem:[%s21246_s29] sm:$0x3f] }
 0xa1c   :  { %v7862_v13 = vsel %vm7856_vm11, %v19059_v50, %v7861_v14  ;;  %v19220_v46 = vpop.permute.xlu1 %7792  ;;  %8544 = vmatpush1.bf16.msra.mxu1 %v11659_v22  ;;  %vm8691_vm5 = vcmp.gt.f32.partialorder %v8690_v47, 0.5 }
 0xa1d   :  { %7875 = vst [vmem:[#allocation3 + $0x78] sm:$0xff] %v7862_v13  ;;  %v7800_v55 = vrot.slane %v19220_v46, 4  ;;  %v11654_v5 = vcombine.high %v19123_v8, %v7862_v13  ;;  %v11653_v12 = vcombine.low %v19123_v8, %v7862_v13 }
 0xa1f   :  { %v7808_v25 = vsel %vm7695_vm8, %v7799_v49, %v7800_v55  ;;  %8545 = vmatprep.subr.bf16.mxu1 %v11654_v5 }
 0xa20   :  { %v7809_v50 = vsel %vm7803_vm12, %v19088_v34, %v7808_v25  ;;  %v19231_v52 = vpop.permute.xlu1 %7737  ;;  %8546 = vmatpush1.bf16.msra.mxu1 %v11653_v12 }
 0xa21   :  { %7822 = vst [vmem:[#allocation3 + $0x48] sm:$0xff] %v7809_v50  ;;  %v7745_v15 = vrot.slane %v19231_v52, 4  ;;  %v11648_v10 = vcombine.high %v19133_v17, %v7809_v50  ;;  %v11647_v8 = vcombine.low %v19133_v17, %v7809_v50 }
 0xa23   :  { %v7753_v32 = vsel %vm7695_vm8, %v7744_v39, %v7745_v15  ;;  %8547 = vmatprep.subr.bf16.mxu1 %v11648_v10 }
 0xa24   :  { %v7754_v34 = vsel %vm7748_vm13, %v19120_v61, %v7753_v32  ;;  %v19242_v11 = vpop.permute.xlu1 %8163  ;;  %8548 = vmatpush1.bf16.msra.mxu1 %v11647_v8 }
 0xa25   :  { %7769 = vst [vmem:[#allocation3 + $0x18] sm:$0xff] %v7754_v34  ;;  %v8171_v48 = vrot.slane %v19242_v11, 4  ;;  %v11642_v30 = vcombine.high %v19143_v53, %v7754_v34  ;;  %v11641_v17 = vcombine.low %v19143_v53, %v7754_v34 }
 0xa27   :  { %v8179_v29 = vsel %vm7695_vm8, %v8170_v62, %v8171_v48  ;;  %8549 = vmatprep.subr.bf16.mxu1 %v11642_v30 }
 0xa28   :  { %v8180_v43 = vsel %vm8174_vm2, %v8162_v9, %v8179_v29  ;;  %8550 = vmatpush1.bf16.msra.mxu1 %v11641_v17 }
 0xa29   :  { %8193 = vst [vmem:[#allocation3 + $0x198] sm:$0xff] %v8180_v43  ;;  %v11690_v61 = vcombine.high %v19153_v40, %v8180_v43  ;;  %v11689_v20 = vcombine.low %v19153_v40, %v8180_v43 }
 0xa2b   :  { %8565 = vmatprep.subr.bf16.mxu1 %v11690_v61 }
 0xa2c   :  { %8566 = vmatpush2.bf16.msra.mxu1 %v11689_v20 }
 0xa2e   :  { %v8107_v53 = vpop.permute.xlu0 %8106 }
 0xa2f   :  { %v8116_v59 = vrot.slane %v8107_v53, 4  ;;  %8568 = vmatmul.mubr.bf16.vlgmr.msra.gmra.mxu1 %v19256_v44 }
 0xa30   :  { %11697 = vmatprep.mubr.msk.bf16.mxu1 %vm8531_vm1, %v19033_v41 }
 0xa31   :  { %v8123_v40 = vsel %vm7695_vm8, %v8115_v58, %v8116_v59  ;;  %v8125_v22 = vsel %vm8121_vm3, %v8107_v53, %v8116_v59 }
 0xa32   :  { %v8124_v14 = vsel %vm8121_vm3, %v19062_v54, %v8123_v40  ;;  %8139 = vst.msk [vmem:[#allocation3 + $0x160] sm:$0xff] %vm19259_vm7, %v8125_v22  ;;  %v8054_v13 = vpop.permute.xlu0 %8053  ;;  %v8113_v49 = vpop.permute.xlu1 %8112 }
 0xa33   :  { %v8063_v5 = vrot.slane %v8054_v13, 4  ;;  %v8119_v12 = vrot.slane %v8113_v49, 4 }
 0xa35   :  { %v8070_v41 = vsel %vm7695_vm8, %v8062_v27, %v8063_v5  ;;  %v8072_v25 = vsel %vm8068_vm4, %v8054_v13, %v8063_v5  ;;  %v8128_v58 = vsel %vm7695_vm8, %v8118_v51, %v8119_v12  ;;  %v8130_v50 = vsel %vm8121_vm3, %v8113_v49, %v8119_v12 }
 0xa36   :  { %v8071_v54 = vsel %vm8068_vm4, %v19071_v3, %v8070_v41  ;;  %8086 = vst.msk [vmem:[#allocation3 + $0x130] sm:$0xff] %vm19259_vm7, %v8072_v25  ;;  %v8129_v39 = vsel %vm8121_vm3, %v19155_v35, %v8128_v58  ;;  %8142 = vst.msk [vmem:[#allocation3 + $0x178] sm:$0xff] %vm19259_vm7, %v8130_v50  ;;  %v8001_v27 = vpop.permute.xlu0 %8000  ;;  %v8060_v10 = vpop.permute.xlu1 %8059 }
 0xa37   :  { %v8010_v8 = vrot.slane %v8001_v27, 4  ;;  %v8066_v9 = vrot.slane %v8060_v10, 4  ;;  %v11685_v32 = vcombine.low %v8124_v14, %v8129_v39  ;;  %v11686_v51 = vcombine.high %v8124_v14, %v8129_v39 }
 0xa39   :  { %v8017_v34 = vsel %vm7695_vm8, %v8009_v1, %v8010_v8  ;;  %v8019_v3 = vsel %vm8015_vm6, %v8001_v27, %v8010_v8  ;;  %v8075_v62 = vsel %vm7695_vm8, %v8065_v37, %v8066_v9  ;;  %v8077_v35 = vsel %vm8068_vm4, %v8060_v10, %v8066_v9  ;;  %8578 = vmatprep.subr.bf16.mxu0 %v11686_v51 }
 0xa3a   :  { %v8018_v30 = vsel %vm8015_vm6, %v19081_v6, %v8017_v34  ;;  %8033 = vst.msk [vmem:[#allocation3 + $0x100] sm:$0xff] %vm19259_vm7, %v8019_v3  ;;  %v8076_v17 = vsel %vm8068_vm4, %v19165_v42, %v8075_v62  ;;  %8089 = vst.msk [vmem:[#allocation3 + $0x148] sm:$0xff] %vm19259_vm7, %v8077_v35  ;;  %v7948_v1 = vpop.permute.xlu0 %7947  ;;  %v8007_v29 = vpop.permute.xlu1 %8006  ;;  %8579 = vmatpush1.bf16.msra.mxu0 %v11685_v32 }
 0xa3b   :  { %v7957_v43 = vrot.slane %v7948_v1, 4  ;;  %v8013_v37 = vrot.slane %v8007_v29, 4  ;;  %v11679_v61 = vcombine.low %v8071_v54, %v8076_v17  ;;  %v11680_v20 = vcombine.high %v8071_v54, %v8076_v17 }
 0xa3d   :  { %v7964_v6 = vsel %vm7695_vm8, %v7956_v4, %v7957_v43  ;;  %v7966_v53 = vsel %vm7962_vm9, %v7948_v1, %v7957_v43  ;;  %v8022_v42 = vsel %vm7695_vm8, %v8012_v0, %v8013_v37  ;;  %v8024_v59 = vsel %vm8015_vm6, %v8007_v29, %v8013_v37  ;;  %v12948_v40 = vld [vmem:[#allocation3 + $0x160] ss:$24 sps:$4 sm:$0xff]   ;;  %v12950_v22 = vld [vmem:[#allocation3 + $0x164] ss:$24 sps:$4 sm:$0xff]   ;;  %8580 = vmatprep.subr.bf16.mxu0 %v11680_v20 }
 0xa3e   :  { %v7965_v14 = vsel %vm7962_vm9, %v19093_v23, %v7964_v6  ;;  %7980 = vst.msk [vmem:[#allocation3 + $0xd0] sm:$0xff] %vm19259_vm7, %v7966_v53  ;;  %v8023_v4 = vsel %vm8015_vm6, %v19176_v57, %v8022_v42  ;;  %8036 = vst.msk [vmem:[#allocation3 + $0x118] sm:$0xff] %vm19259_vm7, %v8024_v59  ;;  %v7895_v13 = vpop.permute.xlu0 %7894  ;;  %v7954_v49 = vpop.permute.xlu1 %7953  ;;  %8581 = vmatpush1.bf16.msra.mxu0 %v11679_v61  ;;  %8621 = vmatprep.subr.bf16.mxu1 %v12950_v22 }
 0xa3f   :  { %v7904_v0 = vrot.slane %v7895_v13, 4  ;;  %v7960_v5 = vrot.slane %v7954_v49, 4  ;;  %v11673_v12 = vcombine.low %v8018_v30, %v8023_v4  ;;  %v11674_v41 = vcombine.high %v8018_v30, %v8023_v4  ;;  %8622 = vmatpush1.bf16.msra.mxu1 %v12948_v40 }
 0xa41   :  { %v7911_v23 = vsel %vm7695_vm8, %v7903_v45, %v7904_v0  ;;  %v7913_v25 = vsel %vm7909_vm10, %v7895_v13, %v7904_v0  ;;  %v7969_v57 = vsel %vm7695_vm8, %v7959_v33, %v7960_v5  ;;  %v7971_v58 = vsel %vm7962_vm9, %v7954_v49, %v7960_v5  ;;  %v12951_v50 = vld [vmem:[#allocation3 + $0x130] ss:$24 sps:$4 sm:$0xff]   ;;  %v12953_v54 = vld [vmem:[#allocation3 + $0x134] ss:$24 sps:$4 sm:$0xff]   ;;  %8582 = vmatprep.subr.bf16.mxu0 %v11674_v41 }
 0xa42   :  { %v7912_v39 = vsel %vm7909_vm10, %v19103_v38, %v7911_v23  ;;  %7927 = vst.msk [vmem:[#allocation3 + $0xa0] sm:$0xff] %vm19259_vm7, %v7913_v25  ;;  %v7970_v45 = vsel %vm7962_vm9, %v19187_v7, %v7969_v57  ;;  %7983 = vst.msk [vmem:[#allocation3 + $0xe8] sm:$0xff] %vm19259_vm7, %v7971_v58  ;;  %v7842_v27 = vpop.permute.xlu0 %7841  ;;  %v7901_v10 = vpop.permute.xlu1 %7900  ;;  %8583 = vmatpush1.bf16.msra.mxu0 %v11673_v12  ;;  %8623 = vmatprep.subr.bf16.mxu1 %v12953_v54 }
 0xa43   :  { %v7851_v33 = vrot.slane %v7842_v27, 4  ;;  %v7907_v8 = vrot.slane %v7901_v10, 4  ;;  %v11667_v9 = vcombine.low %v7965_v14, %v7970_v45  ;;  %v11668_v32 = vcombine.high %v7965_v14, %v7970_v45  ;;  %8624 = vmatpush1.bf16.msra.mxu1 %v12951_v50 }
 0xa45   :  { %v7858_v38 = vsel %vm7695_vm8, %v7850_v56, %v7851_v33  ;;  %v7860_v51 = vsel %vm7856_vm11, %v7842_v27, %v7851_v33  ;;  %v7916_v7 = vsel %vm7695_vm8, %v7906_v28, %v7907_v8  ;;  %v7918_v34 = vsel %vm7909_vm10, %v7901_v10, %v7907_v8  ;;  %v12954_v3 = vld [vmem:[#allocation3 + $0x100] ss:$24 sps:$4 sm:$0xff]   ;;  %v12956_v62 = vld [vmem:[#allocation3 + $0x104] ss:$24 sps:$4 sm:$0xff]   ;;  %8584 = vmatprep.subr.bf16.mxu0 %v11668_v32 }
 0xa46   :  { %v7859_v35 = vsel %vm7856_vm11, %v19113_v63, %v7858_v38  ;;  %7874 = vst.msk [vmem:[#allocation3 + $0x70] sm:$0xff] %vm19259_vm7, %v7860_v51  ;;  %v7917_v56 = vsel %vm7909_vm10, %v19198_v31, %v7916_v7  ;;  %7930 = vst.msk [vmem:[#allocation3 + $0xb8] sm:$0xff] %vm19259_vm7, %v7918_v34  ;;  %v7789_v30 = vpop.permute.xlu0 %7788  ;;  %v7848_v17 = vpop.permute.xlu1 %7847  ;;  %8585 = vmatpush1.bf16.msra.mxu0 %v11667_v9  ;;  %8625 = vmatprep.subr.bf16.mxu1 %v12956_v62 }
 0xa47   :  { %v7798_v28 = vrot.slane %v7789_v30, 4  ;;  %v7854_v1 = vrot.slane %v7848_v17, 4  ;;  %v11661_v29 = vcombine.low %v7912_v39, %v7917_v56  ;;  %v11662_v43 = vcombine.high %v7912_v39, %v7917_v56  ;;  %8626 = vmatpush1.bf16.msra.mxu1 %v12954_v3 }
 0xa48   :  { %v8692_v56 = vsel %vm8691_vm5, 1, %v21236_v18  ;;  %vm9000_vm5 = vcmask 900096  }
 0xa49   :  { %v7805_v63 = vsel %vm7695_vm8, %v7797_v21, %v7798_v28  ;;  %v7807_v37 = vsel %vm7803_vm12, %v7789_v30, %v7798_v28  ;;  %v7863_v31 = vsel %vm7695_vm8, %v7853_v36, %v7854_v1  ;;  %v7865_v61 = vsel %vm7856_vm11, %v7848_v17, %v7854_v1  ;;  %v12957_v20 = vld [vmem:[#allocation3 + $0xd0] ss:$24 sps:$4 sm:$0xff]   ;;  %v12959_v6 = vld [vmem:[#allocation3 + $0xd4] ss:$24 sps:$4 sm:$0xff]   ;;  %8586 = vmatprep.subr.bf16.mxu0 %v11662_v43  ;;  %v21248_v28 = vld [vmem:[#allocation6_spill] sm:$0xff] }
 0xa4a   :  { %v7806_v53 = vsel %vm7803_vm12, %v19125_v24, %v7805_v63  ;;  %7821 = vst.msk [vmem:[#allocation3 + $0x40] sm:$0xff] %vm19259_vm7, %v7807_v37  ;;  %v7864_v21 = vsel %vm7856_vm11, %v19209_v60, %v7863_v31  ;;  %7877 = vst.msk [vmem:[#allocation3 + $0x88] sm:$0xff] %vm19259_vm7, %v7865_v61  ;;  %v7734_v42 = vpop.permute.xlu0 %7733  ;;  %v7795_v59 = vpop.permute.xlu1 %7794  ;;  %8587 = vmatpush1.bf16.msra.mxu0 %v11661_v29  ;;  %8627 = vmatprep.subr.bf16.mxu1 %v12959_v6  ;;  %v21247_v30 = vld [vmem:[#allocation7_spill] sm:$0xff]  ;;  %v21249_v43 = vld [vmem:[#allocation9_spill] sm:$0xff] }
 0xa4b   :  { %v7743_v36 = vrot.slane %v7734_v42, 4  ;;  %v7801_v40 = vrot.slane %v7795_v59, 4  ;;  %v11655_v22 = vcombine.low %v7859_v35, %v7864_v21  ;;  %v11656_v14 = vcombine.high %v7859_v35, %v7864_v21  ;;  %8628 = vmatpush1.bf16.msra.mxu1 %v12957_v20  ;;  %v21254_v20 = vld [vmem:[#allocation8_spill] sm:$0xff] }
 0xa4c   :  { %v8696_v17 = vrot.slane %v8692_v56, %v21247_v30  ;;  %v8700_v1 = vrot.slane %v8692_v56, %v21248_v28  ;;  %v8704_v63 = vrot.slane %v8692_v56, %v21249_v43  ;;  %v8708_v6 = vrot.slane %v8692_v56, %v21254_v20 }
 0xa4d   :  { %v7750_v24 = vsel %vm7695_vm8, %v7742_v26, %v7743_v36  ;;  %v7752_v4 = vsel %vm7748_vm13, %v7734_v42, %v7743_v36  ;;  %v7810_v60 = vsel %vm7695_vm8, %v7800_v55, %v7801_v40  ;;  %v7812_v13 = vsel %vm7803_vm12, %v7795_v59, %v7801_v40  ;;  %v12960_v49 = vld [vmem:[#allocation3 + $0xa0] ss:$24 sps:$4 sm:$0xff]   ;;  %v12962_v0 = vld [vmem:[#allocation3 + $0xa4] ss:$24 sps:$4 sm:$0xff]   ;;  %8588 = vmatprep.subr.bf16.mxu0 %v11656_v14 }
 0xa4e   :  { %v7751_v5 = vsel %vm7748_vm13, %v19135_v19, %v7750_v24  ;;  %7768 = vst.msk [vmem:[#allocation3 + $0x10] sm:$0xff] %vm19259_vm7, %v7752_v4  ;;  %v7811_v26 = vsel %vm7803_vm12, %v19220_v46, %v7810_v60  ;;  %7824 = vst.msk [vmem:[#allocation3 + $0x58] sm:$0xff] %vm19259_vm7, %v7812_v13  ;;  %v8160_v12 = vpop.permute.xlu0 %8159  ;;  %v7740_v41 = vpop.permute.xlu1 %7739  ;;  %8589 = vmatpush1.bf16.msra.mxu0 %v11655_v22  ;;  %8629 = vmatprep.subr.bf16.mxu1 %v12962_v0  ;;  %v21257_v22 = vld [vmem:[#allocation10_spill] sm:$0xff]  ;;  %vm19458_vm3 = vcmp.eq.s32.totalorder %v8708_v6, 1  ;;  %vm13113_vm12 = vmmov 0  }
 0xa4f   :  { %v8169_v55 = vrot.slane %v8160_v12, 4  ;;  %v7746_v23 = vrot.slane %v7740_v41, 4  ;;  %v11649_v25 = vcombine.low %v7806_v53, %v7811_v26  ;;  %v11650_v57 = vcombine.high %v7806_v53, %v7811_v26  ;;  %8630 = vmatpush1.bf16.msra.mxu1 %v12960_v49  ;;  %v21260_v26 = vld [vmem:[#allocation11_spill] sm:$0xff] }
 0xa50   :  { %v8712_v14 = vrot.slane %v8692_v56, %v21257_v22 }
 0xa51   :  { %v8176_v19 = vsel %vm7695_vm8, %v8168_v16, %v8169_v55  ;;  %v8178_v58 = vsel %vm8174_vm2, %v8160_v12, %v8169_v55  ;;  %v7755_v46 = vsel %vm7695_vm8, %v7745_v15, %v7746_v23  ;;  %v7757_v50 = vsel %vm7748_vm13, %v7740_v41, %v7746_v23  ;;  %v12963_v54 = vld [vmem:[#allocation3 + $0x70] ss:$24 sps:$4 sm:$0xff]   ;;  %v12965_v39 = vld [vmem:[#allocation3 + $0x74] ss:$24 sps:$4 sm:$0xff]   ;;  %8590 = vmatprep.subr.bf16.mxu0 %v11650_v57 }
 0xa52   :  { %v8177_v45 = vsel %vm8174_vm2, %v19145_v2, %v8176_v19  ;;  %8192 = vst.msk [vmem:[#allocation3 + $0x190] sm:$0xff] %vm19259_vm7, %v8178_v58  ;;  %v7756_v16 = vsel %vm7748_vm13, %v19231_v52, %v7755_v46  ;;  %7771 = vst.msk [vmem:[#allocation3 + $0x28] sm:$0xff] %vm19259_vm7, %v7757_v50  ;;  %v8166_v27 = vpop.permute.xlu1 %8165  ;;  %8591 = vmatpush1.bf16.msra.mxu0 %v11649_v25  ;;  %8631 = vmatprep.subr.bf16.mxu1 %v12965_v39  ;;  %vm19439_vm13 = vcmp.eq.s32.totalorder %v8704_v63, 1 }
 0xa53   :  { %v8172_v15 = vrot.slane %v8166_v27, 4  ;;  %v11643_v10 = vcombine.low %v7751_v5, %v7756_v16  ;;  %v11644_v33 = vcombine.high %v7751_v5, %v7756_v16  ;;  %8632 = vmatpush1.bf16.msra.mxu1 %v12963_v54  ;;  %v8716_v12 = vrot.slane %v8692_v56, %v21260_v26 }
 0xa54   :  { %vm19478_vm4 = vcmp.eq.s32.totalorder %v8712_v14, 1 }
 0xa55   :  { %v8181_v2 = vsel %vm7695_vm8, %v8171_v48, %v8172_v15  ;;  %v8183_v8 = vsel %vm8174_vm2, %v8166_v27, %v8172_v15  ;;  %v12966_v9 = vld [vmem:[#allocation3 + $0x40] ss:$24 sps:$4 sm:$0xff]   ;;  %v12968_v32 = vld [vmem:[#allocation3 + $0x44] ss:$24 sps:$4 sm:$0xff]   ;;  %8592 = vmatprep.subr.bf16.mxu0 %v11644_v33  ;;  %vm19495_vm11 = vcmp.eq.s32.totalorder %v8716_v12, 1 }
 0xa56   :  { %v8182_v52 = vsel %vm8174_vm2, %v19242_v11, %v8181_v2  ;;  %8195 = vst.msk [vmem:[#allocation3 + $0x1a8] sm:$0xff] %vm19259_vm7, %v8183_v8  ;;  %8593 = vmatpush1.bf16.msra.mxu0 %v11643_v10  ;;  %8633 = vmatprep.subr.bf16.mxu1 %v12968_v32  ;;  %v21245_v11 = vmov 0.0   ;;  %vm19428_vm7 = vcmp.eq.s32.totalorder %v8696_v17, 1  ;;  %vm19432_vm2 = vcmp.eq.s32.totalorder %v8700_v1, 1 }
 0xa57   :  { %v11691_v38 = vcombine.low %v8177_v45, %v8182_v52  ;;  %v11692_v51 = vcombine.high %v8177_v45, %v8182_v52  ;;  %8634 = vmatpush1.bf16.msra.mxu1 %v12966_v9 }
 0xa59   :  { %v12969_v7 = vld [vmem:[#allocation3 + $0x10] ss:$24 sps:$4 sm:$0xff]   ;;  %v12971_v34 = vld [vmem:[#allocation3 + $0x14] ss:$24 sps:$4 sm:$0xff]   ;;  %8608 = vmatprep.subr.bf16.mxu0 %v11692_v51 }
 0xa5a   :  { %8609 = vmatpush2.bf16.msra.mxu0 %v11691_v38  ;;  %8635 = vmatprep.subr.bf16.mxu1 %v12971_v34 }
 0xa5b   :  { %8636 = vmatpush1.bf16.msra.mxu1 %v12969_v7 }
 0xa5d   :  { %v12972_v48 = vld [vmem:[#allocation3 + $0x190] ss:$24 sps:$4 sm:$0xff]   ;;  %v12974_v3 = vld [vmem:[#allocation3 + $0x194] ss:$24 sps:$4 sm:$0xff]   ;;  %8611 = vmatmul.mubr.bf16.vlgmr.msra.gmra.mxu0 %v19256_v44 }
 0xa5e   :  { %8651 = vmatprep.subr.bf16.mxu1 %v12974_v3 }
 0xa5f   :  { %8652 = vmatpush2.bf16.msra.mxu1 %v12972_v48 }
 0xa60   :  { %12154 = vmatprep.subr.bf16.mxu1 %v21245_v11 }
 0xa62   :  { %8654 = vmatmul.mubr.bf16.vlgmr.msra.gmra.mxu1 %v19256_v44 }
 0xa63   :  { %12164 = vmatprep.mubr.msk.bf16.mxu1 %vm13113_vm12, %v21245_v11 }
 0xaef   :  { %v19416_v62 = vpop.f32.mrf.mxu1 }
 0xaf0   :  { %v8723_v59 = vsel %vm19428_vm7, %v19416_v62, 0.0 }
 0xaf1   :  { %v19418_v35 = vpop.f32.mrf.mxu1  ;;  %v8754_v60 = vmul.f32 %v8723_v59, %v19416_v62 }
 0xaf2   :  { %v8724_v36 = vsel %vm19432_vm2, %v19418_v35, 0.0 }
 0xaf3   :  { %v19423_v29 = vpop.f32.mrf.mxu1  ;;  %v8755_v13 = vmul.f32 %v8724_v36, %v19418_v35  ;;  %v8735_v5 = vadd.f32 %v8724_v36, %v8723_v59 }
 0xaf4   :  { %v8729_v55 = vsel %vm19428_vm7, %v19423_v29, 0.0 }
 0xaf5   :  { %v19436_v61 = vpop.f32.mrf.mxu1  ;;  %v8766_v46 = vadd.f32 %v8755_v13, %v8754_v60  ;;  %v8760_v45 = vmul.f32 %v8729_v55, %v19423_v29 }
 0xaf6   :  { %v8730_v23 = vsel %vm19432_vm2, %v19436_v61, 0.0  ;;  %vm21267_vm2 = vcmask 490496  }
 0xaf7   :  { %v8743_v39 = vadd.f32 %v8730_v23, %v8729_v55  ;;  %v8761_v16 = vmul.f32 %v8730_v23, %v19436_v61 }
 0xaf9   :  { %v8774_v34 = vadd.f32 %v8761_v16, %v8760_v45  ;;  %v8788_v16 = vld [vmem:[%s20327_s6] sm:$0xff] }
 0xb1d   :  { %v19426_v44 = vpop.f32.mrf.mxu0 }
 0xb1e   :  { %v8725_v24 = vsel %vm19439_vm13, %v19426_v44, 0.0 }
 0xb1f   :  { %v19445_v42 = vpop.f32.mrf.mxu0  ;;  %v8756_v41 = vmul.f32 %v8725_v24, %v19426_v44  ;;  %v8736_v58 = vadd.f32 %v8735_v5, %v8725_v24 }
 0xb20   :  { %v8726_v19 = vsel %vm19458_vm3, %v19445_v42, 0.0 }
 0xb21   :  { %v19468_v0 = vpop.f32.mrf.mxu0  ;;  %v8757_v10 = vmul.f32 %v8726_v19, %v19445_v42  ;;  %v8767_v33 = vadd.f32 %v8766_v46, %v8756_v41  ;;  %v8737_v2 = vadd.f32 %v8736_v58, %v8726_v19 }
 0xb22   :  { %v19443_v21 = vpop.f32.mrf.mxu1  ;;  %v8731_v50 = vsel %vm19439_vm13, %v19468_v0, 0.0  ;;  %vm21268_vm13 = vmmov %vm21267_vm2 }
 0xb23   :  { %v19491_v54 = vpop.f32.mrf.mxu0  ;;  %v8727_v15 = vsel %vm19478_vm4, %v19443_v21, 0.0  ;;  %v8744_v8 = vadd.f32 %v8743_v39, %v8731_v50  ;;  %v8762_v9 = vmul.f32 %v8731_v50, %v19468_v0  ;;  %v8768_v47 = vadd.f32 %v8767_v33, %v8757_v10  ;;  %v8796_v10 = vld [vmem:[%s20328_s10] sm:$0xff]  ;;  %v8789_v33 = vld [vmem:[%s20327_s6 + $0x8] sm:$0xff]  ;;  %s13120_s6 = smov 77  }
 0xb24   :  { %v8657_v40 = vpop.f32.mrf.mxu1  ;;  %v8732_v52 = vsel %vm19458_vm3, %v19491_v54, 0.0  ;;  %v8738_v51 = vadd.f32 %v8737_v2, %v8727_v15  ;;  %v8758_v7 = vmul.f32 %v8727_v15, %v19443_v21  ;;  %vm21269_vm3 = vmmov %vm21267_vm2 }
 0xb25   :  { %8669 = vst.msk [vmem:[#allocation4 + $0x28] sm:$0xff] %vm2660_vm14, %v8657_v40  ;;  %v8745_v1 = vadd.f32 %v8744_v8, %v8732_v52  ;;  %v8763_v43 = vmul.f32 %v8732_v52, %v19491_v54  ;;  %v8775_v63 = vadd.f32 %v8774_v34, %v8762_v9 }
 0xb26   :  { %8676 = vst.msk [vmem:[#allocation4 + $0x28] sm:$0xff] %vm2681_vm15, %v21245_v11  ;;  %v19466_v49 = vpop.f32.mrf.mxu1  ;;  %v8769_v20 = vadd.f32 %v8768_v47, %v8758_v7 }
 0xb27   :  { %v8733_v56 = vsel %vm19478_vm4, %v19466_v49, 0.0  ;;  %v8776_v24 = vadd.f32 %v8775_v63, %v8763_v43  ;;  %vm9325_vm4 = vcmask 97284  }
 0xb28   :  { %v8661_v25 = vpop.f32.mrf.mxu1  ;;  %v8746_v53 = vadd.f32 %v8745_v1, %v8733_v56  ;;  %v8764_v59 = vmul.f32 %v8733_v56, %v19466_v49 }
 0xb29   :  { %8675 = vst.msk [vmem:[#allocation4 + $0xc0] sm:$0xff] %vm2660_vm14, %v8661_v25 }
 0xb2a   :  { %8677 = vst.msk [vmem:[#allocation4 + $0xc0] sm:$0xff] %vm2681_vm15, %v21245_v11  ;;  %v8777_v60 = vadd.f32 %v8776_v24, %v8764_v59  ;;  %vm21265_vm15 = vcmask 1041408  }
 0xb2b   :  { %vm21266_vm7 = vmmov %vm21265_vm15 }
 0xb2d   :  { %v19504_v32 = vld [vmem:[#allocation4 + $0x28] sm:$0xff] }
 0xb2e   :  { %v8728_v38 = vsel %vm19495_vm11, %v19504_v32, 0.0 }
 0xb2f   :  { %v8739_v48 = vsel %vm2660_vm14, %v8728_v38, 0.0  ;;  %v8759_v3 = vmul.f32 %v8728_v38, %v19504_v32  ;;  %v8797_v38 = vld [vmem:[%s20328_s10 + $0x8] sm:$0xff] }
 0xb30   :  { %v8740_v17 = vadd.f32 %v8739_v48, %v8738_v51 }
 0xb31   :  { %v8770_v37 = vsel %vm2660_vm14, %v8759_v3, 0.0  ;;  %v8689_v31 = vld [vmem:[#allocation4 + $0xc0] sm:$0xff] }
 0xb32   :  { %8741 = vadd.xlane.f32.xlu0 %v8740_v17  ;;  %v8734_v6 = vsel %vm19495_vm11, %v8689_v31, 0.0  ;;  %v8771_v22 = vadd.f32 %v8770_v37, %v8769_v20  ;;  %vm21270_vm11 = vcmask 1043776  }
 0xb33   :  { %v8747_v36 = vsel %vm2660_vm14, %v8734_v6, 0.0  ;;  %v8765_v40 = vmul.f32 %v8734_v6, %v8689_v31 }
 0xb34   :  { %v8748_v14 = vadd.f32 %v8747_v36, %v8746_v53 }
 0xb35   :  { %v8778_v4 = vsel %vm2660_vm14, %v8765_v40, 0.0 }
 0xb36   :  { %8772 = vadd.xlane.f32.xlu0 %v8771_v22  ;;  %8749 = vadd.xlane.f32.xlu1 %v8748_v14  ;;  %v8779_v13 = vadd.f32 %v8778_v4, %v8777_v60 }
 0xb3a   :  { %8780 = vadd.xlane.f32.xlu0 %v8779_v13 }
 0xbbb   :  { %v8742_v5 = vpop.xlane.xlu0 %8741 }
 0xbbc   :  { %v8752_v26 = vmul.f32 0.001953125, %v8742_v5 }
 0xbbe   :  { %v8784_v55 = vmul.f32 %v8752_v26, %v8752_v26 }
 0xbbf   :  { %v8773_v12 = vpop.xlane.xlu0 %8772  ;;  %v8750_v41 = vpop.xlane.xlu1 %8749 }
 0xbc0   :  { %v8782_v23 = vmul.f32 0.001953125, %v8773_v12  ;;  %v8753_v25 = vmul.f32 0.001953125, %v8750_v41 }
 0xbc2   :  { %v8786_v57 = vsub.f32 %v8782_v23, %v8784_v55  ;;  %v8785_v46 = vmul.f32 %v8753_v25, %v8753_v25 }
 0xbc3   :  { %v8781_v19 = vpop.xlane.xlu0 %8780 }
 0xbc4   :  { %v8790_v58 = vadd.f32 1e-05, %v8786_v57  ;;  %v8783_v50 = vmul.f32 0.001953125, %v8781_v19 }
 0xbc6   :  { %13077 = vrsqrt.f32 %v8790_v58  ;;  %v8787_v39 = vsub.f32 %v8783_v50, %v8785_v46  ;;  %v12975_v58 = vld [vmem:[%s20329_s18 + $0x78] sm:$0xff]  }
 0xbc7   :  { %v12976_v50 = vld [vmem:[%s20329_s18 + $0x38] sm:$0xff]   ;;  %12028 = vmatprep.subr.bf16.mxu0 %v12975_v58 }
 0xbc8   :  { %v8791_v45 = vadd.f32 1e-05, %v8787_v39  ;;  %v12977_v39 = vld [vmem:[%s20329_s18 + $0x70] sm:$0xff]   ;;  %12029 = vmatpush3.bf16.msra.mxu0 %v12976_v50 }
 0xbc9   :  { %12030 = vmatprep.subr.bf16.mxu0 %v12977_v39  ;;  %v12996_v39 = vld [vmem:[%s20329_s18 + $0x78] sm:$0xff]  }
 0xbca   :  { %13079 = vrsqrt.f32 %v8791_v45  ;;  %v12978_v45 = vld [vmem:[%s20329_s18 + $0x30] sm:$0xff]  }
 0xbcc   :  { %12031 = vmatpush3.bf16.msra.mxu0 %v12978_v45 }
 0xbd3   :  { %v13078_v27 = vpop.eup %13077 }
 0xbd4   :  { %v8794_v15 = vmul.f32 %v13078_v27, %v8788_v16  ;;  %v12979_v16 = vld [vmem:[%s20329_s18 + $0xa0] ss:$0 sps:$4 sm:$0x33]  }
 0xbd6   :  { %8804 = vperm.xlu1 %12362, %v8794_v15   ;;  %v8798_v2 = vmul.f32 %v8794_v15, %v8752_v26 }
 0xbd7   :  { %v13080_v8 = vpop.eup %13079 }
 0xbd8   :  { %v8800_v9 = vsub.f32 %v8796_v10, %v8798_v2  ;;  %v8795_v52 = vmul.f32 %v13080_v8, %v8789_v33  ;;  %v9225_v2 = vsel %vm21265_vm15, %v12979_v16, 0  ;;  %vm9326_vm15 = vmor %vm9325_vm4, %vm21270_vm11  ;;  %vm9646_vm4 = vcmask 588804  }
 0xbd9   :  { %12155 = vmatpush3.bf16.msra.mxu1 %v9225_v2  ;;  %vm9759_vm11 = vcmask 637952  }
 0xbda   :  { %8826 = vperm.xlu1 %12362, %v8800_v9   ;;  %8809 = vperm.xlu0 %12361, %v8795_v52   ;;  %v8799_v51 = vmul.f32 %v8795_v52, %v8753_v25  ;;  %v12980_v52 = vld [vmem:[%s20329_s18 + $0x68] sm:$0xff]  }
 0xbdb   :  { %12156 = vmatprep.subr.bf16.mxu1 %v21245_v11  ;;  %12032 = vmatprep.subr.bf16.mxu0 %v12980_v52 }
 0xbdc   :  { %v8801_v7 = vsub.f32 %v8797_v38, %v8799_v51  ;;  %v12981_v38 = vld [vmem:[%s20329_s18 + $0x28] sm:$0xff]   ;;  %v12982_v51 = vld [vmem:[%s20329_s18 + $0x98] sm:$0xff]  }
 0xbdd   :  { %12033 = vmatpush3.bf16.msra.mxu0 %v12981_v38  ;;  %12157 = vmatpush3.bf16.msra.mxu1 %v12982_v51 }
 0xbde   :  { %8831 = vperm.xlu1 %12362, %v8801_v7   ;;  %12158 = vmatprep.subr.bf16.mxu1 %v21245_v11 }
 0xc51   :  { %v8805_v34 = vpop.permute.xlu1 %8804 }
 0xc52   :  { %v8815_v3 = vmul.f32 %v8805_v34, %v19445_v42  ;;  %v8816_v47 = vmul.f32 %v8805_v34, %v19443_v21  ;;  %v8817_v56 = vmul.f32 %v8805_v34, %v19504_v32  ;;  %v8814_v14 = vmul.f32 %v8805_v34, %v19426_v44 }
 0xc53   :  { %v8813_v5 = vmul.f32 %v8805_v34, %v19418_v35  ;;  %v8812_v55 = vmul.f32 %v8805_v34, %v19416_v62 }
 0xc55   :  { %v8827_v48 = vpop.permute.xlu1 %8826  ;;  %v8810_v17 = vpop.permute.xlu0 %8809 }
 0xc56   :  { %v19540_v1 = vadd.f32 %v8827_v48, %v8815_v3  ;;  %v19542_v43 = vadd.f32 %v8827_v48, %v8816_v47  ;;  %v19544_v63 = vadd.f32 %v8827_v48, %v8817_v56  ;;  %v8821_v37 = vmul.f32 %v8810_v17, %v19491_v54  ;;  %v12983_v56 = vld [vmem:[%s20329_s18 + $0x60] sm:$0xff]  }
 0xc57   :  { %v8823_v6 = vmul.f32 %v8810_v17, %v8689_v31  ;;  %v8822_v36 = vmul.f32 %v8810_v17, %v19466_v49  ;;  %v8820_v24 = vmul.f32 %v8810_v17, %v19468_v0  ;;  %v19575_v4 = vadd.f32 %v8827_v48, %v8814_v14  ;;  %12034 = vmatprep.subr.bf16.mxu0 %v12983_v56 }
 0xc58   :  { %v8849_v53 = vmax.f32 %v19540_v1, 0.0  ;;  %v8850_v59 = vmax.f32 %v19542_v43, 0.0  ;;  %v8851_v42 = vmax.f32 %v19544_v63, 0.0  ;;  %v8819_v26 = vmul.f32 %v8810_v17, %v19436_v61  ;;  %v12985_v1 = vld [vmem:[%s20329_s18 + $0x90] sm:$0xff]  }
 0xc59   :  { %v8832_v20 = vpop.permute.xlu1 %8831  ;;  %v19589_v44 = vadd.f32 %v8827_v48, %v8813_v5  ;;  %v8848_v0 = vmax.f32 %v19575_v4, 0.0  ;;  %v8818_v35 = vmul.f32 %v8810_v17, %v19423_v29  ;;  %v19603_v61 = vadd.f32 %v8827_v48, %v8812_v55  ;;  %v12984_v17 = vld [vmem:[%s20329_s18 + $0x20] sm:$0xff]   ;;  %12159 = vmatpush3.bf16.msra.mxu1 %v12985_v1 }
 0xc5a   :  { %v19550_v21 = vadd.f32 %v8832_v20, %v8821_v37  ;;  %8863 = vst.msk [vmem:[#allocation4 + $0x28] sm:$0xff] %vm2660_vm14, %v8851_v42  ;;  %v19555_v32 = vadd.f32 %v8832_v20, %v8823_v6  ;;  %8902 = vrot.lane.b32.xlu1 %v8850_v59, %s13090_s24  ;;  %8900 = vrot.lane.b32.xlu0 %v8849_v53, %s13090_s24  ;;  %v12991_v4 = vld [vmem:[%s20329_s18 + $0x80] sm:$0xff]  }
 0xc5b   :  { %v19570_v40 = vadd.f32 %v8832_v20, %v8822_v36  ;;  %v19577_v49 = vadd.f32 %v8832_v20, %v8820_v24  ;;  %v19592_v12 = vadd.f32 %v8832_v20, %v8819_v26  ;;  %v8847_v23 = vmax.f32 %v19589_v44, 0.0  ;;  %12035 = vmatpush3.bf16.msra.mxu0 %v12984_v17  ;;  %v12986_v36 = vld [vmem:[%s20329_s18 + $0x58] sm:$0xff]   ;;  %12160 = vmatprep.subr.bf16.mxu1 %v21245_v11  ;;  %v12989_v24 = vld [vmem:[%s20329_s18 + $0x50] sm:$0xff]   ;;  %v12994_v44 = vld [vmem:[%s20329_s18 + $0x40] sm:$0xff]  }
 0xc5c   :  { %v8855_v54 = vmax.f32 %v19550_v21, 0.0  ;;  %v8857_v31 = vmax.f32 %v19555_v32, 0.0  ;;  %v19606_v25 = vadd.f32 %v8832_v20, %v8818_v35  ;;  %v8846_v62 = vmax.f32 %v19603_v61, 0.0  ;;  %12036 = vmatprep.subr.bf16.mxu0 %v12986_v36 }
 0xc5d   :  { %v8856_v60 = vmax.f32 %v19570_v40, 0.0  ;;  %v8854_v41 = vmax.f32 %v19577_v49, 0.0  ;;  %v8853_v57 = vmax.f32 %v19592_v12, 0.0  ;;  %v12988_v40 = vld [vmem:[%s20329_s18 + $0x88] sm:$0xff]  }
 0xc5e   :  { %8869 = vst.msk [vmem:[#allocation4 + $0xc0] sm:$0xff] %vm2660_vm14, %v8857_v31  ;;  %8912 = vrot.lane.b32.xlu1 %v8855_v54, %s13090_s24  ;;  %v8852_v29 = vmax.f32 %v19606_v25, 0.0  ;;  %12161 = vmatpush3.bf16.msra.mxu1 %v12988_v40  ;;  %v12992_v49 = vld [vmem:[%s20329_s18 + $0x48] sm:$0xff]  }
 0xc5f   :  { %12162 = vmatprep.subr.bf16.mxu1 %v21245_v11 }
 0xc61   :  { %v8875_v22 = vld [vmem:[#allocation4 + $0x28] sm:$0xff] }
 0xc62   :  { %8904 = vrot.lane.b32.xlu0 %v8875_v22, %s13090_s24  ;;  %12163 = vmatpush3.bf16.msra.mxu1 %v12991_v4 }
 0xc63   :  { %12168 = vmatprep.subr.bf16.mxu1 %v21245_v11 }
 0xc65   :  { %v19580_v13 = vld [vmem:[#allocation4 + $0xc0] sm:$0xff] }
 0xc66   :  { %8914 = vrot.lane.b32.xlu0 %v8856_v60, %s13090_s24  ;;  %8916 = vrot.lane.b32.xlu1 %v19580_v13, %s13090_s24 }
 0xc6a   :  { %8898 = vrot.lane.b32.xlu0 %v8848_v0, %s13090_s24  ;;  %8910 = vrot.lane.b32.xlu1 %v8854_v41, %s13090_s24 }
 0xc6e   :  { %8896 = vrot.lane.b32.xlu0 %v8847_v23, %s13090_s24  ;;  %8908 = vrot.lane.b32.xlu1 %v8853_v57, %s13090_s24 }
 0xc72   :  { %8894 = vrot.lane.b32.xlu0 %v8846_v62, %s13090_s24  ;;  %8906 = vrot.lane.b32.xlu1 %v8852_v29, %s13090_s24 }
 0xccc   :  { %v8903_v19 = vpop.permute.xlu1 %8902  ;;  %v8901_v46 = vpop.permute.xlu0 %8900 }
 0xccd   :  { %v8921_v8 = vsel %vm394_vm0, %v8901_v46, %v8903_v19 }
 0xcce   :  { %v19664_v48 = vmax.f32 %v8849_v53, %v8921_v8 }
 0xcd0   :  { %v8913_v15 = vpop.permute.xlu1 %8912 }
 0xcd4   :  { %v19638_v27 = vpop.permute.xlu0 %8904 }
 0xcd5   :  { %v8922_v10 = vsel %vm394_vm0, %v8903_v19, %v19638_v27  ;;  %v8957_v33 = vmax.f32 %v8875_v22, %v19638_v27  ;;  %v12987_v22 = vld [vmem:[%s20329_s18 + $0x18] sm:$0xff]   ;;  %v8945_v61 = vmax.f32 %v8851_v42, %v19638_v27 }
 0xcd6   :  { %v19645_v9 = vmax.f32 %v8850_v59, %v8922_v10  ;;  %12037 = vmatpush3.bf16.msra.mxu0 %v12987_v22 }
 0xcd7   :  { %8986 = vrot.lane.b32.xlu0 %v8957_v33, %s13112_s9  ;;  %12038 = vmatprep.subr.bf16.mxu0 %v12989_v24 }
 0xcd8   :  { %v8915_v7 = vpop.permute.xlu0 %8914  ;;  %8984 = vrot.lane.b32.xlu1 %v19645_v9, %s13112_s9  ;;  %v19660_v34 = vpop.permute.xlu1 %8916 }
 0xcd9   :  { %v8963_v3 = vmax.f32 %v19580_v13, %v19660_v34  ;;  %v8927_v47 = vsel %vm394_vm0, %v8915_v7, %v19660_v34  ;;  %v8926_v43 = vsel %vm394_vm0, %v8913_v15, %v8915_v7  ;;  %v12990_v13 = vld [vmem:[%s20329_s18 + $0x10] sm:$0xff]   ;;  %v8951_v10 = vmax.f32 %v8857_v31, %v19660_v34 }
 0xcda   :  { %v19686_v6 = vmax.f32 %v8856_v60, %v8927_v47  ;;  %v19690_v53 = vmax.f32 %v8855_v54, %v8926_v43  ;;  %12039 = vmatpush3.bf16.msra.mxu0 %v12990_v13 }
 0xcdb   :  { %8982 = vrot.lane.b32.xlu0 %v19664_v48, %s13112_s9  ;;  %12040 = vmatprep.subr.bf16.mxu0 %v12992_v49  ;;  %v13009_v49 = vld [vmem:[%s20329_s18 + $0x90] sm:$0xff]  }
 0xcdc   :  { %v8899_v37 = vpop.permute.xlu0 %8898  ;;  %8998 = vrot.lane.b32.xlu1 %v8963_v3, %s13112_s9  ;;  %v8911_v20 = vpop.permute.xlu1 %8910 }
 0xcdd   :  { %v8920_v59 = vsel %vm394_vm0, %v8899_v37, %v8901_v46  ;;  %v8925_v21 = vsel %vm394_vm0, %v8911_v20, %v8913_v15  ;;  %v12993_v46 = vld [vmem:[%s20329_s18 + $0x8] sm:$0xff]  }
 0xcde   :  { %v19713_v60 = vmax.f32 %v8848_v0, %v8920_v59  ;;  %v19722_v5 = vmax.f32 %v8854_v41, %v8925_v21  ;;  %12041 = vmatpush3.bf16.msra.mxu0 %v12993_v46  ;;  %v13001_v46 = vld [vmem:[%s20329_s18 + $0x28] sm:$0xff]  }
 0xcdf   :  { %8996 = vrot.lane.b32.xlu0 %v19686_v6, %s13112_s9  ;;  %12042 = vmatprep.subr.bf16.mxu0 %v12994_v44  ;;  %v13002_v44 = vld [vmem:[%s20329_s18 + $0x60] sm:$0xff]  }
 0xce0   :  { %v8897_v54 = vpop.permute.xlu0 %8896  ;;  %8994 = vrot.lane.b32.xlu1 %v19690_v53, %s13112_s9  ;;  %v8909_v14 = vpop.permute.xlu1 %8908 }
 0xce1   :  { %v8919_v26 = vsel %vm394_vm0, %v8897_v54, %v8899_v37  ;;  %v8924_v0 = vsel %vm394_vm0, %v8909_v14, %v8911_v20 }
 0xce2   :  { %v19739_v35 = vmax.f32 %v8847_v23, %v8919_v26  ;;  %v19743_v19 = vmax.f32 %v8853_v57, %v8924_v0  ;;  %v12995_v23 = vld [vmem:[%s20329_s18] sm:$0xff]   ;;  %v12997_v0 = vld [vmem:[%s20329_s18 + $0x38] sm:$0xff]  }
 0xce3   :  { %8980 = vrot.lane.b32.xlu0 %v19713_v60, %s13112_s9  ;;  %12043 = vmatpush3.bf16.msra.mxu0 %v12995_v23  ;;  %v13005_v23 = vld [vmem:[%s20329_s18 + $0x58] sm:$0xff]  }
 0xce4   :  { %v8895_v41 = vpop.permute.xlu0 %8894  ;;  %8992 = vrot.lane.b32.xlu1 %v19722_v5, %s13112_s9  ;;  %v8907_v55 = vpop.permute.xlu1 %8906  ;;  %12056 = vmatprep.subr.bf16.mxu0 %v12996_v39  ;;  %v13008_v39 = vld [vmem:[%s20329_s18 + $0x50] sm:$0xff]  }
 0xce5   :  { %v8918_v58 = vsel %vm394_vm0, %v8895_v41, %v8897_v54  ;;  %v8923_v50 = vsel %vm394_vm0, %v8907_v55, %v8909_v14  ;;  %v13006_v14 = vld [vmem:[%s20329_s18 + $0x98] sm:$0xff]   ;;  %v12998_v55 = vld [vmem:[%s20329_s18 + $0x70] sm:$0xff]  }
 0xce6   :  { %v19760_v12 = vmax.f32 %v8846_v62, %v8918_v58  ;;  %v19767_v57 = vmax.f32 %v8852_v29, %v8923_v50  ;;  %v13000_v58 = vld [vmem:[%s20329_s18 + $0x68] sm:$0xff]   ;;  %v13015_v50 = vld [vmem:[%s20329_s18 + $0x80] sm:$0xff]  }
 0xce7   :  { %8978 = vrot.lane.b32.xlu0 %v19739_v35, %s13112_s9 }
 0xce8   :  { %8990 = vrot.lane.b32.xlu1 %v19743_v19, %s13112_s9 }
 0xceb   :  { %8976 = vrot.lane.b32.xlu0 %v19760_v12, %s13112_s9 }
 0xcec   :  { %8988 = vrot.lane.b32.xlu1 %v19767_v57, %s13112_s9 }
 0xd49   :  { %v8987_v25 = vpop.permute.xlu0 %8986 }
 0xd4a   :  { %v9028_v62 = vmax.f32 %v8945_v61, %v8987_v25  ;;  %v8985_v29 = vpop.permute.xlu1 %8984  ;;  %v13010_v61 = vld [vmem:[%s20329_s18 + $0x10] sm:$0xff]  }
 0xd4b   :  { %v9005_v45 = vsel %vm9000_vm5, %v8985_v29, %v8987_v25  ;;  %v13011_v25 = vld [vmem:[%s20329_s18 + $0x48] sm:$0xff]  }
 0xd4c   :  { %9040 = vst.msk [vmem:[#allocation4 + $0x28] sm:$0xff] %vm2660_vm14, %v9028_v62  ;;  %v9027_v16 = vmax.f32 %v19645_v9, %v9005_v45  ;;  %v13013_v62 = vld [vmem:[%s20329_s18 + $0x8] sm:$0xff]   ;;  %v13016_v45 = vld [vmem:[%s20329_s18] sm:$0xff]  }
 0xd4d   :  { %v8983_v15 = vpop.permute.xlu0 %8982 }
 0xd4e   :  { %v9004_v33 = vsel %vm9000_vm5, %v8983_v15, %v8985_v29  ;;  %v8999_v2 = vpop.permute.xlu1 %8998  ;;  %v13014_v29 = vld [vmem:[%s20329_s18 + $0x40] sm:$0xff]  }
 0xd4f   :  { %v9026_v63 = vmax.f32 %v19664_v48, %v9004_v33  ;;  %v9034_v42 = vmax.f32 %v8951_v10, %v8999_v2  ;;  %v13003_v48 = vld [vmem:[%s20329_s18 + $0xa0] ss:$0 sps:$4 sm:$0x33]  }
 0xd50   :  { %v9527_v36 = vsel %vm21266_vm7, %v13003_v48, 0  ;;  %vm9626_vm7 = vcmask 1044352  }
 0xd51   :  { %9046 = vst.msk [vmem:[#allocation4 + $0xc0] sm:$0xff] %vm2660_vm14, %v9034_v42  ;;  %v8997_v27 = vpop.permute.xlu0 %8996  ;;  %vm9220_vm14 = vcmask 556032  }
 0xd52   :  { %v9010_v8 = vsel %vm9000_vm5, %v8997_v27, %v8999_v2  ;;  %v8995_v52 = vpop.permute.xlu1 %8994 }
 0xd53   :  { %v9033_v38 = vmax.f32 %v19686_v6, %v9010_v8  ;;  %v9009_v9 = vsel %vm9000_vm5, %v8995_v52, %v8997_v27  ;;  %v9332_v1 = vld [vmem:[#allocation4 + $0x28] sm:$0xff] }
 0xd54   :  { %v9032_v51 = vmax.f32 %v19690_v53, %v9009_v9 }
 0xd55   :  { %v8981_v32 = vpop.permute.xlu0 %8980  ;;  %v9339_v31 = vpack.c.bf16 %v9033_v38, %v9027_v16 }
 0xd56   :  { %v9003_v7 = vsel %vm9000_vm5, %v8981_v32, %v8983_v15  ;;  %v8993_v34 = vpop.permute.xlu1 %8992  ;;  %v9338_v3 = vpack.c.bf16 %v9032_v51, %v9026_v63 }
 0xd57   :  { %v9025_v47 = vmax.f32 %v19713_v60, %v9003_v7  ;;  %v9008_v56 = vsel %vm9000_vm5, %v8993_v34, %v8995_v52  ;;  %9390 = vrot.lane.b32.xlu1 %v9339_v31, %s13095_s17 }
 0xd58   :  { %v9031_v17 = vmax.f32 %v19722_v5, %v9008_v56  ;;  %9388 = vrot.lane.b32.xlu0 %v9338_v3, %s13095_s17  ;;  %v9336_v43 = vld [vmem:[#allocation4 + $0xc0] sm:$0xff] }
 0xd59   :  { %v8979_v37 = vpop.permute.xlu0 %8978  ;;  %v9340_v20 = vpack.c.bf16 %v9336_v43, %v9332_v1 }
 0xd5a   :  { %v9002_v6 = vsel %vm9000_vm5, %v8979_v37, %v8981_v32  ;;  %v8991_v53 = vpop.permute.xlu1 %8990  ;;  %v9337_v59 = vpack.c.bf16 %v9031_v17, %v9025_v47 }
 0xd5b   :  { %v9024_v22 = vmax.f32 %v19739_v35, %v9002_v6  ;;  %v9007_v40 = vsel %vm9000_vm5, %v8991_v53, %v8993_v34  ;;  %9392 = vrot.lane.b32.xlu1 %v9340_v20, %s13095_s17  ;;  %v12999_v35 = vld [vmem:[%s20329_s18 + $0x30] sm:$0xff]  }
 0xd5c   :  { %v9030_v21 = vmax.f32 %v19743_v19, %v9007_v40  ;;  %9386 = vrot.lane.b32.xlu0 %v9337_v59, %s13095_s17  ;;  %12165 = vmatmul.mubr.msk.bf16.vlgmr.msra.gmra.mxu1 %vm9220_vm14, %v9337_v59  ;;  %v13012_v19 = vld [vmem:[%s20329_s18 + $0x88] sm:$0xff]   ;;  %s13115_s17 = smov 78  }
 0xd5d   :  { %9036 = vst [vmem:[#allocation4 + $0x8] sm:$0xff] %v9024_v22  ;;  %v8977_v54 = vpop.permute.xlu0 %8976  ;;  %12169 = vmatpush3.bf16.msra.mxu1 %v9527_v36  ;;  %12178 = vmatprep.mubr.msk.bf16.mxu1 %vm13113_vm12, %v21245_v11 }
 0xd5e   :  { %9042 = vst [vmem:[#allocation4 + $0xa0] sm:$0xff] %v9030_v21  ;;  %v9001_v24 = vsel %vm9000_vm5, %v8977_v54, %v8979_v37  ;;  %v8989_v60 = vpop.permute.xlu1 %8988  ;;  %v9054_v13 = vpack.c.bf16 %v9030_v21, %v9024_v22  ;;  %12170 = vmatprep.subr.bf16.mxu1 %v21245_v11 }
 0xd5f   :  { %v9023_v5 = vmax.f32 %v19760_v12, %v9001_v24  ;;  %v9006_v26 = vsel %vm9000_vm5, %v8989_v60, %v8991_v53  ;;  %v13004_v12 = vld [vmem:[%s20329_s18 + $0x20] sm:$0xff]   ;;  %vm21271_vm5 = vcmask 326656  }
 0xd60   :  { %v9029_v4 = vmax.f32 %v19767_v57, %v9006_v26  ;;  %9259 = vmatprep.mubr.bf16.mxu0 %v9054_v13  ;;  %v13007_v57 = vld [vmem:[%s20329_s18 + $0x18] sm:$0xff]   ;;  %s13114_s18 = smov 12  }
 0xd61   :  { %12171 = vmatpush3.bf16.msra.mxu1 %v13006_v14 }
 0xd62   :  { %v9053_v41 = vpack.c.bf16 %v9029_v4, %v9023_v5  ;;  %12172 = vmatprep.subr.bf16.mxu1 %v21245_v11 }
 0xd64   :  { %9260 = vmatmul.mubr.bf16.vlgmr.msra.gmra.mxu0 %v9053_v41 }
 0xd65   :  { %12057 = vmatpush3.bf16.msra.mxu0 %v12997_v0  ;;  %12173 = vmatpush3.bf16.msra.mxu1 %v13009_v49 }
 0xd66   :  { %12058 = vmatprep.subr.bf16.mxu0 %v12998_v55  ;;  %12174 = vmatprep.subr.bf16.mxu1 %v21245_v11 }
 0xd69   :  { %12059 = vmatpush3.bf16.msra.mxu0 %v12999_v35  ;;  %12175 = vmatpush3.bf16.msra.mxu1 %v13012_v19  ;;  %v13044_v19 = vld [vmem:[%s20330_s3 + $0x4] ss:$8 sps:$4 sm:$0xff]  }
 0xd6a   :  { %12060 = vmatprep.subr.bf16.mxu0 %v13000_v58  ;;  %12176 = vmatprep.subr.bf16.mxu1 %v21245_v11 }
 0xd6d   :  { %12061 = vmatpush3.bf16.msra.mxu0 %v13001_v46  ;;  %12177 = vmatpush3.bf16.msra.mxu1 %v13015_v50  ;;  %v9960_v46 = vld [vmem:[%s20331_s15] sm:$0x3] }
 0xd6e   :  { %12062 = vmatprep.subr.bf16.mxu0 %v13002_v44  ;;  %12182 = vmatprep.subr.bf16.mxu1 %v21245_v11 }
 0xd71   :  { %12063 = vmatpush3.bf16.msra.mxu0 %v13004_v12 }
 0xd72   :  { %12064 = vmatprep.subr.bf16.mxu0 %v13005_v23 }
 0xd75   :  { %12065 = vmatpush3.bf16.msra.mxu0 %v13007_v57 }
 0xd76   :  { %12066 = vmatprep.subr.bf16.mxu0 %v13008_v39 }
 0xd79   :  { %12067 = vmatpush3.bf16.msra.mxu0 %v13010_v61 }
 0xd7a   :  { %12068 = vmatprep.subr.bf16.mxu0 %v13011_v25 }
 0xd7d   :  { %12069 = vmatpush3.bf16.msra.mxu0 %v13013_v62 }
 0xd7e   :  { %12070 = vmatprep.subr.bf16.mxu0 %v13014_v29 }
 0xd81   :  { %12071 = vmatpush3.bf16.msra.mxu0 %v13016_v45 }
 0xdc9   :  { %v9391_v16 = vpop.permute.xlu1 %9390 }
 0xdca   :  { %v9389_v15 = vpop.permute.xlu0 %9388 }
 0xdcb   :  { %v9396_v10 = vsel %vm21267_vm2, %v9389_v15, %v9391_v16  ;;  %vm9627_vm2 = vcmask 195588  }
 0xdcc   :  { %9561 = vmatprep.mubr.bf16.mxu0 %v9396_v10 }
 0xdcd   :  { %v9393_v33 = vpop.permute.xlu1 %9392 }
 0xdce   :  { %v9397_v2 = vsel %vm21268_vm13, %v9391_v16, %v9393_v33  ;;  %v9387_v63 = vpop.permute.xlu0 %9386  ;;  %vm9623_vm13 = vcmask 912480  }
 0xdcf   :  { %v9395_v42 = vsel %vm21269_vm3, %v9387_v63, %v9389_v15  ;;  %12179 = vmatmul.mubr.msk.bf16.vlgmr.msra.gmra.mxu1 %vm9220_vm14, %v9397_v2  ;;  %vm21272_vm14 = vmmov %vm21271_vm5 }
 0xdd0   :  { %9562 = vmatmul.mubr.bf16.vlgmr.msra.gmra.mxu0 %v9395_v42  ;;  %12196 = vmatprep.mubr.msk.bf16.mxu1 %vm13113_vm12, %v21245_v11  ;;  %vm19888_vm3 = vmor %vm9627_vm2, %vm9626_vm7  ;;  %vm9961_vm7 = vcmp.gt.f32.partialorder %v9960_v46, 0.5  ;;  %vm9953_vm2 = vcmask 917056  }
 0xdd1   :  { %11766 = vmatprep.mubr.msk.bf16.mxu0 %vm8531_vm1, %v13044_v19 }
 0xe1c   :  { %v9302_v27 = vpop.f32.mrf.mxu1 }
 0xe1e   :  { %v12166_v8 = vpop.f32.mrf.mxu1 }
 0xe20   :  { %v9305_v52 = vpop.f32.mrf.mxu1 }
 0xe22   :  { %v12167_v38 = vpop.f32.mrf.mxu1 }
 0xe24   :  { %v12044_v9 = vpop.f32.mrf.mxu0 }
 0xe26   :  { %v12045_v51 = vpop.f32.mrf.mxu0 }
 0xe27   :  { %v12046_v32 = vadd.f32 %v12045_v51, %v12044_v9 }
 0xe28   :  { %v12047_v31 = vpop.f32.mrf.mxu0 }
 0xe29   :  { %v9303_v7 = vadd.f32 %v12046_v32, %v9302_v27 }
 0xe2a   :  { %v12048_v34 = vpop.f32.mrf.mxu0 }
 0xe2b   :  { %v11844_v3 = vpack.c.bf16 %v9303_v7, %v9303_v7  ;;  %v12049_v48 = vadd.f32 %v12048_v34, %v12047_v31 }
 0xe2d   :  { %v9306_v47 = vadd.f32 %v12049_v48, %v9305_v52  ;;  %9315 = vrot.lane.b32.xlu0 %v11844_v3, %s13101_s27 }
 0xe2f   :  { %v11845_v56 = vpack.c.bf16 %v9306_v47, %v9306_v47 }
 0xe31   :  { %9317 = vrot.lane.b32.xlu1 %v11845_v56, %s13101_s27 }
 0xe8f   :  { %v9604_v17 = vpop.f32.mrf.mxu1 }
 0xe90   :  { %v12072_v1 = vpop.f32.mrf.mxu0 }
 0xe91   :  { %v12180_v43 = vpop.f32.mrf.mxu1 }
 0xe92   :  { %v12073_v37 = vpop.f32.mrf.mxu0 }
 0xe93   :  { %v12074_v20 = vadd.f32 %v12073_v37, %v12072_v1  ;;  %v9607_v6 = vpop.f32.mrf.mxu1 }
 0xe94   :  { %v12075_v53 = vpop.f32.mrf.mxu0 }
 0xe95   :  { %v9605_v59 = vadd.f32 %v12074_v20, %v9604_v17  ;;  %v12181_v36 = vpop.f32.mrf.mxu1 }
 0xe96   :  { %v12076_v22 = vpop.f32.mrf.mxu0 }
 0xe97   :  { %v11846_v40 = vpack.c.bf16 %v9605_v59, %v9605_v59  ;;  %v12077_v21 = vadd.f32 %v12076_v22, %v12075_v53 }
 0xe99   :  { %v9608_v54 = vadd.f32 %v12077_v21, %v9607_v6  ;;  %9617 = vrot.lane.b32.xlu0 %v11846_v40, %s13114_s18 }
 0xe9b   :  { %v11847_v14 = vpack.c.bf16 %v9608_v54, %v9608_v54 }
 0xe9d   :  { %9619 = vrot.lane.b32.xlu1 %v11847_v14, %s13114_s18 }
 0xe9f   :  { %v9316_v24 = vpop.permute.xlu0 %9315 }
 0xea0   :  { %v9319_v60 = vrot.slane %v9316_v24, 4 }
 0xea2   :  { %v9321_v13 = vsel %vm21271_vm5, %v9319_v60, %v9316_v24  ;;  %vm9742_vm5 = vcmask 646144  }
 0xea3   :  { %9327 = vst.msk [vmem:[#allocation2] sm:$0xff] %vm9326_vm15, %v9321_v13  ;;  %v9318_v5 = vpop.permute.xlu1 %9317 }
 0xea4   :  { %v9320_v26 = vrot.slane %v9318_v5, 4 }
 0xea6   :  { %v9322_v4 = vsel %vm21272_vm14, %v9320_v26, %v9318_v5  ;;  %vm9949_vm14 = vcmask 588800  }
 0xea7   :  { %9328 = vst.msk [vmem:[#allocation2 + $0x18] sm:$0xff] %vm9326_vm15, %v9322_v4  ;;  %vm19909_vm15 = vmor %vm9646_vm4, %vm7695_vm8  ;;  %vm9677_vm8 = vcmask 793600  }
 0xf0b   :  { %v9618_v49 = vpop.permute.xlu0 %9617 }
 0xf0c   :  { %9624 = vst.msk [vmem:[#allocation2 + $0x4] sm:$0xf] %vm9623_vm13, %v9618_v49 }
 0xf0d   :  { %9629 = vst.msk [vmem:[#allocation2 + $0x4] sm:$0xff] %vm19888_vm3, %v21236_v18 }
 0xf0f   :  { %v9620_v41 = vpop.permute.xlu1 %9619 }
 0xf10   :  { %9625 = vst.msk [vmem:[#allocation2 + $0x1c] sm:$0xf] %vm9623_vm13, %v9620_v41 }
 0xf11   :  { %9630 = vst.msk [vmem:[#allocation2 + $0x1c] sm:$0xff] %vm19888_vm3, %v21236_v18 }
 0xf14   :  { %v9749_v55 = vld [vmem:[#allocation2] sm:$0xff] }
 0xf15   :  { %9753 = vrot.lane.b32.xlu0 %v9749_v55, %s13115_s17 }
 0xf18   :  { %v9750_v35 = vld [vmem:[#allocation2 + $0x18] sm:$0xff] }
 0xf19   :  { %9736 = vrot.lane.b32.xlu0 %v9749_v55, %s13116_s5  ;;  %9755 = vrot.lane.b32.xlu1 %v9750_v35, %s13115_s17  ;;  %s13121_s17 = smov 118  }
 0xf1d   :  { %9720 = vrot.lane.b32.xlu0 %v9749_v55, %s13105_s14  ;;  %9738 = vrot.lane.b32.xlu1 %v9750_v35, %s13116_s5  ;;  %s13125_s5 = smov 83  }
 0xf21   :  { %9704 = vrot.lane.b32.xlu0 %v9749_v55, %s13106_s2  ;;  %9722 = vrot.lane.b32.xlu1 %v9750_v35, %s13105_s14 }
 0xf25   :  { %9688 = vrot.lane.b32.xlu0 %v9749_v55, %s13107_s13  ;;  %9706 = vrot.lane.b32.xlu1 %v9750_v35, %s13106_s2 }
 0xf29   :  { %9671 = vrot.lane.b32.xlu0 %v9749_v55, %s13117_s0  ;;  %9690 = vrot.lane.b32.xlu1 %v9750_v35, %s13107_s13 }
 0xf2d   :  { %9654 = vrot.lane.b32.xlu0 %v9749_v55, %s13118_s1  ;;  %9673 = vrot.lane.b32.xlu1 %v9750_v35, %s13117_s0  ;;  %s21279_s0 = smov 93  }
 0xf31   :  { %9635 = vrot.lane.b32.xlu0 %v9749_v55, %s13119_s28  ;;  %9656 = vrot.lane.b32.xlu1 %v9750_v35, %s13118_s1  ;;  %s21280_s1 = smov 94  }
 0xf35   :  { %9770 = vrot.lane.b32.xlu0 %v9749_v55, %s13120_s6  ;;  %9637 = vrot.lane.b32.xlu1 %v9750_v35, %s13119_s28 }
 0xf39   :  { %9772 = vrot.lane.b32.xlu1 %v9750_v35, %s13120_s6 }
 0xf87   :  { %v9754_v58 = vpop.permute.xlu0 %9753 }
 0xf88   :  { %v9757_v50 = vrot.slane %v9754_v58, 4 }
 0xf8a   :  { %v9760_v44 = vsel %vm9759_vm11, %v9754_v58, %v9757_v50 }
 0xf8b   :  { %9764 = vst.msk [vmem:[#allocation3 + $0x150] sm:$0xff] %vm19909_vm15, %v9760_v44  ;;  %v9737_v12 = vpop.permute.xlu0 %9736  ;;  %v9756_v23 = vpop.permute.xlu1 %9755 }
 0xf8c   :  { %v9740_v57 = vrot.slane %v9737_v12, 4  ;;  %v9758_v39 = vrot.slane %v9756_v23, 4 }
 0xf8e   :  { %v9743_v61 = vsel %vm9742_vm5, %v9737_v12, %v9740_v57  ;;  %v9761_v25 = vsel %vm9759_vm11, %v9756_v23, %v9758_v39  ;;  %vm21277_vm11 = vcmask 1041408  }
 0xf8f   :  { %9747 = vst.msk [vmem:[#allocation3 + $0x120] sm:$0xff] %vm19909_vm15, %v9743_v61  ;;  %9765 = vst.msk [vmem:[#allocation3 + $0x168] sm:$0xff] %vm19909_vm15, %v9761_v25  ;;  %v9721_v62 = vpop.permute.xlu0 %9720  ;;  %v9739_v29 = vpop.permute.xlu1 %9738 }
 0xf90   :  { %v9724_v45 = vrot.slane %v9721_v62, 4  ;;  %v9741_v16 = vrot.slane %v9739_v29, 4 }
 0xf92   :  { %v9726_v15 = vsel %vm8015_vm6, %v9721_v62, %v9724_v45  ;;  %v9744_v10 = vsel %vm9742_vm5, %v9739_v29, %v9741_v16  ;;  %vm21278_vm5 = vmmov %vm21277_vm11 }
 0xf93   :  { %9730 = vst.msk [vmem:[#allocation3 + $0xf0] sm:$0xff] %vm19909_vm15, %v9726_v15  ;;  %9748 = vst.msk [vmem:[#allocation3 + $0x138] sm:$0xff] %vm19909_vm15, %v9744_v10  ;;  %v9705_v33 = vpop.permute.xlu0 %9704  ;;  %v9723_v2 = vpop.permute.xlu1 %9722  ;;  %v13046_v10 = vld [vmem:[%s20330_s3] ss:$8 sps:$4 sm:$0xff]  }
 0xf94   :  { %v9708_v63 = vrot.slane %v9705_v33, 4  ;;  %v9725_v42 = vrot.slane %v9723_v2, 4 }
 0xf96   :  { %v9710_v27 = vsel %vm7962_vm9, %v9705_v33, %v9708_v63  ;;  %v9727_v8 = vsel %vm8015_vm6, %v9723_v2, %v9725_v42  ;;  %v13017_v52 = vld [vmem:[#allocation3 + $0x154] ss:$24 sps:$4 sm:$0xff]   ;;  %v13019_v38 = vld [vmem:[#allocation3 + $0x150] ss:$24 sps:$4 sm:$0xff]   ;;  %vm9660_vm6 = vcmask 801792   ;;  %v9962_v63 = vsel %vm9961_vm7, 1, %v21236_v18 }
 0xf97   :  { %9714 = vst.msk [vmem:[#allocation3 + $0xc0] sm:$0xff] %vm19909_vm15, %v9710_v27  ;;  %9731 = vst.msk [vmem:[#allocation3 + $0x108] sm:$0xff] %vm19909_vm15, %v9727_v8  ;;  %v9689_v9 = vpop.permute.xlu0 %9688  ;;  %v9707_v51 = vpop.permute.xlu1 %9706  ;;  %9905 = vmatprep.subr.bf16.mxu0 %v13017_v52  ;;  %v9970_v27 = vrot.slane %v9962_v63, %v21248_v28  ;;  %v9966_v52 = vrot.slane %v9962_v63, %v21247_v30  ;;  %vm10796_vm7 = vcmask 15360  }
 0xf98   :  { %v9692_v32 = vrot.slane %v9689_v9, 4  ;;  %v9709_v31 = vrot.slane %v9707_v51, 4  ;;  %9906 = vmatpush1.bf16.msra.mxu0 %v13019_v38 }
 0xf99   :  { %vm9972_vm13 = vcmp.eq.s32.totalorder %v9970_v27, 1  ;;  %vm9971_vm4 = vcmp.eq.s32.totalorder %v9966_v52, 1 }
 0xf9a   :  { %v9694_v7 = vsel %vm7909_vm10, %v9689_v9, %v9692_v32  ;;  %v9711_v34 = vsel %vm7962_vm9, %v9707_v51, %v9709_v31  ;;  %v13020_v3 = vld [vmem:[#allocation3 + $0x124] ss:$24 sps:$4 sm:$0xff]   ;;  %v13022_v48 = vld [vmem:[#allocation3 + $0x120] ss:$24 sps:$4 sm:$0xff]   ;;  %vm9641_vm9 = vcmask 809984  }
 0xf9b   :  { %9698 = vst.msk [vmem:[#allocation3 + $0x90] sm:$0xff] %vm19909_vm15, %v9694_v7  ;;  %9715 = vst.msk [vmem:[#allocation3 + $0xd8] sm:$0xff] %vm19909_vm15, %v9711_v34  ;;  %v9672_v47 = vpop.permute.xlu0 %9671  ;;  %v9691_v56 = vpop.permute.xlu1 %9690  ;;  %9907 = vmatprep.subr.bf16.mxu0 %v13020_v3 }
 0xf9c   :  { %v9675_v17 = vrot.slane %v9672_v47, 4  ;;  %v9693_v1 = vrot.slane %v9691_v56, 4  ;;  %9908 = vmatpush1.bf16.msra.mxu0 %v13022_v48 }
 0xf9e   :  { %v9678_v43 = vsel %vm9677_vm8, %v9672_v47, %v9675_v17  ;;  %v9695_v37 = vsel %vm7909_vm10, %v9691_v56, %v9693_v1  ;;  %v13023_v20 = vld [vmem:[#allocation3 + $0xf4] ss:$24 sps:$4 sm:$0xff]   ;;  %v13025_v6 = vld [vmem:[#allocation3 + $0xf0] ss:$24 sps:$4 sm:$0xff]   ;;  %vm9776_vm10 = vcmask 629760  }
 0xf9f   :  { %9682 = vst.msk [vmem:[#allocation3 + $0x60] sm:$0xff] %vm19909_vm15, %v9678_v43  ;;  %9699 = vst.msk [vmem:[#allocation3 + $0xa8] sm:$0xff] %vm19909_vm15, %v9695_v37  ;;  %v9655_v53 = vpop.permute.xlu0 %9654  ;;  %v9674_v59 = vpop.permute.xlu1 %9673  ;;  %9909 = vmatprep.subr.bf16.mxu0 %v13023_v20 }
 0xfa0   :  { %v9658_v36 = vrot.slane %v9655_v53, 4  ;;  %v9676_v22 = vrot.slane %v9674_v59, 4  ;;  %9910 = vmatpush1.bf16.msra.mxu0 %v13025_v6 }
 0xfa2   :  { %v9661_v40 = vsel %vm9660_vm6, %v9655_v53, %v9658_v36  ;;  %v9679_v21 = vsel %vm9677_vm8, %v9674_v59, %v9676_v22  ;;  %v13026_v54 = vld [vmem:[#allocation3 + $0xc4] ss:$24 sps:$4 sm:$0xff]   ;;  %v13028_v14 = vld [vmem:[#allocation3 + $0xc0] ss:$24 sps:$4 sm:$0xff]   ;;  %vm10228_vm8 = vcmask 617792  }
 0xfa3   :  { %9665 = vst.msk [vmem:[#allocation3 + $0x30] sm:$0xff] %vm19909_vm15, %v9661_v40  ;;  %9683 = vst.msk [vmem:[#allocation3 + $0x78] sm:$0xff] %vm19909_vm15, %v9679_v21  ;;  %v9636_v24 = vpop.permute.xlu0 %9635  ;;  %v9657_v60 = vpop.permute.xlu1 %9656  ;;  %9911 = vmatprep.subr.bf16.mxu0 %v13026_v54 }
 0xfa4   :  { %v9639_v13 = vrot.slane %v9636_v24, 4  ;;  %v9659_v5 = vrot.slane %v9657_v60, 4  ;;  %9912 = vmatpush1.bf16.msra.mxu0 %v13028_v14 }
 0xfa6   :  { %v9642_v26 = vsel %vm9641_vm9, %v9636_v24, %v9639_v13  ;;  %v9662_v4 = vsel %vm9660_vm6, %v9657_v60, %v9659_v5  ;;  %v13029_v49 = vld [vmem:[#allocation3 + $0x94] ss:$24 sps:$4 sm:$0xff]   ;;  %v13031_v41 = vld [vmem:[#allocation3 + $0x90] ss:$24 sps:$4 sm:$0xff]   ;;  %vm10356_vm6 = vcmask 912992  }
 0xfa7   :  { %9648 = vst.msk [vmem:[#allocation3] sm:$0xff] %vm19909_vm15, %v9642_v26  ;;  %9666 = vst.msk [vmem:[#allocation3 + $0x48] sm:$0xff] %vm19909_vm15, %v9662_v4  ;;  %v9771_v55 = vpop.permute.xlu0 %9770  ;;  %v9638_v35 = vpop.permute.xlu1 %9637  ;;  %9913 = vmatprep.subr.bf16.mxu0 %v13029_v49  ;;  %v10006_v49 = vld [vmem:[%s20332_s7] sm:$0xff] }
 0xfa8   :  { %v9774_v19 = vrot.slane %v9771_v55, 4  ;;  %v9640_v58 = vrot.slane %v9638_v35, 4  ;;  %9914 = vmatpush1.bf16.msra.mxu0 %v13031_v41 }
 0xfaa   :  { %v9777_v50 = vsel %vm9776_vm10, %v9771_v55, %v9774_v19  ;;  %v9643_v44 = vsel %vm9641_vm9, %v9638_v35, %v9640_v58  ;;  %v13032_v12 = vld [vmem:[#allocation3 + $0x64] ss:$24 sps:$4 sm:$0xff]   ;;  %v13034_v23 = vld [vmem:[#allocation3 + $0x60] ss:$24 sps:$4 sm:$0xff]   ;;  %v10014_v35 = vld [vmem:[%s20333_s11] sm:$0xff] }
 0xfab   :  { %9781 = vst.msk [vmem:[#allocation3 + $0x180] sm:$0xff] %vm19909_vm15, %v9777_v50  ;;  %9649 = vst.msk [vmem:[#allocation3 + $0x18] sm:$0xff] %vm19909_vm15, %v9643_v44  ;;  %v9773_v57 = vpop.permute.xlu1 %9772  ;;  %9915 = vmatprep.subr.bf16.mxu0 %v13032_v12  ;;  %v10007_v19 = vld [vmem:[%s20332_s7 + $0x8] sm:$0xff]  ;;  %s13122_s7 = smov 28  }
 0xfac   :  { %v9775_v39 = vrot.slane %v9773_v57, 4  ;;  %9916 = vmatpush1.bf16.msra.mxu0 %v13034_v23  ;;  %v10015_v23 = vld [vmem:[%s20333_s11 + $0x8] sm:$0xff] }
 0xfae   :  { %v9778_v61 = vsel %vm9776_vm10, %v9773_v57, %v9775_v39  ;;  %v13035_v25 = vld [vmem:[#allocation3 + $0x34] ss:$24 sps:$4 sm:$0xff]   ;;  %v13037_v62 = vld [vmem:[#allocation3 + $0x30] ss:$24 sps:$4 sm:$0xff]   ;;  %vm11082_vm10 = vcmask 523264  }
 0xfaf   :  { %9782 = vst.msk [vmem:[#allocation3 + $0x198] sm:$0xff] %vm19909_vm15, %v9778_v61  ;;  %9917 = vmatprep.subr.bf16.mxu0 %v13035_v25  ;;  %vm10098_vm15 = vcmask 965632  }
 0xfb0   :  { %9918 = vmatpush1.bf16.msra.mxu0 %v13037_v62 }
 0xfb2   :  { %v13038_v29 = vld [vmem:[#allocation3 + $0x4] ss:$24 sps:$4 sm:$0xff]   ;;  %v13040_v45 = vld [vmem:[#allocation3] ss:$24 sps:$4 sm:$0xff]  }
 0xfb3   :  { %9919 = vmatprep.subr.bf16.mxu0 %v13038_v29 }
 0xfb4   :  { %9920 = vmatpush1.bf16.msra.mxu0 %v13040_v45 }
 0xfb6   :  { %v13041_v16 = vld [vmem:[#allocation3 + $0x184] ss:$24 sps:$4 sm:$0xff]   ;;  %v13043_v15 = vld [vmem:[#allocation3 + $0x180] ss:$24 sps:$4 sm:$0xff]  }
 0xfb7   :  { %9935 = vmatprep.subr.bf16.mxu0 %v13041_v16 }
 0xfb8   :  { %9936 = vmatpush2.bf16.msra.mxu0 %v13043_v15 }
 0xfb9   :  { %10556 = vmatprep.subr.bf16.mxu0 %v21236_v18 }
 0xfbb   :  { %9938 = vmatmul.mubr.bf16.vlgmr.msra.gmra.mxu0 %v13046_v10 }
0x107b   :  { %v19970_v33 = vpop.f32.mrf.mxu0 }
0x107c   :  { %v9973_v51 = vsel %vm9971_vm4, %v19970_v33, 0.0 }
0x107d   :  { %v9941_v2 = vpop.f32.mrf.mxu0  ;;  %v9988_v3 = vmul.f32 %v9973_v51, %v19970_v33 }
0x107e   :  { %9950 = vst.msk [vmem:[#allocation4 + $0x8] sm:$0xff] %vm9949_vm14, %v9941_v2 }
0x107f   :  { %9954 = vst.msk [vmem:[#allocation4 + $0x8] sm:$0xff] %vm9953_vm2, %v21245_v11  ;;  %v19976_v42 = vpop.f32.mrf.mxu0 }
0x1080   :  { %v9975_v47 = vsel %vm9971_vm4, %v19976_v42, 0.0 }
0x1081   :  { %v9945_v8 = vpop.f32.mrf.mxu0  ;;  %v9990_v20 = vmul.f32 %v9975_v47, %v19976_v42 }
0x1082   :  { %9952 = vst.msk [vmem:[#allocation4 + $0xa0] sm:$0xff] %vm9949_vm14, %v9945_v8 }
0x1083   :  { %9955 = vst.msk [vmem:[#allocation4 + $0xa0] sm:$0xff] %vm9953_vm2, %v21245_v11 }
0x1086   :  { %v9957_v38 = vld [vmem:[#allocation4 + $0x8] sm:$0xff] }
0x1087   :  { %v9974_v9 = vsel %vm9972_vm13, %v9957_v38, 0.0 }
0x1088   :  { %v9977_v32 = vsel %vm9949_vm14, %v9974_v9, 0.0  ;;  %v9989_v31 = vmul.f32 %v9974_v9, %v9957_v38 }
0x1089   :  { %v9978_v7 = vadd.f32 %v9977_v32, %v9973_v51 }
0x108a   :  { %v9992_v28 = vsel %vm9949_vm14, %v9989_v31, 0.0  ;;  %v9959_v34 = vld [vmem:[#allocation4 + $0xa0] sm:$0xff] }
0x108b   :  { %9979 = vadd.xlane.f32.xlu0 %v9978_v7  ;;  %v9976_v48 = vsel %vm9972_vm13, %v9959_v34, 0.0  ;;  %v9993_v1 = vadd.f32 %v9992_v28, %v9988_v3  ;;  %v13049_v31 = vld [vmem:[%s20334_s19 + $0x20] sm:$0xff]   ;;  %v13050_v28 = vld [vmem:[%s20334_s19 + $0x18] sm:$0xff]   ;;  %v13051_v3 = vld [vmem:[%s20334_s19 + $0x10] sm:$0xff]  }
0x108c   :  { %v9981_v56 = vsel %vm9949_vm14, %v9976_v48, 0.0  ;;  %v9991_v17 = vmul.f32 %v9976_v48, %v9959_v34 }
0x108d   :  { %v9982_v43 = vadd.f32 %v9981_v56, %v9975_v47  ;;  %v13052_v47 = vld [vmem:[%s20334_s19 + $0x8] sm:$0xff]  }
0x108e   :  { %v9996_v37 = vsel %vm9949_vm14, %v9991_v17, 0.0 }
0x108f   :  { %9994 = vadd.xlane.f32.xlu0 %v9993_v1  ;;  %9983 = vadd.xlane.f32.xlu1 %v9982_v43  ;;  %v9997_v6 = vadd.f32 %v9996_v37, %v9990_v20  ;;  %v13053_v20 = vld [vmem:[%s20334_s19] sm:$0xff]  }
0x1093   :  { %9998 = vadd.xlane.f32.xlu0 %v9997_v6 }
0x1114   :  { %v9980_v53 = vpop.xlane.xlu0 %9979 }
0x1115   :  { %v9986_v59 = vmul.f32 0.0078125, %v9980_v53 }
0x1117   :  { %v10002_v40 = vmul.f32 %v9986_v59, %v9986_v59 }
0x1118   :  { %v9995_v36 = vpop.xlane.xlu0 %9994  ;;  %v9984_v22 = vpop.xlane.xlu1 %9983 }
0x1119   :  { %v10000_v21 = vmul.f32 0.0078125, %v9995_v36  ;;  %v9987_v54 = vmul.f32 0.0078125, %v9984_v22 }
0x111b   :  { %v10004_v14 = vsub.f32 %v10000_v21, %v10002_v40  ;;  %v10003_v13 = vmul.f32 %v9987_v54, %v9987_v54 }
0x111c   :  { %v9999_v24 = vpop.xlane.xlu0 %9998 }
0x111d   :  { %v10008_v60 = vadd.f32 1e-05, %v10004_v14  ;;  %v10001_v5 = vmul.f32 0.0078125, %v9999_v24 }
0x111f   :  { %13081 = vrsqrt.f32 %v10008_v60  ;;  %v10005_v26 = vsub.f32 %v10001_v5, %v10003_v13 }
0x1121   :  { %v10009_v4 = vadd.f32 1e-05, %v10005_v26  ;;  %v13054_v26 = vld [vmem:[%s20334_s19 + $0x30] ss:$0 sps:$4 sm:$0x33]  }
0x1123   :  { %13083 = vrsqrt.f32 %v10009_v4 }
0x112c   :  { %v13082_v41 = vpop.eup %13081 }
0x112d   :  { %v10012_v55 = vmul.f32 %v13082_v41, %v10006_v49 }
0x112f   :  { %10022 = vperm.xlu1 %12362, %v10012_v55   ;;  %v10016_v58 = vmul.f32 %v10012_v55, %v9986_v59  ;;  %v10301_v55 = vsel %vm21278_vm5, %v13054_v26, 0 }
0x1130   :  { %v13084_v50 = vpop.eup %13083 }
0x1131   :  { %v10018_v44 = vsub.f32 %v10014_v35, %v10016_v58  ;;  %v10013_v12 = vmul.f32 %v13084_v50, %v10007_v19  ;;  %v13055_v35 = vld [vmem:[%s20334_s19 + $0x28] sm:$0xff]  }
0x1133   :  { %10036 = vperm.xlu1 %12362, %v10018_v44   ;;  %10027 = vperm.xlu0 %12361, %v10013_v12   ;;  %v10017_v57 = vmul.f32 %v10013_v12, %v9987_v54  ;;  %v13056_v44 = vld [vmem:[%s20334_s19 + $0x20] sm:$0xff]   ;;  %v13057_v12 = vld [vmem:[%s20334_s19 + $0x18] sm:$0xff]  }
0x1135   :  { %v10019_v39 = vsub.f32 %v10015_v23, %v10017_v57  ;;  %v13058_v23 = vld [vmem:[%s20334_s19 + $0x10] sm:$0xff]   ;;  %v13059_v57 = vld [vmem:[%s20334_s19 + $0x8] sm:$0xff]  }
0x1137   :  { %10041 = vperm.xlu1 %12362, %v10019_v39   ;;  %v13060_v39 = vld [vmem:[%s20334_s19] sm:$0xff]  }
0x11aa   :  { %v10023_v61 = vpop.permute.xlu1 %10022 }
0x11ab   :  { %v10030_v25 = vmul.f32 %v10023_v61, %v19970_v33  ;;  %v10031_v62 = vmul.f32 %v10023_v61, %v9957_v38  ;;  %v13047_v33 = vld [vmem:[%s20334_s19 + $0x30] ss:$0 sps:$4 sm:$0x33]   ;;  %v13048_v38 = vld [vmem:[%s20334_s19 + $0x28] sm:$0xff]   ;;  %s13123_s19 = smov 76  }
0x11ae   :  { %v10028_v29 = vpop.permute.xlu0 %10027  ;;  %v10037_v45 = vpop.permute.xlu1 %10036 }
0x11af   :  { %v10044_v16 = vadd.f32 %v10037_v45, %v10030_v25  ;;  %v10045_v15 = vadd.f32 %v10037_v45, %v10031_v62  ;;  %v10032_v10 = vmul.f32 %v10028_v29, %v19976_v42  ;;  %v10033_v46 = vmul.f32 %v10028_v29, %v9959_v34 }
0x11b0   :  { %v10173_v42 = vsel %vm21277_vm11, %v13047_v33, 0 }
0x11b1   :  { %v10048_v2 = vmax.f32 %v10044_v16, 0.0  ;;  %v10049_v63 = vmax.f32 %v10045_v15, 0.0  ;;  %12183 = vmatpush3.bf16.msra.mxu1 %v10173_v42 }
0x11b2   :  { %v10042_v27 = vpop.permute.xlu1 %10041  ;;  %12184 = vmatprep.subr.bf16.mxu1 %v21245_v11 }
0x11b3   :  { %10053 = vst.msk [vmem:[#allocation4 + $0x8] sm:$0xff] %vm9949_vm14, %v10049_v63  ;;  %v10046_v8 = vadd.f32 %v10042_v27, %v10032_v10  ;;  %v10047_v52 = vadd.f32 %v10042_v27, %v10033_v46  ;;  %10064 = vrot.lane.b32.xlu0 %v10048_v2, %s13090_s24 }
0x11b5   :  { %v10050_v9 = vmax.f32 %v10046_v8, 0.0  ;;  %v10051_v51 = vmax.f32 %v10047_v52, 0.0  ;;  %12185 = vmatpush3.bf16.msra.mxu1 %v13048_v38 }
0x11b6   :  { %12186 = vmatprep.subr.bf16.mxu1 %v21245_v11 }
0x11b7   :  { %10055 = vst.msk [vmem:[#allocation4 + $0xa0] sm:$0xff] %vm9949_vm14, %v10051_v51  ;;  %10068 = vrot.lane.b32.xlu0 %v10050_v9, %s13090_s24 }
0x11b9   :  { %12187 = vmatpush3.bf16.msra.mxu1 %v13049_v31 }
0x11ba   :  { %v10057_v32 = vld [vmem:[#allocation4 + $0x8] sm:$0xff]  ;;  %12188 = vmatprep.subr.bf16.mxu1 %v21245_v11 }
0x11bb   :  { %10066 = vrot.lane.b32.xlu1 %v10057_v32, %s13090_s24 }
0x11bd   :  { %12189 = vmatpush3.bf16.msra.mxu1 %v13050_v28 }
0x11be   :  { %v10059_v7 = vld [vmem:[#allocation4 + $0xa0] sm:$0xff]  ;;  %12190 = vmatprep.subr.bf16.mxu1 %v21245_v11 }
0x11bf   :  { %10070 = vrot.lane.b32.xlu1 %v10059_v7, %s13090_s24 }
0x11c1   :  { %12191 = vmatpush3.bf16.msra.mxu1 %v13051_v3 }
0x11c2   :  { %12192 = vmatprep.subr.bf16.mxu1 %v21245_v11 }
0x11c5   :  { %12193 = vmatpush3.bf16.msra.mxu1 %v13052_v47 }
0x11c6   :  { %12194 = vmatprep.subr.bf16.mxu1 %v21245_v11 }
0x11c9   :  { %12195 = vmatpush3.bf16.msra.mxu1 %v13053_v20 }
0x11ca   :  { %12200 = vmatprep.subr.bf16.mxu1 %v21245_v11 }
0x1225   :  { %v10065_v34 = vpop.permute.xlu0 %10064 }
0x1229   :  { %v10069_v43 = vpop.permute.xlu0 %10068 }
0x122d   :  { %v10067_v48 = vpop.permute.xlu1 %10066 }
0x122e   :  { %v10072_v56 = vsel %vm394_vm0, %v10065_v34, %v10067_v48  ;;  %v10083_v17 = vmax.f32 %v10057_v32, %v10067_v48  ;;  %v10079_v36 = vmax.f32 %v10049_v63, %v10067_v48 }
0x122f   :  { %v10078_v1 = vmax.f32 %v10048_v2, %v10072_v56 }
0x1230   :  { %10092 = vrot.lane.b32.xlu1 %v10083_v17, %s13121_s17 }
0x1231   :  { %10090 = vrot.lane.b32.xlu0 %v10078_v1, %s13121_s17  ;;  %v10071_v37 = vpop.permute.xlu1 %10070 }
0x1232   :  { %v10073_v6 = vsel %vm394_vm0, %v10069_v43, %v10071_v37  ;;  %v10085_v53 = vmax.f32 %v10059_v7, %v10071_v37  ;;  %v10081_v14 = vmax.f32 %v10051_v51, %v10071_v37  ;;  %vm10168_vm0 = vcmask 818176  }
0x1233   :  { %v10080_v59 = vmax.f32 %v10050_v9, %v10073_v6 }
0x1234   :  { %10096 = vrot.lane.b32.xlu1 %v10085_v53, %s13121_s17 }
0x1235   :  { %10094 = vrot.lane.b32.xlu0 %v10080_v59, %s13121_s17 }
0x12a2   :  { %v10093_v22 = vpop.permute.xlu1 %10092 }
0x12a3   :  { %v10106_v40 = vmax.f32 %v10079_v36, %v10093_v22  ;;  %v10091_v21 = vpop.permute.xlu0 %10090  ;;  %v13070_v36 = vld [vmem:[%s20335_s4 + $0x4] ss:$8 sps:$4 sm:$0xff]  }
0x12a4   :  { %v10099_v54 = vsel %vm10098_vm15, %v10091_v21, %v10093_v22  ;;  %11798 = vmatprep.mubr.msk.bf16.mxu0 %vm8531_vm1, %v13070_v36  ;;  %v10637_v36 = vld [vmem:[%s20337_s8 + $0x8] sm:$0xff] }
0x12a5   :  { %10110 = vst.msk [vmem:[#allocation4 + $0x8] sm:$0xff] %vm9949_vm14, %v10106_v40  ;;  %v10105_v24 = vmax.f32 %v10078_v1, %v10099_v54 }
0x12a6   :  { %v10097_v60 = vpop.permute.xlu1 %10096 }
0x12a7   :  { %10109 = vst [vmem:[#allocation4] sm:$0xff] %v10105_v24  ;;  %v10108_v13 = vmax.f32 %v10081_v14, %v10097_v60  ;;  %v10095_v5 = vpop.permute.xlu0 %10094 }
0x12a8   :  { %v10100_v4 = vsel %vm10098_vm15, %v10095_v5, %v10097_v60 }
0x12a9   :  { %10112 = vst.msk [vmem:[#allocation4 + $0xa0] sm:$0xff] %vm9949_vm14, %v10108_v13  ;;  %v10107_v49 = vmax.f32 %v10080_v59, %v10100_v4 }
0x12ab   :  { %10111 = vst [vmem:[#allocation4 + $0x98] sm:$0xff] %v10107_v49  ;;  %v10235_v41 = vpack.c.bf16 %v10107_v49, %v10105_v24 }
0x12ac   :  { %v10232_v19 = vld [vmem:[#allocation4 + $0x8] sm:$0xff] }
0x12ad   :  { %10252 = vrot.lane.b32.xlu0 %v10235_v41, %s13122_s7  ;;  %12197 = vmatmul.mubr.msk.bf16.vlgmr.msra.gmra.mxu1 %vm10168_vm0, %v10235_v41 }
0x12ae   :  { %12201 = vmatpush3.bf16.msra.mxu1 %v10301_v55  ;;  %12214 = vmatprep.mubr.msk.bf16.mxu1 %vm13113_vm12, %v21245_v11  ;;  %vm10256_vm12 = vcmask 228352  }
0x12af   :  { %12202 = vmatprep.subr.bf16.mxu1 %v21245_v11 }
0x12b0   :  { %v10234_v58 = vld [vmem:[#allocation4 + $0xa0] sm:$0xff] }
0x12b1   :  { %v10236_v50 = vpack.c.bf16 %v10234_v58, %v10232_v19 }
0x12b2   :  { %12203 = vmatpush3.bf16.msra.mxu1 %v13055_v35 }
0x12b3   :  { %10254 = vrot.lane.b32.xlu1 %v10236_v50, %s13122_s7  ;;  %12204 = vmatprep.subr.bf16.mxu1 %v21245_v11 }
0x12b6   :  { %12205 = vmatpush3.bf16.msra.mxu1 %v13056_v44 }
0x12b7   :  { %12206 = vmatprep.subr.bf16.mxu1 %v21245_v11 }
0x12ba   :  { %12207 = vmatpush3.bf16.msra.mxu1 %v13057_v12 }
0x12bb   :  { %12208 = vmatprep.subr.bf16.mxu1 %v21245_v11 }
0x12be   :  { %12209 = vmatpush3.bf16.msra.mxu1 %v13058_v23 }
0x12bf   :  { %12210 = vmatprep.subr.bf16.mxu1 %v21245_v11 }
0x12c2   :  { %12211 = vmatpush3.bf16.msra.mxu1 %v13059_v57 }
0x12c3   :  { %12212 = vmatprep.subr.bf16.mxu1 %v21245_v11 }
0x12c6   :  { %12213 = vmatpush3.bf16.msra.mxu1 %v13060_v39 }
0x131f   :  { %v10253_v25 = vpop.permute.xlu0 %10252 }
0x1325   :  { %v10255_v61 = vpop.permute.xlu1 %10254 }
0x1326   :  { %v10257_v62 = vsel %vm10256_vm12, %v10253_v25, %v10255_v61 }
0x1327   :  { %12215 = vmatmul.mubr.msk.bf16.vlgmr.msra.gmra.mxu1 %vm10168_vm0, %v10257_v62 }
0x136d   :  { %v10209_v29 = vpop.f32.mrf.mxu1 }
0x136e   :  { %v11848_v45 = vpack.c.bf16 %v10209_v29, %v10209_v29 }
0x136f   :  { %v12198_v16 = vpop.f32.mrf.mxu1 }
0x1370   :  { %10222 = vrot.lane.b32.xlu0 %v11848_v45, %s13101_s27  ;;  %v13072_v45 = vld [vmem:[%s20335_s4] ss:$8 sps:$4 sm:$0xff]  }
0x1371   :  { %v10212_v15 = vpop.f32.mrf.mxu1  ;;  %v10603_v16 = vld [vmem:[%s20336_s16] sm:$0x1] }
0x1372   :  { %v11849_v10 = vpack.c.bf16 %v10212_v15, %v10212_v15  ;;  %vm10604_vm1 = vcmp.gt.f32.partialorder %v10603_v16, 0.5  ;;  %v11805_v16 = vld [vmem:[%s20339_s20 + $0x68] sm:$0xff] }
0x1373   :  { %v12199_v46 = vpop.f32.mrf.mxu1 }
0x1374   :  { %10224 = vrot.lane.b32.xlu1 %v11849_v10, %s13101_s27  ;;  %s13124_s27 = smov 82   ;;  %v10605_v10 = vsel %vm10604_vm1, 1, %v21236_v18 }
0x13e2   :  { %v10223_v2 = vpop.permute.xlu0 %10222 }
0x13e3   :  { %10229 = vst.msk [vmem:[#allocation2] sm:$0xf] %vm10228_vm8, %v10223_v2  ;;  %v10609_v2 = vrot.slane %v10605_v10, %v21247_v30  ;;  %v11804_v10 = vld [vmem:[%s20339_s20 + $0x60] sm:$0xff] }
0x13e5   :  { %vm10610_vm9 = vcmp.eq.s32.totalorder %v10609_v2, 1  ;;  %v11803_v2 = vld [vmem:[%s20339_s20 + $0x58] sm:$0xff] }
0x13e6   :  { %v10225_v63 = vpop.permute.xlu1 %10224 }
0x13e7   :  { %v10337_v27 = vpop.f32.mrf.mxu1  ;;  %10230 = vst.msk [vmem:[#allocation2 + $0x18] sm:$0xf] %vm10228_vm8, %v10225_v63 }
0x13e8   :  { %v11850_v8 = vpack.c.bf16 %v10337_v27, %v10337_v27 }
0x13e9   :  { %v12216_v52 = vpop.f32.mrf.mxu1 }
0x13ea   :  { %10350 = vrot.lane.b32.xlu0 %v11850_v8, %s13123_s19 }
0x13eb   :  { %v10340_v9 = vpop.f32.mrf.mxu1 }
0x13ec   :  { %v11851_v51 = vpack.c.bf16 %v10340_v9, %v10340_v9 }
0x13ed   :  { %v12217_v33 = vpop.f32.mrf.mxu1 }
0x13ee   :  { %10352 = vrot.lane.b32.xlu1 %v11851_v51, %s13123_s19 }
0x145c   :  { %v10351_v42 = vpop.permute.xlu0 %10350 }
0x145d   :  { %10357 = vst.msk [vmem:[#allocation2] sm:$0xf] %vm10356_vm6, %v10351_v42 }
0x145e   :  { %10359 = vst.msk [vmem:[#allocation2] sm:$0xff] %vm19888_vm3, %v21236_v18 }
0x1460   :  { %v10353_v38 = vpop.permute.xlu1 %10352 }
0x1461   :  { %10358 = vst.msk [vmem:[#allocation2 + $0x18] sm:$0xf] %vm10356_vm6, %v10353_v38 }
0x1462   :  { %10360 = vst.msk [vmem:[#allocation2 + $0x18] sm:$0xff] %vm19888_vm3, %v21236_v18  ;;  %vm10371_vm3 = vcmask 584704  }
0x1465   :  { %v10446_v32 = vld [vmem:[#allocation2] sm:$0xf] }
0x1466   :  { %10450 = vrot.lane.b32.xlu0 %v10446_v32, %s13124_s27  ;;  %v10434_v31 = vld [vmem:[#allocation2] sm:$0xf] }
0x1467   :  { %v10422_v34 = vld [vmem:[#allocation2] sm:$0xf] }
0x1468   :  { %v10410_v48 = vld [vmem:[#allocation2] sm:$0xf] }
0x1469   :  { %v10447_v7 = vld [vmem:[#allocation2 + $0x18] sm:$0xf]  ;;  %v10398_v47 = vld [vmem:[#allocation2] sm:$0xf] }
0x146a   :  { %10452 = vrot.lane.b32.xlu1 %v10447_v7, %s13124_s27  ;;  %10438 = vrot.lane.b32.xlu0 %v10434_v31, %s13125_s5  ;;  %v10435_v28 = vld [vmem:[#allocation2 + $0x18] sm:$0xf]  ;;  %v10386_v17 = vld [vmem:[#allocation2] sm:$0xf] }
0x146b   :  { %v10423_v3 = vld [vmem:[#allocation2 + $0x18] sm:$0xf]  ;;  %v10374_v43 = vld [vmem:[#allocation2] sm:$0xf] }
0x146c   :  { %v10411_v0 = vld [vmem:[#allocation2 + $0x18] sm:$0xf]  ;;  %v10361_v20 = vld [vmem:[#allocation2] sm:$0xf] }
0x146d   :  { %v10399_v56 = vld [vmem:[#allocation2 + $0x18] sm:$0xf]  ;;  %v10458_v53 = vld [vmem:[#allocation2] sm:$0xf] }
0x146e   :  { %10440 = vrot.lane.b32.xlu1 %v10435_v28, %s13125_s5  ;;  %10426 = vrot.lane.b32.xlu0 %v10422_v34, %s13105_s14  ;;  %v10387_v1 = vld [vmem:[#allocation2 + $0x18] sm:$0xf] }
0x146f   :  { %v10375_v37 = vld [vmem:[#allocation2 + $0x18] sm:$0xf] }
0x1470   :  { %v10362_v6 = vld [vmem:[#allocation2 + $0x18] sm:$0xf] }
0x1471   :  { %v10459_v59 = vld [vmem:[#allocation2 + $0x18] sm:$0xf] }
0x1472   :  { %10428 = vrot.lane.b32.xlu1 %v10423_v3, %s13105_s14  ;;  %10414 = vrot.lane.b32.xlu0 %v10410_v48, %s13106_s2  ;;  %s13126_s14 = smov 95  }
0x1476   :  { %10416 = vrot.lane.b32.xlu1 %v10411_v0, %s13106_s2  ;;  %10402 = vrot.lane.b32.xlu0 %v10398_v47, %s13107_s13  ;;  %s13127_s2 = smov 81  }
0x147a   :  { %10404 = vrot.lane.b32.xlu1 %v10399_v56, %s13107_s13  ;;  %10390 = vrot.lane.b32.xlu0 %v10386_v17, %s21279_s0 }
0x147e   :  { %10392 = vrot.lane.b32.xlu1 %v10387_v1, %s21279_s0  ;;  %10378 = vrot.lane.b32.xlu0 %v10374_v43, %s21280_s1 }
0x1482   :  { %10380 = vrot.lane.b32.xlu1 %v10375_v37, %s21280_s1  ;;  %10365 = vrot.lane.b32.xlu0 %v10361_v20, %s13126_s14  ;;  %v10636_v20 = vld [vmem:[%s20337_s8] sm:$0xff] }
0x1486   :  { %10367 = vrot.lane.b32.xlu1 %v10362_v6, %s13126_s14  ;;  %10462 = vrot.lane.b32.xlu0 %v10458_v53, %s13127_s2 }
0x148a   :  { %10464 = vrot.lane.b32.xlu1 %v10459_v59, %s13127_s2  ;;  %v10644_v59 = vld [vmem:[%s20338_s12] sm:$0xff]  ;;  %s13128_s2 = smov 122  }
0x14d8   :  { %v10451_v22 = vpop.permute.xlu0 %10450 }
0x14d9   :  { %10456 = vst.msk [vmem:[#allocation3 + $0x150] sm:$0xf] %vm10371_vm3, %v10451_v22 }
0x14dc   :  { %v10453_v40 = vpop.permute.xlu1 %10452  ;;  %v10439_v21 = vpop.permute.xlu0 %10438 }
0x14dd   :  { %10457 = vst.msk [vmem:[#allocation3 + $0x168] sm:$0xf] %vm10371_vm3, %v10453_v40  ;;  %10444 = vst.msk [vmem:[#allocation3 + $0x120] sm:$0xf] %vm10371_vm3, %v10439_v21 }
0x14e0   :  { %v10441_v54 = vpop.permute.xlu1 %10440  ;;  %v10427_v14 = vpop.permute.xlu0 %10426 }
0x14e1   :  { %10445 = vst.msk [vmem:[#allocation3 + $0x138] sm:$0xf] %vm10371_vm3, %v10441_v54  ;;  %10432 = vst.msk [vmem:[#allocation3 + $0xf0] sm:$0xf] %vm10371_vm3, %v10427_v14  ;;  %v10645_v14 = vld [vmem:[%s20338_s12 + $0x8] sm:$0xff] }
0x14e4   :  { %v10429_v24 = vpop.permute.xlu1 %10428  ;;  %v13061_v60 = vld [vmem:[#allocation3 + $0x150] ss:$24 sps:$4 sm:$0xff]   ;;  %v10415_v13 = vpop.permute.xlu0 %10414 }
0x14e5   :  { %10433 = vst.msk [vmem:[#allocation3 + $0x108] sm:$0xf] %vm10371_vm3, %v10429_v24  ;;  %10420 = vst.msk [vmem:[#allocation3 + $0xc0] sm:$0xf] %vm10371_vm3, %v10415_v13  ;;  %10557 = vmatpush1.bf16.msra.mxu0 %v13061_v60 }
0x14e6   :  { %10558 = vmatprep.subr.bf16.mxu0 %v21236_v18 }
0x14e8   :  { %v10417_v5 = vpop.permute.xlu1 %10416  ;;  %v13062_v26 = vld [vmem:[#allocation3 + $0x120] ss:$24 sps:$4 sm:$0xff]   ;;  %v10403_v4 = vpop.permute.xlu0 %10402 }
0x14e9   :  { %10421 = vst.msk [vmem:[#allocation3 + $0xd8] sm:$0xf] %vm10371_vm3, %v10417_v5  ;;  %10408 = vst.msk [vmem:[#allocation3 + $0x90] sm:$0xf] %vm10371_vm3, %v10403_v4  ;;  %10559 = vmatpush1.bf16.msra.mxu0 %v13062_v26 }
0x14ea   :  { %10560 = vmatprep.subr.bf16.mxu0 %v21236_v18 }
0x14ec   :  { %v10405_v49 = vpop.permute.xlu1 %10404  ;;  %v13063_v41 = vld [vmem:[#allocation3 + $0xf0] ss:$24 sps:$4 sm:$0xff]   ;;  %v10391_v55 = vpop.permute.xlu0 %10390 }
0x14ed   :  { %10409 = vst.msk [vmem:[#allocation3 + $0xa8] sm:$0xf] %vm10371_vm3, %v10405_v49  ;;  %10396 = vst.msk [vmem:[#allocation3 + $0x60] sm:$0xf] %vm10371_vm3, %v10391_v55  ;;  %10561 = vmatpush1.bf16.msra.mxu0 %v13063_v41 }
0x14ee   :  { %10562 = vmatprep.subr.bf16.mxu0 %v21236_v18 }
0x14f0   :  { %v10393_v35 = vpop.permute.xlu1 %10392  ;;  %v13064_v19 = vld [vmem:[#allocation3 + $0xc0] ss:$24 sps:$4 sm:$0xff]   ;;  %v10379_v58 = vpop.permute.xlu0 %10378 }
0x14f1   :  { %10397 = vst.msk [vmem:[#allocation3 + $0x78] sm:$0xf] %vm10371_vm3, %v10393_v35  ;;  %10384 = vst.msk [vmem:[#allocation3 + $0x30] sm:$0xf] %vm10371_vm3, %v10379_v58  ;;  %10563 = vmatpush1.bf16.msra.mxu0 %v13064_v19 }
0x14f2   :  { %10564 = vmatprep.subr.bf16.mxu0 %v21236_v18 }
0x14f4   :  { %v10381_v50 = vpop.permute.xlu1 %10380  ;;  %v13065_v44 = vld [vmem:[#allocation3 + $0x90] ss:$24 sps:$4 sm:$0xff]   ;;  %v10366_v12 = vpop.permute.xlu0 %10365 }
0x14f5   :  { %10385 = vst.msk [vmem:[#allocation3 + $0x48] sm:$0xf] %vm10371_vm3, %v10381_v50  ;;  %10372 = vst.msk [vmem:[#allocation3] sm:$0xf] %vm10371_vm3, %v10366_v12  ;;  %10565 = vmatpush1.bf16.msra.mxu0 %v13065_v44  ;;  %v10714_v50 = vld [vmem:[%s20339_s20 + $0x40] sm:$0xff]  ;;  %v11809_v44 = vld [vmem:[%s20339_s20 + $0x88] sm:$0xff] }
0x14f6   :  { %10566 = vmatprep.subr.bf16.mxu0 %v21236_v18  ;;  %v10713_v12 = vld [vmem:[%s20339_s20 + $0x38] sm:$0xff]  ;;  %12218 = vmatprep.subr.mxu1 %v10714_v50 }
0x14f7   :  { %12219 = vmatpush3.msra.mxu1 %v10714_v50 }
0x14f8   :  { %v10368_v23 = vpop.permute.xlu1 %10367  ;;  %v13066_v57 = vld [vmem:[#allocation3 + $0x60] ss:$24 sps:$4 sm:$0xff]   ;;  %v10463_v39 = vpop.permute.xlu0 %10462  ;;  %12220 = vmatprep.subr.mxu1 %v10713_v12 }
0x14f9   :  { %10373 = vst.msk [vmem:[#allocation3 + $0x18] sm:$0xf] %vm10371_vm3, %v10368_v23  ;;  %10468 = vst.msk [vmem:[#allocation3 + $0x180] sm:$0xf] %vm10371_vm3, %v10463_v39  ;;  %10567 = vmatpush1.bf16.msra.mxu0 %v13066_v57  ;;  %v11808_v57 = vld [vmem:[%s20339_s20 + $0x80] sm:$0xff]  ;;  %v10712_v39 = vld [vmem:[%s20339_s20 + $0x30] sm:$0xff]  ;;  %12221 = vmatpush3.msra.mxu1 %v10713_v12 }
0x14fa   :  { %10568 = vmatprep.subr.bf16.mxu0 %v21236_v18  ;;  %12222 = vmatprep.subr.mxu1 %v10712_v39 }
0x14fb   :  { %12223 = vmatpush3.msra.mxu1 %v10712_v39  ;;  %v11061_v39 = vld [vmem:[%s20341_s21 + $0x8] sm:$0x3] }
0x14fc   :  { %v10465_v61 = vpop.permute.xlu1 %10464  ;;  %v13067_v25 = vld [vmem:[#allocation3 + $0x30] ss:$24 sps:$4 sm:$0xff]  }
0x14fd   :  { %10469 = vst.msk [vmem:[#allocation3 + $0x198] sm:$0xf] %vm10371_vm3, %v10465_v61  ;;  %10569 = vmatpush1.bf16.msra.mxu0 %v13067_v25  ;;  %v11807_v61 = vld [vmem:[%s20339_s20 + $0x78] sm:$0xff] }
0x14fe   :  { %10570 = vmatprep.subr.bf16.mxu0 %v21236_v18 }
0x1500   :  { %v13068_v62 = vld [vmem:[#allocation3] ss:$24 sps:$4 sm:$0xff]  }
0x1501   :  { %10571 = vmatpush1.bf16.msra.mxu0 %v13068_v62  ;;  %v10711_v62 = vld [vmem:[%s20339_s20 + $0x28] sm:$0xff] }
0x1502   :  { %10586 = vmatprep.subr.bf16.mxu0 %v21236_v18  ;;  %12224 = vmatprep.subr.mxu1 %v10711_v62 }
0x1503   :  { %12225 = vmatpush3.msra.mxu1 %v10711_v62 }
0x1504   :  { %v13069_v29 = vld [vmem:[#allocation3 + $0x180] ss:$24 sps:$4 sm:$0xff]  }
0x1505   :  { %10587 = vmatpush2.bf16.msra.mxu0 %v13069_v29  ;;  %v11806_v29 = vld [vmem:[%s20339_s20 + $0x70] sm:$0xff] }
0x1506   :  { %12239 = vmatprep.subr.mxu0 %v11809_v44 }
0x1508   :  { %10589 = vmatmul.mubr.bf16.vlgmr.msra.gmra.mxu0 %v13072_v45  ;;  %v10710_v45 = vld [vmem:[%s20339_s20 + $0x20] sm:$0xff] }
0x1509   :  { %12240 = vmatpush3.msra.mxu0 %v11809_v44  ;;  %12226 = vmatprep.subr.mxu1 %v10710_v45 }
0x150a   :  { %12241 = vmatprep.subr.mxu0 %v11808_v57  ;;  %12227 = vmatpush3.msra.mxu1 %v10710_v45 }
0x150b   :  { %12242 = vmatpush3.msra.mxu0 %v11808_v57 }
0x150c   :  { %12243 = vmatprep.subr.mxu0 %v11807_v61 }
0x150d   :  { %12244 = vmatpush3.msra.mxu0 %v11807_v61 }
0x150e   :  { %12245 = vmatprep.subr.mxu0 %v11806_v29 }
0x150f   :  { %12246 = vmatpush3.msra.mxu0 %v11806_v29 }
0x1510   :  { %12247 = vmatprep.subr.mxu0 %v11805_v16 }
0x1511   :  { %12248 = vmatpush3.msra.mxu0 %v11805_v16 }
0x1512   :  { %12249 = vmatprep.subr.mxu0 %v11804_v10 }
0x1513   :  { %12250 = vmatpush3.msra.mxu0 %v11804_v10 }
0x1514   :  { %12251 = vmatprep.subr.mxu0 %v11803_v2 }
0x1515   :  { %12252 = vmatpush3.msra.mxu0 %v11803_v2 }
0x15c8   :  { %v10590_v15 = vpop.f32.mrf.mxu0 }
0x15c9   :  { %10597 = vst.msk [vmem:[#allocation4] sm:$0xff] %vm9949_vm14, %v10590_v15  ;;  %v10709_v15 = vld [vmem:[%s20339_s20 + $0x18] sm:$0xff] }
0x15ca   :  { %10599 = vst.msk [vmem:[#allocation4] sm:$0xff] %vm9953_vm2, %v21245_v11  ;;  %v10592_v46 = vpop.f32.mrf.mxu0  ;;  %12228 = vmatprep.subr.mxu1 %v10709_v15 }
0x15cb   :  { %v10708_v46 = vld [vmem:[%s20339_s20 + $0x10] sm:$0xff]  ;;  %12229 = vmatpush3.msra.mxu1 %v10709_v15 }
0x15cc   :  { %v10593_v63 = vpop.f32.mrf.mxu0  ;;  %12230 = vmatprep.subr.mxu1 %v10708_v46 }
0x15cd   :  { %10598 = vst.msk [vmem:[#allocation4 + $0x98] sm:$0xff] %vm9949_vm14, %v10593_v63  ;;  %v10707_v63 = vld [vmem:[%s20339_s20 + $0x8] sm:$0xff]  ;;  %12231 = vmatpush3.msra.mxu1 %v10708_v46 }
0x15ce   :  { %10600 = vst.msk [vmem:[#allocation4 + $0x98] sm:$0xff] %vm9953_vm2, %v21245_v11  ;;  %v10595_v27 = vpop.f32.mrf.mxu0  ;;  %12232 = vmatprep.subr.mxu1 %v10707_v63 }
0x15cf   :  { %v11802_v27 = vld [vmem:[%s20339_s20 + $0x50] sm:$0xff]  ;;  %12233 = vmatpush3.msra.mxu1 %v10707_v63 }
0x15d0   :  { %12253 = vmatprep.subr.mxu0 %v11802_v27 }
0x15d1   :  { %v10601_v8 = vld [vmem:[#allocation4] sm:$0xff]  ;;  %12254 = vmatpush3.msra.mxu0 %v11802_v27 }
0x15d2   :  { %v10611_v52 = vsel %vm10610_vm9, %v10601_v8, 0.0 }
0x15d3   :  { %v10613_v18 = vsel %vm9949_vm14, %v10611_v52, 0.0  ;;  %v10622_v9 = vmul.f32 %v10611_v52, %v10601_v8  ;;  %v10706_v52 = vld [vmem:[%s20339_s20] sm:$0xff] }
0x15d4   :  { %10614 = vadd.xlane.f32.xlu0 %v10613_v18  ;;  %12234 = vmatprep.subr.mxu1 %v10706_v52 }
0x15d5   :  { %v10624_v51 = vsel %vm9949_vm14, %v10622_v9, 0.0  ;;  %v10602_v33 = vld [vmem:[#allocation4 + $0x98] sm:$0xff]  ;;  %v11801_v9 = vld [vmem:[%s20339_s20 + $0x48] sm:$0xff]  ;;  %12235 = vmatpush3.msra.mxu1 %v10706_v52 }
0x15d6   :  { %v10612_v42 = vsel %vm10610_vm9, %v10602_v33, 0.0  ;;  %12255 = vmatprep.subr.mxu0 %v11801_v9 }
0x15d7   :  { %v10616_v30 = vsel %vm9949_vm14, %v10612_v42, 0.0  ;;  %v10623_v38 = vmul.f32 %v10612_v42, %v10602_v33  ;;  %12256 = vmatpush3.msra.mxu0 %v11801_v9 }
0x15d8   :  { %10625 = vadd.xlane.f32.xlu0 %v10624_v51  ;;  %10617 = vadd.xlane.f32.xlu1 %v10616_v30  ;;  %v11820_v51 = vld [vmem:[%s20339_s20 + $0xd0] sm:$0xff]  ;;  %v11070_v30 = vld [vmem:[%s20340_s22] sm:$0xff] }
0x15d9   :  { %v10627_v32 = vsel %vm9949_vm14, %v10623_v38, 0.0  ;;  %12260 = vmatprep.subr.mxu1 %v11820_v51 }
0x15dc   :  { %10628 = vadd.xlane.f32.xlu0 %v10627_v32  ;;  %v11071_v32 = vld [vmem:[%s20340_s22 + $0x8] sm:$0x3] }
0x165d   :  { %v10615_v11 = vpop.xlane.xlu0 %10614 }
0x165e   :  { %v10620_v31 = vmul.f32 0.03125, %v10615_v11 }
0x1660   :  { %v10632_v34 = vmul.f32 %v10620_v31, %v10620_v31 }
0x1661   :  { %v10626_v7 = vpop.xlane.xlu0 %10625  ;;  %v10618_v28 = vpop.xlane.xlu1 %10617 }
0x1662   :  { %v10630_v3 = vmul.f32 0.03125, %v10626_v7  ;;  %v10621_v48 = vmul.f32 0.03125, %v10618_v28 }
0x1664   :  { %v10634_v0 = vsub.f32 %v10630_v3, %v10632_v34  ;;  %v10633_v47 = vmul.f32 %v10621_v48, %v10621_v48 }
0x1665   :  { %v10629_v56 = vpop.xlane.xlu0 %10628 }
0x1666   :  { %v10638_v17 = vadd.f32 1e-05, %v10634_v0  ;;  %v10631_v1 = vmul.f32 0.03125, %v10629_v56  ;;  %v11830_v56 = vld [vmem:[%s20339_s20 + $0x110] sm:$0xff] }
0x1668   :  { %13085 = vrsqrt.f32 %v10638_v17  ;;  %v10635_v43 = vsub.f32 %v10631_v1, %v10633_v47  ;;  %v11819_v47 = vld [vmem:[%s20339_s20 + $0xc8] sm:$0xff]  ;;  %v11818_v17 = vld [vmem:[%s20339_s20 + $0xc0] sm:$0xff] }
0x1669   :  { %v11829_v1 = vld [vmem:[%s20339_s20 + $0x108] sm:$0xff] }
0x166a   :  { %v10639_v37 = vadd.f32 1e-05, %v10635_v43  ;;  %v11817_v43 = vld [vmem:[%s20339_s20 + $0xb8] sm:$0xff] }
0x166c   :  { %13087 = vrsqrt.f32 %v10639_v37  ;;  %v11828_v37 = vld [vmem:[%s20339_s20 + $0x100] sm:$0xff] }
0x1675   :  { %v13086_v6 = vpop.eup %13085 }
0x1676   :  { %v10642_v53 = vmul.f32 %v13086_v6, %v10636_v20  ;;  %v11816_v20 = vld [vmem:[%s20339_s20 + $0xb0] sm:$0xff]  ;;  %v11827_v6 = vld [vmem:[%s20339_s20 + $0xf8] sm:$0xff] }
0x1678   :  { %10652 = vperm.xlu1 %12362, %v10642_v53   ;;  %v10646_v22 = vmul.f32 %v10642_v53, %v10620_v31  ;;  %v11815_v53 = vld [vmem:[%s20339_s20 + $0xa8] sm:$0xff] }
0x1679   :  { %v13088_v40 = vpop.eup %13087 }
0x167a   :  { %v10648_v21 = vsub.f32 %v10644_v59, %v10646_v22  ;;  %v10643_v54 = vmul.f32 %v13088_v40, %v10637_v36  ;;  %v11826_v59 = vld [vmem:[%s20339_s20 + $0xf0] sm:$0xff]  ;;  %v11814_v36 = vld [vmem:[%s20339_s20 + $0xa0] sm:$0xff]  ;;  %v11825_v22 = vld [vmem:[%s20339_s20 + $0xe8] sm:$0xff] }
0x167b   :  { %v11813_v40 = vld [vmem:[%s20339_s20 + $0x98] sm:$0xff] }
0x167c   :  { %10664 = vperm.xlu1 %12362, %v10648_v21   ;;  %10657 = vperm.xlu0 %12361, %v10643_v54   ;;  %v10647_v24 = vmul.f32 %v10643_v54, %v10621_v48  ;;  %v11824_v21 = vld [vmem:[%s20339_s20 + $0xe0] sm:$0xff]  ;;  %v11812_v54 = vld [vmem:[%s20339_s20 + $0x90] sm:$0xff] }
0x167e   :  { %v10649_v60 = vsub.f32 %v10645_v14, %v10647_v24  ;;  %v11823_v14 = vld [vmem:[%s20339_s20 + $0xd8] sm:$0xff]  ;;  %v11060_v24 = vld [vmem:[%s20341_s21] sm:$0xff] }
0x1680   :  { %10669 = vperm.xlu1 %12362, %v10649_v60  }
0x16f3   :  { %v10653_v13 = vpop.permute.xlu1 %10652 }
0x16f4   :  { %v10660_v5 = vmul.f32 %v10653_v13, %v10601_v8 }
0x16f7   :  { %v10658_v26 = vpop.permute.xlu0 %10657  ;;  %v10665_v4 = vpop.permute.xlu1 %10664 }
0x16f8   :  { %v20154_v49 = vadd.f32 %v10665_v4, %v10660_v5  ;;  %v10661_v41 = vmul.f32 %v10658_v26, %v10602_v33  ;;  %v11831_v33 = vld [vmem:[%s20339_s20 + $0x118] sm:$0xff] }
0x16f9   :  { %12281 = vmatprep.subr.mxu0 %v11831_v33 }
0x16fa   :  { %v10674_v55 = vmax.f32 %v20154_v49, 0.0 }
0x16fb   :  { %v10670_v35 = vpop.permute.xlu1 %10669 }
0x16fc   :  { %10676 = vst.msk [vmem:[#allocation4] sm:$0xff] %vm9949_vm14, %v10674_v55  ;;  %v20160_v19 = vadd.f32 %v10670_v35, %v10661_v41 }
0x16fe   :  { %v10675_v58 = vmax.f32 %v20160_v19, 0.0 }
0x1700   :  { %10677 = vst.msk [vmem:[#allocation4 + $0x98] sm:$0xff] %vm9949_vm14, %v10675_v58 }
0x1703   :  { %v10678_v23 = vld [vmem:[#allocation4] sm:$0xff] }
0x1704   :  { %10682 = vrot.lane.b32.xlu0 %v10678_v23, %s13090_s24 }
0x1707   :  { %v10679_v25 = vld [vmem:[#allocation4 + $0x98] sm:$0xff] }
0x1708   :  { %10684 = vrot.lane.b32.xlu1 %v10679_v25, %s13090_s24 }
0x1776   :  { %v10683_v8 = vpop.permute.xlu0 %10682 }
0x1777   :  { %v10690_v18 = vmax.f32 %v10678_v23, %v10683_v8  ;;  %v10688_v11 = vmax.f32 %v10674_v55, %v10683_v8 }
0x1779   :  { %10694 = vrot.lane.b32.xlu0 %v10690_v18, %s13128_s2 }
0x177a   :  { %v10685_v42 = vpop.permute.xlu1 %10684 }
0x177b   :  { %v10691_v38 = vmax.f32 %v10679_v25, %v10685_v42  ;;  %v10689_v28 = vmax.f32 %v10675_v58, %v10685_v42 }
0x177d   :  { %11074 = vperm.xlu0 %12361, %v11070_v30   ;;  %10696 = vrot.lane.b32.xlu1 %v10691_v38, %s13128_s2 }
0x1781   :  { %11079 = vperm.xlu1 %12362, %v11071_v32  }
0x17eb   :  { %v10695_v31 = vpop.permute.xlu0 %10694 }
0x17ec   :  { %v10700_v7 = vmax.f32 %v10688_v11, %v10695_v31 }
0x17ee   :  { %10702 = vst.msk [vmem:[#allocation4] sm:$0xff] %vm9949_vm14, %v10700_v7 }
0x17ef   :  { %v10697_v34 = vpop.permute.xlu1 %10696 }
0x17f0   :  { %v10701_v3 = vmax.f32 %v10689_v28, %v10697_v34 }
0x17f2   :  { %10703 = vst.msk [vmem:[#allocation4 + $0x98] sm:$0xff] %vm9949_vm14, %v10701_v3 }
0x17f5   :  { %v10704_v48 = vld [vmem:[#allocation4] sm:$0xff] }
0x17f6   :  { %12236 = vmatprep.mubr.msk.f32.mxu1 %vm9949_vm14, %v10704_v48  ;;  %12257 = vmatprep.mubr.msk.f32.mxu0 %vm9949_vm14, %v10704_v48 }
0x17f8   :  { %v11075_v29 = vpop.permute.xlu0 %11074 }
0x17f9   :  { %v10705_v0 = vld [vmem:[#allocation4 + $0x98] sm:$0xff] }
0x17fa   :  { %12237 = vmatmul.mubr.msk.f32.vlgmr.msra.gmra.mxu1 %vm9949_vm14, %v10705_v0  ;;  %12258 = vmatmul.mubr.msk.f32.vlgmr.msra.gmra.mxu0 %vm9949_vm14, %v10705_v0 }
0x17fb   :  { %12261 = vmatpush3.msra.mxu1 %v11820_v51  ;;  %12282 = vmatpush3.msra.mxu0 %v11831_v33 }
0x17fc   :  { %12262 = vmatprep.subr.mxu1 %v11819_v47  ;;  %12278 = vmatprep.mubr.msk.f32.mxu1 %vm9949_vm14, %v10704_v48  ;;  %v11080_v61 = vpop.permute.xlu1 %11079 }
0x17fd   :  { %12283 = vmatprep.subr.mxu0 %v11830_v56  ;;  %12299 = vmatprep.mubr.msk.f32.mxu0 %vm9949_vm14, %v10704_v48 }
0x17fe   :  { %12263 = vmatpush3.msra.mxu1 %v11819_v47  ;;  %12284 = vmatpush3.msra.mxu0 %v11830_v56 }
0x17ff   :  { %12264 = vmatprep.subr.mxu1 %v11818_v17  ;;  %12285 = vmatprep.subr.mxu0 %v11829_v1 }
0x1800   :  { %12265 = vmatpush3.msra.mxu1 %v11818_v17  ;;  %12286 = vmatpush3.msra.mxu0 %v11829_v1 }
0x1801   :  { %12266 = vmatprep.subr.mxu1 %v11817_v43  ;;  %12287 = vmatprep.subr.mxu0 %v11828_v37 }
0x1802   :  { %12267 = vmatpush3.msra.mxu1 %v11817_v43  ;;  %12288 = vmatpush3.msra.mxu0 %v11828_v37 }
0x1803   :  { %12268 = vmatprep.subr.mxu1 %v11816_v20  ;;  %12289 = vmatprep.subr.mxu0 %v11827_v6 }
0x1804   :  { %12269 = vmatpush3.msra.mxu1 %v11816_v20  ;;  %12290 = vmatpush3.msra.mxu0 %v11827_v6 }
0x1805   :  { %12270 = vmatprep.subr.mxu1 %v11815_v53  ;;  %12291 = vmatprep.subr.mxu0 %v11826_v59 }
0x1806   :  { %12271 = vmatpush3.msra.mxu1 %v11815_v53  ;;  %12292 = vmatpush3.msra.mxu0 %v11826_v59 }
0x1807   :  { %12272 = vmatprep.subr.mxu1 %v11814_v36  ;;  %12293 = vmatprep.subr.mxu0 %v11825_v22 }
0x1808   :  { %12273 = vmatpush3.msra.mxu1 %v11814_v36  ;;  %12294 = vmatpush3.msra.mxu0 %v11825_v22 }
0x1809   :  { %12274 = vmatprep.subr.mxu1 %v11813_v40  ;;  %12295 = vmatprep.subr.mxu0 %v11824_v21 }
0x180a   :  { %12275 = vmatpush3.msra.mxu1 %v11813_v40  ;;  %12296 = vmatpush3.msra.mxu0 %v11824_v21 }
0x180b   :  { %12276 = vmatprep.subr.mxu1 %v11812_v54  ;;  %12297 = vmatprep.subr.mxu0 %v11823_v14 }
0x180c   :  { %12277 = vmatpush3.msra.mxu1 %v11812_v54  ;;  %12298 = vmatpush3.msra.mxu0 %v11823_v14 }
0x180d   :  { %12279 = vmatmul.mubr.msk.f32.vlgmr.msra.gmra.mxu1 %vm9949_vm14, %v10705_v0  ;;  %12300 = vmatmul.mubr.msk.f32.vlgmr.msra.gmra.mxu0 %vm9949_vm14, %v10705_v0  ;;  %vm11165_vm14 = vcmask 9216  }
0x180e   :  { %12318 = vmatprep.mubr.msk.f32.mxu1 %vm11082_vm10, %v11060_v24 }
0x18ba   :  { %v12238_v60 = vpop.f32.mrf.mxu1  ;;  %v12259_v13 = vpop.f32.mrf.mxu0 }
0x18bb   :  { %10798 = vst.msk [vmem:[#allocation5 + $0x8] sm:$0xff] %vm10796_vm7, %v12238_v60  ;;  %10885 = vst.msk [vmem:[#allocation5 + $0x18] sm:$0xff] %vm10796_vm7, %v12259_v13 }
0x18bc   :  { %v10787_v5 = vpop.f32.mrf.mxu1  ;;  %v10875_v26 = vpop.f32.mrf.mxu0 }
0x18bd   :  { %10797 = vst.msk [vmem:[#allocation5] sm:$0xff] %vm10796_vm7, %v10787_v5  ;;  %10884 = vst.msk [vmem:[#allocation5 + $0x10] sm:$0xff] %vm10796_vm7, %v10875_v26 }
0x18c2   :  { %v11065_v44 = vld [vmem:[#allocation5 + $0x18] sm:$0xff]  ;;  %v11063_v23 = vld [vmem:[#allocation5 + $0x8] sm:$0xff] }
0x18c4   :  { %v11064_v12 = vld [vmem:[#allocation5 + $0x10] sm:$0xff]  ;;  %v11062_v57 = vld [vmem:[#allocation5] sm:$0xff] }
0x18cd   :  { %v12280_v4 = vpop.f32.mrf.mxu1  ;;  %v12301_v49 = vpop.f32.mrf.mxu0 }
0x18ce   :  { %10972 = vst.msk [vmem:[#allocation5 + $0x28] sm:$0xff] %vm10796_vm7, %v12280_v4  ;;  %11059 = vst.msk [vmem:[#allocation5 + $0x38] sm:$0xff] %vm10796_vm7, %v12301_v49 }
0x18cf   :  { %v10962_v41 = vpop.f32.mrf.mxu1  ;;  %v11049_v55 = vpop.f32.mrf.mxu0 }
0x18d0   :  { %10971 = vst.msk [vmem:[#allocation5 + $0x20] sm:$0xff] %vm10796_vm7, %v10962_v41  ;;  %11058 = vst.msk [vmem:[#allocation5 + $0x30] sm:$0xff] %vm10796_vm7, %v11049_v55 }
0x18d5   :  { %v11069_v35 = vld [vmem:[#allocation5 + $0x38] sm:$0xff]  ;;  %v11067_v58 = vld [vmem:[#allocation5 + $0x28] sm:$0xff] }
0x18d6   :  { %12302 = vmatprep.subr.mxu1 %v11069_v35 }
0x18d7   :  { %12303 = vmatpush3.msra.mxu1 %v11069_v35  ;;  %v11068_v19 = vld [vmem:[#allocation5 + $0x30] sm:$0xff]  ;;  %v11066_v50 = vld [vmem:[#allocation5 + $0x20] sm:$0xff] }
0x18d8   :  { %12304 = vmatprep.subr.mxu1 %v11068_v19 }
0x18d9   :  { %12305 = vmatpush3.msra.mxu1 %v11068_v19 }
0x18da   :  { %12306 = vmatprep.subr.mxu1 %v11067_v58 }
0x18db   :  { %12307 = vmatpush3.msra.mxu1 %v11067_v58 }
0x18dc   :  { %12308 = vmatprep.subr.mxu1 %v11066_v50 }
0x18dd   :  { %12309 = vmatpush3.msra.mxu1 %v11066_v50 }
0x18de   :  { %12310 = vmatprep.subr.mxu1 %v11065_v44 }
0x18df   :  { %12311 = vmatpush3.msra.mxu1 %v11065_v44 }
0x18e0   :  { %12312 = vmatprep.subr.mxu1 %v11064_v12 }
0x18e1   :  { %12313 = vmatpush3.msra.mxu1 %v11064_v12 }
0x18e2   :  { %12314 = vmatprep.subr.mxu1 %v11063_v23 }
0x18e3   :  { %12315 = vmatpush3.msra.mxu1 %v11063_v23 }
0x18e4   :  { %12316 = vmatprep.subr.mxu1 %v11062_v57 }
0x18e5   :  { %12317 = vmatpush3.msra.mxu1 %v11062_v57 }
0x18e6   :  { %12319 = vmatmul.mubr.msk.f32.vlgmr.msra.gmra.mxu1 %vm11082_vm10, %v11061_v39 }
0x19a6   :  { %v12320_v25 = vpop.f32.mrf.mxu1 }
0x19a7   :  { %v11161_v62 = vadd.f32 %v12320_v25, %v11080_v61 }
0x19a8   :  { %v11155_v45 = vpop.f32.mrf.mxu1 }
0x19a9   :  { %11166 = vst.msk [vmem:[%s20342_s23 + $0x8] sm:$0x3] %vm11165_vm14, %v11161_v62  ;;  %v11156_v16 = vadd.f32 %v11155_v45, %v11075_v29 }
0x19ab   :  { %11164 = vst.msk [vmem:[%s20342_s23] sm:$0xff] %vm10796_vm7, %v11156_v16 }

</bundles_post_ra>
